<compile_context>
chip_gen: v6e
topology: v6e:2x2x1
jax: 0.10.0
libtpu: 0.0.40
codegen_flags: <defaults>
</compile_context>

<pallas_src>
import functools

import jax
import jax.numpy as jnp
from jax.experimental import pallas as pl
from jax.experimental.pallas import tpu as pltpu


def _rup(x, m):
    return ((x + m - 1) // m) * m


# ---------------------------------------------------------------------------
# Pallas kernels
# ---------------------------------------------------------------------------

def _conv_kernel(*refs, relu, has_res):
    """Tap-accumulated conv GEMM with fused (bias+BN) affine, ReLU, residual."""
    if has_res:
        a_ref, w_ref, s_ref, t_ref, r_ref, o_ref, acc_ref = refs
    else:
        a_ref, w_ref, s_ref, t_ref, o_ref, acc_ref = refs
        r_ref = None

    t = pl.program_id(1)

    @pl.when(t == 0)
    def _():
        acc_ref[...] = jnp.zeros_like(acc_ref)

    acc_ref[...] += jnp.dot(a_ref[0], w_ref[0],
                            preferred_element_type=jnp.float32)

    @pl.when(t == pl.num_programs(1) - 1)
    def _():
        # bias already folded into (scale, shift): y = acc*scale + shift
        y = acc_ref[...] * s_ref[...] + t_ref[...]
        if relu:
            y = jnp.maximum(y, 0.0)
        if has_res:
            y = y + r_ref[...]
        o_ref[...] = y.astype(o_ref.dtype)


def _affine_kernel(x_ref, s_ref, t_ref, o_ref, *, relu):
    y = x_ref[...] * s_ref[...] + t_ref[...]
    if relu:
        y = jnp.maximum(y, 0.0)
    o_ref[...] = y.astype(o_ref.dtype)


def _head_kernel(x_ref, s_ref, t_ref, w_ref, b_ref, o_ref, *, inv_hw):
    # fused: BN affine + ReLU + global average pool + linear + bias
    y = jnp.maximum(x_ref[...] * s_ref[...] + t_ref[...], 0.0)   # (N, HW, C)
    pooled = jnp.sum(y, axis=1) * inv_hw                          # (N, C)
    o_ref[...] = (jnp.dot(pooled, w_ref[...],
                          preferred_element_type=jnp.float32) + b_ref[...])


# ---------------------------------------------------------------------------
# Wrappers
# ---------------------------------------------------------------------------

def conv2d_fused(x, w_oihw, bias, *, stride=1, padding=1,
                 scale=None, shift=None, relu=False, residual=None,
                 out_dtype=jnp.float32):
    """Conv2d (PyTorch OIHW weights) on NHWC input as a tap-accumulated Pallas
    GEMM with a fused epilogue:  out = relu?((conv(x)+bias)*scale + shift) + residual."""
    N, H, W, Cin = x.shape
    Cout, Cin2, KH, KW = w_oihw.shape
    assert Cin2 == Cin
    Ho = (H + 2 * padding - KH) // stride + 1
    Wo = (W + 2 * padding - KW) // stride + 1
    M = N * Ho * Wo
    T = KH * KW

    xp = x
    if padding:
        xp = jnp.pad(x, ((0, 0), (padding, padding), (padding, padding), (0, 0)))
    xp = xp.astype(jnp.bfloat16)

    # Per-tap shifted/strided views (each only Cin wide); streamed tap-by-tap
    # through the GEMM grid instead of a concatenated 9*Cin im2col matrix.
    taps = [xp[:, kh:kh + stride * Ho:stride, kw:kw + stride * Wo:stride, :]
            .reshape(M, Cin)
            for kh in range(KH) for kw in range(KW)]
    a = jnp.stack(taps, axis=0)                                   # (T, M, Cin) bf16

    wt = (jnp.transpose(w_oihw, (2, 3, 1, 0))
          .reshape(T, Cin, Cout).astype(jnp.bfloat16))            # (T, Cin, Cout)

    if scale is None:
        scale = jnp.ones((Cout,), jnp.float32)
    if shift is None:
        shift = jnp.zeros((Cout,), jnp.float32)
    scale = scale.astype(jnp.float32)
    # fold conv bias into the affine: (acc + b)*s + t = acc*s + (b*s + t)
    shift = bias.astype(jnp.float32) * scale + shift.astype(jnp.float32)
    s2 = scale.reshape(1, Cout)
    t2 = shift.reshape(1, Cout)

    # adaptive M tiling (no padding M=32/128 up to 128)
    Mp = _rup(M, 8)
    if Mp <= 512:
        tm = Mp
    else:
        tm = 512
        Mp = _rup(M, tm)
    if Mp != M:
        a = jnp.pad(a, ((0, 0), (0, Mp - M), (0, 0)))

    has_res = residual is not None
    inputs = [a, wt, s2, t2]
    in_specs = [
        pl.BlockSpec((1, tm, Cin), lambda i, t: (t, i, 0)),
        pl.BlockSpec((1, Cin, Cout), lambda i, t: (t, 0, 0)),
        pl.BlockSpec((1, Cout), lambda i, t: (0, 0)),
        pl.BlockSpec((1, Cout), lambda i, t: (0, 0)),
    ]
    if has_res:
        r = residual.astype(jnp.float32)
        if Mp != M:
            r = jnp.pad(r, ((0, Mp - M), (0, 0)))
        inputs.append(r)
        in_specs.append(pl.BlockSpec((tm, Cout), lambda i, t: (i, 0)))

    out = pl.pallas_call(
        functools.partial(_conv_kernel, relu=relu, has_res=has_res),
        out_shape=jax.ShapeDtypeStruct((Mp, Cout), out_dtype),
        grid=(Mp // tm, T),
        in_specs=in_specs,
        out_specs=pl.BlockSpec((tm, Cout), lambda i, t: (i, 0)),
        scratch_shapes=[pltpu.VMEM((tm, Cout), jnp.float32)],
        compiler_params=pltpu.CompilerParams(
            dimension_semantics=("parallel", "arbitrary")),
    )(*inputs)

    if Mp != M:
        out = out[:M]
    return out.reshape(N, Ho, Wo, Cout)


def batchnorm_relu(x_nhwc, bn, relu=True, eps=1e-5, out_dtype=jnp.bfloat16):
    """Eval-mode BN folded to per-channel affine (+ optional ReLU)."""
    gamma, beta, mean, var = bn
    s = gamma / jnp.sqrt(var + eps)
    t = beta - mean * s
    N, H, W, C = x_nhwc.shape
    R = N * H * W
    x2 = x_nhwc.reshape(R, C)

    Rb = min(_rup(R, 8), 2048)
    Rp = _rup(R, Rb)
    if Rp != R:
        x2 = jnp.pad(x2, ((0, Rp - R), (0, 0)))

    out = pl.pallas_call(
        functools.partial(_affine_kernel, relu=relu),
        out_shape=jax.ShapeDtypeStruct((Rp, C), out_dtype),
        grid=(Rp // Rb,),
        in_specs=[pl.BlockSpec((Rb, C), lambda i: (i, 0)),
                  pl.BlockSpec((1, C), lambda i: (0, 0)),
                  pl.BlockSpec((1, C), lambda i: (0, 0))],
        out_specs=pl.BlockSpec((Rb, C), lambda i: (i, 0)),
        compiler_params=pltpu.CompilerParams(
            dimension_semantics=("parallel",)),
    )(x2.astype(jnp.float32),
      s.reshape(1, C).astype(jnp.float32),
      t.reshape(1, C).astype(jnp.float32))

    if Rp != R:
        out = out[:R]
    return out.reshape(N, H, W, C)


def head(x_nhwc, bn, lin_w, lin_b, eps=1e-5):
    """Fused final BN + ReLU + adaptive_avg_pool2d(1,1) + Linear."""
    gamma, beta, mean, var = bn
    s = gamma / jnp.sqrt(var + eps)
    t = beta - mean * s
    N, H, W, C = x_nhwc.shape
    HW = H * W
    ncls = lin_b.shape[0]
    out = pl.pallas_call(
        functools.partial(_head_kernel, inv_hw=1.0 / float(HW)),
        out_shape=jax.ShapeDtypeStruct((N, ncls), jnp.float32),
    )(x_nhwc.reshape(N, HW, C).astype(jnp.float32),
      s.reshape(1, C).astype(jnp.float32),
      t.reshape(1, C).astype(jnp.float32),
      lin_w.T.astype(jnp.float32),
      lin_b.reshape(1, ncls).astype(jnp.float32))
    return out


# ---------------------------------------------------------------------------
# Model
# ---------------------------------------------------------------------------

def wide_basic(x, blk, eps=1e-5):
    stride = blk["stride"]

    # pre-activation (bn1 + relu); raw x is still needed for the shortcut path
    pre = batchnorm_relu(x, blk["bn1"], relu=True, out_dtype=jnp.bfloat16)

    # conv1 + bias, fused with bn2 + relu (dropout is identity in eval mode)
    gamma, beta, mean, var = blk["bn2"]
    s2 = gamma / jnp.sqrt(var + eps)
    t2 = beta - mean * s2
    h = conv2d_fused(pre, blk["conv1_w"], blk["conv1_b"], stride=1, padding=1,
                     scale=s2, shift=t2, relu=True, out_dtype=jnp.bfloat16)

    # shortcut branch (raw block input)
    if "short_w" in blk:
        sc4 = conv2d_fused(x, blk["short_w"], blk["short_b"], stride=stride,
                           padding=0, out_dtype=jnp.float32)
        Ns, Hs, Ws, Cs = sc4.shape
        sc = sc4.reshape(Ns * Hs * Ws, Cs)
    else:
        Nn, Hn, Wn, Cn = x.shape
        sc = x.reshape(Nn * Hn * Wn, Cn).astype(jnp.float32)

    # conv2 + bias, residual add fused into the epilogue
    out = conv2d_fused(h, blk["conv2_w"], blk["conv2_b"], stride=stride,
                       padding=1, residual=sc, out_dtype=jnp.float32)
    return out


def wideresnet_forward(x_nchw, params):
    x = jnp.transpose(x_nchw, (0, 2, 3, 1)).astype(jnp.float32)   # NCHW -> NHWC
    out = conv2d_fused(x, params["conv1_w"], params["conv1_b"],
                       stride=1, padding=1, out_dtype=jnp.float32)
    for blk in params["layer1"]:
        out = wide_basic(out, blk)
    for blk in params["layer2"]:
        out = wide_basic(out, blk)
    for blk in params["layer3"]:
        out = wide_basic(out, blk)
    logits = head(out, params["bn_final"], params["linear_w"], params["linear_b"])
    return logits


# ---------------------------------------------------------------------------
# Deterministic parameter initialization (shapes follow WideResNet.__init__)
# ---------------------------------------------------------------------------

def init_params(key, depth=10, widen_factor=1, num_classes=10):
    assert (depth - 4) % 6 == 0, "Wide-resnet depth should be 6n+4"
    n = (depth - 4) // 6
    k = widen_factor
    nStages = [16, 16 * k, 32 * k, 64 * k]
    keys = iter(jax.random.split(key, 512))

    def conv_init(cout, cin, kh, kw):
        fan_in = cin * kh * kw
        w = jax.random.normal(next(keys), (cout, cin, kh, kw),
                              jnp.float32) / jnp.sqrt(float(fan_in))
        b = 0.01 * jax.random.normal(next(keys), (cout,), jnp.float32)
        return w, b

    def bn_init(c):
        gamma = 1.0 + 0.1 * jax.random.normal(next(keys), (c,), jnp.float32)
        beta = 0.1 * jax.random.normal(next(keys), (c,), jnp.float32)
        mean = 0.1 * jax.random.normal(next(keys), (c,), jnp.float32)
        var = 1.0 + 0.1 * jax.random.uniform(next(keys), (c,), jnp.float32)
        return (gamma, beta, mean, var)

    params = {}
    params["conv1_w"], params["conv1_b"] = conv_init(nStages[0], 3, 3, 3)
    in_planes = [nStages[0]]

    def make_layer(planes, num_blocks, stride):
        blocks = []
        strides = [stride] + [1] * (num_blocks - 1)
        for s in strides:
            blk = {"stride": s}
            blk["bn1"] = bn_init(in_planes[0])
            blk["conv1_w"], blk["conv1_b"] = conv_init(planes, in_planes[0], 3, 3)
            blk["bn2"] = bn_init(planes)
            blk["conv2_w"], blk["conv2_b"] = conv_init(planes, planes, 3, 3)
            if s != 1 or in_planes[0] != planes:
                blk["short_w"], blk["short_b"] = conv_init(planes, in_planes[0], 1, 1)
            blocks.append(blk)
            in_planes[0] = planes
        return blocks

    params["layer1"] = make_layer(nStages[1], n, 1)
    params["layer2"] = make_layer(nStages[2], n, 2)
    params["layer3"] = make_layer(nStages[3], n, 2)
    params["bn_final"] = bn_init(nStages[3])
    params["linear_w"] = jax.random.normal(
        next(keys), (num_classes, nStages[3]), jnp.float32) / jnp.sqrt(float(nStages[3]))
    params["linear_b"] = 0.01 * jax.random.normal(next(keys), (num_classes,), jnp.float32)
    return params


if __name__ == "__main__":
    key = jax.random.PRNGKey(0)
    kx, kp = jax.random.split(key)
    # batch=2, 3 input channels, 16x16 spatial, depth=10, widen=1, 10 classes
    x = jax.random.normal(kx, (2, 3, 16, 16), jnp.float32)  # NCHW, like PyTorch
    params = init_params(kp, depth=10, widen_factor=1, num_classes=10)

    fwd = jax.jit(lambda inp: wideresnet_forward(inp, params))
    logits = fwd(x)
    jax.block_until_ready(logits)
    assert logits.shape == (2, 10), logits.shape
    assert bool(jnp.all(jnp.isfinite(logits)))
    print("KERNEL_OK")
</pallas_src>

<mosaic_0001>
module attributes {stable_mosaic.version = 11 : i64} {
  func.func @_conv_kernel(%arg0: i32, %arg1: i32, %arg2: memref<1x512x3xbf16, #tpu.memory_space<vmem>>, %arg3: memref<1x3x16xbf16, #tpu.memory_space<vmem>>, %arg4: memref<1x16xf32, #tpu.memory_space<vmem>>, %arg5: memref<1x16xf32, #tpu.memory_space<vmem>>, %arg6: memref<512x16xf32, #tpu.memory_space<vmem>>, %arg7: memref<512x16xf32, #tpu.memory_space<vmem>>) attributes {dimension_semantics = [#tpu.dimension_semantics<parallel>, #tpu.dimension_semantics<arbitrary>], iteration_bounds = array<i64: 1, 9>, scalar_prefetch = 0 : i64, scratch_operands = 1 : i64, tpu.core_type = #tpu.core_type<tc>, window_params = [{transform_indices = @transform_0, window_bounds = array<i64: 1, 512, 3>}, {transform_indices = @transform_1, window_bounds = array<i64: 1, 3, 16>}, {pipeline_mode = #tpu.pipeline_mode<synchronous>, transform_indices = @transform_2, window_bounds = array<i64: 1, 16>}, {pipeline_mode = #tpu.pipeline_mode<synchronous>, transform_indices = @transform_3, window_bounds = array<i64: 1, 16>}, {transform_indices = @transform_4, window_bounds = array<i64: 512, 16>}]} {
    %c0_i32 = arith.constant 0 : i32
    %0 = arith.cmpi eq, %arg1, %c0_i32 : i32
    %1 = arith.extui %0 : i1 to i32
    %c0_i32_0 = arith.constant 0 : i32
    %2 = arith.cmpi ne, %1, %c0_i32_0 : i32
    scf.if %2 {
      %cst_11 = arith.constant 0.000000e+00 : f32
      %14 = vector.broadcast %cst_11 : f32 to vector<512x16xf32>
      %c0_12 = arith.constant 0 : index
      %c0_13 = arith.constant 0 : index
      %15 = vector.load %arg7[%c0_12, %c0_13] : memref<512x16xf32, #tpu.memory_space<vmem>>, vector<512x16xf32>
      tpu.vector_store %arg7[%c0_12, %c0_13], %14 {strides = array<i32>} : memref<512x16xf32, #tpu.memory_space<vmem>>, vector<512x16xf32>,
    } else {
    }
    %c0 = arith.constant 0 : index
    %c0_1 = arith.constant 0 : index
    %3 = vector.load %arg7[%c0, %c0_1] : memref<512x16xf32, #tpu.memory_space<vmem>>, vector<512x16xf32>
    %c0_2 = arith.constant 0 : index
    %c0_3 = arith.constant 0 : index
    %c0_4 = arith.constant 0 : index
    %4 = vector.load %arg2[%c0_2, %c0_3, %c0_4] : memref<1x512x3xbf16, #tpu.memory_space<vmem>>, vector<1x512x3xbf16>
    %5 = vector.shape_cast %4 : vector<1x512x3xbf16> to vector<512x3xbf16>
    %c0_5 = arith.constant 0 : index
    %c0_6 = arith.constant 0 : index
    %c0_7 = arith.constant 0 : index
    %6 = vector.load %arg3[%c0_5, %c0_6, %c0_7] : memref<1x3x16xbf16, #tpu.memory_space<vmem>>, vector<1x3x16xbf16>
    %7 = vector.shape_cast %6 : vector<1x3x16xbf16> to vector<3x16xbf16>
    %cst = arith.constant dense<0.000000e+00> : vector<512x16xf32>
    %8 = tpu.matmul %5, %7, %cst {dimension_numbers = #tpu.dot_dimension_numbers<[1], [0], [0], [1], [0, 0, 1, 1], [], []>} : vector<512x3xbf16>, vector<3x16xbf16>, vector<512x16xf32> -> vector<512x16xf32>
    %9 = arith.addf %3, %8 : vector<512x16xf32>
    %c0_8 = arith.constant 0 : index
    %c0_9 = arith.constant 0 : index
    %10 = vector.load %arg7[%c0_8, %c0_9] : memref<512x16xf32, #tpu.memory_space<vmem>>, vector<512x16xf32>
    tpu.vector_store %arg7[%c0_8, %c0_9], %9 {strides = array<i32>} : memref<512x16xf32, #tpu.memory_space<vmem>>, vector<512x16xf32>,
    %c8_i32 = arith.constant 8 : i32
    %11 = arith.cmpi eq, %arg1, %c8_i32 : i32
    %12 = arith.extui %11 : i1 to i32
    %c0_i32_10 = arith.constant 0 : i32
    %13 = arith.cmpi ne, %12, %c0_i32_10 : i32
    scf.if %13 {
      %c0_11 = arith.constant 0 : index
      %c0_12 = arith.constant 0 : index
      %14 = vector.load %arg7[%c0_11, %c0_12] : memref<512x16xf32, #tpu.memory_space<vmem>>, vector<512x16xf32>
      %c0_13 = arith.constant 0 : index
      %c0_14 = arith.constant 0 : index
      %15 = vector.load %arg4[%c0_13, %c0_14] : memref<1x16xf32, #tpu.memory_space<vmem>>, vector<1x16xf32>
      %16 = vector.broadcast %15 : vector<1x16xf32> to vector<512x16xf32>
      %17 = arith.mulf %14, %16 : vector<512x16xf32>
      %c0_15 = arith.constant 0 : index
      %c0_16 = arith.constant 0 : index
      %18 = vector.load %arg5[%c0_15, %c0_16] : memref<1x16xf32, #tpu.memory_space<vmem>>, vector<1x16xf32>
      %19 = vector.broadcast %18 : vector<1x16xf32> to vector<512x16xf32>
      %20 = arith.addf %17, %19 : vector<512x16xf32>
      %c0_17 = arith.constant 0 : index
      %c0_18 = arith.constant 0 : index
      %21 = vector.load %arg6[%c0_17, %c0_18] : memref<512x16xf32, #tpu.memory_space<vmem>>, vector<512x16xf32>
      tpu.vector_store %arg6[%c0_17, %c0_18], %20 {strides = array<i32>} : memref<512x16xf32, #tpu.memory_space<vmem>>, vector<512x16xf32>,
    } else {
    }
    return
  }
  func.func @transform_0(%arg0: i32, %arg1: i32) -> (i32, i32, i32) {
    %c0_i32 = arith.constant 0 : i32
    %c0_i32_0 = arith.constant 0 : i32
    return %arg1, %arg0, %c0_i32 : i32, i32, i32
  }
  func.func @transform_1(%arg0: i32, %arg1: i32) -> (i32, i32, i32) {
    %c0_i32 = arith.constant 0 : i32
    %c0_i32_0 = arith.constant 0 : i32
    %c0_i32_1 = arith.constant 0 : i32
    return %arg1, %c0_i32, %c0_i32_0 : i32, i32, i32
  }
  func.func @transform_2(%arg0: i32, %arg1: i32) -> (i32, i32) {
    %c0_i32 = arith.constant 0 : i32
    %c0_i32_0 = arith.constant 0 : i32
    %c0_i32_1 = arith.constant 0 : i32
    return %c0_i32, %c0_i32_0 : i32, i32
  }
  func.func @transform_3(%arg0: i32, %arg1: i32) -> (i32, i32) {
    %c0_i32 = arith.constant 0 : i32
    %c0_i32_0 = arith.constant 0 : i32
    %c0_i32_1 = arith.constant 0 : i32
    return %c0_i32, %c0_i32_0 : i32, i32
  }
  func.func @transform_4(%arg0: i32, %arg1: i32) -> (i32, i32) {
    %c0_i32 = arith.constant 0 : i32
    %c0_i32_0 = arith.constant 0 : i32
    return %arg0, %c0_i32 : i32, i32
  }
}

module attributes {stable_mosaic.version = 11 : i64} {
  func.func @_affine_kernel(%arg0: i32, %arg1: memref<512x16xf32, #tpu.memory_space<vmem>>, %arg2: memref<1x16xf32, #tpu.memory_space<vmem>>, %arg3: memref<1x16xf32, #tpu.memory_space<vmem>>, %arg4: memref<512x16xbf16, #tpu.memory_space<vmem>>) attributes {dimension_semantics = [#tpu.dimension_semantics<parallel>], iteration_bounds = array<i64: 1>, scalar_prefetch = 0 : i64, scratch_operands = 0 : i64, tpu.core_type = #tpu.core_type<tc>, window_params = [{transform_indices = @transform_0, window_bounds = array<i64: 512, 16>}, {pipeline_mode = #tpu.pipeline_mode<synchronous>, transform_indices = @transform_1, window_bounds = array<i64: 1, 16>}, {pipeline_mode = #tpu.pipeline_mode<synchronous>, transform_indices = @transform_2, window_bounds = array<i64: 1, 16>}, {transform_indices = @transform_3, window_bounds = array<i64: 512, 16>}]} {
    %c0 = arith.constant 0 : index
    %c0_0 = arith.constant 0 : index
    %0 = vector.load %arg1[%c0, %c0_0] : memref<512x16xf32, #tpu.memory_space<vmem>>, vector<512x16xf32>
    %c0_1 = arith.constant 0 : index
    %c0_2 = arith.constant 0 : index
    %1 = vector.load %arg2[%c0_1, %c0_2] : memref<1x16xf32, #tpu.memory_space<vmem>>, vector<1x16xf32>
    %2 = vector.broadcast %1 : vector<1x16xf32> to vector<512x16xf32>
    %3 = arith.mulf %0, %2 : vector<512x16xf32>
    %c0_3 = arith.constant 0 : index
    %c0_4 = arith.constant 0 : index
    %4 = vector.load %arg3[%c0_3, %c0_4] : memref<1x16xf32, #tpu.memory_space<vmem>>, vector<1x16xf32>
    %5 = vector.broadcast %4 : vector<1x16xf32> to vector<512x16xf32>
    %6 = arith.addf %3, %5 : vector<512x16xf32>
    %cst = arith.constant 0.000000e+00 : f32
    %7 = vector.broadcast %cst : f32 to vector<512x16xf32>
    %8 = arith.maximumf %6, %7 : vector<512x16xf32>
    %9 = arith.truncf %8 : vector<512x16xf32> to vector<512x16xbf16>
    %c0_5 = arith.constant 0 : index
    %c0_6 = arith.constant 0 : index
    %10 = vector.load %arg4[%c0_5, %c0_6] : memref<512x16xbf16, #tpu.memory_space<vmem>>, vector<512x16xbf16>
    tpu.vector_store %arg4[%c0_5, %c0_6], %9 {strides = array<i32>} : memref<512x16xbf16, #tpu.memory_space<vmem>>, vector<512x16xbf16>,
    return
  }
  func.func @transform_0(%arg0: i32) -> (i32, i32) {
    %c0_i32 = arith.constant 0 : i32
    %c0_i32_0 = arith.constant 0 : i32
    return %arg0, %c0_i32 : i32, i32
  }
  func.func @transform_1(%arg0: i32) -> (i32, i32) {
    %c0_i32 = arith.constant 0 : i32
    %c0_i32_0 = arith.constant 0 : i32
    %c0_i32_1 = arith.constant 0 : i32
    return %c0_i32, %c0_i32_0 : i32, i32
  }
  func.func @transform_2(%arg0: i32) -> (i32, i32) {
    %c0_i32 = arith.constant 0 : i32
    %c0_i32_0 = arith.constant 0 : i32
    %c0_i32_1 = arith.constant 0 : i32
    return %c0_i32, %c0_i32_0 : i32, i32
  }
  func.func @transform_3(%arg0: i32) -> (i32, i32) {
    %c0_i32 = arith.constant 0 : i32
    %c0_i32_0 = arith.constant 0 : i32
    return %arg0, %c0_i32 : i32, i32
  }
}

module attributes {stable_mosaic.version = 11 : i64} {
  func.func @_conv_kernel(%arg0: i32, %arg1: i32, %arg2: memref<1x512x16xbf16, #tpu.memory_space<vmem>>, %arg3: memref<1x16x32xbf16, #tpu.memory_space<vmem>>, %arg4: memref<1x32xf32, #tpu.memory_space<vmem>>, %arg5: memref<1x32xf32, #tpu.memory_space<vmem>>, %arg6: memref<512x32xbf16, #tpu.memory_space<vmem>>, %arg7: memref<512x32xf32, #tpu.memory_space<vmem>>) attributes {dimension_semantics = [#tpu.dimension_semantics<parallel>, #tpu.dimension_semantics<arbitrary>], iteration_bounds = array<i64: 1, 9>, scalar_prefetch = 0 : i64, scratch_operands = 1 : i64, tpu.core_type = #tpu.core_type<tc>, window_params = [{transform_indices = @transform_0, window_bounds = array<i64: 1, 512, 16>}, {transform_indices = @transform_1, window_bounds = array<i64: 1, 16, 32>}, {pipeline_mode = #tpu.pipeline_mode<synchronous>, transform_indices = @transform_2, window_bounds = array<i64: 1, 32>}, {pipeline_mode = #tpu.pipeline_mode<synchronous>, transform_indices = @transform_3, window_bounds = array<i64: 1, 32>}, {transform_indices = @transform_4, window_bounds = array<i64: 512, 32>}]} {
    %c0_i32 = arith.constant 0 : i32
    %0 = arith.cmpi eq, %arg1, %c0_i32 : i32
    %1 = arith.extui %0 : i1 to i32
    %c0_i32_0 = arith.constant 0 : i32
    %2 = arith.cmpi ne, %1, %c0_i32_0 : i32
    scf.if %2 {
      %cst_11 = arith.constant 0.000000e+00 : f32
      %14 = vector.broadcast %cst_11 : f32 to vector<512x32xf32>
      %c0_12 = arith.constant 0 : index
      %c0_13 = arith.constant 0 : index
      %15 = vector.load %arg7[%c0_12, %c0_13] : memref<512x32xf32, #tpu.memory_space<vmem>>, vector<512x32xf32>
      tpu.vector_store %arg7[%c0_12, %c0_13], %14 {strides = array<i32>} : memref<512x32xf32, #tpu.memory_space<vmem>>, vector<512x32xf32>,
    } else {
    }
    %c0 = arith.constant 0 : index
    %c0_1 = arith.constant 0 : index
    %3 = vector.load %arg7[%c0, %c0_1] : memref<512x32xf32, #tpu.memory_space<vmem>>, vector<512x32xf32>
    %c0_2 = arith.constant 0 : index
    %c0_3 = arith.constant 0 : index
    %c0_4 = arith.constant 0 : index
    %4 = vector.load %arg2[%c0_2, %c0_3, %c0_4] : memref<1x512x16xbf16, #tpu.memory_space<vmem>>, vector<1x512x16xbf16>
    %5 = vector.shape_cast %4 : vector<1x512x16xbf16> to vector<512x16xbf16>
    %c0_5 = arith.constant 0 : index
    %c0_6 = arith.constant 0 : index
    %c0_7 = arith.constant 0 : index
    %6 = vector.load %arg3[%c0_5, %c0_6, %c0_7] : memref<1x16x32xbf16, #tpu.memory_space<vmem>>, vector<1x16x32xbf16>
    %7 = vector.shape_cast %6 : vector<1x16x32xbf16> to vector<16x32xbf16>
    %cst = arith.constant dense<0.000000e+00> : vector<512x32xf32>
    %8 = tpu.matmul %5, %7, %cst {dimension_numbers = #tpu.dot_dimension_numbers<[1], [0], [0], [1], [0, 0, 1, 1], [], []>} : vector<512x16xbf16>, vector<16x32xbf16>, vector<512x32xf32> -> vector<512x32xf32>
    %9 = arith.addf %3, %8 : vector<512x32xf32>
    %c0_8 = arith.constant 0 : index
    %c0_9 = arith.constant 0 : index
    %10 = vector.load %arg7[%c0_8, %c0_9] : memref<512x32xf32, #tpu.memory_space<vmem>>, vector<512x32xf32>
    tpu.vector_store %arg7[%c0_8, %c0_9], %9 {strides = array<i32>} : memref<512x32xf32, #tpu.memory_space<vmem>>, vector<512x32xf32>,
    %c8_i32 = arith.constant 8 : i32
    %11 = arith.cmpi eq, %arg1, %c8_i32 : i32
    %12 = arith.extui %11 : i1 to i32
    %c0_i32_10 = arith.constant 0 : i32
    %13 = arith.cmpi ne, %12, %c0_i32_10 : i32
    scf.if %13 {
      %c0_11 = arith.constant 0 : index
      %c0_12 = arith.constant 0 : index
      %14 = vector.load %arg7[%c0_11, %c0_12] : memref<512x32xf32, #tpu.memory_space<vmem>>, vector<512x32xf32>
      %c0_13 = arith.constant 0 : index
      %c0_14 = arith.constant 0 : index
      %15 = vector.load %arg4[%c0_13, %c0_14] : memref<1x32xf32, #tpu.memory_space<vmem>>, vector<1x32xf32>
      %16 = vector.broadcast %15 : vector<1x32xf32> to vector<512x32xf32>
      %17 = arith.mulf %14, %16 : vector<512x32xf32>
      %c0_15 = arith.constant 0 : index
      %c0_16 = arith.constant 0 : index
      %18 = vector.load %arg5[%c0_15, %c0_16] : memref<1x32xf32, #tpu.memory_space<vmem>>, vector<1x32xf32>
      %19 = vector.broadcast %18 : vector<1x32xf32> to vector<512x32xf32>
      %20 = arith.addf %17, %19 : vector<512x32xf32>
      %cst_17 = arith.constant 0.000000e+00 : f32
      %21 = vector.broadcast %cst_17 : f32 to vector<512x32xf32>
      %22 = arith.maximumf %20, %21 : vector<512x32xf32>
      %23 = arith.truncf %22 : vector<512x32xf32> to vector<512x32xbf16>
      %c0_18 = arith.constant 0 : index
      %c0_19 = arith.constant 0 : index
      %24 = vector.load %arg6[%c0_18, %c0_19] : memref<512x32xbf16, #tpu.memory_space<vmem>>, vector<512x32xbf16>
      tpu.vector_store %arg6[%c0_18, %c0_19], %23 {strides = array<i32>} : memref<512x32xbf16, #tpu.memory_space<vmem>>, vector<512x32xbf16>,
    } else {
    }
    return
  }
  func.func @transform_0(%arg0: i32, %arg1: i32) -> (i32, i32, i32) {
    %c0_i32 = arith.constant 0 : i32
    %c0_i32_0 = arith.constant 0 : i32
    return %arg1, %arg0, %c0_i32 : i32, i32, i32
  }
  func.func @transform_1(%arg0: i32, %arg1: i32) -> (i32, i32, i32) {
    %c0_i32 = arith.constant 0 : i32
    %c0_i32_0 = arith.constant 0 : i32
    %c0_i32_1 = arith.constant 0 : i32
    return %arg1, %c0_i32, %c0_i32_0 : i32, i32, i32
  }
  func.func @transform_2(%arg0: i32, %arg1: i32) -> (i32, i32) {
    %c0_i32 = arith.constant 0 : i32
    %c0_i32_0 = arith.constant 0 : i32
    %c0_i32_1 = arith.constant 0 : i32
    return %c0_i32, %c0_i32_0 : i32, i32
  }
  func.func @transform_3(%arg0: i32, %arg1: i32) -> (i32, i32) {
    %c0_i32 = arith.constant 0 : i32
    %c0_i32_0 = arith.constant 0 : i32
    %c0_i32_1 = arith.constant 0 : i32
    return %c0_i32, %c0_i32_0 : i32, i32
  }
  func.func @transform_4(%arg0: i32, %arg1: i32) -> (i32, i32) {
    %c0_i32 = arith.constant 0 : i32
    %c0_i32_0 = arith.constant 0 : i32
    return %arg0, %c0_i32 : i32, i32
  }
}

module attributes {stable_mosaic.version = 11 : i64} {
  func.func @_conv_kernel(%arg0: i32, %arg1: i32, %arg2: memref<1x512x16xbf16, #tpu.memory_space<vmem>>, %arg3: memref<1x16x16xbf16, #tpu.memory_space<vmem>>, %arg4: memref<1x16xf32, #tpu.memory_space<vmem>>, %arg5: memref<1x16xf32, #tpu.memory_space<vmem>>, %arg6: memref<512x16xbf16, #tpu.memory_space<vmem>>, %arg7: memref<512x16xf32, #tpu.memory_space<vmem>>) attributes {dimension_semantics = [#tpu.dimension_semantics<parallel>, #tpu.dimension_semantics<arbitrary>], iteration_bounds = array<i64: 1, 9>, scalar_prefetch = 0 : i64, scratch_operands = 1 : i64, tpu.core_type = #tpu.core_type<tc>, window_params = [{transform_indices = @transform_0, window_bounds = array<i64: 1, 512, 16>}, {transform_indices = @transform_1, window_bounds = array<i64: 1, 16, 16>}, {pipeline_mode = #tpu.pipeline_mode<synchronous>, transform_indices = @transform_2, window_bounds = array<i64: 1, 16>}, {pipeline_mode = #tpu.pipeline_mode<synchronous>, transform_indices = @transform_3, window_bounds = array<i64: 1, 16>}, {transform_indices = @transform_4, window_bounds = array<i64: 512, 16>}]} {
    %c0_i32 = arith.constant 0 : i32
    %0 = arith.cmpi eq, %arg1, %c0_i32 : i32
    %1 = arith.extui %0 : i1 to i32
    %c0_i32_0 = arith.constant 0 : i32
    %2 = arith.cmpi ne, %1, %c0_i32_0 : i32
    scf.if %2 {
      %cst_11 = arith.constant 0.000000e+00 : f32
      %14 = vector.broadcast %cst_11 : f32 to vector<512x16xf32>
      %c0_12 = arith.constant 0 : index
      %c0_13 = arith.constant 0 : index
      %15 = vector.load %arg7[%c0_12, %c0_13] : memref<512x16xf32, #tpu.memory_space<vmem>>, vector<512x16xf32>
      tpu.vector_store %arg7[%c0_12, %c0_13], %14 {strides = array<i32>} : memref<512x16xf32, #tpu.memory_space<vmem>>, vector<512x16xf32>,
    } else {
    }
    %c0 = arith.constant 0 : index
    %c0_1 = arith.constant 0 : index
    %3 = vector.load %arg7[%c0, %c0_1] : memref<512x16xf32, #tpu.memory_space<vmem>>, vector<512x16xf32>
    %c0_2 = arith.constant 0 : index
    %c0_3 = arith.constant 0 : index
    %c0_4 = arith.constant 0 : index
    %4 = vector.load %arg2[%c0_2, %c0_3, %c0_4] : memref<1x512x16xbf16, #tpu.memory_space<vmem>>, vector<1x512x16xbf16>
    %5 = vector.shape_cast %4 : vector<1x512x16xbf16> to vector<512x16xbf16>
    %c0_5 = arith.constant 0 : index
    %c0_6 = arith.constant 0 : index
    %c0_7 = arith.constant 0 : index
    %6 = vector.load %arg3[%c0_5, %c0_6, %c0_7] : memref<1x16x16xbf16, #tpu.memory_space<vmem>>, vector<1x16x16xbf16>
    %7 = vector.shape_cast %6 : vector<1x16x16xbf16> to vector<16x16xbf16>
    %cst = arith.constant dense<0.000000e+00> : vector<512x16xf32>
    %8 = tpu.matmul %5, %7, %cst {dimension_numbers = #tpu.dot_dimension_numbers<[1], [0], [0], [1], [0, 0, 1, 1], [], []>} : vector<512x16xbf16>, vector<16x16xbf16>, vector<512x16xf32> -> vector<512x16xf32>
    %9 = arith.addf %3, %8 : vector<512x16xf32>
    %c0_8 = arith.constant 0 : index
    %c0_9 = arith.constant 0 : index
    %10 = vector.load %arg7[%c0_8, %c0_9] : memref<512x16xf32, #tpu.memory_space<vmem>>, vector<512x16xf32>
    tpu.vector_store %arg7[%c0_8, %c0_9], %9 {strides = array<i32>} : memref<512x16xf32, #tpu.memory_space<vmem>>, vector<512x16xf32>,
    %c8_i32 = arith.constant 8 : i32
    %11 = arith.cmpi eq, %arg1, %c8_i32 : i32
    %12 = arith.extui %11 : i1 to i32
    %c0_i32_10 = arith.constant 0 : i32
    %13 = arith.cmpi ne, %12, %c0_i32_10 : i32
    scf.if %13 {
      %c0_11 = arith.constant 0 : index
      %c0_12 = arith.constant 0 : index
      %14 = vector.load %arg7[%c0_11, %c0_12] : memref<512x16xf32, #tpu.memory_space<vmem>>, vector<512x16xf32>
      %c0_13 = arith.constant 0 : index
      %c0_14 = arith.constant 0 : index
      %15 = vector.load %arg4[%c0_13, %c0_14] : memref<1x16xf32, #tpu.memory_space<vmem>>, vector<1x16xf32>
      %16 = vector.broadcast %15 : vector<1x16xf32> to vector<512x16xf32>
      %17 = arith.mulf %14, %16 : vector<512x16xf32>
      %c0_15 = arith.constant 0 : index
      %c0_16 = arith.constant 0 : index
      %18 = vector.load %arg5[%c0_15, %c0_16] : memref<1x16xf32, #tpu.memory_space<vmem>>, vector<1x16xf32>
      %19 = vector.broadcast %18 : vector<1x16xf32> to vector<512x16xf32>
      %20 = arith.addf %17, %19 : vector<512x16xf32>
      %cst_17 = arith.constant 0.000000e+00 : f32
      %21 = vector.broadcast %cst_17 : f32 to vector<512x16xf32>
      %22 = arith.maximumf %20, %21 : vector<512x16xf32>
      %23 = arith.truncf %22 : vector<512x16xf32> to vector<512x16xbf16>
      %c0_18 = arith.constant 0 : index
      %c0_19 = arith.constant 0 : index
      %24 = vector.load %arg6[%c0_18, %c0_19] : memref<512x16xbf16, #tpu.memory_space<vmem>>, vector<512x16xbf16>
      tpu.vector_store %arg6[%c0_18, %c0_19], %23 {strides = array<i32>} : memref<512x16xbf16, #tpu.memory_space<vmem>>, vector<512x16xbf16>,
    } else {
    }
    return
  }
  func.func @transform_0(%arg0: i32, %arg1: i32) -> (i32, i32, i32) {
    %c0_i32 = arith.constant 0 : i32
    %c0_i32_0 = arith.constant 0 : i32
    return %arg1, %arg0, %c0_i32 : i32, i32, i32
  }
  func.func @transform_1(%arg0: i32, %arg1: i32) -> (i32, i32, i32) {
    %c0_i32 = arith.constant 0 : i32
    %c0_i32_0 = arith.constant 0 : i32
    %c0_i32_1 = arith.constant 0 : i32
    return %arg1, %c0_i32, %c0_i32_0 : i32, i32, i32
  }
  func.func @transform_2(%arg0: i32, %arg1: i32) -> (i32, i32) {
    %c0_i32 = arith.constant 0 : i32
    %c0_i32_0 = arith.constant 0 : i32
    %c0_i32_1 = arith.constant 0 : i32
    return %c0_i32, %c0_i32_0 : i32, i32
  }
  func.func @transform_3(%arg0: i32, %arg1: i32) -> (i32, i32) {
    %c0_i32 = arith.constant 0 : i32
    %c0_i32_0 = arith.constant 0 : i32
    %c0_i32_1 = arith.constant 0 : i32
    return %c0_i32, %c0_i32_0 : i32, i32
  }
  func.func @transform_4(%arg0: i32, %arg1: i32) -> (i32, i32) {
    %c0_i32 = arith.constant 0 : i32
    %c0_i32_0 = arith.constant 0 : i32
    return %arg0, %c0_i32 : i32, i32
  }
}

module attributes {stable_mosaic.version = 11 : i64} {
  func.func @_conv_kernel(%arg0: i32, %arg1: i32, %arg2: memref<1x512x16xbf16, #tpu.memory_space<vmem>>, %arg3: memref<1x16x16xbf16, #tpu.memory_space<vmem>>, %arg4: memref<1x16xf32, #tpu.memory_space<vmem>>, %arg5: memref<1x16xf32, #tpu.memory_space<vmem>>, %arg6: memref<512x16xf32, #tpu.memory_space<vmem>>, %arg7: memref<512x16xf32, #tpu.memory_space<vmem>>, %arg8: memref<512x16xf32, #tpu.memory_space<vmem>>) attributes {dimension_semantics = [#tpu.dimension_semantics<parallel>, #tpu.dimension_semantics<arbitrary>], iteration_bounds = array<i64: 1, 9>, scalar_prefetch = 0 : i64, scratch_operands = 1 : i64, tpu.core_type = #tpu.core_type<tc>, window_params = [{transform_indices = @transform_0, window_bounds = array<i64: 1, 512, 16>}, {transform_indices = @transform_1, window_bounds = array<i64: 1, 16, 16>}, {pipeline_mode = #tpu.pipeline_mode<synchronous>, transform_indices = @transform_2, window_bounds = array<i64: 1, 16>}, {pipeline_mode = #tpu.pipeline_mode<synchronous>, transform_indices = @transform_3, window_bounds = array<i64: 1, 16>}, {transform_indices = @transform_4, window_bounds = array<i64: 512, 16>}, {transform_indices = @transform_5, window_bounds = array<i64: 512, 16>}]} {
    %c0_i32 = arith.constant 0 : i32
    %0 = arith.cmpi eq, %arg1, %c0_i32 : i32
    %1 = arith.extui %0 : i1 to i32
    %c0_i32_0 = arith.constant 0 : i32
    %2 = arith.cmpi ne, %1, %c0_i32_0 : i32
    scf.if %2 {
      %cst_11 = arith.constant 0.000000e+00 : f32
      %14 = vector.broadcast %cst_11 : f32 to vector<512x16xf32>
      %c0_12 = arith.constant 0 : index
      %c0_13 = arith.constant 0 : index
      %15 = vector.load %arg8[%c0_12, %c0_13] : memref<512x16xf32, #tpu.memory_space<vmem>>, vector<512x16xf32>
      tpu.vector_store %arg8[%c0_12, %c0_13], %14 {strides = array<i32>} : memref<512x16xf32, #tpu.memory_space<vmem>>, vector<512x16xf32>,
    } else {
    }
    %c0 = arith.constant 0 : index
    %c0_1 = arith.constant 0 : index
    %3 = vector.load %arg8[%c0, %c0_1] : memref<512x16xf32, #tpu.memory_space<vmem>>, vector<512x16xf32>
    %c0_2 = arith.constant 0 : index
    %c0_3 = arith.constant 0 : index
    %c0_4 = arith.constant 0 : index
    %4 = vector.load %arg2[%c0_2, %c0_3, %c0_4] : memref<1x512x16xbf16, #tpu.memory_space<vmem>>, vector<1x512x16xbf16>
    %5 = vector.shape_cast %4 : vector<1x512x16xbf16> to vector<512x16xbf16>
    %c0_5 = arith.constant 0 : index
    %c0_6 = arith.constant 0 : index
    %c0_7 = arith.constant 0 : index
    %6 = vector.load %arg3[%c0_5, %c0_6, %c0_7] : memref<1x16x16xbf16, #tpu.memory_space<vmem>>, vector<1x16x16xbf16>
    %7 = vector.shape_cast %6 : vector<1x16x16xbf16> to vector<16x16xbf16>
    %cst = arith.constant dense<0.000000e+00> : vector<512x16xf32>
    %8 = tpu.matmul %5, %7, %cst {dimension_numbers = #tpu.dot_dimension_numbers<[1], [0], [0], [1], [0, 0, 1, 1], [], []>} : vector<512x16xbf16>, vector<16x16xbf16>, vector<512x16xf32> -> vector<512x16xf32>
    %9 = arith.addf %3, %8 : vector<512x16xf32>
    %c0_8 = arith.constant 0 : index
    %c0_9 = arith.constant 0 : index
    %10 = vector.load %arg8[%c0_8, %c0_9] : memref<512x16xf32, #tpu.memory_space<vmem>>, vector<512x16xf32>
    tpu.vector_store %arg8[%c0_8, %c0_9], %9 {strides = array<i32>} : memref<512x16xf32, #tpu.memory_space<vmem>>, vector<512x16xf32>,
    %c8_i32 = arith.constant 8 : i32
    %11 = arith.cmpi eq, %arg1, %c8_i32 : i32
    %12 = arith.extui %11 : i1 to i32
    %c0_i32_10 = arith.constant 0 : i32
    %13 = arith.cmpi ne, %12, %c0_i32_10 : i32
    scf.if %13 {
      %c0_11 = arith.constant 0 : index
      %c0_12 = arith.constant 0 : index
      %14 = vector.load %arg8[%c0_11, %c0_12] : memref<512x16xf32, #tpu.memory_space<vmem>>, vector<512x16xf32>
      %c0_13 = arith.constant 0 : index
      %c0_14 = arith.constant 0 : index
      %15 = vector.load %arg4[%c0_13, %c0_14] : memref<1x16xf32, #tpu.memory_space<vmem>>, vector<1x16xf32>
      %16 = vector.broadcast %15 : vector<1x16xf32> to vector<512x16xf32>
      %17 = arith.mulf %14, %16 : vector<512x16xf32>
      %c0_15 = arith.constant 0 : index
      %c0_16 = arith.constant 0 : index
      %18 = vector.load %arg5[%c0_15, %c0_16] : memref<1x16xf32, #tpu.memory_space<vmem>>, vector<1x16xf32>
      %19 = vector.broadcast %18 : vector<1x16xf32> to vector<512x16xf32>
      %20 = arith.addf %17, %19 : vector<512x16xf32>
      %c0_17 = arith.constant 0 : index
      %c0_18 = arith.constant 0 : index
      %21 = vector.load %arg6[%c0_17, %c0_18] : memref<512x16xf32, #tpu.memory_space<vmem>>, vector<512x16xf32>
      %22 = arith.addf %20, %21 : vector<512x16xf32>
      %c0_19 = arith.constant 0 : index
      %c0_20 = arith.constant 0 : index
      %23 = vector.load %arg7[%c0_19, %c0_20] : memref<512x16xf32, #tpu.memory_space<vmem>>, vector<512x16xf32>
      tpu.vector_store %arg7[%c0_19, %c0_20], %22 {strides = array<i32>} : memref<512x16xf32, #tpu.memory_space<vmem>>, vector<512x16xf32>,
    } else {
    }
    return
  }
  func.func @transform_0(%arg0: i32, %arg1: i32) -> (i32, i32, i32) {
    %c0_i32 = arith.constant 0 : i32
    %c0_i32_0 = arith.constant 0 : i32
    return %arg1, %arg0, %c0_i32 : i32, i32, i32
  }
  func.func @transform_1(%arg0: i32, %arg1: i32) -> (i32, i32, i32) {
    %c0_i32 = arith.constant 0 : i32
    %c0_i32_0 = arith.constant 0 : i32
    %c0_i32_1 = arith.constant 0 : i32
    return %arg1, %c0_i32, %c0_i32_0 : i32, i32, i32
  }
  func.func @transform_2(%arg0: i32, %arg1: i32) -> (i32, i32) {
    %c0_i32 = arith.constant 0 : i32
    %c0_i32_0 = arith.constant 0 : i32
    %c0_i32_1 = arith.constant 0 : i32
    return %c0_i32, %c0_i32_0 : i32, i32
  }
  func.func @transform_3(%arg0: i32, %arg1: i32) -> (i32, i32) {
    %c0_i32 = arith.constant 0 : i32
    %c0_i32_0 = arith.constant 0 : i32
    %c0_i32_1 = arith.constant 0 : i32
    return %c0_i32, %c0_i32_0 : i32, i32
  }
  func.func @transform_4(%arg0: i32, %arg1: i32) -> (i32, i32) {
    %c0_i32 = arith.constant 0 : i32
    %c0_i32_0 = arith.constant 0 : i32
    return %arg0, %c0_i32 : i32, i32
  }
  func.func @transform_5(%arg0: i32, %arg1: i32) -> (i32, i32) {
    %c0_i32 = arith.constant 0 : i32
    %c0_i32_0 = arith.constant 0 : i32
    return %arg0, %c0_i32 : i32, i32
  }
}

module attributes {stable_mosaic.version = 11 : i64} {
  func.func @_affine_kernel(%arg0: i32, %arg1: memref<128x32xf32, #tpu.memory_space<vmem>>, %arg2: memref<1x32xf32, #tpu.memory_space<vmem>>, %arg3: memref<1x32xf32, #tpu.memory_space<vmem>>, %arg4: memref<128x32xbf16, #tpu.memory_space<vmem>>) attributes {dimension_semantics = [#tpu.dimension_semantics<parallel>], iteration_bounds = array<i64: 1>, scalar_prefetch = 0 : i64, scratch_operands = 0 : i64, tpu.core_type = #tpu.core_type<tc>, window_params = [{transform_indices = @transform_0, window_bounds = array<i64: 128, 32>}, {pipeline_mode = #tpu.pipeline_mode<synchronous>, transform_indices = @transform_1, window_bounds = array<i64: 1, 32>}, {pipeline_mode = #tpu.pipeline_mode<synchronous>, transform_indices = @transform_2, window_bounds = array<i64: 1, 32>}, {transform_indices = @transform_3, window_bounds = array<i64: 128, 32>}]} {
    %c0 = arith.constant 0 : index
    %c0_0 = arith.constant 0 : index
    %0 = vector.load %arg1[%c0, %c0_0] : memref<128x32xf32, #tpu.memory_space<vmem>>, vector<128x32xf32>
    %c0_1 = arith.constant 0 : index
    %c0_2 = arith.constant 0 : index
    %1 = vector.load %arg2[%c0_1, %c0_2] : memref<1x32xf32, #tpu.memory_space<vmem>>, vector<1x32xf32>
    %2 = vector.broadcast %1 : vector<1x32xf32> to vector<128x32xf32>
    %3 = arith.mulf %0, %2 : vector<128x32xf32>
    %c0_3 = arith.constant 0 : index
    %c0_4 = arith.constant 0 : index
    %4 = vector.load %arg3[%c0_3, %c0_4] : memref<1x32xf32, #tpu.memory_space<vmem>>, vector<1x32xf32>
    %5 = vector.broadcast %4 : vector<1x32xf32> to vector<128x32xf32>
    %6 = arith.addf %3, %5 : vector<128x32xf32>
    %cst = arith.constant 0.000000e+00 : f32
    %7 = vector.broadcast %cst : f32 to vector<128x32xf32>
    %8 = arith.maximumf %6, %7 : vector<128x32xf32>
    %9 = arith.truncf %8 : vector<128x32xf32> to vector<128x32xbf16>
    %c0_5 = arith.constant 0 : index
    %c0_6 = arith.constant 0 : index
    %10 = vector.load %arg4[%c0_5, %c0_6] : memref<128x32xbf16, #tpu.memory_space<vmem>>, vector<128x32xbf16>
    tpu.vector_store %arg4[%c0_5, %c0_6], %9 {strides = array<i32>} : memref<128x32xbf16, #tpu.memory_space<vmem>>, vector<128x32xbf16>,
    return
  }
  func.func @transform_0(%arg0: i32) -> (i32, i32) {
    %c0_i32 = arith.constant 0 : i32
    %c0_i32_0 = arith.constant 0 : i32
    return %arg0, %c0_i32 : i32, i32
  }
  func.func @transform_1(%arg0: i32) -> (i32, i32) {
    %c0_i32 = arith.constant 0 : i32
    %c0_i32_0 = arith.constant 0 : i32
    %c0_i32_1 = arith.constant 0 : i32
    return %c0_i32, %c0_i32_0 : i32, i32
  }
  func.func @transform_2(%arg0: i32) -> (i32, i32) {
    %c0_i32 = arith.constant 0 : i32
    %c0_i32_0 = arith.constant 0 : i32
    %c0_i32_1 = arith.constant 0 : i32
    return %c0_i32, %c0_i32_0 : i32, i32
  }
  func.func @transform_3(%arg0: i32) -> (i32, i32) {
    %c0_i32 = arith.constant 0 : i32
    %c0_i32_0 = arith.constant 0 : i32
    return %arg0, %c0_i32 : i32, i32
  }
}

module attributes {stable_mosaic.version = 11 : i64} {
  func.func @_conv_kernel(%arg0: i32, %arg1: i32, %arg2: memref<1x128x32xbf16, #tpu.memory_space<vmem>>, %arg3: memref<1x32x32xbf16, #tpu.memory_space<vmem>>, %arg4: memref<1x32xf32, #tpu.memory_space<vmem>>, %arg5: memref<1x32xf32, #tpu.memory_space<vmem>>, %arg6: memref<128x32xf32, #tpu.memory_space<vmem>>, %arg7: memref<128x32xf32, #tpu.memory_space<vmem>>, %arg8: memref<128x32xf32, #tpu.memory_space<vmem>>) attributes {dimension_semantics = [#tpu.dimension_semantics<parallel>, #tpu.dimension_semantics<arbitrary>], iteration_bounds = array<i64: 1, 9>, scalar_prefetch = 0 : i64, scratch_operands = 1 : i64, tpu.core_type = #tpu.core_type<tc>, window_params = [{transform_indices = @transform_0, window_bounds = array<i64: 1, 128, 32>}, {transform_indices = @transform_1, window_bounds = array<i64: 1, 32, 32>}, {pipeline_mode = #tpu.pipeline_mode<synchronous>, transform_indices = @transform_2, window_bounds = array<i64: 1, 32>}, {pipeline_mode = #tpu.pipeline_mode<synchronous>, transform_indices = @transform_3, window_bounds = array<i64: 1, 32>}, {transform_indices = @transform_4, window_bounds = array<i64: 128, 32>}, {transform_indices = @transform_5, window_bounds = array<i64: 128, 32>}]} {
    %c0_i32 = arith.constant 0 : i32
    %0 = arith.cmpi eq, %arg1, %c0_i32 : i32
    %1 = arith.extui %0 : i1 to i32
    %c0_i32_0 = arith.constant 0 : i32
    %2 = arith.cmpi ne, %1, %c0_i32_0 : i32
    scf.if %2 {
      %cst_11 = arith.constant 0.000000e+00 : f32
      %14 = vector.broadcast %cst_11 : f32 to vector<128x32xf32>
      %c0_12 = arith.constant 0 : index
      %c0_13 = arith.constant 0 : index
      %15 = vector.load %arg8[%c0_12, %c0_13] : memref<128x32xf32, #tpu.memory_space<vmem>>, vector<128x32xf32>
      tpu.vector_store %arg8[%c0_12, %c0_13], %14 {strides = array<i32>} : memref<128x32xf32, #tpu.memory_space<vmem>>, vector<128x32xf32>,
    } else {
    }
    %c0 = arith.constant 0 : index
    %c0_1 = arith.constant 0 : index
    %3 = vector.load %arg8[%c0, %c0_1] : memref<128x32xf32, #tpu.memory_space<vmem>>, vector<128x32xf32>
    %c0_2 = arith.constant 0 : index
    %c0_3 = arith.constant 0 : index
    %c0_4 = arith.constant 0 : index
    %4 = vector.load %arg2[%c0_2, %c0_3, %c0_4] : memref<1x128x32xbf16, #tpu.memory_space<vmem>>, vector<1x128x32xbf16>
    %5 = vector.shape_cast %4 : vector<1x128x32xbf16> to vector<128x32xbf16>
    %c0_5 = arith.constant 0 : index
    %c0_6 = arith.constant 0 : index
    %c0_7 = arith.constant 0 : index
    %6 = vector.load %arg3[%c0_5, %c0_6, %c0_7] : memref<1x32x32xbf16, #tpu.memory_space<vmem>>, vector<1x32x32xbf16>
    %7 = vector.shape_cast %6 : vector<1x32x32xbf16> to vector<32x32xbf16>
    %cst = arith.constant dense<0.000000e+00> : vector<128x32xf32>
    %8 = tpu.matmul %5, %7, %cst {dimension_numbers = #tpu.dot_dimension_numbers<[1], [0], [0], [1], [0, 0, 1, 1], [], []>} : vector<128x32xbf16>, vector<32x32xbf16>, vector<128x32xf32> -> vector<128x32xf32>
    %9 = arith.addf %3, %8 : vector<128x32xf32>
    %c0_8 = arith.constant 0 : index
    %c0_9 = arith.constant 0 : index
    %10 = vector.load %arg8[%c0_8, %c0_9] : memref<128x32xf32, #tpu.memory_space<vmem>>, vector<128x32xf32>
    tpu.vector_store %arg8[%c0_8, %c0_9], %9 {strides = array<i32>} : memref<128x32xf32, #tpu.memory_space<vmem>>, vector<128x32xf32>,
    %c8_i32 = arith.constant 8 : i32
    %11 = arith.cmpi eq, %arg1, %c8_i32 : i32
    %12 = arith.extui %11 : i1 to i32
    %c0_i32_10 = arith.constant 0 : i32
    %13 = arith.cmpi ne, %12, %c0_i32_10 : i32
    scf.if %13 {
      %c0_11 = arith.constant 0 : index
      %c0_12 = arith.constant 0 : index
      %14 = vector.load %arg8[%c0_11, %c0_12] : memref<128x32xf32, #tpu.memory_space<vmem>>, vector<128x32xf32>
      %c0_13 = arith.constant 0 : index
      %c0_14 = arith.constant 0 : index
      %15 = vector.load %arg4[%c0_13, %c0_14] : memref<1x32xf32, #tpu.memory_space<vmem>>, vector<1x32xf32>
      %16 = vector.broadcast %15 : vector<1x32xf32> to vector<128x32xf32>
      %17 = arith.mulf %14, %16 : vector<128x32xf32>
      %c0_15 = arith.constant 0 : index
      %c0_16 = arith.constant 0 : index
      %18 = vector.load %arg5[%c0_15, %c0_16] : memref<1x32xf32, #tpu.memory_space<vmem>>, vector<1x32xf32>
      %19 = vector.broadcast %18 : vector<1x32xf32> to vector<128x32xf32>
      %20 = arith.addf %17, %19 : vector<128x32xf32>
      %c0_17 = arith.constant 0 : index
      %c0_18 = arith.constant 0 : index
      %21 = vector.load %arg6[%c0_17, %c0_18] : memref<128x32xf32, #tpu.memory_space<vmem>>, vector<128x32xf32>
      %22 = arith.addf %20, %21 : vector<128x32xf32>
      %c0_19 = arith.constant 0 : index
      %c0_20 = arith.constant 0 : index
      %23 = vector.load %arg7[%c0_19, %c0_20] : memref<128x32xf32, #tpu.memory_space<vmem>>, vector<128x32xf32>
      tpu.vector_store %arg7[%c0_19, %c0_20], %22 {strides = array<i32>} : memref<128x32xf32, #tpu.memory_space<vmem>>, vector<128x32xf32>,
    } else {
    }
    return
  }
  func.func @transform_0(%arg0: i32, %arg1: i32) -> (i32, i32, i32) {
    %c0_i32 = arith.constant 0 : i32
    %c0_i32_0 = arith.constant 0 : i32
    return %arg1, %arg0, %c0_i32 : i32, i32, i32
  }
  func.func @transform_1(%arg0: i32, %arg1: i32) -> (i32, i32, i32) {
    %c0_i32 = arith.constant 0 : i32
    %c0_i32_0 = arith.constant 0 : i32
    %c0_i32_1 = arith.constant 0 : i32
    return %arg1, %c0_i32, %c0_i32_0 : i32, i32, i32
  }
  func.func @transform_2(%arg0: i32, %arg1: i32) -> (i32, i32) {
    %c0_i32 = arith.constant 0 : i32
    %c0_i32_0 = arith.constant 0 : i32
    %c0_i32_1 = arith.constant 0 : i32
    return %c0_i32, %c0_i32_0 : i32, i32
  }
  func.func @transform_3(%arg0: i32, %arg1: i32) -> (i32, i32) {
    %c0_i32 = arith.constant 0 : i32
    %c0_i32_0 = arith.constant 0 : i32
    %c0_i32_1 = arith.constant 0 : i32
    return %c0_i32, %c0_i32_0 : i32, i32
  }
  func.func @transform_4(%arg0: i32, %arg1: i32) -> (i32, i32) {
    %c0_i32 = arith.constant 0 : i32
    %c0_i32_0 = arith.constant 0 : i32
    return %arg0, %c0_i32 : i32, i32
  }
  func.func @transform_5(%arg0: i32, %arg1: i32) -> (i32, i32) {
    %c0_i32 = arith.constant 0 : i32
    %c0_i32_0 = arith.constant 0 : i32
    return %arg0, %c0_i32 : i32, i32
  }
}

module attributes {stable_mosaic.version = 11 : i64} {
  func.func @_conv_kernel(%arg0: i32, %arg1: i32, %arg2: memref<1x128x16xbf16, #tpu.memory_space<vmem>>, %arg3: memref<1x16x32xbf16, #tpu.memory_space<vmem>>, %arg4: memref<1x32xf32, #tpu.memory_space<vmem>>, %arg5: memref<1x32xf32, #tpu.memory_space<vmem>>, %arg6: memref<128x32xf32, #tpu.memory_space<vmem>>, %arg7: memref<128x32xf32, #tpu.memory_space<vmem>>) attributes {dimension_semantics = [#tpu.dimension_semantics<parallel>, #tpu.dimension_semantics<arbitrary>], iteration_bounds = array<i64: 1, 1>, scalar_prefetch = 0 : i64, scratch_operands = 1 : i64, tpu.core_type = #tpu.core_type<tc>, window_params = [{transform_indices = @transform_0, window_bounds = array<i64: 1, 128, 16>}, {transform_indices = @transform_1, window_bounds = array<i64: 1, 16, 32>}, {pipeline_mode = #tpu.pipeline_mode<synchronous>, transform_indices = @transform_2, window_bounds = array<i64: 1, 32>}, {pipeline_mode = #tpu.pipeline_mode<synchronous>, transform_indices = @transform_3, window_bounds = array<i64: 1, 32>}, {transform_indices = @transform_4, window_bounds = array<i64: 128, 32>}]} {
    %c0_i32 = arith.constant 0 : i32
    %0 = arith.cmpi eq, %arg1, %c0_i32 : i32
    %1 = arith.extui %0 : i1 to i32
    %c0_i32_0 = arith.constant 0 : i32
    %2 = arith.cmpi ne, %1, %c0_i32_0 : i32
    scf.if %2 {
      %cst_12 = arith.constant 0.000000e+00 : f32
      %14 = vector.broadcast %cst_12 : f32 to vector<128x32xf32>
      %c0_13 = arith.constant 0 : index
      %c0_14 = arith.constant 0 : index
      %15 = vector.load %arg7[%c0_13, %c0_14] : memref<128x32xf32, #tpu.memory_space<vmem>>, vector<128x32xf32>
      tpu.vector_store %arg7[%c0_13, %c0_14], %14 {strides = array<i32>} : memref<128x32xf32, #tpu.memory_space<vmem>>, vector<128x32xf32>,
    } else {
    }
    %c0 = arith.constant 0 : index
    %c0_1 = arith.constant 0 : index
    %3 = vector.load %arg7[%c0, %c0_1] : memref<128x32xf32, #tpu.memory_space<vmem>>, vector<128x32xf32>
    %c0_2 = arith.constant 0 : index
    %c0_3 = arith.constant 0 : index
    %c0_4 = arith.constant 0 : index
    %4 = vector.load %arg2[%c0_2, %c0_3, %c0_4] : memref<1x128x16xbf16, #tpu.memory_space<vmem>>, vector<1x128x16xbf16>
    %5 = vector.shape_cast %4 : vector<1x128x16xbf16> to vector<128x16xbf16>
    %c0_5 = arith.constant 0 : index
    %c0_6 = arith.constant 0 : index
    %c0_7 = arith.constant 0 : index
    %6 = vector.load %arg3[%c0_5, %c0_6, %c0_7] : memref<1x16x32xbf16, #tpu.memory_space<vmem>>, vector<1x16x32xbf16>
    %7 = vector.shape_cast %6 : vector<1x16x32xbf16> to vector<16x32xbf16>
    %cst = arith.constant dense<0.000000e+00> : vector<128x32xf32>
    %8 = tpu.matmul %5, %7, %cst {dimension_numbers = #tpu.dot_dimension_numbers<[1], [0], [0], [1], [0, 0, 1, 1], [], []>} : vector<128x16xbf16>, vector<16x32xbf16>, vector<128x32xf32> -> vector<128x32xf32>
    %9 = arith.addf %3, %8 : vector<128x32xf32>
    %c0_8 = arith.constant 0 : index
    %c0_9 = arith.constant 0 : index
    %10 = vector.load %arg7[%c0_8, %c0_9] : memref<128x32xf32, #tpu.memory_space<vmem>>, vector<128x32xf32>
    tpu.vector_store %arg7[%c0_8, %c0_9], %9 {strides = array<i32>} : memref<128x32xf32, #tpu.memory_space<vmem>>, vector<128x32xf32>,
    %c0_i32_10 = arith.constant 0 : i32
    %11 = arith.cmpi eq, %arg1, %c0_i32_10 : i32
    %12 = arith.extui %11 : i1 to i32
    %c0_i32_11 = arith.constant 0 : i32
    %13 = arith.cmpi ne, %12, %c0_i32_11 : i32
    scf.if %13 {
      %c0_12 = arith.constant 0 : index
      %c0_13 = arith.constant 0 : index
      %14 = vector.load %arg7[%c0_12, %c0_13] : memref<128x32xf32, #tpu.memory_space<vmem>>, vector<128x32xf32>
      %c0_14 = arith.constant 0 : index
      %c0_15 = arith.constant 0 : index
      %15 = vector.load %arg4[%c0_14, %c0_15] : memref<1x32xf32, #tpu.memory_space<vmem>>, vector<1x32xf32>
      %16 = vector.broadcast %15 : vector<1x32xf32> to vector<128x32xf32>
      %17 = arith.mulf %14, %16 : vector<128x32xf32>
      %c0_16 = arith.constant 0 : index
      %c0_17 = arith.constant 0 : index
      %18 = vector.load %arg5[%c0_16, %c0_17] : memref<1x32xf32, #tpu.memory_space<vmem>>, vector<1x32xf32>
      %19 = vector.broadcast %18 : vector<1x32xf32> to vector<128x32xf32>
      %20 = arith.addf %17, %19 : vector<128x32xf32>
      %c0_18 = arith.constant 0 : index
      %c0_19 = arith.constant 0 : index
      %21 = vector.load %arg6[%c0_18, %c0_19] : memref<128x32xf32, #tpu.memory_space<vmem>>, vector<128x32xf32>
      tpu.vector_store %arg6[%c0_18, %c0_19], %20 {strides = array<i32>} : memref<128x32xf32, #tpu.memory_space<vmem>>, vector<128x32xf32>,
    } else {
    }
    return
  }
  func.func @transform_0(%arg0: i32, %arg1: i32) -> (i32, i32, i32) {
    %c0_i32 = arith.constant 0 : i32
    %c0_i32_0 = arith.constant 0 : i32
    return %arg1, %arg0, %c0_i32 : i32, i32, i32
  }
  func.func @transform_1(%arg0: i32, %arg1: i32) -> (i32, i32, i32) {
    %c0_i32 = arith.constant 0 : i32
    %c0_i32_0 = arith.constant 0 : i32
    %c0_i32_1 = arith.constant 0 : i32
    return %arg1, %c0_i32, %c0_i32_0 : i32, i32, i32
  }
  func.func @transform_2(%arg0: i32, %arg1: i32) -> (i32, i32) {
    %c0_i32 = arith.constant 0 : i32
    %c0_i32_0 = arith.constant 0 : i32
    %c0_i32_1 = arith.constant 0 : i32
    return %c0_i32, %c0_i32_0 : i32, i32
  }
  func.func @transform_3(%arg0: i32, %arg1: i32) -> (i32, i32) {
    %c0_i32 = arith.constant 0 : i32
    %c0_i32_0 = arith.constant 0 : i32
    %c0_i32_1 = arith.constant 0 : i32
    return %c0_i32, %c0_i32_0 : i32, i32
  }
  func.func @transform_4(%arg0: i32, %arg1: i32) -> (i32, i32) {
    %c0_i32 = arith.constant 0 : i32
    %c0_i32_0 = arith.constant 0 : i32
    return %arg0, %c0_i32 : i32, i32
  }
}

module attributes {stable_mosaic.version = 11 : i64} {
  func.func @_conv_kernel(%arg0: i32, %arg1: i32, %arg2: memref<1x128x32xbf16, #tpu.memory_space<vmem>>, %arg3: memref<1x32x64xbf16, #tpu.memory_space<vmem>>, %arg4: memref<1x64xf32, #tpu.memory_space<vmem>>, %arg5: memref<1x64xf32, #tpu.memory_space<vmem>>, %arg6: memref<128x64xbf16, #tpu.memory_space<vmem>>, %arg7: memref<128x64xf32, #tpu.memory_space<vmem>>) attributes {dimension_semantics = [#tpu.dimension_semantics<parallel>, #tpu.dimension_semantics<arbitrary>], iteration_bounds = array<i64: 1, 9>, scalar_prefetch = 0 : i64, scratch_operands = 1 : i64, tpu.core_type = #tpu.core_type<tc>, window_params = [{transform_indices = @transform_0, window_bounds = array<i64: 1, 128, 32>}, {transform_indices = @transform_1, window_bounds = array<i64: 1, 32, 64>}, {pipeline_mode = #tpu.pipeline_mode<synchronous>, transform_indices = @transform_2, window_bounds = array<i64: 1, 64>}, {pipeline_mode = #tpu.pipeline_mode<synchronous>, transform_indices = @transform_3, window_bounds = array<i64: 1, 64>}, {transform_indices = @transform_4, window_bounds = array<i64: 128, 64>}]} {
    %c0_i32 = arith.constant 0 : i32
    %0 = arith.cmpi eq, %arg1, %c0_i32 : i32
    %1 = arith.extui %0 : i1 to i32
    %c0_i32_0 = arith.constant 0 : i32
    %2 = arith.cmpi ne, %1, %c0_i32_0 : i32
    scf.if %2 {
      %cst_11 = arith.constant 0.000000e+00 : f32
      %14 = vector.broadcast %cst_11 : f32 to vector<128x64xf32>
      %c0_12 = arith.constant 0 : index
      %c0_13 = arith.constant 0 : index
      %15 = vector.load %arg7[%c0_12, %c0_13] : memref<128x64xf32, #tpu.memory_space<vmem>>, vector<128x64xf32>
      tpu.vector_store %arg7[%c0_12, %c0_13], %14 {strides = array<i32>} : memref<128x64xf32, #tpu.memory_space<vmem>>, vector<128x64xf32>,
    } else {
    }
    %c0 = arith.constant 0 : index
    %c0_1 = arith.constant 0 : index
    %3 = vector.load %arg7[%c0, %c0_1] : memref<128x64xf32, #tpu.memory_space<vmem>>, vector<128x64xf32>
    %c0_2 = arith.constant 0 : index
    %c0_3 = arith.constant 0 : index
    %c0_4 = arith.constant 0 : index
    %4 = vector.load %arg2[%c0_2, %c0_3, %c0_4] : memref<1x128x32xbf16, #tpu.memory_space<vmem>>, vector<1x128x32xbf16>
    %5 = vector.shape_cast %4 : vector<1x128x32xbf16> to vector<128x32xbf16>
    %c0_5 = arith.constant 0 : index
    %c0_6 = arith.constant 0 : index
    %c0_7 = arith.constant 0 : index
    %6 = vector.load %arg3[%c0_5, %c0_6, %c0_7] : memref<1x32x64xbf16, #tpu.memory_space<vmem>>, vector<1x32x64xbf16>
    %7 = vector.shape_cast %6 : vector<1x32x64xbf16> to vector<32x64xbf16>
    %cst = arith.constant dense<0.000000e+00> : vector<128x64xf32>
    %8 = tpu.matmul %5, %7, %cst {dimension_numbers = #tpu.dot_dimension_numbers<[1], [0], [0], [1], [0, 0, 1, 1], [], []>} : vector<128x32xbf16>, vector<32x64xbf16>, vector<128x64xf32> -> vector<128x64xf32>
    %9 = arith.addf %3, %8 : vector<128x64xf32>
    %c0_8 = arith.constant 0 : index
    %c0_9 = arith.constant 0 : index
    %10 = vector.load %arg7[%c0_8, %c0_9] : memref<128x64xf32, #tpu.memory_space<vmem>>, vector<128x64xf32>
    tpu.vector_store %arg7[%c0_8, %c0_9], %9 {strides = array<i32>} : memref<128x64xf32, #tpu.memory_space<vmem>>, vector<128x64xf32>,
    %c8_i32 = arith.constant 8 : i32
    %11 = arith.cmpi eq, %arg1, %c8_i32 : i32
    %12 = arith.extui %11 : i1 to i32
    %c0_i32_10 = arith.constant 0 : i32
    %13 = arith.cmpi ne, %12, %c0_i32_10 : i32
    scf.if %13 {
      %c0_11 = arith.constant 0 : index
      %c0_12 = arith.constant 0 : index
      %14 = vector.load %arg7[%c0_11, %c0_12] : memref<128x64xf32, #tpu.memory_space<vmem>>, vector<128x64xf32>
      %c0_13 = arith.constant 0 : index
      %c0_14 = arith.constant 0 : index
      %15 = vector.load %arg4[%c0_13, %c0_14] : memref<1x64xf32, #tpu.memory_space<vmem>>, vector<1x64xf32>
      %16 = vector.broadcast %15 : vector<1x64xf32> to vector<128x64xf32>
      %17 = arith.mulf %14, %16 : vector<128x64xf32>
      %c0_15 = arith.constant 0 : index
      %c0_16 = arith.constant 0 : index
      %18 = vector.load %arg5[%c0_15, %c0_16] : memref<1x64xf32, #tpu.memory_space<vmem>>, vector<1x64xf32>
      %19 = vector.broadcast %18 : vector<1x64xf32> to vector<128x64xf32>
      %20 = arith.addf %17, %19 : vector<128x64xf32>
      %cst_17 = arith.constant 0.000000e+00 : f32
      %21 = vector.broadcast %cst_17 : f32 to vector<128x64xf32>
      %22 = arith.maximumf %20, %21 : vector<128x64xf32>
      %23 = arith.truncf %22 : vector<128x64xf32> to vector<128x64xbf16>
      %c0_18 = arith.constant 0 : index
      %c0_19 = arith.constant 0 : index
      %24 = vector.load %arg6[%c0_18, %c0_19] : memref<128x64xbf16, #tpu.memory_space<vmem>>, vector<128x64xbf16>
      tpu.vector_store %arg6[%c0_18, %c0_19], %23 {strides = array<i32>} : memref<128x64xbf16, #tpu.memory_space<vmem>>, vector<128x64xbf16>,
    } else {
    }
    return
  }
  func.func @transform_0(%arg0: i32, %arg1: i32) -> (i32, i32, i32) {
    %c0_i32 = arith.constant 0 : i32
    %c0_i32_0 = arith.constant 0 : i32
    return %arg1, %arg0, %c0_i32 : i32, i32, i32
  }
  func.func @transform_1(%arg0: i32, %arg1: i32) -> (i32, i32, i32) {
    %c0_i32 = arith.constant 0 : i32
    %c0_i32_0 = arith.constant 0 : i32
    %c0_i32_1 = arith.constant 0 : i32
    return %arg1, %c0_i32, %c0_i32_0 : i32, i32, i32
  }
  func.func @transform_2(%arg0: i32, %arg1: i32) -> (i32, i32) {
    %c0_i32 = arith.constant 0 : i32
    %c0_i32_0 = arith.constant 0 : i32
    %c0_i32_1 = arith.constant 0 : i32
    return %c0_i32, %c0_i32_0 : i32, i32
  }
  func.func @transform_3(%arg0: i32, %arg1: i32) -> (i32, i32) {
    %c0_i32 = arith.constant 0 : i32
    %c0_i32_0 = arith.constant 0 : i32
    %c0_i32_1 = arith.constant 0 : i32
    return %c0_i32, %c0_i32_0 : i32, i32
  }
  func.func @transform_4(%arg0: i32, %arg1: i32) -> (i32, i32) {
    %c0_i32 = arith.constant 0 : i32
    %c0_i32_0 = arith.constant 0 : i32
    return %arg0, %c0_i32 : i32, i32
  }
}

module attributes {stable_mosaic.version = 11 : i64} {
  func.func @_conv_kernel(%arg0: i32, %arg1: i32, %arg2: memref<1x32x64xbf16, #tpu.memory_space<vmem>>, %arg3: memref<1x64x64xbf16, #tpu.memory_space<vmem>>, %arg4: memref<1x64xf32, #tpu.memory_space<vmem>>, %arg5: memref<1x64xf32, #tpu.memory_space<vmem>>, %arg6: memref<32x64xf32, #tpu.memory_space<vmem>>, %arg7: memref<32x64xf32, #tpu.memory_space<vmem>>, %arg8: memref<32x64xf32, #tpu.memory_space<vmem>>) attributes {dimension_semantics = [#tpu.dimension_semantics<parallel>, #tpu.dimension_semantics<arbitrary>], iteration_bounds = array<i64: 1, 9>, scalar_prefetch = 0 : i64, scratch_operands = 1 : i64, tpu.core_type = #tpu.core_type<tc>, window_params = [{transform_indices = @transform_0, window_bounds = array<i64: 1, 32, 64>}, {transform_indices = @transform_1, window_bounds = array<i64: 1, 64, 64>}, {pipeline_mode = #tpu.pipeline_mode<synchronous>, transform_indices = @transform_2, window_bounds = array<i64: 1, 64>}, {pipeline_mode = #tpu.pipeline_mode<synchronous>, transform_indices = @transform_3, window_bounds = array<i64: 1, 64>}, {transform_indices = @transform_4, window_bounds = array<i64: 32, 64>}, {transform_indices = @transform_5, window_bounds = array<i64: 32, 64>}]} {
    %c0_i32 = arith.constant 0 : i32
    %0 = arith.cmpi eq, %arg1, %c0_i32 : i32
    %1 = arith.extui %0 : i1 to i32
    %c0_i32_0 = arith.constant 0 : i32
    %2 = arith.cmpi ne, %1, %c0_i32_0 : i32
    scf.if %2 {
      %cst_11 = arith.constant 0.000000e+00 : f32
      %14 = vector.broadcast %cst_11 : f32 to vector<32x64xf32>
      %c0_12 = arith.constant 0 : index
      %c0_13 = arith.constant 0 : index
      %15 = vector.load %arg8[%c0_12, %c0_13] : memref<32x64xf32, #tpu.memory_space<vmem>>, vector<32x64xf32>
      tpu.vector_store %arg8[%c0_12, %c0_13], %14 {strides = array<i32>} : memref<32x64xf32, #tpu.memory_space<vmem>>, vector<32x64xf32>,
    } else {
    }
    %c0 = arith.constant 0 : index
    %c0_1 = arith.constant 0 : index
    %3 = vector.load %arg8[%c0, %c0_1] : memref<32x64xf32, #tpu.memory_space<vmem>>, vector<32x64xf32>
    %c0_2 = arith.constant 0 : index
    %c0_3 = arith.constant 0 : index
    %c0_4 = arith.constant 0 : index
    %4 = vector.load %arg2[%c0_2, %c0_3, %c0_4] : memref<1x32x64xbf16, #tpu.memory_space<vmem>>, vector<1x32x64xbf16>
    %5 = vector.shape_cast %4 : vector<1x32x64xbf16> to vector<32x64xbf16>
    %c0_5 = arith.constant 0 : index
    %c0_6 = arith.constant 0 : index
    %c0_7 = arith.constant 0 : index
    %6 = vector.load %arg3[%c0_5, %c0_6, %c0_7] : memref<1x64x64xbf16, #tpu.memory_space<vmem>>, vector<1x64x64xbf16>
    %7 = vector.shape_cast %6 : vector<1x64x64xbf16> to vector<64x64xbf16>
    %cst = arith.constant dense<0.000000e+00> : vector<32x64xf32>
    %8 = tpu.matmul %5, %7, %cst {dimension_numbers = #tpu.dot_dimension_numbers<[1], [0], [0], [1], [0, 0, 1, 1], [], []>} : vector<32x64xbf16>, vector<64x64xbf16>, vector<32x64xf32> -> vector<32x64xf32>
    %9 = arith.addf %3, %8 : vector<32x64xf32>
    %c0_8 = arith.constant 0 : index
    %c0_9 = arith.constant 0 : index
    %10 = vector.load %arg8[%c0_8, %c0_9] : memref<32x64xf32, #tpu.memory_space<vmem>>, vector<32x64xf32>
    tpu.vector_store %arg8[%c0_8, %c0_9], %9 {strides = array<i32>} : memref<32x64xf32, #tpu.memory_space<vmem>>, vector<32x64xf32>,
    %c8_i32 = arith.constant 8 : i32
    %11 = arith.cmpi eq, %arg1, %c8_i32 : i32
    %12 = arith.extui %11 : i1 to i32
    %c0_i32_10 = arith.constant 0 : i32
    %13 = arith.cmpi ne, %12, %c0_i32_10 : i32
    scf.if %13 {
      %c0_11 = arith.constant 0 : index
      %c0_12 = arith.constant 0 : index
      %14 = vector.load %arg8[%c0_11, %c0_12] : memref<32x64xf32, #tpu.memory_space<vmem>>, vector<32x64xf32>
      %c0_13 = arith.constant 0 : index
      %c0_14 = arith.constant 0 : index
      %15 = vector.load %arg4[%c0_13, %c0_14] : memref<1x64xf32, #tpu.memory_space<vmem>>, vector<1x64xf32>
      %16 = vector.broadcast %15 : vector<1x64xf32> to vector<32x64xf32>
      %17 = arith.mulf %14, %16 : vector<32x64xf32>
      %c0_15 = arith.constant 0 : index
      %c0_16 = arith.constant 0 : index
      %18 = vector.load %arg5[%c0_15, %c0_16] : memref<1x64xf32, #tpu.memory_space<vmem>>, vector<1x64xf32>
      %19 = vector.broadcast %18 : vector<1x64xf32> to vector<32x64xf32>
      %20 = arith.addf %17, %19 : vector<32x64xf32>
      %c0_17 = arith.constant 0 : index
      %c0_18 = arith.constant 0 : index
      %21 = vector.load %arg6[%c0_17, %c0_18] : memref<32x64xf32, #tpu.memory_space<vmem>>, vector<32x64xf32>
      %22 = arith.addf %20, %21 : vector<32x64xf32>
      %c0_19 = arith.constant 0 : index
      %c0_20 = arith.constant 0 : index
      %23 = vector.load %arg7[%c0_19, %c0_20] : memref<32x64xf32, #tpu.memory_space<vmem>>, vector<32x64xf32>
      tpu.vector_store %arg7[%c0_19, %c0_20], %22 {strides = array<i32>} : memref<32x64xf32, #tpu.memory_space<vmem>>, vector<32x64xf32>,
    } else {
    }
    return
  }
  func.func @transform_0(%arg0: i32, %arg1: i32) -> (i32, i32, i32) {
    %c0_i32 = arith.constant 0 : i32
    %c0_i32_0 = arith.constant 0 : i32
    return %arg1, %arg0, %c0_i32 : i32, i32, i32
  }
  func.func @transform_1(%arg0: i32, %arg1: i32) -> (i32, i32, i32) {
    %c0_i32 = arith.constant 0 : i32
    %c0_i32_0 = arith.constant 0 : i32
    %c0_i32_1 = arith.constant 0 : i32
    return %arg1, %c0_i32, %c0_i32_0 : i32, i32, i32
  }
  func.func @transform_2(%arg0: i32, %arg1: i32) -> (i32, i32) {
    %c0_i32 = arith.constant 0 : i32
    %c0_i32_0 = arith.constant 0 : i32
    %c0_i32_1 = arith.constant 0 : i32
    return %c0_i32, %c0_i32_0 : i32, i32
  }
  func.func @transform_3(%arg0: i32, %arg1: i32) -> (i32, i32) {
    %c0_i32 = arith.constant 0 : i32
    %c0_i32_0 = arith.constant 0 : i32
    %c0_i32_1 = arith.constant 0 : i32
    return %c0_i32, %c0_i32_0 : i32, i32
  }
  func.func @transform_4(%arg0: i32, %arg1: i32) -> (i32, i32) {
    %c0_i32 = arith.constant 0 : i32
    %c0_i32_0 = arith.constant 0 : i32
    return %arg0, %c0_i32 : i32, i32
  }
  func.func @transform_5(%arg0: i32, %arg1: i32) -> (i32, i32) {
    %c0_i32 = arith.constant 0 : i32
    %c0_i32_0 = arith.constant 0 : i32
    return %arg0, %c0_i32 : i32, i32
  }
}

module attributes {stable_mosaic.version = 11 : i64} {
  func.func @_head_kernel(%arg0: memref<2x16x64xf32, #tpu.memory_space<vmem>>, %arg1: memref<1x64xf32, #tpu.memory_space<vmem>>, %arg2: memref<1x64xf32, #tpu.memory_space<vmem>>, %arg3: memref<64x10xf32, #tpu.memory_space<vmem>>, %arg4: memref<1x10xf32, #tpu.memory_space<vmem>>, %arg5: memref<2x10xf32, #tpu.memory_space<vmem>>) attributes {dimension_semantics = [], scalar_prefetch = 0 : i64, scratch_operands = 0 : i64, tpu.core_type = #tpu.core_type<tc>} {
    %c0 = arith.constant 0 : index
    %c0_0 = arith.constant 0 : index
    %c0_1 = arith.constant 0 : index
    %0 = vector.load %arg0[%c0, %c0_0, %c0_1] : memref<2x16x64xf32, #tpu.memory_space<vmem>>, vector<2x16x64xf32>
    %c0_2 = arith.constant 0 : index
    %c0_3 = arith.constant 0 : index
    %1 = vector.load %arg1[%c0_2, %c0_3] : memref<1x64xf32, #tpu.memory_space<vmem>>, vector<1x64xf32>
    %2 = vector.shape_cast %1 : vector<1x64xf32> to vector<1x1x64xf32>
    %3 = vector.broadcast %2 : vector<1x1x64xf32> to vector<2x16x64xf32>
    %4 = arith.mulf %0, %3 : vector<2x16x64xf32>
    %c0_4 = arith.constant 0 : index
    %c0_5 = arith.constant 0 : index
    %5 = vector.load %arg2[%c0_4, %c0_5] : memref<1x64xf32, #tpu.memory_space<vmem>>, vector<1x64xf32>
    %6 = vector.shape_cast %5 : vector<1x64xf32> to vector<1x1x64xf32>
    %7 = vector.broadcast %6 : vector<1x1x64xf32> to vector<2x16x64xf32>
    %8 = arith.addf %4, %7 : vector<2x16x64xf32>
    %cst = arith.constant 0.000000e+00 : f32
    %9 = vector.broadcast %cst : f32 to vector<2x16x64xf32>
    %10 = arith.maximumf %8, %9 : vector<2x16x64xf32>
    %cst_6 = arith.constant dense<0.000000e+00> : vector<2x64xf32>
    %11 = vector.multi_reduction <add>, %10, %cst_6 [1] : vector<2x16x64xf32> to vector<2x64xf32>
    %cst_7 = arith.constant 6.250000e-02 : f32
    %12 = vector.broadcast %cst_7 : f32 to vector<2x64xf32>
    %13 = arith.mulf %11, %12 : vector<2x64xf32>
    %c0_8 = arith.constant 0 : index
    %c0_9 = arith.constant 0 : index
    %14 = vector.load %arg3[%c0_8, %c0_9] : memref<64x10xf32, #tpu.memory_space<vmem>>, vector<64x10xf32>
    %cst_10 = arith.constant dense<0.000000e+00> : vector<2x10xf32>
    %15 = tpu.matmul %13, %14, %cst_10 {dimension_numbers = #tpu.dot_dimension_numbers<[1], [0], [0], [1], [0, 0, 1, 1], [], []>} : vector<2x64xf32>, vector<64x10xf32>, vector<2x10xf32> -> vector<2x10xf32>
    %c0_11 = arith.constant 0 : index
    %c0_12 = arith.constant 0 : index
    %16 = vector.load %arg4[%c0_11, %c0_12] : memref<1x10xf32, #tpu.memory_space<vmem>>, vector<1x10xf32>
    %17 = vector.broadcast %16 : vector<1x10xf32> to vector<2x10xf32>
    %18 = arith.addf %15, %17 : vector<2x10xf32>
    %c0_13 = arith.constant 0 : index
    %c0_14 = arith.constant 0 : index
    %19 = vector.load %arg5[%c0_13, %c0_14] : memref<2x10xf32, #tpu.memory_space<vmem>>, vector<2x10xf32>
    tpu.vector_store %arg5[%c0_13, %c0_14], %18 {strides = array<i32>} : memref<2x10xf32, #tpu.memory_space<vmem>>, vector<2x10xf32>,
    return
  }
}

module attributes {stable_mosaic.version = 11 : i64} {
  func.func @_conv_kernel(%arg0: i32, %arg1: i32, %arg2: memref<1x32x32xbf16, #tpu.memory_space<vmem>>, %arg3: memref<1x32x64xbf16, #tpu.memory_space<vmem>>, %arg4: memref<1x64xf32, #tpu.memory_space<vmem>>, %arg5: memref<1x64xf32, #tpu.memory_space<vmem>>, %arg6: memref<32x64xf32, #tpu.memory_space<vmem>>, %arg7: memref<32x64xf32, #tpu.memory_space<vmem>>) attributes {dimension_semantics = [#tpu.dimension_semantics<parallel>, #tpu.dimension_semantics<arbitrary>], iteration_bounds = array<i64: 1, 1>, scalar_prefetch = 0 : i64, scratch_operands = 1 : i64, tpu.core_type = #tpu.core_type<tc>, window_params = [{transform_indices = @transform_0, window_bounds = array<i64: 1, 32, 32>}, {transform_indices = @transform_1, window_bounds = array<i64: 1, 32, 64>}, {pipeline_mode = #tpu.pipeline_mode<synchronous>, transform_indices = @transform_2, window_bounds = array<i64: 1, 64>}, {pipeline_mode = #tpu.pipeline_mode<synchronous>, transform_indices = @transform_3, window_bounds = array<i64: 1, 64>}, {transform_indices = @transform_4, window_bounds = array<i64: 32, 64>}]} {
    %c0_i32 = arith.constant 0 : i32
    %0 = arith.cmpi eq, %arg1, %c0_i32 : i32
    %1 = arith.extui %0 : i1 to i32
    %c0_i32_0 = arith.constant 0 : i32
    %2 = arith.cmpi ne, %1, %c0_i32_0 : i32
    scf.if %2 {
      %cst_12 = arith.constant 0.000000e+00 : f32
      %14 = vector.broadcast %cst_12 : f32 to vector<32x64xf32>
      %c0_13 = arith.constant 0 : index
      %c0_14 = arith.constant 0 : index
      %15 = vector.load %arg7[%c0_13, %c0_14] : memref<32x64xf32, #tpu.memory_space<vmem>>, vector<32x64xf32>
      tpu.vector_store %arg7[%c0_13, %c0_14], %14 {strides = array<i32>} : memref<32x64xf32, #tpu.memory_space<vmem>>, vector<32x64xf32>,
    } else {
    }
    %c0 = arith.constant 0 : index
    %c0_1 = arith.constant 0 : index
    %3 = vector.load %arg7[%c0, %c0_1] : memref<32x64xf32, #tpu.memory_space<vmem>>, vector<32x64xf32>
    %c0_2 = arith.constant 0 : index
    %c0_3 = arith.constant 0 : index
    %c0_4 = arith.constant 0 : index
    %4 = vector.load %arg2[%c0_2, %c0_3, %c0_4] : memref<1x32x32xbf16, #tpu.memory_space<vmem>>, vector<1x32x32xbf16>
    %5 = vector.shape_cast %4 : vector<1x32x32xbf16> to vector<32x32xbf16>
    %c0_5 = arith.constant 0 : index
    %c0_6 = arith.constant 0 : index
    %c0_7 = arith.constant 0 : index
    %6 = vector.load %arg3[%c0_5, %c0_6, %c0_7] : memref<1x32x64xbf16, #tpu.memory_space<vmem>>, vector<1x32x64xbf16>
    %7 = vector.shape_cast %6 : vector<1x32x64xbf16> to vector<32x64xbf16>
    %cst = arith.constant dense<0.000000e+00> : vector<32x64xf32>
    %8 = tpu.matmul %5, %7, %cst {dimension_numbers = #tpu.dot_dimension_numbers<[1], [0], [0], [1], [0, 0, 1, 1], [], []>} : vector<32x32xbf16>, vector<32x64xbf16>, vector<32x64xf32> -> vector<32x64xf32>
    %9 = arith.addf %3, %8 : vector<32x64xf32>
    %c0_8 = arith.constant 0 : index
    %c0_9 = arith.constant 0 : index
    %10 = vector.load %arg7[%c0_8, %c0_9] : memref<32x64xf32, #tpu.memory_space<vmem>>, vector<32x64xf32>
    tpu.vector_store %arg7[%c0_8, %c0_9], %9 {strides = array<i32>} : memref<32x64xf32, #tpu.memory_space<vmem>>, vector<32x64xf32>,
    %c0_i32_10 = arith.constant 0 : i32
    %11 = arith.cmpi eq, %arg1, %c0_i32_10 : i32
    %12 = arith.extui %11 : i1 to i32
    %c0_i32_11 = arith.constant 0 : i32
    %13 = arith.cmpi ne, %12, %c0_i32_11 : i32
    scf.if %13 {
      %c0_12 = arith.constant 0 : index
      %c0_13 = arith.constant 0 : index
      %14 = vector.load %arg7[%c0_12, %c0_13] : memref<32x64xf32, #tpu.memory_space<vmem>>, vector<32x64xf32>
      %c0_14 = arith.constant 0 : index
      %c0_15 = arith.constant 0 : index
      %15 = vector.load %arg4[%c0_14, %c0_15] : memref<1x64xf32, #tpu.memory_space<vmem>>, vector<1x64xf32>
      %16 = vector.broadcast %15 : vector<1x64xf32> to vector<32x64xf32>
      %17 = arith.mulf %14, %16 : vector<32x64xf32>
      %c0_16 = arith.constant 0 : index
      %c0_17 = arith.constant 0 : index
      %18 = vector.load %arg5[%c0_16, %c0_17] : memref<1x64xf32, #tpu.memory_space<vmem>>, vector<1x64xf32>
      %19 = vector.broadcast %18 : vector<1x64xf32> to vector<32x64xf32>
      %20 = arith.addf %17, %19 : vector<32x64xf32>
      %c0_18 = arith.constant 0 : index
      %c0_19 = arith.constant 0 : index
      %21 = vector.load %arg6[%c0_18, %c0_19] : memref<32x64xf32, #tpu.memory_space<vmem>>, vector<32x64xf32>
      tpu.vector_store %arg6[%c0_18, %c0_19], %20 {strides = array<i32>} : memref<32x64xf32, #tpu.memory_space<vmem>>, vector<32x64xf32>,
    } else {
    }
    return
  }
  func.func @transform_0(%arg0: i32, %arg1: i32) -> (i32, i32, i32) {
    %c0_i32 = arith.constant 0 : i32
    %c0_i32_0 = arith.constant 0 : i32
    return %arg1, %arg0, %c0_i32 : i32, i32, i32
  }
  func.func @transform_1(%arg0: i32, %arg1: i32) -> (i32, i32, i32) {
    %c0_i32 = arith.constant 0 : i32
    %c0_i32_0 = arith.constant 0 : i32
    %c0_i32_1 = arith.constant 0 : i32
    return %arg1, %c0_i32, %c0_i32_0 : i32, i32, i32
  }
  func.func @transform_2(%arg0: i32, %arg1: i32) -> (i32, i32) {
    %c0_i32 = arith.constant 0 : i32
    %c0_i32_0 = arith.constant 0 : i32
    %c0_i32_1 = arith.constant 0 : i32
    return %c0_i32, %c0_i32_0 : i32, i32
  }
  func.func @transform_3(%arg0: i32, %arg1: i32) -> (i32, i32) {
    %c0_i32 = arith.constant 0 : i32
    %c0_i32_0 = arith.constant 0 : i32
    %c0_i32_1 = arith.constant 0 : i32
    return %c0_i32, %c0_i32_0 : i32, i32
  }
  func.func @transform_4(%arg0: i32, %arg1: i32) -> (i32, i32) {
    %c0_i32 = arith.constant 0 : i32
    %c0_i32_0 = arith.constant 0 : i32
    return %arg0, %c0_i32 : i32, i32
  }
}

</mosaic_0001>

<bundles_post_ra>
// kernel: _lambda_.14
= control target key start
LH: loop header
LB: loop body
LE: loop exit
PB: predicated region body
PF: predicated region fallthrough
CT: control target
= control target key end

     0   :  { %vm540_vm0 = vcmask 125952   ;;  %s1345_s0 = inlined_call_operand.vmem [shape: f32[512,16], index: 0, kind: input, shape index: {}]   ;;  %s1346_s1 = inlined_call_operand.vmem [shape: f32[1,16], index: 1, kind: input, shape index: {}]   ;;  %s1347_s2 = inlined_call_operand.vmem [shape: f32[1,16], index: 2, kind: input, shape index: {}]   ;;  %s1348_s3 = inlined_call_operand.vmem [shape: bf16[512,16], index: 3, kind: output, shape index: {}]  }
   0x1   :  { %v14_v0 = vld [vmem:[%s1345_s0] sm:$0xff]  ;;  %v15_v4 = vld [vmem:[%s1345_s0 + $0x8] sm:$0xff]  ;;  %v16_v5 = vld [vmem:[%s1345_s0 + $0x10] sm:$0xff] }
   0x2   :  { %v765_v1 = vld [vmem:[%s1346_s1] ss:$0 sm:$0xff]  ;;  %v17_v6 = vld [vmem:[%s1345_s0 + $0x18] sm:$0xff]  ;;  %v19_v11 = vld [vmem:[%s1345_s0 + $0x28] sm:$0xff] }
   0x3   :  { %v770_v2 = vld [vmem:[%s1347_s2] ss:$0 sm:$0xff]  ;;  %v85_v3 = vmul.f32 %v765_v1, %v14_v0  ;;  %v86_v7 = vmul.f32 %v765_v1, %v15_v4  ;;  %v87_v8 = vmul.f32 %v765_v1, %v16_v5  ;;  %v88_v9 = vmul.f32 %v765_v1, %v17_v6  ;;  %v20_v12 = vld [vmem:[%s1345_s0 + $0x30] sm:$0xff]  ;;  %v21_v17 = vld [vmem:[%s1345_s0 + $0x38] sm:$0xff] }
   0x4   :  { %v18_v10 = vld [vmem:[%s1345_s0 + $0x20] sm:$0xff]  ;;  %v90_v15 = vmul.f32 %v765_v1, %v19_v11  ;;  %v91_v16 = vmul.f32 %v765_v1, %v20_v12  ;;  %v92_v21 = vmul.f32 %v765_v1, %v21_v17  ;;  %v23_v35 = vld [vmem:[%s1345_s0 + $0x48] sm:$0xff]  ;;  %v24_v36 = vld [vmem:[%s1345_s0 + $0x50] sm:$0xff] }
   0x5   :  { %v156_v13 = vadd.f32 %v770_v2, %v85_v3  ;;  %v89_v14 = vmul.f32 %v765_v1, %v18_v10  ;;  %v157_v18 = vadd.f32 %v770_v2, %v86_v7  ;;  %v158_v19 = vadd.f32 %v770_v2, %v87_v8  ;;  %v22_v30 = vld [vmem:[%s1345_s0 + $0x40] sm:$0xff]  ;;  %v25_v37 = vld [vmem:[%s1345_s0 + $0x58] sm:$0xff]  ;;  %v27_v43 = vld [vmem:[%s1345_s0 + $0x68] sm:$0xff] }
   0x6   :  { %v159_v20 = vadd.f32 %v770_v2, %v88_v9  ;;  %v161_v24 = vadd.f32 %v770_v2, %v90_v15  ;;  %v162_v25 = vadd.f32 %v770_v2, %v91_v16  ;;  %v163_v29 = vadd.f32 %v770_v2, %v92_v21  ;;  %v26_v42 = vld [vmem:[%s1345_s0 + $0x60] sm:$0xff]  ;;  %v28_v44 = vld [vmem:[%s1345_s0 + $0x70] sm:$0xff]  ;;  %v29_v49 = vld [vmem:[%s1345_s0 + $0x78] sm:$0xff] }
   0x7   :  { %v220_v22 = vmax.f32 %v156_v13, 0.0  ;;  %v160_v23 = vadd.f32 %v770_v2, %v89_v14  ;;  %v221_v26 = vmax.f32 %v157_v18, 0.0  ;;  %v222_v27 = vmax.f32 %v158_v19, 0.0  ;;  %v30_v8 = vld [vmem:[%s1345_s0 + $0x80] sm:$0xff]  ;;  %v31_v13 = vld [vmem:[%s1345_s0 + $0x88] sm:$0xff]  ;;  %v32_v14 = vld [vmem:[%s1345_s0 + $0x90] sm:$0xff] }
   0x8   :  { %v223_v28 = vmax.f32 %v159_v20, 0.0  ;;  %v225_v33 = vmax.f32 %v161_v24, 0.0  ;;  %v226_v34 = vmax.f32 %v162_v25, 0.0  ;;  %v227_v41 = vmax.f32 %v163_v29, 0.0  ;;  %v33_v15 = vld [vmem:[%s1345_s0 + $0x98] sm:$0xff]  ;;  %v34_v20 = vld [vmem:[%s1345_s0 + $0xa0] sm:$0xff] }
   0x9   :  { %v675_v31 = vpack.c.bf16 %v220_v22, %v220_v22  ;;  %v224_v32 = vmax.f32 %v160_v23, 0.0  ;;  %v676_v38 = vpack.c.bf16 %v221_v26, %v221_v26  ;;  %v677_v39 = vpack.c.bf16 %v222_v27, %v222_v27  ;;  %v35_v21 = vld [vmem:[%s1345_s0 + $0xa8] sm:$0xff]  ;;  %v36_v22 = vld [vmem:[%s1345_s0 + $0xb0] sm:$0xff]  ;;  %v37_v27 = vld [vmem:[%s1345_s0 + $0xb8] sm:$0xff] }
   0xa   :  { %v678_v40 = vpack.c.bf16 %v223_v28, %v223_v28  ;;  %v680_v46 = vpack.c.bf16 %v225_v33, %v225_v33  ;;  %v681_v47 = vpack.c.bf16 %v226_v34, %v226_v34  ;;  %v93_v48 = vmul.f32 %v765_v1, %v22_v30 }
   0xb   :  { %541 = vst.msk [vmem:[%s1348_s3] sm:$0xf] %vm540_vm0, %v675_v31  ;;  %v679_v45 = vpack.c.bf16 %v224_v32, %v224_v32  ;;  %542 = vst.msk [vmem:[%s1348_s3 + $0x4] sm:$0xf] %vm540_vm0, %v676_v38  ;;  %v682_v50 = vpack.c.bf16 %v227_v41, %v227_v41  ;;  %v94_v51 = vmul.f32 %v765_v1, %v23_v35 }
   0xc   :  { %543 = vst.msk [vmem:[%s1348_s3 + $0x8] sm:$0xf] %vm540_vm0, %v677_v39  ;;  %544 = vst.msk [vmem:[%s1348_s3 + $0xc] sm:$0xf] %vm540_vm0, %v678_v40  ;;  %v95_v52 = vmul.f32 %v765_v1, %v24_v36  ;;  %v96_v53 = vmul.f32 %v765_v1, %v25_v37  ;;  %v164_v54 = vadd.f32 %v770_v2, %v93_v48  ;;  %v38_v48 = vld [vmem:[%s1345_s0 + $0xc0] sm:$0xff] }
   0xd   :  { %545 = vst.msk [vmem:[%s1348_s3 + $0x10] sm:$0xf] %vm540_vm0, %v679_v45  ;;  %546 = vst.msk [vmem:[%s1348_s3 + $0x14] sm:$0xf] %vm540_vm0, %v680_v46  ;;  %v97_v55 = vmul.f32 %v765_v1, %v26_v42  ;;  %v98_v56 = vmul.f32 %v765_v1, %v27_v43  ;;  %v99_v57 = vmul.f32 %v765_v1, %v28_v44 }
   0xe   :  { %547 = vst.msk [vmem:[%s1348_s3 + $0x18] sm:$0xf] %vm540_vm0, %v681_v47  ;;  %548 = vst.msk [vmem:[%s1348_s3 + $0x1c] sm:$0xf] %vm540_vm0, %v682_v50  ;;  %v165_v58 = vadd.f32 %v770_v2, %v94_v51  ;;  %v166_v59 = vadd.f32 %v770_v2, %v95_v52  ;;  %v167_v60 = vadd.f32 %v770_v2, %v96_v53  ;;  %v228_v62 = vmax.f32 %v164_v54, 0.0  ;;  %v39_v53 = vld [vmem:[%s1345_s0 + $0xc8] sm:$0xff] }
   0xf   :  { %v100_v61 = vmul.f32 %v765_v1, %v29_v49  ;;  %v168_v63 = vadd.f32 %v770_v2, %v97_v55  ;;  %v169_v0 = vadd.f32 %v770_v2, %v98_v56  ;;  %v170_v3 = vadd.f32 %v770_v2, %v99_v57  ;;  %v40_v54 = vld [vmem:[%s1345_s0 + $0xd0] sm:$0xff]  ;;  %v41_v55 = vld [vmem:[%s1345_s0 + $0xd8] sm:$0xff] }
  0x10   :  { %v229_v4 = vmax.f32 %v165_v58, 0.0  ;;  %v230_v5 = vmax.f32 %v166_v59, 0.0  ;;  %v231_v6 = vmax.f32 %v167_v60, 0.0  ;;  %v683_v9 = vpack.c.bf16 %v228_v62, %v228_v62  ;;  %v42_v60 = vld [vmem:[%s1345_s0 + $0xe0] sm:$0xff]  ;;  %v44_v62 = vld [vmem:[%s1345_s0 + $0xf0] sm:$0xff] }
  0x11   :  { %v171_v7 = vadd.f32 %v770_v2, %v100_v61  ;;  %v232_v10 = vmax.f32 %v168_v63, 0.0  ;;  %v233_v11 = vmax.f32 %v169_v0, 0.0  ;;  %v234_v12 = vmax.f32 %v170_v3, 0.0  ;;  %v43_v61 = vld [vmem:[%s1345_s0 + $0xe8] sm:$0xff] }
  0x12   :  { %v684_v16 = vpack.c.bf16 %v229_v4, %v229_v4  ;;  %v685_v17 = vpack.c.bf16 %v230_v5, %v230_v5  ;;  %v686_v18 = vpack.c.bf16 %v231_v6, %v231_v6  ;;  %549 = vst.msk [vmem:[%s1348_s3 + $0x20] sm:$0xf] %vm540_vm0, %v683_v9  ;;  %v101_v26 = vmul.f32 %v765_v1, %v30_v8  ;;  %v45_v5 = vld [vmem:[%s1345_s0 + $0xf8] sm:$0xff] }
  0x13   :  { %v235_v19 = vmax.f32 %v171_v7, 0.0  ;;  %v687_v23 = vpack.c.bf16 %v232_v10, %v232_v10  ;;  %v688_v24 = vpack.c.bf16 %v233_v11, %v233_v11  ;;  %v689_v25 = vpack.c.bf16 %v234_v12, %v234_v12 }
  0x14   :  { %550 = vst.msk [vmem:[%s1348_s3 + $0x24] sm:$0xf] %vm540_vm0, %v684_v16  ;;  %551 = vst.msk [vmem:[%s1348_s3 + $0x28] sm:$0xf] %vm540_vm0, %v685_v17  ;;  %v102_v29 = vmul.f32 %v765_v1, %v31_v13  ;;  %v103_v30 = vmul.f32 %v765_v1, %v32_v14  ;;  %v104_v31 = vmul.f32 %v765_v1, %v33_v15 }
  0x15   :  { %552 = vst.msk [vmem:[%s1348_s3 + $0x2c] sm:$0xf] %vm540_vm0, %v686_v18  ;;  %v690_v28 = vpack.c.bf16 %v235_v19, %v235_v19  ;;  %553 = vst.msk [vmem:[%s1348_s3 + $0x30] sm:$0xf] %vm540_vm0, %v687_v23  ;;  %v172_v32 = vadd.f32 %v770_v2, %v101_v26  ;;  %v105_v33 = vmul.f32 %v765_v1, %v34_v20  ;;  %v46_v26 = vld [vmem:[%s1345_s0 + $0x100] sm:$0xff] }
  0x16   :  { %554 = vst.msk [vmem:[%s1348_s3 + $0x34] sm:$0xf] %vm540_vm0, %v688_v24  ;;  %555 = vst.msk [vmem:[%s1348_s3 + $0x38] sm:$0xf] %vm540_vm0, %v689_v25  ;;  %v106_v34 = vmul.f32 %v765_v1, %v35_v21  ;;  %v107_v35 = vmul.f32 %v765_v1, %v36_v22  ;;  %v173_v36 = vadd.f32 %v770_v2, %v102_v29 }
  0x17   :  { %556 = vst.msk [vmem:[%s1348_s3 + $0x3c] sm:$0xf] %vm540_vm0, %v690_v28  ;;  %v174_v37 = vadd.f32 %v770_v2, %v103_v30  ;;  %v175_v38 = vadd.f32 %v770_v2, %v104_v31  ;;  %v108_v39 = vmul.f32 %v765_v1, %v37_v27  ;;  %v236_v40 = vmax.f32 %v172_v32, 0.0  ;;  %v47_v31 = vld [vmem:[%s1345_s0 + $0x108] sm:$0xff]  ;;  %v48_v32 = vld [vmem:[%s1345_s0 + $0x110] sm:$0xff] }
  0x18   :  { %v176_v41 = vadd.f32 %v770_v2, %v105_v33  ;;  %v177_v42 = vadd.f32 %v770_v2, %v106_v34  ;;  %v178_v43 = vadd.f32 %v770_v2, %v107_v35  ;;  %v237_v44 = vmax.f32 %v173_v36, 0.0  ;;  %v49_v33 = vld [vmem:[%s1345_s0 + $0x118] sm:$0xff] }
  0x19   :  { %v238_v45 = vmax.f32 %v174_v37, 0.0  ;;  %v239_v46 = vmax.f32 %v175_v38, 0.0  ;;  %v179_v47 = vadd.f32 %v770_v2, %v108_v39  ;;  %v691_v49 = vpack.c.bf16 %v236_v40, %v236_v40  ;;  %v50_v38 = vld [vmem:[%s1345_s0 + $0x120] sm:$0xff]  ;;  %v51_v39 = vld [vmem:[%s1345_s0 + $0x128] sm:$0xff]  ;;  %v52_v40 = vld [vmem:[%s1345_s0 + $0x130] sm:$0xff] }
  0x1a   :  { %v240_v50 = vmax.f32 %v176_v41, 0.0  ;;  %v241_v51 = vmax.f32 %v177_v42, 0.0  ;;  %v242_v52 = vmax.f32 %v178_v43, 0.0  ;;  %v692_v56 = vpack.c.bf16 %v237_v44, %v237_v44 }
  0x1b   :  { %v693_v57 = vpack.c.bf16 %v238_v45, %v238_v45  ;;  %v694_v58 = vpack.c.bf16 %v239_v46, %v239_v46  ;;  %v243_v59 = vmax.f32 %v179_v47, 0.0  ;;  %557 = vst.msk [vmem:[%s1348_s3 + $0x40] sm:$0xf] %vm540_vm0, %v691_v49  ;;  %v109_v4 = vmul.f32 %v765_v1, %v38_v48  ;;  %v53_v45 = vld [vmem:[%s1345_s0 + $0x138] sm:$0xff] }
  0x1c   :  { %v695_v63 = vpack.c.bf16 %v240_v50, %v240_v50  ;;  %v696_v0 = vpack.c.bf16 %v241_v51, %v241_v51  ;;  %v697_v3 = vpack.c.bf16 %v242_v52, %v242_v52  ;;  %558 = vst.msk [vmem:[%s1348_s3 + $0x44] sm:$0xf] %vm540_vm0, %v692_v56  ;;  %v110_v7 = vmul.f32 %v765_v1, %v39_v53 }
  0x1d   :  { %559 = vst.msk [vmem:[%s1348_s3 + $0x48] sm:$0xf] %vm540_vm0, %v693_v57  ;;  %560 = vst.msk [vmem:[%s1348_s3 + $0x4c] sm:$0xf] %vm540_vm0, %v694_v58  ;;  %v698_v6 = vpack.c.bf16 %v243_v59, %v243_v59  ;;  %v111_v8 = vmul.f32 %v765_v1, %v40_v54  ;;  %v112_v9 = vmul.f32 %v765_v1, %v41_v55 }
  0x1e   :  { %561 = vst.msk [vmem:[%s1348_s3 + $0x50] sm:$0xf] %vm540_vm0, %v695_v63  ;;  %562 = vst.msk [vmem:[%s1348_s3 + $0x54] sm:$0xf] %vm540_vm0, %v696_v0  ;;  %v180_v10 = vadd.f32 %v770_v2, %v109_v4  ;;  %v113_v11 = vmul.f32 %v765_v1, %v42_v60  ;;  %v114_v12 = vmul.f32 %v765_v1, %v43_v61  ;;  %v54_v4 = vld [vmem:[%s1345_s0 + $0x140] sm:$0xff] }
  0x1f   :  { %563 = vst.msk [vmem:[%s1348_s3 + $0x58] sm:$0xf] %vm540_vm0, %v697_v3  ;;  %v115_v13 = vmul.f32 %v765_v1, %v44_v62  ;;  %564 = vst.msk [vmem:[%s1348_s3 + $0x5c] sm:$0xf] %vm540_vm0, %v698_v6  ;;  %v181_v14 = vadd.f32 %v770_v2, %v110_v7  ;;  %v182_v15 = vadd.f32 %v770_v2, %v111_v8 }
  0x20   :  { %v183_v16 = vadd.f32 %v770_v2, %v112_v9  ;;  %v116_v17 = vmul.f32 %v765_v1, %v45_v5  ;;  %v244_v18 = vmax.f32 %v180_v10, 0.0  ;;  %v184_v19 = vadd.f32 %v770_v2, %v113_v11  ;;  %v55_v9 = vld [vmem:[%s1345_s0 + $0x148] sm:$0xff]  ;;  %v56_v10 = vld [vmem:[%s1345_s0 + $0x150] sm:$0xff]  ;;  %v57_v11 = vld [vmem:[%s1345_s0 + $0x158] sm:$0xff] }
  0x21   :  { %v185_v20 = vadd.f32 %v770_v2, %v114_v12  ;;  %v186_v21 = vadd.f32 %v770_v2, %v115_v13  ;;  %v245_v22 = vmax.f32 %v181_v14, 0.0  ;;  %v246_v23 = vmax.f32 %v182_v15, 0.0 }
  0x22   :  { %v247_v24 = vmax.f32 %v183_v16, 0.0  ;;  %v187_v25 = vadd.f32 %v770_v2, %v116_v17  ;;  %v699_v27 = vpack.c.bf16 %v244_v18, %v244_v18  ;;  %v248_v28 = vmax.f32 %v184_v19, 0.0  ;;  %v58_v16 = vld [vmem:[%s1345_s0 + $0x160] sm:$0xff]  ;;  %v59_v17 = vld [vmem:[%s1345_s0 + $0x168] sm:$0xff]  ;;  %v60_v18 = vld [vmem:[%s1345_s0 + $0x170] sm:$0xff] }
  0x23   :  { %v249_v29 = vmax.f32 %v185_v20, 0.0  ;;  %v250_v30 = vmax.f32 %v186_v21, 0.0  ;;  %v700_v34 = vpack.c.bf16 %v245_v22, %v245_v22  ;;  %v701_v35 = vpack.c.bf16 %v246_v23, %v246_v23  ;;  %v61_v23 = vld [vmem:[%s1345_s0 + $0x178] sm:$0xff] }
  0x24   :  { %v702_v36 = vpack.c.bf16 %v247_v24, %v247_v24  ;;  %v251_v37 = vmax.f32 %v187_v25, 0.0  ;;  %565 = vst.msk [vmem:[%s1348_s3 + $0x60] sm:$0xf] %vm540_vm0, %v699_v27  ;;  %v703_v41 = vpack.c.bf16 %v248_v28, %v248_v28  ;;  %v117_v44 = vmul.f32 %v765_v1, %v46_v26 }
  0x25   :  { %v704_v42 = vpack.c.bf16 %v249_v29, %v249_v29  ;;  %v705_v43 = vpack.c.bf16 %v250_v30, %v250_v30  ;;  %566 = vst.msk [vmem:[%s1348_s3 + $0x64] sm:$0xf] %vm540_vm0, %v700_v34  ;;  %567 = vst.msk [vmem:[%s1348_s3 + $0x68] sm:$0xf] %vm540_vm0, %v701_v35  ;;  %v118_v47 = vmul.f32 %v765_v1, %v47_v31 }
  0x26   :  { %568 = vst.msk [vmem:[%s1348_s3 + $0x6c] sm:$0xf] %vm540_vm0, %v702_v36  ;;  %v706_v46 = vpack.c.bf16 %v251_v37, %v251_v37  ;;  %v119_v48 = vmul.f32 %v765_v1, %v48_v32  ;;  %v120_v49 = vmul.f32 %v765_v1, %v49_v33  ;;  %569 = vst.msk [vmem:[%s1348_s3 + $0x70] sm:$0xf] %vm540_vm0, %v703_v41 }
  0x27   :  { %570 = vst.msk [vmem:[%s1348_s3 + $0x74] sm:$0xf] %vm540_vm0, %v704_v42  ;;  %571 = vst.msk [vmem:[%s1348_s3 + $0x78] sm:$0xf] %vm540_vm0, %v705_v43  ;;  %v188_v50 = vadd.f32 %v770_v2, %v117_v44  ;;  %v121_v51 = vmul.f32 %v765_v1, %v50_v38  ;;  %v122_v52 = vmul.f32 %v765_v1, %v51_v39  ;;  %v62_v44 = vld [vmem:[%s1345_s0 + $0x180] sm:$0xff] }
  0x28   :  { %v123_v53 = vmul.f32 %v765_v1, %v52_v40  ;;  %572 = vst.msk [vmem:[%s1348_s3 + $0x7c] sm:$0xf] %vm540_vm0, %v706_v46  ;;  %v189_v54 = vadd.f32 %v770_v2, %v118_v47  ;;  %v190_v55 = vadd.f32 %v770_v2, %v119_v48  ;;  %v191_v56 = vadd.f32 %v770_v2, %v120_v49  ;;  %v63_v49 = vld [vmem:[%s1345_s0 + $0x188] sm:$0xff] }
  0x29   :  { %v124_v57 = vmul.f32 %v765_v1, %v53_v45  ;;  %v252_v58 = vmax.f32 %v188_v50, 0.0  ;;  %v192_v59 = vadd.f32 %v770_v2, %v121_v51  ;;  %v193_v60 = vadd.f32 %v770_v2, %v122_v52  ;;  %v64_v50 = vld [vmem:[%s1345_s0 + $0x190] sm:$0xff]  ;;  %v65_v51 = vld [vmem:[%s1345_s0 + $0x198] sm:$0xff] }
  0x2a   :  { %v194_v61 = vadd.f32 %v770_v2, %v123_v53  ;;  %v253_v62 = vmax.f32 %v189_v54, 0.0  ;;  %v254_v63 = vmax.f32 %v190_v55, 0.0  ;;  %v255_v0 = vmax.f32 %v191_v56, 0.0  ;;  %v66_v56 = vld [vmem:[%s1345_s0 + $0x1a0] sm:$0xff] }
  0x2b   :  { %v195_v3 = vadd.f32 %v770_v2, %v124_v57  ;;  %v707_v5 = vpack.c.bf16 %v252_v58, %v252_v58  ;;  %v256_v6 = vmax.f32 %v192_v59, 0.0  ;;  %v257_v7 = vmax.f32 %v193_v60, 0.0  ;;  %v67_v57 = vld [vmem:[%s1345_s0 + $0x1a8] sm:$0xff]  ;;  %v68_v58 = vld [vmem:[%s1345_s0 + $0x1b0] sm:$0xff] }
  0x2c   :  { %v258_v8 = vmax.f32 %v194_v61, 0.0  ;;  %v708_v12 = vpack.c.bf16 %v253_v62, %v253_v62  ;;  %v709_v13 = vpack.c.bf16 %v254_v63, %v254_v63  ;;  %v710_v14 = vpack.c.bf16 %v255_v0, %v255_v0  ;;  %v69_v63 = vld [vmem:[%s1345_s0 + $0x1b8] sm:$0xff] }
  0x2d   :  { %v259_v15 = vmax.f32 %v195_v3, 0.0  ;;  %573 = vst.msk [vmem:[%s1348_s3 + $0x80] sm:$0xf] %vm540_vm0, %v707_v5  ;;  %v711_v19 = vpack.c.bf16 %v256_v6, %v256_v6  ;;  %v712_v20 = vpack.c.bf16 %v257_v7, %v257_v7  ;;  %v125_v22 = vmul.f32 %v765_v1, %v54_v4 }
  0x2e   :  { %v713_v21 = vpack.c.bf16 %v258_v8, %v258_v8  ;;  %574 = vst.msk [vmem:[%s1348_s3 + $0x84] sm:$0xf] %vm540_vm0, %v708_v12  ;;  %575 = vst.msk [vmem:[%s1348_s3 + $0x88] sm:$0xf] %vm540_vm0, %v709_v13  ;;  %v126_v25 = vmul.f32 %v765_v1, %v55_v9  ;;  %v127_v26 = vmul.f32 %v765_v1, %v56_v10 }
  0x2f   :  { %576 = vst.msk [vmem:[%s1348_s3 + $0x8c] sm:$0xf] %vm540_vm0, %v710_v14  ;;  %v714_v24 = vpack.c.bf16 %v259_v15, %v259_v15  ;;  %v128_v27 = vmul.f32 %v765_v1, %v57_v11  ;;  %577 = vst.msk [vmem:[%s1348_s3 + $0x90] sm:$0xf] %vm540_vm0, %v711_v19  ;;  %v196_v28 = vadd.f32 %v770_v2, %v125_v22  ;;  %v70_v22 = vld [vmem:[%s1345_s0 + $0x1c0] sm:$0xff] }
  0x30   :  { %578 = vst.msk [vmem:[%s1348_s3 + $0x94] sm:$0xf] %vm540_vm0, %v712_v20  ;;  %579 = vst.msk [vmem:[%s1348_s3 + $0x98] sm:$0xf] %vm540_vm0, %v713_v21  ;;  %v129_v29 = vmul.f32 %v765_v1, %v58_v16  ;;  %v130_v30 = vmul.f32 %v765_v1, %v59_v17  ;;  %v131_v31 = vmul.f32 %v765_v1, %v60_v18 }
  0x31   :  { %580 = vst.msk [vmem:[%s1348_s3 + $0x9c] sm:$0xf] %vm540_vm0, %v714_v24  ;;  %v197_v32 = vadd.f32 %v770_v2, %v126_v25  ;;  %v198_v33 = vadd.f32 %v770_v2, %v127_v26  ;;  %v199_v34 = vadd.f32 %v770_v2, %v128_v27  ;;  %v132_v35 = vmul.f32 %v765_v1, %v61_v23  ;;  %v71_v27 = vld [vmem:[%s1345_s0 + $0x1c8] sm:$0xff] }
  0x32   :  { %v260_v36 = vmax.f32 %v196_v28, 0.0  ;;  %v200_v37 = vadd.f32 %v770_v2, %v129_v29  ;;  %v201_v38 = vadd.f32 %v770_v2, %v130_v30  ;;  %v202_v39 = vadd.f32 %v770_v2, %v131_v31  ;;  %v72_v28 = vld [vmem:[%s1345_s0 + $0x1d0] sm:$0xff]  ;;  %v73_v29 = vld [vmem:[%s1345_s0 + $0x1d8] sm:$0xff] }
  0x33   :  { %v261_v40 = vmax.f32 %v197_v32, 0.0  ;;  %v262_v41 = vmax.f32 %v198_v33, 0.0  ;;  %v263_v42 = vmax.f32 %v199_v34, 0.0  ;;  %v203_v43 = vadd.f32 %v770_v2, %v132_v35  ;;  %v74_v34 = vld [vmem:[%s1345_s0 + $0x1e0] sm:$0xff]  ;;  %v75_v35 = vld [vmem:[%s1345_s0 + $0x1e8] sm:$0xff] }
  0x34   :  { %v715_v45 = vpack.c.bf16 %v260_v36, %v260_v36  ;;  %v264_v46 = vmax.f32 %v200_v37, 0.0  ;;  %v265_v47 = vmax.f32 %v201_v38, 0.0  ;;  %v266_v48 = vmax.f32 %v202_v39, 0.0  ;;  %v76_v36 = vld [vmem:[%s1345_s0 + $0x1f0] sm:$0xff] }
  0x35   :  { %v716_v52 = vpack.c.bf16 %v261_v40, %v261_v40  ;;  %v717_v53 = vpack.c.bf16 %v262_v41, %v262_v41  ;;  %v718_v54 = vpack.c.bf16 %v263_v42, %v263_v42  ;;  %v267_v55 = vmax.f32 %v203_v43, 0.0  ;;  %v77_v41 = vld [vmem:[%s1345_s0 + $0x1f8] sm:$0xff] }
  0x36   :  { %581 = vst.msk [vmem:[%s1348_s3 + $0xa0] sm:$0xf] %vm540_vm0, %v715_v45  ;;  %v719_v59 = vpack.c.bf16 %v264_v46, %v264_v46  ;;  %v720_v60 = vpack.c.bf16 %v265_v47, %v265_v47  ;;  %v721_v61 = vpack.c.bf16 %v266_v48, %v266_v48  ;;  %v133_v62 = vmul.f32 %v765_v1, %v62_v44 }
  0x37   :  { %582 = vst.msk [vmem:[%s1348_s3 + $0xa4] sm:$0xf] %vm540_vm0, %v716_v52  ;;  %583 = vst.msk [vmem:[%s1348_s3 + $0xa8] sm:$0xf] %vm540_vm0, %v717_v53  ;;  %v722_v0 = vpack.c.bf16 %v267_v55, %v267_v55  ;;  %v134_v3 = vmul.f32 %v765_v1, %v63_v49  ;;  %v135_v4 = vmul.f32 %v765_v1, %v64_v50 }
  0x38   :  { %584 = vst.msk [vmem:[%s1348_s3 + $0xac] sm:$0xf] %vm540_vm0, %v718_v54  ;;  %v136_v5 = vmul.f32 %v765_v1, %v65_v51  ;;  %585 = vst.msk [vmem:[%s1348_s3 + $0xb0] sm:$0xf] %vm540_vm0, %v719_v59  ;;  %v204_v6 = vadd.f32 %v770_v2, %v133_v62  ;;  %v137_v7 = vmul.f32 %v765_v1, %v66_v56 }
  0x39   :  { %586 = vst.msk [vmem:[%s1348_s3 + $0xb4] sm:$0xf] %vm540_vm0, %v720_v60  ;;  %587 = vst.msk [vmem:[%s1348_s3 + $0xb8] sm:$0xf] %vm540_vm0, %v721_v61  ;;  %v138_v8 = vmul.f32 %v765_v1, %v67_v57  ;;  %v139_v9 = vmul.f32 %v765_v1, %v68_v58  ;;  %v205_v10 = vadd.f32 %v770_v2, %v134_v3 }
  0x3a   :  { %588 = vst.msk [vmem:[%s1348_s3 + $0xbc] sm:$0xf] %vm540_vm0, %v722_v0  ;;  %v206_v11 = vadd.f32 %v770_v2, %v135_v4  ;;  %v207_v12 = vadd.f32 %v770_v2, %v136_v5  ;;  %v140_v13 = vmul.f32 %v765_v1, %v69_v63  ;;  %v268_v14 = vmax.f32 %v204_v6, 0.0 }
  0x3b   :  { %v208_v15 = vadd.f32 %v770_v2, %v137_v7  ;;  %v209_v16 = vadd.f32 %v770_v2, %v138_v8  ;;  %v210_v17 = vadd.f32 %v770_v2, %v139_v9  ;;  %v269_v18 = vmax.f32 %v205_v10, 0.0 }
  0x3c   :  { %v270_v19 = vmax.f32 %v206_v11, 0.0  ;;  %v271_v20 = vmax.f32 %v207_v12, 0.0  ;;  %v211_v21 = vadd.f32 %v770_v2, %v140_v13  ;;  %v723_v23 = vpack.c.bf16 %v268_v14, %v268_v14 }
  0x3d   :  { %v272_v24 = vmax.f32 %v208_v15, 0.0  ;;  %v273_v25 = vmax.f32 %v209_v16, 0.0  ;;  %v274_v26 = vmax.f32 %v210_v17, 0.0  ;;  %v724_v30 = vpack.c.bf16 %v269_v18, %v269_v18 }
  0x3e   :  { %v725_v31 = vpack.c.bf16 %v270_v19, %v270_v19  ;;  %v726_v32 = vpack.c.bf16 %v271_v20, %v271_v20  ;;  %v275_v33 = vmax.f32 %v211_v21, 0.0  ;;  %589 = vst.msk [vmem:[%s1348_s3 + $0xc0] sm:$0xf] %vm540_vm0, %v723_v23  ;;  %v141_v40 = vmul.f32 %v765_v1, %v70_v22 }
  0x3f   :  { %v727_v37 = vpack.c.bf16 %v272_v24, %v272_v24  ;;  %v728_v38 = vpack.c.bf16 %v273_v25, %v273_v25  ;;  %v729_v39 = vpack.c.bf16 %v274_v26, %v274_v26  ;;  %590 = vst.msk [vmem:[%s1348_s3 + $0xc4] sm:$0xf] %vm540_vm0, %v724_v30  ;;  %v142_v43 = vmul.f32 %v765_v1, %v71_v27 }
  0x40   :  { %591 = vst.msk [vmem:[%s1348_s3 + $0xc8] sm:$0xf] %vm540_vm0, %v725_v31  ;;  %592 = vst.msk [vmem:[%s1348_s3 + $0xcc] sm:$0xf] %vm540_vm0, %v726_v32  ;;  %v730_v42 = vpack.c.bf16 %v275_v33, %v275_v33  ;;  %v143_v44 = vmul.f32 %v765_v1, %v72_v28  ;;  %v144_v45 = vmul.f32 %v765_v1, %v73_v29 }
  0x41   :  { %593 = vst.msk [vmem:[%s1348_s3 + $0xd0] sm:$0xf] %vm540_vm0, %v727_v37  ;;  %594 = vst.msk [vmem:[%s1348_s3 + $0xd4] sm:$0xf] %vm540_vm0, %v728_v38  ;;  %v212_v46 = vadd.f32 %v770_v2, %v141_v40  ;;  %v145_v47 = vmul.f32 %v765_v1, %v74_v34  ;;  %v146_v48 = vmul.f32 %v765_v1, %v75_v35 }
  0x42   :  { %595 = vst.msk [vmem:[%s1348_s3 + $0xd8] sm:$0xf] %vm540_vm0, %v729_v39  ;;  %v147_v49 = vmul.f32 %v765_v1, %v76_v36  ;;  %596 = vst.msk [vmem:[%s1348_s3 + $0xdc] sm:$0xf] %vm540_vm0, %v730_v42  ;;  %v213_v50 = vadd.f32 %v770_v2, %v142_v43  ;;  %v214_v51 = vadd.f32 %v770_v2, %v143_v44 }
  0x43   :  { %v215_v52 = vadd.f32 %v770_v2, %v144_v45  ;;  %v148_v53 = vmul.f32 %v765_v1, %v77_v41  ;;  %v276_v54 = vmax.f32 %v212_v46, 0.0  ;;  %v216_v55 = vadd.f32 %v770_v2, %v145_v47 }
  0x44   :  { %v217_v56 = vadd.f32 %v770_v2, %v146_v48  ;;  %v218_v57 = vadd.f32 %v770_v2, %v147_v49  ;;  %v277_v58 = vmax.f32 %v213_v50, 0.0  ;;  %v278_v59 = vmax.f32 %v214_v51, 0.0 }
  0x45   :  { %v279_v60 = vmax.f32 %v215_v52, 0.0  ;;  %v219_v61 = vadd.f32 %v770_v2, %v148_v53  ;;  %v731_v62 = vpack.c.bf16 %v276_v54, %v276_v54  ;;  %v280_v63 = vmax.f32 %v216_v55, 0.0 }
  0x46   :  { %v281_v0 = vmax.f32 %v217_v56, 0.0  ;;  %v282_v3 = vmax.f32 %v218_v57, 0.0  ;;  %v732_v4 = vpack.c.bf16 %v277_v58, %v277_v58  ;;  %v733_v5 = vpack.c.bf16 %v278_v59, %v278_v59 }
  0x47   :  { %v734_v6 = vpack.c.bf16 %v279_v60, %v279_v60  ;;  %v283_v1 = vmax.f32 %v219_v61, 0.0  ;;  %597 = vst.msk [vmem:[%s1348_s3 + $0xe0] sm:$0xf] %vm540_vm0, %v731_v62  ;;  %v735_v7 = vpack.c.bf16 %v280_v63, %v280_v63 }
  0x48   :  { %v736_v8 = vpack.c.bf16 %v281_v0, %v281_v0  ;;  %v737_v9 = vpack.c.bf16 %v282_v3, %v282_v3  ;;  %598 = vst.msk [vmem:[%s1348_s3 + $0xe4] sm:$0xf] %vm540_vm0, %v732_v4  ;;  %599 = vst.msk [vmem:[%s1348_s3 + $0xe8] sm:$0xf] %vm540_vm0, %v733_v5 }
  0x49   :  { %600 = vst.msk [vmem:[%s1348_s3 + $0xec] sm:$0xf] %vm540_vm0, %v734_v6  ;;  %v738_v2 = vpack.c.bf16 %v283_v1, %v283_v1  ;;  %601 = vst.msk [vmem:[%s1348_s3 + $0xf0] sm:$0xf] %vm540_vm0, %v735_v7 }
  0x4a   :  { %602 = vst.msk [vmem:[%s1348_s3 + $0xf4] sm:$0xf] %vm540_vm0, %v736_v8  ;;  %603 = vst.msk [vmem:[%s1348_s3 + $0xf8] sm:$0xf] %vm540_vm0, %v737_v9 }
  0x4b   :  { %604 = vst.msk [vmem:[%s1348_s3 + $0xfc] sm:$0xf] %vm540_vm0, %v738_v2 }

// kernel: _lambda_.13
= control target key start
LH: loop header
LB: loop body
LE: loop exit
PB: predicated region body
PF: predicated region fallthrough
CT: control target
= control target key end

     0   :  { %s1769_s15 = smov 0   ;;  %s1771_s16 = smov 0   ;;  %s2463_s0 = inlined_call_operand.vmem [shape: bf16[9,512,3], index: 0, kind: input, shape index: {}]   ;;  %s2464_s1 = inlined_call_operand.vmem [shape: bf16[9,3,16], index: 1, kind: input, shape index: {}]   ;;  %s2465_s2 = inlined_call_operand.vmem [shape: f32[1,16], index: 2, kind: input, shape index: {}]   ;;  %s2466_s3 = inlined_call_operand.vmem [shape: f32[1,16], index: 3, kind: input, shape index: {}]   ;;  %s2467_s4 = inlined_call_operand.vmem [shape: f32[512,16], index: 4, kind: output, shape index: {}]  }
   0x1   :  { %s1773_s17 = smov 0  }
   0x2 LB: > { %s23_s18 = sadd.s32 1, %s1736_s16  ;;  %p1482_p0 = scmp.ge.s32.totalorder %s1740_s17, 1  ;;  %s1740_s17 = sphi %s1773_s17, %s14_s17   ;;  %s1736_s16 = sphi %s1771_s16, %s2469_s16   ;;  %s1732_s15 = sphi %s1769_s15, %s2468_s15  }
   0x3   : > { %p24_p1 = scmp.ge.s32.totalorder %s23_s18, 9  ;;  %p190_p2 = scmp.lt.s32.totalorder %s1740_s17, 10 }
   0x5   : > { %s2471_s18 = smov (%p24_p1, %s23_s18), 0  ;;  %p191_p3 = pnand %p1482_p0, %p190_p2 }
   0x6   : > { %p225_p4 = scmp.lt.s32.totalorder (!%p191_p3), %s1732_s15, 8  ;;  %p1486_p5 = scmp.ne.s32.totalorder (!%p191_p3), %s1732_s15, 0 }
   0x7   : > { %194 = sbr.rel (%p191_p3) target bundleno = 362 (0x16a), region = 36 }
   0xc   : > { %s226_s19 = scalar_select %p225_p4, %s1732_s15, 8 }
   0xd   : > { %248 = sbr.rel (%p1486_p5) target bundleno = 51 (0x33), region = 40 }
   0xe   : > { %s1558_s20 = sshll.u32 %s226_s19, 8  ;;  %s1485_s21 = sshll.u32 %s226_s19, 1 }
   0xf   : > { %s1794_s24 = scalar_lea.vmem %s2463_s0, %s1558_s20  ;;  %s1799_s27 = scalar_lea.vmem %s2464_s1, %s1485_s21 }
  0x12   : > { %vm249_vm0 = vcmask 130048   ;;  %v1742_v0 = vmov 0.0  }
  0x13   : > { %250 = vst.msk [vmem:[#allocation2] sm:$0xff] %vm249_vm0, %v1742_v0  ;;  %251 = vst.msk [vmem:[#allocation2 + $0x8] sm:$0xff] %vm249_vm0, %v1742_v0 }
  0x14   : > { %252 = vst.msk [vmem:[#allocation2 + $0x10] sm:$0xff] %vm249_vm0, %v1742_v0  ;;  %253 = vst.msk [vmem:[#allocation2 + $0x18] sm:$0xff] %vm249_vm0, %v1742_v0 }
  0x15   : > { %254 = vst.msk [vmem:[#allocation2 + $0x20] sm:$0xff] %vm249_vm0, %v1742_v0  ;;  %255 = vst.msk [vmem:[#allocation2 + $0x28] sm:$0xff] %vm249_vm0, %v1742_v0 }
  0x16   : > { %256 = vst.msk [vmem:[#allocation2 + $0x30] sm:$0xff] %vm249_vm0, %v1742_v0  ;;  %257 = vst.msk [vmem:[#allocation2 + $0x38] sm:$0xff] %vm249_vm0, %v1742_v0 }
  0x17   : > { %258 = vst.msk [vmem:[#allocation2 + $0x40] sm:$0xff] %vm249_vm0, %v1742_v0  ;;  %259 = vst.msk [vmem:[#allocation2 + $0x48] sm:$0xff] %vm249_vm0, %v1742_v0 }
  0x18   : > { %260 = vst.msk [vmem:[#allocation2 + $0x50] sm:$0xff] %vm249_vm0, %v1742_v0  ;;  %261 = vst.msk [vmem:[#allocation2 + $0x58] sm:$0xff] %vm249_vm0, %v1742_v0 }
  0x19   : > { %262 = vst.msk [vmem:[#allocation2 + $0x60] sm:$0xff] %vm249_vm0, %v1742_v0  ;;  %263 = vst.msk [vmem:[#allocation2 + $0x68] sm:$0xff] %vm249_vm0, %v1742_v0 }
  0x1a   : > { %264 = vst.msk [vmem:[#allocation2 + $0x70] sm:$0xff] %vm249_vm0, %v1742_v0  ;;  %265 = vst.msk [vmem:[#allocation2 + $0x78] sm:$0xff] %vm249_vm0, %v1742_v0 }
  0x1b   : > { %266 = vst.msk [vmem:[#allocation2 + $0x80] sm:$0xff] %vm249_vm0, %v1742_v0  ;;  %267 = vst.msk [vmem:[#allocation2 + $0x88] sm:$0xff] %vm249_vm0, %v1742_v0 }
  0x1c   : > { %268 = vst.msk [vmem:[#allocation2 + $0x90] sm:$0xff] %vm249_vm0, %v1742_v0  ;;  %269 = vst.msk [vmem:[#allocation2 + $0x98] sm:$0xff] %vm249_vm0, %v1742_v0 }
  0x1d   : > { %270 = vst.msk [vmem:[#allocation2 + $0xa0] sm:$0xff] %vm249_vm0, %v1742_v0  ;;  %271 = vst.msk [vmem:[#allocation2 + $0xa8] sm:$0xff] %vm249_vm0, %v1742_v0 }
  0x1e   : > { %272 = vst.msk [vmem:[#allocation2 + $0xb0] sm:$0xff] %vm249_vm0, %v1742_v0  ;;  %273 = vst.msk [vmem:[#allocation2 + $0xb8] sm:$0xff] %vm249_vm0, %v1742_v0 }
  0x1f   : > { %274 = vst.msk [vmem:[#allocation2 + $0xc0] sm:$0xff] %vm249_vm0, %v1742_v0  ;;  %275 = vst.msk [vmem:[#allocation2 + $0xc8] sm:$0xff] %vm249_vm0, %v1742_v0 }
  0x20   : > { %276 = vst.msk [vmem:[#allocation2 + $0xd0] sm:$0xff] %vm249_vm0, %v1742_v0  ;;  %277 = vst.msk [vmem:[#allocation2 + $0xd8] sm:$0xff] %vm249_vm0, %v1742_v0 }
  0x21   : > { %278 = vst.msk [vmem:[#allocation2 + $0xe0] sm:$0xff] %vm249_vm0, %v1742_v0  ;;  %279 = vst.msk [vmem:[#allocation2 + $0xe8] sm:$0xff] %vm249_vm0, %v1742_v0 }
  0x22   : > { %280 = vst.msk [vmem:[#allocation2 + $0xf0] sm:$0xff] %vm249_vm0, %v1742_v0  ;;  %281 = vst.msk [vmem:[#allocation2 + $0xf8] sm:$0xff] %vm249_vm0, %v1742_v0 }
  0x23   : > { %282 = vst.msk [vmem:[#allocation2 + $0x100] sm:$0xff] %vm249_vm0, %v1742_v0  ;;  %283 = vst.msk [vmem:[#allocation2 + $0x108] sm:$0xff] %vm249_vm0, %v1742_v0 }
  0x24   : > { %284 = vst.msk [vmem:[#allocation2 + $0x110] sm:$0xff] %vm249_vm0, %v1742_v0  ;;  %285 = vst.msk [vmem:[#allocation2 + $0x118] sm:$0xff] %vm249_vm0, %v1742_v0 }
  0x25   : > { %286 = vst.msk [vmem:[#allocation2 + $0x120] sm:$0xff] %vm249_vm0, %v1742_v0  ;;  %287 = vst.msk [vmem:[#allocation2 + $0x128] sm:$0xff] %vm249_vm0, %v1742_v0 }
  0x26   : > { %288 = vst.msk [vmem:[#allocation2 + $0x130] sm:$0xff] %vm249_vm0, %v1742_v0  ;;  %289 = vst.msk [vmem:[#allocation2 + $0x138] sm:$0xff] %vm249_vm0, %v1742_v0 }
  0x27   : > { %290 = vst.msk [vmem:[#allocation2 + $0x140] sm:$0xff] %vm249_vm0, %v1742_v0  ;;  %291 = vst.msk [vmem:[#allocation2 + $0x148] sm:$0xff] %vm249_vm0, %v1742_v0 }
  0x28   : > { %292 = vst.msk [vmem:[#allocation2 + $0x150] sm:$0xff] %vm249_vm0, %v1742_v0  ;;  %293 = vst.msk [vmem:[#allocation2 + $0x158] sm:$0xff] %vm249_vm0, %v1742_v0 }
  0x29   : > { %294 = vst.msk [vmem:[#allocation2 + $0x160] sm:$0xff] %vm249_vm0, %v1742_v0  ;;  %295 = vst.msk [vmem:[#allocation2 + $0x168] sm:$0xff] %vm249_vm0, %v1742_v0 }
  0x2a   : > { %296 = vst.msk [vmem:[#allocation2 + $0x170] sm:$0xff] %vm249_vm0, %v1742_v0  ;;  %297 = vst.msk [vmem:[#allocation2 + $0x178] sm:$0xff] %vm249_vm0, %v1742_v0 }
  0x2b   : > { %298 = vst.msk [vmem:[#allocation2 + $0x180] sm:$0xff] %vm249_vm0, %v1742_v0  ;;  %299 = vst.msk [vmem:[#allocation2 + $0x188] sm:$0xff] %vm249_vm0, %v1742_v0 }
  0x2c   : > { %300 = vst.msk [vmem:[#allocation2 + $0x190] sm:$0xff] %vm249_vm0, %v1742_v0  ;;  %301 = vst.msk [vmem:[#allocation2 + $0x198] sm:$0xff] %vm249_vm0, %v1742_v0 }
  0x2d   : > { %302 = vst.msk [vmem:[#allocation2 + $0x1a0] sm:$0xff] %vm249_vm0, %v1742_v0  ;;  %303 = vst.msk [vmem:[#allocation2 + $0x1a8] sm:$0xff] %vm249_vm0, %v1742_v0 }
  0x2e   : > { %304 = vst.msk [vmem:[#allocation2 + $0x1b0] sm:$0xff] %vm249_vm0, %v1742_v0  ;;  %305 = vst.msk [vmem:[#allocation2 + $0x1b8] sm:$0xff] %vm249_vm0, %v1742_v0 }
  0x2f   : > { %306 = vst.msk [vmem:[#allocation2 + $0x1c0] sm:$0xff] %vm249_vm0, %v1742_v0  ;;  %307 = vst.msk [vmem:[#allocation2 + $0x1c8] sm:$0xff] %vm249_vm0, %v1742_v0 }
  0x30   : > { %308 = vst.msk [vmem:[#allocation2 + $0x1d0] sm:$0xff] %vm249_vm0, %v1742_v0  ;;  %309 = vst.msk [vmem:[#allocation2 + $0x1d8] sm:$0xff] %vm249_vm0, %v1742_v0 }
  0x31   : > { %310 = vst.msk [vmem:[#allocation2 + $0x1e0] sm:$0xff] %vm249_vm0, %v1742_v0  ;;  %311 = vst.msk [vmem:[#allocation2 + $0x1e8] sm:$0xff] %vm249_vm0, %v1742_v0 }
  0x32   : > { %312 = vst.msk [vmem:[#allocation2 + $0x1f0] sm:$0xff] %vm249_vm0, %v1742_v0  ;;  %313 = vst.msk [vmem:[#allocation2 + $0x1f8] sm:$0xff] %vm249_vm0, %v1742_v0 }
  0x33 PF: > { %v442_v1 = vld [vmem:[%s1799_s27] sm:$0x3]  ;;  %vm700_vm1 = vcmask 1040384   ;;  %vm701_vm2 = vcmask 1041408   ;;  %v1743_v3 = vmov 65535   ;;  %vm603_vm3 = vcmask 23552  }
  0x34   : > { %v1686_v2 = vld [vmem:[%s1794_s24] sm:$0xff]   ;;  %v702_v4 = vsel %vm700_vm1, 4294967295, %v1743_v3  ;;  %v1688_v8 = vld [vmem:[%s1794_s24 + $0x8] sm:$0xff]   ;;  %v1690_v10 = vld [vmem:[%s1794_s24 + $0x10] sm:$0xff]   ;;  %vm1060_vm4 = vcmask 130048   ;;  %p1551_p6 = scmp.ne.s32.totalorder %s1732_s15, 8 }
  0x35   : > { %v703_v5 = vsel %vm701_vm2, %v702_v4, 0  ;;  %1594 = vmatprep.mubr.msk.bf16.mxu0 %vm603_vm3, %v1686_v2  ;;  %v1687_v6 = vld [vmem:[%s1794_s24 + $0x80] sm:$0xff]   ;;  %v1689_v9 = vld [vmem:[%s1794_s24 + $0x88] sm:$0xff]   ;;  %v1691_v11 = vld [vmem:[%s1794_s24 + $0x90] sm:$0xff]  }
  0x36   : > { %v705_v7 = vand.u32 %v703_v5, %v442_v1  ;;  %1626 = vmatprep.mubr.msk.bf16.mxu1 %vm603_vm3, %v1687_v6  ;;  %v1692_v12 = vld [vmem:[%s1794_s24 + $0x18] sm:$0xff]   ;;  %v1694_v14 = vld [vmem:[%s1794_s24 + $0x20] sm:$0xff]   ;;  %v1696_v16 = vld [vmem:[%s1794_s24 + $0x28] sm:$0xff]  }
  0x37   : > { %v1693_v13 = vld [vmem:[%s1794_s24 + $0x98] sm:$0xff]   ;;  %v1695_v15 = vld [vmem:[%s1794_s24 + $0xa0] sm:$0xff]   ;;  %v1697_v17 = vld [vmem:[%s1794_s24 + $0xa8] sm:$0xff]  }
  0x38   : > { %1592 = vmatprep.subr.bf16.mxu0 %v705_v7  ;;  %1658 = vmatprep.subr.bf16.mxu1 %v705_v7  ;;  %v1698_v18 = vld [vmem:[%s1794_s24 + $0x30] sm:$0xff]   ;;  %v1700_v20 = vld [vmem:[%s1794_s24 + $0x38] sm:$0xff]   ;;  %v1702_v22 = vld [vmem:[%s1794_s24 + $0x40] sm:$0xff]  }
  0x39   : > { %1593 = vmatpush3.bf16.msra.mxu0 %v705_v7  ;;  %1659 = vmatpush3.bf16.msra.mxu1 %v705_v7  ;;  %v1699_v19 = vld [vmem:[%s1794_s24 + $0xb0] sm:$0xff]   ;;  %v1701_v21 = vld [vmem:[%s1794_s24 + $0xb8] sm:$0xff]   ;;  %v1703_v23 = vld [vmem:[%s1794_s24 + $0xc0] sm:$0xff]  }
  0x3a   : > { %v1704_v24 = vld [vmem:[%s1794_s24 + $0x48] sm:$0xff]   ;;  %v1706_v26 = vld [vmem:[%s1794_s24 + $0x50] sm:$0xff]   ;;  %v1708_v28 = vld [vmem:[%s1794_s24 + $0x58] sm:$0xff]  }
  0x3b   : > { %v1705_v25 = vld [vmem:[%s1794_s24 + $0xc8] sm:$0xff]   ;;  %v1707_v27 = vld [vmem:[%s1794_s24 + $0xd0] sm:$0xff]   ;;  %v1709_v29 = vld [vmem:[%s1794_s24 + $0xd8] sm:$0xff]  }
  0x3c   : > { %1595 = vmatmul.mubr.msk.bf16.vlgmr.msra.gmra.mxu0 %vm603_vm3, %v1688_v8  ;;  %1627 = vmatmul.mubr.msk.bf16.vlgmr.msra.gmra.mxu1 %vm603_vm3, %v1689_v9  ;;  %v1710_v30 = vld [vmem:[%s1794_s24 + $0x60] sm:$0xff]   ;;  %v1712_v32 = vld [vmem:[%s1794_s24 + $0x68] sm:$0xff]   ;;  %v1714_v34 = vld [vmem:[%s1794_s24 + $0x70] sm:$0xff]  }
  0x3d   : > { %1598 = vmatprep.mubr.msk.bf16.mxu0 %vm603_vm3, %v1690_v10  ;;  %1630 = vmatprep.mubr.msk.bf16.mxu1 %vm603_vm3, %v1691_v11  ;;  %v1711_v31 = vld [vmem:[%s1794_s24 + $0xe0] sm:$0xff]   ;;  %v1713_v33 = vld [vmem:[%s1794_s24 + $0xe8] sm:$0xff]   ;;  %v1715_v35 = vld [vmem:[%s1794_s24 + $0xf0] sm:$0xff]  }
  0x3e   : > { %v1716_v36 = vld [vmem:[%s1794_s24 + $0x78] sm:$0xff]   ;;  %v316_v38 = vld [vmem:[#allocation2 + $0x10] sm:$0xff]  ;;  %v314_v42 = vld [vmem:[#allocation2] sm:$0xff] }
  0x3f   : > { %v1717_v37 = vld [vmem:[%s1794_s24 + $0xf8] sm:$0xff]   ;;  %v348_v39 = vld [vmem:[#allocation2 + $0x110] sm:$0xff]  ;;  %v346_v43 = vld [vmem:[#allocation2 + $0x100] sm:$0xff] }
  0x40   : > { %v317_v48 = vld [vmem:[#allocation2 + $0x18] sm:$0xff]  ;;  %v315_v54 = vld [vmem:[#allocation2 + $0x8] sm:$0xff]  ;;  %v320_v60 = vld [vmem:[#allocation2 + $0x30] sm:$0xff] }
  0x41   : > { %v349_v49 = vld [vmem:[#allocation2 + $0x118] sm:$0xff]  ;;  %v347_v55 = vld [vmem:[#allocation2 + $0x108] sm:$0xff]  ;;  %v352_v61 = vld [vmem:[#allocation2 + $0x130] sm:$0xff] }
  0x42   : > { %v318_v2 = vld [vmem:[#allocation2 + $0x20] sm:$0xff]  ;;  %v321_v8 = vld [vmem:[#allocation2 + $0x38] sm:$0xff] }
  0x43   : > { %v350_v3 = vld [vmem:[#allocation2 + $0x120] sm:$0xff]  ;;  %v353_v9 = vld [vmem:[#allocation2 + $0x138] sm:$0xff] }
  0x44   : > { %1599 = vmatmul.mubr.msk.bf16.gmra.mxu0 %vm603_vm3, %v1692_v12  ;;  %1631 = vmatmul.mubr.msk.bf16.gmra.mxu1 %vm603_vm3, %v1693_v13 }
  0x45   : > { %1602 = vmatprep.mubr.msk.bf16.mxu0 %vm603_vm3, %v1694_v14  ;;  %1634 = vmatprep.mubr.msk.bf16.mxu1 %vm603_vm3, %v1695_v15  ;;  %v319_v14 = vld [vmem:[#allocation2 + $0x28] sm:$0xff] }
  0x46   : > { %v351_v15 = vld [vmem:[#allocation2 + $0x128] sm:$0xff] }
  0x4c   : > { %1603 = vmatmul.mubr.msk.bf16.gmra.mxu0 %vm603_vm3, %v1696_v16  ;;  %1635 = vmatmul.mubr.msk.bf16.gmra.mxu1 %vm603_vm3, %v1697_v17 }
  0x4d   : > { %1606 = vmatprep.mubr.msk.bf16.mxu0 %vm603_vm3, %v1698_v18  ;;  %1638 = vmatprep.mubr.msk.bf16.mxu1 %vm603_vm3, %v1699_v19 }
  0x54   : > { %1607 = vmatmul.mubr.msk.bf16.gmra.mxu0 %vm603_vm3, %v1700_v20  ;;  %1639 = vmatmul.mubr.msk.bf16.gmra.mxu1 %vm603_vm3, %v1701_v21  ;;  %v324_v20 = vld [vmem:[#allocation2 + $0x50] sm:$0xff] }
  0x55   : > { %1610 = vmatprep.mubr.msk.bf16.mxu0 %vm603_vm3, %v1702_v22  ;;  %1642 = vmatprep.mubr.msk.bf16.mxu1 %vm603_vm3, %v1703_v23  ;;  %v356_v21 = vld [vmem:[#allocation2 + $0x150] sm:$0xff] }
  0x5c   : > { %1611 = vmatmul.mubr.msk.bf16.gmra.mxu0 %vm603_vm3, %v1704_v24  ;;  %1643 = vmatmul.mubr.msk.bf16.gmra.mxu1 %vm603_vm3, %v1705_v25 }
  0x5d   : > { %1614 = vmatprep.mubr.msk.bf16.mxu0 %vm603_vm3, %v1706_v26  ;;  %1646 = vmatprep.mubr.msk.bf16.mxu1 %vm603_vm3, %v1707_v27  ;;  %v322_v26 = vld [vmem:[#allocation2 + $0x40] sm:$0xff] }
  0x5e   : > { %v354_v27 = vld [vmem:[#allocation2 + $0x140] sm:$0xff] }
  0x64   : > { %1615 = vmatmul.mubr.msk.bf16.gmra.mxu0 %vm603_vm3, %v1708_v28  ;;  %1647 = vmatmul.mubr.msk.bf16.gmra.mxu1 %vm603_vm3, %v1709_v29 }
  0x65   : > { %1618 = vmatprep.mubr.msk.bf16.mxu0 %vm603_vm3, %v1710_v30  ;;  %1650 = vmatprep.mubr.msk.bf16.mxu1 %vm603_vm3, %v1711_v31 }
  0x6c   : > { %1619 = vmatmul.mubr.msk.bf16.gmra.mxu0 %vm603_vm3, %v1712_v32  ;;  %1651 = vmatmul.mubr.msk.bf16.gmra.mxu1 %vm603_vm3, %v1713_v33  ;;  %v325_v32 = vld [vmem:[#allocation2 + $0x58] sm:$0xff] }
  0x6d   : > { %1622 = vmatprep.mubr.msk.bf16.mxu0 %vm603_vm3, %v1714_v34  ;;  %1654 = vmatprep.mubr.msk.bf16.mxu1 %vm603_vm3, %v1715_v35  ;;  %v357_v33 = vld [vmem:[#allocation2 + $0x158] sm:$0xff] }
  0x74   : > { %1623 = vmatmul.mubr.msk.bf16.gmra.mxu0 %vm603_vm3, %v1716_v36  ;;  %1655 = vmatmul.mubr.msk.bf16.gmra.mxu1 %vm603_vm3, %v1717_v37 }
  0xfc   : > { %v1596_v40 = vpop.f32.mrf.mxu0  ;;  %v1628_v41 = vpop.f32.mrf.mxu1 }
  0xfd   : > { %v998_v44 = vadd.f32 %v1596_v40, %v316_v38  ;;  %v1030_v45 = vadd.f32 %v1628_v41, %v348_v39  ;;  %v323_v38 = vld [vmem:[#allocation2 + $0x48] sm:$0xff] }
  0xfe   : > { %v741_v46 = vpop.f32.mrf.mxu0  ;;  %v869_v47 = vpop.f32.mrf.mxu1  ;;  %v355_v39 = vld [vmem:[#allocation2 + $0x148] sm:$0xff] }
  0xff   : > { %1063 = vst.msk [vmem:[#allocation2 + $0x10] sm:$0xff] %vm1060_vm4, %v998_v44  ;;  %1095 = vst.msk [vmem:[#allocation2 + $0x110] sm:$0xff] %vm1060_vm4, %v1030_v45  ;;  %v996_v50 = vadd.f32 %v741_v46, %v314_v42  ;;  %v1028_v51 = vadd.f32 %v869_v47, %v346_v43  ;;  %v328_v44 = vld [vmem:[#allocation2 + $0x70] sm:$0xff] }
 0x100   : > { %v1597_v52 = vpop.f32.mrf.mxu0  ;;  %v1629_v53 = vpop.f32.mrf.mxu1  ;;  %v360_v45 = vld [vmem:[#allocation2 + $0x170] sm:$0xff] }
 0x101   : > { %1061 = vst.msk [vmem:[#allocation2] sm:$0xff] %vm1060_vm4, %v996_v50  ;;  %1093 = vst.msk [vmem:[#allocation2 + $0x100] sm:$0xff] %vm1060_vm4, %v1028_v51  ;;  %v999_v56 = vadd.f32 %v1597_v52, %v317_v48  ;;  %v1031_v57 = vadd.f32 %v1629_v53, %v349_v49  ;;  %v326_v50 = vld [vmem:[#allocation2 + $0x60] sm:$0xff] }
 0x102   : > { %v744_v58 = vpop.f32.mrf.mxu0  ;;  %v872_v59 = vpop.f32.mrf.mxu1  ;;  %v358_v51 = vld [vmem:[#allocation2 + $0x160] sm:$0xff] }
 0x103   : > { %1064 = vst.msk [vmem:[#allocation2 + $0x18] sm:$0xff] %vm1060_vm4, %v999_v56  ;;  %1096 = vst.msk [vmem:[#allocation2 + $0x118] sm:$0xff] %vm1060_vm4, %v1031_v57  ;;  %v997_v62 = vadd.f32 %v744_v58, %v315_v54  ;;  %v1029_v63 = vadd.f32 %v872_v59, %v347_v55  ;;  %v329_v56 = vld [vmem:[#allocation2 + $0x78] sm:$0xff] }
 0x104   : > { %v1600_v0 = vpop.f32.mrf.mxu0  ;;  %v1632_v1 = vpop.f32.mrf.mxu1  ;;  %v361_v57 = vld [vmem:[#allocation2 + $0x178] sm:$0xff] }
 0x105   : > { %1062 = vst.msk [vmem:[#allocation2 + $0x8] sm:$0xff] %vm1060_vm4, %v997_v62  ;;  %1094 = vst.msk [vmem:[#allocation2 + $0x108] sm:$0xff] %vm1060_vm4, %v1029_v63  ;;  %v1002_v4 = vadd.f32 %v1600_v0, %v320_v60  ;;  %v1034_v5 = vadd.f32 %v1632_v1, %v352_v61  ;;  %v327_v62 = vld [vmem:[#allocation2 + $0x68] sm:$0xff] }
 0x106   : > { %v757_v6 = vpop.f32.mrf.mxu0  ;;  %v885_v7 = vpop.f32.mrf.mxu1  ;;  %v359_v63 = vld [vmem:[#allocation2 + $0x168] sm:$0xff] }
 0x107   : > { %1067 = vst.msk [vmem:[#allocation2 + $0x30] sm:$0xff] %vm1060_vm4, %v1002_v4  ;;  %1099 = vst.msk [vmem:[#allocation2 + $0x130] sm:$0xff] %vm1060_vm4, %v1034_v5  ;;  %v1000_v10 = vadd.f32 %v757_v6, %v318_v2  ;;  %v1032_v11 = vadd.f32 %v885_v7, %v350_v3  ;;  %v332_v4 = vld [vmem:[#allocation2 + $0x90] sm:$0xff] }
 0x108   : > { %v1601_v12 = vpop.f32.mrf.mxu0  ;;  %v1633_v13 = vpop.f32.mrf.mxu1  ;;  %v364_v5 = vld [vmem:[#allocation2 + $0x190] sm:$0xff] }
 0x109   : > { %1065 = vst.msk [vmem:[#allocation2 + $0x20] sm:$0xff] %vm1060_vm4, %v1000_v10  ;;  %1097 = vst.msk [vmem:[#allocation2 + $0x120] sm:$0xff] %vm1060_vm4, %v1032_v11  ;;  %v1003_v16 = vadd.f32 %v1601_v12, %v321_v8  ;;  %v1035_v17 = vadd.f32 %v1633_v13, %v353_v9  ;;  %v330_v10 = vld [vmem:[#allocation2 + $0x80] sm:$0xff] }
 0x10a   : > { %v760_v18 = vpop.f32.mrf.mxu0  ;;  %v888_v19 = vpop.f32.mrf.mxu1  ;;  %v362_v11 = vld [vmem:[#allocation2 + $0x180] sm:$0xff] }
 0x10b   : > { %1068 = vst.msk [vmem:[#allocation2 + $0x38] sm:$0xff] %vm1060_vm4, %v1003_v16  ;;  %1100 = vst.msk [vmem:[#allocation2 + $0x138] sm:$0xff] %vm1060_vm4, %v1035_v17  ;;  %v1001_v22 = vadd.f32 %v760_v18, %v319_v14  ;;  %v1033_v23 = vadd.f32 %v888_v19, %v351_v15  ;;  %v333_v16 = vld [vmem:[#allocation2 + $0x98] sm:$0xff] }
 0x10c   : > { %v1604_v24 = vpop.f32.mrf.mxu0  ;;  %v1636_v25 = vpop.f32.mrf.mxu1  ;;  %v365_v17 = vld [vmem:[#allocation2 + $0x198] sm:$0xff] }
 0x10d   : > { %1066 = vst.msk [vmem:[#allocation2 + $0x28] sm:$0xff] %vm1060_vm4, %v1001_v22  ;;  %1098 = vst.msk [vmem:[#allocation2 + $0x128] sm:$0xff] %vm1060_vm4, %v1033_v23  ;;  %v1006_v28 = vadd.f32 %v1604_v24, %v324_v20  ;;  %v1038_v29 = vadd.f32 %v1636_v25, %v356_v21  ;;  %v331_v22 = vld [vmem:[#allocation2 + $0x88] sm:$0xff] }
 0x10e   : > { %v773_v30 = vpop.f32.mrf.mxu0  ;;  %v901_v31 = vpop.f32.mrf.mxu1  ;;  %v363_v23 = vld [vmem:[#allocation2 + $0x188] sm:$0xff] }
 0x10f   : > { %1071 = vst.msk [vmem:[#allocation2 + $0x50] sm:$0xff] %vm1060_vm4, %v1006_v28  ;;  %1103 = vst.msk [vmem:[#allocation2 + $0x150] sm:$0xff] %vm1060_vm4, %v1038_v29  ;;  %v1004_v34 = vadd.f32 %v773_v30, %v322_v26  ;;  %v1036_v35 = vadd.f32 %v901_v31, %v354_v27  ;;  %v336_v28 = vld [vmem:[#allocation2 + $0xb0] sm:$0xff] }
 0x110   : > { %v1605_v36 = vpop.f32.mrf.mxu0  ;;  %v1637_v37 = vpop.f32.mrf.mxu1  ;;  %v368_v29 = vld [vmem:[#allocation2 + $0x1b0] sm:$0xff] }
 0x111   : > { %1069 = vst.msk [vmem:[#allocation2 + $0x40] sm:$0xff] %vm1060_vm4, %v1004_v34  ;;  %1101 = vst.msk [vmem:[#allocation2 + $0x140] sm:$0xff] %vm1060_vm4, %v1036_v35  ;;  %v1007_v40 = vadd.f32 %v1605_v36, %v325_v32  ;;  %v1039_v41 = vadd.f32 %v1637_v37, %v357_v33  ;;  %v334_v34 = vld [vmem:[#allocation2 + $0xa0] sm:$0xff] }
 0x112   : > { %v776_v42 = vpop.f32.mrf.mxu0  ;;  %v904_v43 = vpop.f32.mrf.mxu1  ;;  %v366_v35 = vld [vmem:[#allocation2 + $0x1a0] sm:$0xff] }
 0x113   : > { %1072 = vst.msk [vmem:[#allocation2 + $0x58] sm:$0xff] %vm1060_vm4, %v1007_v40  ;;  %1104 = vst.msk [vmem:[#allocation2 + $0x158] sm:$0xff] %vm1060_vm4, %v1039_v41  ;;  %v1005_v46 = vadd.f32 %v776_v42, %v323_v38  ;;  %v1037_v47 = vadd.f32 %v904_v43, %v355_v39  ;;  %v337_v40 = vld [vmem:[#allocation2 + $0xb8] sm:$0xff] }
 0x114   : > { %v1608_v48 = vpop.f32.mrf.mxu0  ;;  %v1640_v49 = vpop.f32.mrf.mxu1  ;;  %v369_v41 = vld [vmem:[#allocation2 + $0x1b8] sm:$0xff] }
 0x115   : > { %1070 = vst.msk [vmem:[#allocation2 + $0x48] sm:$0xff] %vm1060_vm4, %v1005_v46  ;;  %1102 = vst.msk [vmem:[#allocation2 + $0x148] sm:$0xff] %vm1060_vm4, %v1037_v47  ;;  %v1010_v52 = vadd.f32 %v1608_v48, %v328_v44  ;;  %v1042_v53 = vadd.f32 %v1640_v49, %v360_v45  ;;  %v335_v46 = vld [vmem:[#allocation2 + $0xa8] sm:$0xff] }
 0x116   : > { %v789_v54 = vpop.f32.mrf.mxu0  ;;  %v917_v55 = vpop.f32.mrf.mxu1  ;;  %v367_v47 = vld [vmem:[#allocation2 + $0x1a8] sm:$0xff] }
 0x117   : > { %1075 = vst.msk [vmem:[#allocation2 + $0x70] sm:$0xff] %vm1060_vm4, %v1010_v52  ;;  %1107 = vst.msk [vmem:[#allocation2 + $0x170] sm:$0xff] %vm1060_vm4, %v1042_v53  ;;  %v1008_v58 = vadd.f32 %v789_v54, %v326_v50  ;;  %v1040_v59 = vadd.f32 %v917_v55, %v358_v51  ;;  %v340_v52 = vld [vmem:[#allocation2 + $0xd0] sm:$0xff] }
 0x118   : > { %v1609_v60 = vpop.f32.mrf.mxu0  ;;  %v1641_v61 = vpop.f32.mrf.mxu1  ;;  %v372_v53 = vld [vmem:[#allocation2 + $0x1d0] sm:$0xff] }
 0x119   : > { %1073 = vst.msk [vmem:[#allocation2 + $0x60] sm:$0xff] %vm1060_vm4, %v1008_v58  ;;  %1105 = vst.msk [vmem:[#allocation2 + $0x160] sm:$0xff] %vm1060_vm4, %v1040_v59  ;;  %v1011_v0 = vadd.f32 %v1609_v60, %v329_v56  ;;  %v1043_v1 = vadd.f32 %v1641_v61, %v361_v57  ;;  %v338_v58 = vld [vmem:[#allocation2 + $0xc0] sm:$0xff] }
 0x11a   : > { %v792_v2 = vpop.f32.mrf.mxu0  ;;  %v920_v3 = vpop.f32.mrf.mxu1  ;;  %v370_v59 = vld [vmem:[#allocation2 + $0x1c0] sm:$0xff] }
 0x11b   : > { %1076 = vst.msk [vmem:[#allocation2 + $0x78] sm:$0xff] %vm1060_vm4, %v1011_v0  ;;  %1108 = vst.msk [vmem:[#allocation2 + $0x178] sm:$0xff] %vm1060_vm4, %v1043_v1  ;;  %v1009_v6 = vadd.f32 %v792_v2, %v327_v62  ;;  %v1041_v7 = vadd.f32 %v920_v3, %v359_v63  ;;  %v341_v0 = vld [vmem:[#allocation2 + $0xd8] sm:$0xff] }
 0x11c   : > { %v1612_v8 = vpop.f32.mrf.mxu0  ;;  %v1644_v9 = vpop.f32.mrf.mxu1  ;;  %v373_v1 = vld [vmem:[#allocation2 + $0x1d8] sm:$0xff] }
 0x11d   : > { %1074 = vst.msk [vmem:[#allocation2 + $0x68] sm:$0xff] %vm1060_vm4, %v1009_v6  ;;  %1106 = vst.msk [vmem:[#allocation2 + $0x168] sm:$0xff] %vm1060_vm4, %v1041_v7  ;;  %v1014_v12 = vadd.f32 %v1612_v8, %v332_v4  ;;  %v1046_v13 = vadd.f32 %v1644_v9, %v364_v5  ;;  %v339_v6 = vld [vmem:[#allocation2 + $0xc8] sm:$0xff] }
 0x11e   : > { %v805_v14 = vpop.f32.mrf.mxu0  ;;  %v933_v15 = vpop.f32.mrf.mxu1  ;;  %v371_v7 = vld [vmem:[#allocation2 + $0x1c8] sm:$0xff] }
 0x11f   : > { %1079 = vst.msk [vmem:[#allocation2 + $0x90] sm:$0xff] %vm1060_vm4, %v1014_v12  ;;  %1111 = vst.msk [vmem:[#allocation2 + $0x190] sm:$0xff] %vm1060_vm4, %v1046_v13  ;;  %v1012_v18 = vadd.f32 %v805_v14, %v330_v10  ;;  %v1044_v19 = vadd.f32 %v933_v15, %v362_v11  ;;  %v344_v12 = vld [vmem:[#allocation2 + $0xf0] sm:$0xff] }
 0x120   : > { %v1613_v20 = vpop.f32.mrf.mxu0  ;;  %v1645_v21 = vpop.f32.mrf.mxu1  ;;  %v376_v13 = vld [vmem:[#allocation2 + $0x1f0] sm:$0xff] }
 0x121   : > { %1077 = vst.msk [vmem:[#allocation2 + $0x80] sm:$0xff] %vm1060_vm4, %v1012_v18  ;;  %1109 = vst.msk [vmem:[#allocation2 + $0x180] sm:$0xff] %vm1060_vm4, %v1044_v19  ;;  %v1015_v24 = vadd.f32 %v1613_v20, %v333_v16  ;;  %v1047_v25 = vadd.f32 %v1645_v21, %v365_v17  ;;  %v342_v18 = vld [vmem:[#allocation2 + $0xe0] sm:$0xff] }
 0x122   : > { %v808_v26 = vpop.f32.mrf.mxu0  ;;  %v936_v27 = vpop.f32.mrf.mxu1  ;;  %v374_v19 = vld [vmem:[#allocation2 + $0x1e0] sm:$0xff] }
 0x123   : > { %1080 = vst.msk [vmem:[#allocation2 + $0x98] sm:$0xff] %vm1060_vm4, %v1015_v24  ;;  %1112 = vst.msk [vmem:[#allocation2 + $0x198] sm:$0xff] %vm1060_vm4, %v1047_v25  ;;  %v1013_v30 = vadd.f32 %v808_v26, %v331_v22  ;;  %v1045_v31 = vadd.f32 %v936_v27, %v363_v23  ;;  %v345_v24 = vld [vmem:[#allocation2 + $0xf8] sm:$0xff] }
 0x124   : > { %v1616_v32 = vpop.f32.mrf.mxu0  ;;  %v1648_v33 = vpop.f32.mrf.mxu1  ;;  %v377_v25 = vld [vmem:[#allocation2 + $0x1f8] sm:$0xff] }
 0x125   : > { %1078 = vst.msk [vmem:[#allocation2 + $0x88] sm:$0xff] %vm1060_vm4, %v1013_v30  ;;  %1110 = vst.msk [vmem:[#allocation2 + $0x188] sm:$0xff] %vm1060_vm4, %v1045_v31  ;;  %v1018_v36 = vadd.f32 %v1616_v32, %v336_v28  ;;  %v1050_v37 = vadd.f32 %v1648_v33, %v368_v29  ;;  %v343_v30 = vld [vmem:[#allocation2 + $0xe8] sm:$0xff] }
 0x126   : > { %v821_v38 = vpop.f32.mrf.mxu0  ;;  %v949_v39 = vpop.f32.mrf.mxu1  ;;  %v375_v31 = vld [vmem:[#allocation2 + $0x1e8] sm:$0xff] }
 0x127   : > { %1083 = vst.msk [vmem:[#allocation2 + $0xb0] sm:$0xff] %vm1060_vm4, %v1018_v36  ;;  %1115 = vst.msk [vmem:[#allocation2 + $0x1b0] sm:$0xff] %vm1060_vm4, %v1050_v37  ;;  %v1016_v42 = vadd.f32 %v821_v38, %v334_v34  ;;  %v1048_v43 = vadd.f32 %v949_v39, %v366_v35 }
 0x128   : > { %v1617_v44 = vpop.f32.mrf.mxu0  ;;  %v1649_v45 = vpop.f32.mrf.mxu1 }
 0x129   : > { %1081 = vst.msk [vmem:[#allocation2 + $0xa0] sm:$0xff] %vm1060_vm4, %v1016_v42  ;;  %1113 = vst.msk [vmem:[#allocation2 + $0x1a0] sm:$0xff] %vm1060_vm4, %v1048_v43  ;;  %v1019_v48 = vadd.f32 %v1617_v44, %v337_v40  ;;  %v1051_v49 = vadd.f32 %v1649_v45, %v369_v41 }
 0x12a   : > { %v824_v50 = vpop.f32.mrf.mxu0  ;;  %v952_v51 = vpop.f32.mrf.mxu1 }
 0x12b   : > { %1084 = vst.msk [vmem:[#allocation2 + $0xb8] sm:$0xff] %vm1060_vm4, %v1019_v48  ;;  %1116 = vst.msk [vmem:[#allocation2 + $0x1b8] sm:$0xff] %vm1060_vm4, %v1051_v49  ;;  %v1017_v54 = vadd.f32 %v824_v50, %v335_v46  ;;  %v1049_v55 = vadd.f32 %v952_v51, %v367_v47 }
 0x12c   : > { %v1620_v56 = vpop.f32.mrf.mxu0  ;;  %v1652_v57 = vpop.f32.mrf.mxu1 }
 0x12d   : > { %1082 = vst.msk [vmem:[#allocation2 + $0xa8] sm:$0xff] %vm1060_vm4, %v1017_v54  ;;  %1114 = vst.msk [vmem:[#allocation2 + $0x1a8] sm:$0xff] %vm1060_vm4, %v1049_v55  ;;  %v1022_v60 = vadd.f32 %v1620_v56, %v340_v52  ;;  %v1054_v61 = vadd.f32 %v1652_v57, %v372_v53 }
 0x12e   : > { %v837_v62 = vpop.f32.mrf.mxu0  ;;  %v965_v63 = vpop.f32.mrf.mxu1 }
 0x12f   : > { %1087 = vst.msk [vmem:[#allocation2 + $0xd0] sm:$0xff] %vm1060_vm4, %v1022_v60  ;;  %1119 = vst.msk [vmem:[#allocation2 + $0x1d0] sm:$0xff] %vm1060_vm4, %v1054_v61  ;;  %v1020_v2 = vadd.f32 %v837_v62, %v338_v58  ;;  %v1052_v3 = vadd.f32 %v965_v63, %v370_v59 }
 0x130   : > { %v1621_v4 = vpop.f32.mrf.mxu0  ;;  %v1653_v5 = vpop.f32.mrf.mxu1 }
 0x131   : > { %1085 = vst.msk [vmem:[#allocation2 + $0xc0] sm:$0xff] %vm1060_vm4, %v1020_v2  ;;  %1117 = vst.msk [vmem:[#allocation2 + $0x1c0] sm:$0xff] %vm1060_vm4, %v1052_v3  ;;  %v1023_v8 = vadd.f32 %v1621_v4, %v341_v0  ;;  %v1055_v9 = vadd.f32 %v1653_v5, %v373_v1 }
 0x132   : > { %v840_v10 = vpop.f32.mrf.mxu0  ;;  %v968_v11 = vpop.f32.mrf.mxu1 }
 0x133   : > { %1088 = vst.msk [vmem:[#allocation2 + $0xd8] sm:$0xff] %vm1060_vm4, %v1023_v8  ;;  %1120 = vst.msk [vmem:[#allocation2 + $0x1d8] sm:$0xff] %vm1060_vm4, %v1055_v9  ;;  %v1021_v14 = vadd.f32 %v840_v10, %v339_v6  ;;  %v1053_v15 = vadd.f32 %v968_v11, %v371_v7 }
 0x134   : > { %v1624_v16 = vpop.f32.mrf.mxu0  ;;  %v1656_v17 = vpop.f32.mrf.mxu1 }
 0x135   : > { %1086 = vst.msk [vmem:[#allocation2 + $0xc8] sm:$0xff] %vm1060_vm4, %v1021_v14  ;;  %1118 = vst.msk [vmem:[#allocation2 + $0x1c8] sm:$0xff] %vm1060_vm4, %v1053_v15  ;;  %v1026_v20 = vadd.f32 %v1624_v16, %v344_v12  ;;  %v1058_v21 = vadd.f32 %v1656_v17, %v376_v13 }
 0x136   : > { %v853_v22 = vpop.f32.mrf.mxu0  ;;  %v981_v23 = vpop.f32.mrf.mxu1 }
 0x137   : > { %1091 = vst.msk [vmem:[#allocation2 + $0xf0] sm:$0xff] %vm1060_vm4, %v1026_v20  ;;  %1123 = vst.msk [vmem:[#allocation2 + $0x1f0] sm:$0xff] %vm1060_vm4, %v1058_v21  ;;  %v1024_v26 = vadd.f32 %v853_v22, %v342_v18  ;;  %v1056_v27 = vadd.f32 %v981_v23, %v374_v19 }
 0x138   : > { %v1625_v28 = vpop.f32.mrf.mxu0  ;;  %v1657_v29 = vpop.f32.mrf.mxu1 }
 0x139   : > { %1089 = vst.msk [vmem:[#allocation2 + $0xe0] sm:$0xff] %vm1060_vm4, %v1024_v26  ;;  %1121 = vst.msk [vmem:[#allocation2 + $0x1e0] sm:$0xff] %vm1060_vm4, %v1056_v27  ;;  %v1027_v32 = vadd.f32 %v1625_v28, %v345_v24  ;;  %v1059_v33 = vadd.f32 %v1657_v29, %v377_v25  ;;  %1128 = sbr.rel (%p1551_p6) target bundleno = 362 (0x16a), region = 44 }
 0x13a   : > { %v856_v34 = vpop.f32.mrf.mxu0  ;;  %v984_v35 = vpop.f32.mrf.mxu1 }
 0x13b   : > { %1092 = vst.msk [vmem:[#allocation2 + $0xf8] sm:$0xff] %vm1060_vm4, %v1027_v32  ;;  %1124 = vst.msk [vmem:[#allocation2 + $0x1f8] sm:$0xff] %vm1060_vm4, %v1059_v33  ;;  %v1025_v36 = vadd.f32 %v856_v34, %v343_v30  ;;  %v1057_v37 = vadd.f32 %v984_v35, %v375_v31 }
 0x13d   : > { %1090 = vst.msk [vmem:[#allocation2 + $0xe8] sm:$0xff] %vm1060_vm4, %v1025_v36  ;;  %1122 = vst.msk [vmem:[#allocation2 + $0x1e8] sm:$0xff] %vm1060_vm4, %v1057_v37 }
 0x13e   : > { %v1129_v38 = vld [vmem:[#allocation2] sm:$0xff]  ;;  %v1130_v42 = vld [vmem:[#allocation2 + $0x8] sm:$0xff]  ;;  %v1131_v43 = vld [vmem:[#allocation2 + $0x10] sm:$0xff] }
 0x13f   : > { %v2063_v39 = vld [vmem:[%s2465_s2] ss:$0 sm:$0xff]  ;;  %v1132_v44 = vld [vmem:[#allocation2 + $0x18] sm:$0xff]  ;;  %v1134_v49 = vld [vmem:[#allocation2 + $0x28] sm:$0xff] }
 0x140   : > { %v2068_v40 = vld [vmem:[%s2466_s3] ss:$0 sm:$0xff]  ;;  %v1200_v41 = vmul.f32 %v2063_v39, %v1129_v38  ;;  %v1201_v45 = vmul.f32 %v2063_v39, %v1130_v42  ;;  %v1202_v46 = vmul.f32 %v2063_v39, %v1131_v43  ;;  %v1203_v47 = vmul.f32 %v2063_v39, %v1132_v44  ;;  %v1135_v50 = vld [vmem:[#allocation2 + $0x30] sm:$0xff]  ;;  %v1136_v55 = vld [vmem:[#allocation2 + $0x38] sm:$0xff] }
 0x141   : > { %v1133_v48 = vld [vmem:[#allocation2 + $0x20] sm:$0xff]  ;;  %v1205_v53 = vmul.f32 %v2063_v39, %v1134_v49  ;;  %v1206_v54 = vmul.f32 %v2063_v39, %v1135_v50  ;;  %v1138_v57 = vld [vmem:[#allocation2 + $0x48] sm:$0xff]  ;;  %v1207_v61 = vmul.f32 %v2063_v39, %v1136_v55  ;;  %v1139_v62 = vld [vmem:[#allocation2 + $0x50] sm:$0xff] }
 0x142   : > { %v1271_v51 = vadd.f32 %v2068_v40, %v1200_v41  ;;  %v1204_v52 = vmul.f32 %v2063_v39, %v1133_v48  ;;  %v1137_v56 = vld [vmem:[#allocation2 + $0x40] sm:$0xff]  ;;  %v1272_v58 = vadd.f32 %v2068_v40, %v1201_v45  ;;  %v1273_v59 = vadd.f32 %v2068_v40, %v1202_v46  ;;  %v1140_v63 = vld [vmem:[#allocation2 + $0x58] sm:$0xff]  ;;  %v1142_v5 = vld [vmem:[#allocation2 + $0x68] sm:$0xff] }
 0x143   : > { %v1274_v60 = vadd.f32 %v2068_v40, %v1203_v47  ;;  %v1141_v0 = vld [vmem:[#allocation2 + $0x60] sm:$0xff]  ;;  %v1276_v2 = vadd.f32 %v2068_v40, %v1205_v53  ;;  %v1277_v3 = vadd.f32 %v2068_v40, %v1206_v54  ;;  %v1208_v4 = vmul.f32 %v2063_v39, %v1137_v56  ;;  %v1143_v6 = vld [vmem:[#allocation2 + $0x70] sm:$0xff]  ;;  %v1144_v7 = vld [vmem:[#allocation2 + $0x78] sm:$0xff] }
 0x144   : > { %1335 = vst.msk [vmem:[%s2467_s4] sm:$0xff] %vm1060_vm4, %v1271_v51  ;;  %v1275_v1 = vadd.f32 %v2068_v40, %v1204_v52  ;;  %1336 = vst.msk [vmem:[%s2467_s4 + $0x8] sm:$0xff] %vm1060_vm4, %v1272_v58  ;;  %v1278_v8 = vadd.f32 %v2068_v40, %v1207_v61  ;;  %v1209_v9 = vmul.f32 %v2063_v39, %v1138_v57  ;;  %v1145_v12 = vld [vmem:[#allocation2 + $0x80] sm:$0xff]  ;;  %v1146_v17 = vld [vmem:[#allocation2 + $0x88] sm:$0xff] }
 0x145   : > { %1337 = vst.msk [vmem:[%s2467_s4 + $0x10] sm:$0xff] %vm1060_vm4, %v1273_v59  ;;  %1338 = vst.msk [vmem:[%s2467_s4 + $0x18] sm:$0xff] %vm1060_vm4, %v1274_v60  ;;  %v1210_v10 = vmul.f32 %v2063_v39, %v1139_v62  ;;  %v1211_v11 = vmul.f32 %v2063_v39, %v1140_v63  ;;  %v1279_v13 = vadd.f32 %v2068_v40, %v1208_v4  ;;  %v1147_v18 = vld [vmem:[#allocation2 + $0x90] sm:$0xff]  ;;  %v1148_v19 = vld [vmem:[#allocation2 + $0x98] sm:$0xff] }
 0x146   : > { %1339 = vst.msk [vmem:[%s2467_s4 + $0x20] sm:$0xff] %vm1060_vm4, %v1275_v1  ;;  %1340 = vst.msk [vmem:[%s2467_s4 + $0x28] sm:$0xff] %vm1060_vm4, %v1276_v2  ;;  %v1212_v14 = vmul.f32 %v2063_v39, %v1141_v0  ;;  %v1213_v15 = vmul.f32 %v2063_v39, %v1142_v5  ;;  %v1214_v16 = vmul.f32 %v2063_v39, %v1143_v6  ;;  %v1149_v24 = vld [vmem:[#allocation2 + $0xa0] sm:$0xff]  ;;  %v1150_v25 = vld [vmem:[#allocation2 + $0xa8] sm:$0xff] }
 0x147   : > { %1341 = vst.msk [vmem:[%s2467_s4 + $0x30] sm:$0xff] %vm1060_vm4, %v1277_v3  ;;  %1342 = vst.msk [vmem:[%s2467_s4 + $0x38] sm:$0xff] %vm1060_vm4, %v1278_v8  ;;  %v1280_v20 = vadd.f32 %v2068_v40, %v1209_v9  ;;  %v1281_v21 = vadd.f32 %v2068_v40, %v1210_v10  ;;  %v1282_v22 = vadd.f32 %v2068_v40, %v1211_v11  ;;  %v1151_v26 = vld [vmem:[#allocation2 + $0xb0] sm:$0xff]  ;;  %v1152_v31 = vld [vmem:[#allocation2 + $0xb8] sm:$0xff] }
 0x148   : > { %v1215_v23 = vmul.f32 %v2063_v39, %v1144_v7  ;;  %1343 = vst.msk [vmem:[%s2467_s4 + $0x40] sm:$0xff] %vm1060_vm4, %v1279_v13  ;;  %v1283_v27 = vadd.f32 %v2068_v40, %v1212_v14  ;;  %v1284_v28 = vadd.f32 %v2068_v40, %v1213_v15  ;;  %v1285_v29 = vadd.f32 %v2068_v40, %v1214_v16  ;;  %v1153_v36 = vld [vmem:[#allocation2 + $0xc0] sm:$0xff]  ;;  %v1154_v43 = vld [vmem:[#allocation2 + $0xc8] sm:$0xff]  ;;  %v1155_v44 = vld [vmem:[#allocation2 + $0xd0] sm:$0xff] }
 0x149   : > { %v1216_v30 = vmul.f32 %v2063_v39, %v1145_v12  ;;  %1344 = vst.msk [vmem:[%s2467_s4 + $0x48] sm:$0xff] %vm1060_vm4, %v1280_v20  ;;  %1345 = vst.msk [vmem:[%s2467_s4 + $0x50] sm:$0xff] %vm1060_vm4, %v1281_v21  ;;  %v1217_v33 = vmul.f32 %v2063_v39, %v1146_v17  ;;  %v1218_v34 = vmul.f32 %v2063_v39, %v1147_v18  ;;  %v1156_v45 = vld [vmem:[#allocation2 + $0xd8] sm:$0xff]  ;;  %v1157_v50 = vld [vmem:[#allocation2 + $0xe0] sm:$0xff] }
 0x14a   : > { %1346 = vst.msk [vmem:[%s2467_s4 + $0x58] sm:$0xff] %vm1060_vm4, %v1282_v22  ;;  %v1286_v32 = vadd.f32 %v2068_v40, %v1215_v23  ;;  %v1219_v35 = vmul.f32 %v2063_v39, %v1148_v19  ;;  %1347 = vst.msk [vmem:[%s2467_s4 + $0x60] sm:$0xff] %vm1060_vm4, %v1283_v27  ;;  %v1220_v38 = vmul.f32 %v2063_v39, %v1149_v24  ;;  %v1158_v51 = vld [vmem:[#allocation2 + $0xe8] sm:$0xff]  ;;  %v1159_v52 = vld [vmem:[#allocation2 + $0xf0] sm:$0xff] }
 0x14b   : > { %1348 = vst.msk [vmem:[%s2467_s4 + $0x68] sm:$0xff] %vm1060_vm4, %v1284_v28  ;;  %1349 = vst.msk [vmem:[%s2467_s4 + $0x70] sm:$0xff] %vm1060_vm4, %v1285_v29  ;;  %v1287_v37 = vadd.f32 %v2068_v40, %v1216_v30  ;;  %v1221_v41 = vmul.f32 %v2063_v39, %v1150_v25  ;;  %v1222_v42 = vmul.f32 %v2063_v39, %v1151_v26  ;;  %v1160_v57 = vld [vmem:[#allocation2 + $0xf8] sm:$0xff]  ;;  %v1161_v62 = vld [vmem:[#allocation2 + $0x100] sm:$0xff] }
 0x14c   : > { %1350 = vst.msk [vmem:[%s2467_s4 + $0x78] sm:$0xff] %vm1060_vm4, %v1286_v32  ;;  %v1288_v46 = vadd.f32 %v2068_v40, %v1217_v33  ;;  %v1289_v47 = vadd.f32 %v2068_v40, %v1218_v34  ;;  %v1290_v48 = vadd.f32 %v2068_v40, %v1219_v35  ;;  %v1223_v49 = vmul.f32 %v2063_v39, %v1152_v31  ;;  %v1162_v3 = vld [vmem:[#allocation2 + $0x108] sm:$0xff]  ;;  %v1163_v4 = vld [vmem:[#allocation2 + $0x110] sm:$0xff]  ;;  %v1164_v5 = vld [vmem:[#allocation2 + $0x118] sm:$0xff] }
 0x14d   : > { %1351 = vst.msk [vmem:[%s2467_s4 + $0x80] sm:$0xff] %vm1060_vm4, %v1287_v37  ;;  %v1291_v53 = vadd.f32 %v2068_v40, %v1220_v38  ;;  %v1292_v54 = vadd.f32 %v2068_v40, %v1221_v41  ;;  %v1293_v55 = vadd.f32 %v2068_v40, %v1222_v42  ;;  %v1224_v56 = vmul.f32 %v2063_v39, %v1153_v36  ;;  %v1165_v10 = vld [vmem:[#allocation2 + $0x120] sm:$0xff]  ;;  %v1166_v11 = vld [vmem:[#allocation2 + $0x128] sm:$0xff]  ;;  %v1167_v12 = vld [vmem:[#allocation2 + $0x130] sm:$0xff] }
 0x14e   : > { %1352 = vst.msk [vmem:[%s2467_s4 + $0x88] sm:$0xff] %vm1060_vm4, %v1288_v46  ;;  %1353 = vst.msk [vmem:[%s2467_s4 + $0x90] sm:$0xff] %vm1060_vm4, %v1289_v47  ;;  %v1294_v58 = vadd.f32 %v2068_v40, %v1223_v49  ;;  %v1225_v59 = vmul.f32 %v2063_v39, %v1154_v43  ;;  %v1226_v60 = vmul.f32 %v2063_v39, %v1155_v44  ;;  %v1168_v17 = vld [vmem:[#allocation2 + $0x138] sm:$0xff]  ;;  %v1169_v22 = vld [vmem:[#allocation2 + $0x140] sm:$0xff] }
 0x14f   : > { %1354 = vst.msk [vmem:[%s2467_s4 + $0x98] sm:$0xff] %vm1060_vm4, %v1290_v48  ;;  %v1227_v61 = vmul.f32 %v2063_v39, %v1156_v45  ;;  %1355 = vst.msk [vmem:[%s2467_s4 + $0xa0] sm:$0xff] %vm1060_vm4, %v1291_v53  ;;  %v1295_v63 = vadd.f32 %v2068_v40, %v1224_v56  ;;  %v1228_v0 = vmul.f32 %v2063_v39, %v1157_v50  ;;  %v1170_v27 = vld [vmem:[#allocation2 + $0x148] sm:$0xff]  ;;  %v1171_v28 = vld [vmem:[#allocation2 + $0x150] sm:$0xff] }
 0x150   : > { %1356 = vst.msk [vmem:[%s2467_s4 + $0xa8] sm:$0xff] %vm1060_vm4, %v1292_v54  ;;  %1357 = vst.msk [vmem:[%s2467_s4 + $0xb0] sm:$0xff] %vm1060_vm4, %v1293_v55  ;;  %v1229_v1 = vmul.f32 %v2063_v39, %v1158_v51  ;;  %v1230_v2 = vmul.f32 %v2063_v39, %v1159_v52  ;;  %v1296_v6 = vadd.f32 %v2068_v40, %v1225_v59  ;;  %v1172_v29 = vld [vmem:[#allocation2 + $0x158] sm:$0xff]  ;;  %v1173_v34 = vld [vmem:[#allocation2 + $0x160] sm:$0xff] }
 0x151   : > { %1358 = vst.msk [vmem:[%s2467_s4 + $0xb8] sm:$0xff] %vm1060_vm4, %v1294_v58  ;;  %v1297_v7 = vadd.f32 %v2068_v40, %v1226_v60  ;;  %v1298_v8 = vadd.f32 %v2068_v40, %v1227_v61  ;;  %v1231_v9 = vmul.f32 %v2063_v39, %v1160_v57  ;;  %1359 = vst.msk [vmem:[%s2467_s4 + $0xc0] sm:$0xff] %vm1060_vm4, %v1295_v63  ;;  %v1174_v35 = vld [vmem:[#allocation2 + $0x168] sm:$0xff]  ;;  %v1175_v36 = vld [vmem:[#allocation2 + $0x170] sm:$0xff] }
 0x152   : > { %v1299_v13 = vadd.f32 %v2068_v40, %v1228_v0  ;;  %v1300_v14 = vadd.f32 %v2068_v40, %v1229_v1  ;;  %v1301_v15 = vadd.f32 %v2068_v40, %v1230_v2  ;;  %v1232_v16 = vmul.f32 %v2063_v39, %v1161_v62  ;;  %1360 = vst.msk [vmem:[%s2467_s4 + $0xc8] sm:$0xff] %vm1060_vm4, %v1296_v6  ;;  %v1176_v43 = vld [vmem:[#allocation2 + $0x178] sm:$0xff]  ;;  %v1177_v48 = vld [vmem:[#allocation2 + $0x180] sm:$0xff]  ;;  %v1178_v53 = vld [vmem:[#allocation2 + $0x188] sm:$0xff] }
 0x153   : > { %1361 = vst.msk [vmem:[%s2467_s4 + $0xd0] sm:$0xff] %vm1060_vm4, %v1297_v7  ;;  %1362 = vst.msk [vmem:[%s2467_s4 + $0xd8] sm:$0xff] %vm1060_vm4, %v1298_v8  ;;  %v1302_v18 = vadd.f32 %v2068_v40, %v1231_v9  ;;  %v1233_v19 = vmul.f32 %v2063_v39, %v1162_v3  ;;  %v1234_v20 = vmul.f32 %v2063_v39, %v1163_v4  ;;  %v1179_v54 = vld [vmem:[#allocation2 + $0x190] sm:$0xff]  ;;  %v1180_v55 = vld [vmem:[#allocation2 + $0x198] sm:$0xff] }
 0x154   : > { %v1235_v21 = vmul.f32 %v2063_v39, %v1164_v5  ;;  %1363 = vst.msk [vmem:[%s2467_s4 + $0xe0] sm:$0xff] %vm1060_vm4, %v1299_v13  ;;  %1364 = vst.msk [vmem:[%s2467_s4 + $0xe8] sm:$0xff] %vm1060_vm4, %v1300_v14  ;;  %v1303_v23 = vadd.f32 %v2068_v40, %v1232_v16  ;;  %v1236_v24 = vmul.f32 %v2063_v39, %v1165_v10  ;;  %v1181_v60 = vld [vmem:[#allocation2 + $0x1a0] sm:$0xff]  ;;  %v1182_v61 = vld [vmem:[#allocation2 + $0x1a8] sm:$0xff] }
 0x155   : > { %1365 = vst.msk [vmem:[%s2467_s4 + $0xf0] sm:$0xff] %vm1060_vm4, %v1301_v15  ;;  %v1237_v25 = vmul.f32 %v2063_v39, %v1166_v11  ;;  %v1238_v26 = vmul.f32 %v2063_v39, %v1167_v12  ;;  %1366 = vst.msk [vmem:[%s2467_s4 + $0xf8] sm:$0xff] %vm1060_vm4, %v1302_v18  ;;  %v1304_v30 = vadd.f32 %v2068_v40, %v1233_v19  ;;  %v1183_v62 = vld [vmem:[#allocation2 + $0x1b0] sm:$0xff]  ;;  %v1184_v3 = vld [vmem:[#allocation2 + $0x1b8] sm:$0xff] }
 0x156   : > { %v1305_v31 = vadd.f32 %v2068_v40, %v1234_v20  ;;  %v1306_v32 = vadd.f32 %v2068_v40, %v1235_v21  ;;  %v1239_v33 = vmul.f32 %v2063_v39, %v1168_v17  ;;  %1367 = vst.msk [vmem:[%s2467_s4 + $0x100] sm:$0xff] %vm1060_vm4, %v1303_v23  ;;  %v1307_v37 = vadd.f32 %v2068_v40, %v1236_v24  ;;  %v1185_v8 = vld [vmem:[#allocation2 + $0x1c0] sm:$0xff]  ;;  %v1186_v13 = vld [vmem:[#allocation2 + $0x1c8] sm:$0xff]  ;;  %v1187_v14 = vld [vmem:[#allocation2 + $0x1d0] sm:$0xff] }
 0x157   : > { %v1308_v38 = vadd.f32 %v2068_v40, %v1237_v25  ;;  %v1309_v41 = vadd.f32 %v2068_v40, %v1238_v26  ;;  %v1240_v42 = vmul.f32 %v2063_v39, %v1169_v22  ;;  %1368 = vst.msk [vmem:[%s2467_s4 + $0x108] sm:$0xff] %vm1060_vm4, %v1304_v30  ;;  %v1241_v45 = vmul.f32 %v2063_v39, %v1170_v27  ;;  %v1188_v15 = vld [vmem:[#allocation2 + $0x1d8] sm:$0xff]  ;;  %v1189_v20 = vld [vmem:[#allocation2 + $0x1e0] sm:$0xff]  ;;  %v1190_v21 = vld [vmem:[#allocation2 + $0x1e8] sm:$0xff] }
 0x158   : > { %1369 = vst.msk [vmem:[%s2467_s4 + $0x110] sm:$0xff] %vm1060_vm4, %v1305_v31  ;;  %1370 = vst.msk [vmem:[%s2467_s4 + $0x118] sm:$0xff] %vm1060_vm4, %v1306_v32  ;;  %v1310_v44 = vadd.f32 %v2068_v40, %v1239_v33  ;;  %v1242_v46 = vmul.f32 %v2063_v39, %v1171_v28  ;;  %v1243_v47 = vmul.f32 %v2063_v39, %v1172_v29  ;;  %v1191_v22 = vld [vmem:[#allocation2 + $0x1f0] sm:$0xff]  ;;  %v1192_v27 = vld [vmem:[#allocation2 + $0x1f8] sm:$0xff] }
 0x159   : > { %1371 = vst.msk [vmem:[%s2467_s4 + $0x120] sm:$0xff] %vm1060_vm4, %v1307_v37  ;;  %1372 = vst.msk [vmem:[%s2467_s4 + $0x128] sm:$0xff] %vm1060_vm4, %v1308_v38  ;;  %v1311_v49 = vadd.f32 %v2068_v40, %v1240_v42  ;;  %v1244_v50 = vmul.f32 %v2063_v39, %v1173_v34  ;;  %v1245_v51 = vmul.f32 %v2063_v39, %v1174_v35 }
 0x15a   : > { %1373 = vst.msk [vmem:[%s2467_s4 + $0x130] sm:$0xff] %vm1060_vm4, %v1309_v41  ;;  %v1246_v52 = vmul.f32 %v2063_v39, %v1175_v36  ;;  %1374 = vst.msk [vmem:[%s2467_s4 + $0x138] sm:$0xff] %vm1060_vm4, %v1310_v44  ;;  %v1312_v56 = vadd.f32 %v2068_v40, %v1241_v45  ;;  %v1313_v57 = vadd.f32 %v2068_v40, %v1242_v46 }
 0x15b   : > { %v1314_v58 = vadd.f32 %v2068_v40, %v1243_v47  ;;  %v1247_v59 = vmul.f32 %v2063_v39, %v1176_v43  ;;  %1375 = vst.msk [vmem:[%s2467_s4 + $0x140] sm:$0xff] %vm1060_vm4, %v1311_v49  ;;  %v1315_v63 = vadd.f32 %v2068_v40, %v1244_v50  ;;  %v1316_v0 = vadd.f32 %v2068_v40, %v1245_v51 }
 0x15c   : > { %v1317_v1 = vadd.f32 %v2068_v40, %v1246_v52  ;;  %v1248_v2 = vmul.f32 %v2063_v39, %v1177_v48  ;;  %1376 = vst.msk [vmem:[%s2467_s4 + $0x148] sm:$0xff] %vm1060_vm4, %v1312_v56  ;;  %1377 = vst.msk [vmem:[%s2467_s4 + $0x150] sm:$0xff] %vm1060_vm4, %v1313_v57  ;;  %v1249_v5 = vmul.f32 %v2063_v39, %v1178_v53 }
 0x15d   : > { %1378 = vst.msk [vmem:[%s2467_s4 + $0x158] sm:$0xff] %vm1060_vm4, %v1314_v58  ;;  %v1318_v4 = vadd.f32 %v2068_v40, %v1247_v59  ;;  %v1250_v6 = vmul.f32 %v2063_v39, %v1179_v54  ;;  %v1251_v7 = vmul.f32 %v2063_v39, %v1180_v55  ;;  %1379 = vst.msk [vmem:[%s2467_s4 + $0x160] sm:$0xff] %vm1060_vm4, %v1315_v63 }
 0x15e   : > { %1380 = vst.msk [vmem:[%s2467_s4 + $0x168] sm:$0xff] %vm1060_vm4, %v1316_v0  ;;  %1381 = vst.msk [vmem:[%s2467_s4 + $0x170] sm:$0xff] %vm1060_vm4, %v1317_v1  ;;  %v1319_v9 = vadd.f32 %v2068_v40, %v1248_v2  ;;  %v1252_v10 = vmul.f32 %v2063_v39, %v1181_v60  ;;  %v1253_v11 = vmul.f32 %v2063_v39, %v1182_v61 }
 0x15f   : > { %v1254_v12 = vmul.f32 %v2063_v39, %v1183_v62  ;;  %1382 = vst.msk [vmem:[%s2467_s4 + $0x178] sm:$0xff] %vm1060_vm4, %v1318_v4  ;;  %v1320_v16 = vadd.f32 %v2068_v40, %v1249_v5  ;;  %v1321_v17 = vadd.f32 %v2068_v40, %v1250_v6  ;;  %v1322_v18 = vadd.f32 %v2068_v40, %v1251_v7 }
 0x160   : > { %v1255_v19 = vmul.f32 %v2063_v39, %v1184_v3  ;;  %1383 = vst.msk [vmem:[%s2467_s4 + $0x180] sm:$0xff] %vm1060_vm4, %v1319_v9  ;;  %v1323_v23 = vadd.f32 %v2068_v40, %v1252_v10  ;;  %v1324_v24 = vadd.f32 %v2068_v40, %v1253_v11  ;;  %v1256_v26 = vmul.f32 %v2063_v39, %v1185_v8 }
 0x161   : > { %v1325_v25 = vadd.f32 %v2068_v40, %v1254_v12  ;;  %1384 = vst.msk [vmem:[%s2467_s4 + $0x188] sm:$0xff] %vm1060_vm4, %v1320_v16  ;;  %1385 = vst.msk [vmem:[%s2467_s4 + $0x190] sm:$0xff] %vm1060_vm4, %v1321_v17  ;;  %v1257_v29 = vmul.f32 %v2063_v39, %v1186_v13  ;;  %v1258_v30 = vmul.f32 %v2063_v39, %v1187_v14 }
 0x162   : > { %1386 = vst.msk [vmem:[%s2467_s4 + $0x198] sm:$0xff] %vm1060_vm4, %v1322_v18  ;;  %v1326_v28 = vadd.f32 %v2068_v40, %v1255_v19  ;;  %v1259_v31 = vmul.f32 %v2063_v39, %v1188_v15  ;;  %1387 = vst.msk [vmem:[%s2467_s4 + $0x1a0] sm:$0xff] %vm1060_vm4, %v1323_v23  ;;  %v1327_v32 = vadd.f32 %v2068_v40, %v1256_v26 }
 0x163   : > { %1388 = vst.msk [vmem:[%s2467_s4 + $0x1a8] sm:$0xff] %vm1060_vm4, %v1324_v24  ;;  %1389 = vst.msk [vmem:[%s2467_s4 + $0x1b0] sm:$0xff] %vm1060_vm4, %v1325_v25  ;;  %v1260_v33 = vmul.f32 %v2063_v39, %v1189_v20  ;;  %v1261_v34 = vmul.f32 %v2063_v39, %v1190_v21  ;;  %v1262_v35 = vmul.f32 %v2063_v39, %v1191_v22 }
 0x164   : > { %1390 = vst.msk [vmem:[%s2467_s4 + $0x1b8] sm:$0xff] %vm1060_vm4, %v1326_v28  ;;  %v1328_v36 = vadd.f32 %v2068_v40, %v1257_v29  ;;  %v1329_v37 = vadd.f32 %v2068_v40, %v1258_v30  ;;  %v1330_v38 = vadd.f32 %v2068_v40, %v1259_v31  ;;  %v1263_v41 = vmul.f32 %v2063_v39, %v1192_v27 }
 0x165   : > { %1391 = vst.msk [vmem:[%s2467_s4 + $0x1c0] sm:$0xff] %vm1060_vm4, %v1327_v32  ;;  %v1331_v42 = vadd.f32 %v2068_v40, %v1260_v33  ;;  %v1332_v43 = vadd.f32 %v2068_v40, %v1261_v34  ;;  %v1333_v44 = vadd.f32 %v2068_v40, %v1262_v35 }
 0x166   : > { %1392 = vst.msk [vmem:[%s2467_s4 + $0x1c8] sm:$0xff] %vm1060_vm4, %v1328_v36  ;;  %1393 = vst.msk [vmem:[%s2467_s4 + $0x1d0] sm:$0xff] %vm1060_vm4, %v1329_v37  ;;  %v1334_v39 = vadd.f32 %v2068_v40, %v1263_v41 }
 0x167   : > { %1394 = vst.msk [vmem:[%s2467_s4 + $0x1d8] sm:$0xff] %vm1060_vm4, %v1330_v38  ;;  %1395 = vst.msk [vmem:[%s2467_s4 + $0x1e0] sm:$0xff] %vm1060_vm4, %v1331_v42 }
 0x168   : > { %1396 = vst.msk [vmem:[%s2467_s4 + $0x1e8] sm:$0xff] %vm1060_vm4, %v1332_v43  ;;  %1397 = vst.msk [vmem:[%s2467_s4 + $0x1f0] sm:$0xff] %vm1060_vm4, %v1333_v44 }
 0x169   : > { %1398 = vst.msk [vmem:[%s2467_s4 + $0x1f8] sm:$0xff] %vm1060_vm4, %v1334_v39 }
 0x16a PF: > { %s14_s17 = sadd.s32 1, %s1740_s17   ;;  %s2468_s15 = smov %s1736_s16 }
 0x16b   : > { %p11_p7 = scmp.ge.s32.totalorder %s14_s17, 11   ;;  %s2469_s16 = smov %s2471_s18 }
 0x16d   :  { %13 = sbr.rel (!%p11_p7) target bundleno = 2 (0x2), region = 77 }

// kernel: _lambda_.18
= control target key start
LH: loop header
LB: loop body
LE: loop exit
PB: predicated region body
PF: predicated region fallthrough
CT: control target
= control target key end

     0   :  { %s2223_s15 = smov 0   ;;  %s2225_s16 = smov 0   ;;  %s2917_s0 = inlined_call_operand.vmem [shape: bf16[9,512,16], index: 0, kind: input, shape index: {}]   ;;  %s2918_s1 = inlined_call_operand.vmem [shape: bf16[9,16,32], index: 1, kind: input, shape index: {}]   ;;  %s2919_s2 = inlined_call_operand.vmem [shape: f32[1,32], index: 2, kind: input, shape index: {}]   ;;  %s2920_s3 = inlined_call_operand.vmem [shape: f32[1,32], index: 3, kind: input, shape index: {}]   ;;  %s2921_s4 = inlined_call_operand.vmem [shape: bf16[512,32], index: 4, kind: output, shape index: {}]  }
   0x1   :  { %s2227_s17 = smov 0  }
   0x2 LB: > { %s23_s18 = sadd.s32 1, %s2191_s16  ;;  %p1806_p0 = scmp.ge.s32.totalorder %s2195_s17, 1  ;;  %s2195_s17 = sphi %s2227_s17, %s14_s17   ;;  %s2191_s16 = sphi %s2225_s16, %s2923_s16   ;;  %s2187_s15 = sphi %s2223_s15, %s2922_s15  }
   0x3   : > { %p24_p1 = scmp.ge.s32.totalorder %s23_s18, 9  ;;  %p191_p2 = scmp.lt.s32.totalorder %s2195_s17, 10 }
   0x5   : > { %s2925_s18 = smov (%p24_p1, %s23_s18), 0  ;;  %p192_p3 = pnand %p1806_p0, %p191_p2 }
   0x6   : > { %p227_p4 = scmp.lt.s32.totalorder (!%p192_p3), %s2187_s15, 8  ;;  %p1811_p5 = scmp.ne.s32.totalorder (!%p192_p3), %s2187_s15, 0 }
   0x7   : > { %195 = sbr.rel (%p192_p3) target bundleno = 389 (0x185), region = 36 }
   0xc   : > { %s228_s19 = scalar_select %p227_p4, %s2187_s15, 8 }
   0xd   : > { %251 = sbr.rel (%p1811_p5) target bundleno = 51 (0x33), region = 40 }
   0xe   : > { %s1948_s20 = sshll.u32 %s228_s19, 8  ;;  %s1949_s21 = sshll.u32 %s228_s19, 3 }
   0xf   : > { %s2248_s24 = scalar_lea.vmem %s2917_s0, %s1948_s20  ;;  %s2253_s27 = scalar_lea.vmem %s2918_s1, %s1949_s21 }
  0x12   : > { %vm252_vm0 = vcmask 261120   ;;  %v2197_v0 = vmov 0.0  }
  0x13   : > { %253 = vst.msk [vmem:[#allocation2] sm:$0xff] %vm252_vm0, %v2197_v0  ;;  %254 = vst.msk [vmem:[#allocation2 + $0x8] sm:$0xff] %vm252_vm0, %v2197_v0 }
  0x14   : > { %255 = vst.msk [vmem:[#allocation2 + $0x10] sm:$0xff] %vm252_vm0, %v2197_v0  ;;  %256 = vst.msk [vmem:[#allocation2 + $0x18] sm:$0xff] %vm252_vm0, %v2197_v0 }
  0x15   : > { %257 = vst.msk [vmem:[#allocation2 + $0x20] sm:$0xff] %vm252_vm0, %v2197_v0  ;;  %258 = vst.msk [vmem:[#allocation2 + $0x28] sm:$0xff] %vm252_vm0, %v2197_v0 }
  0x16   : > { %259 = vst.msk [vmem:[#allocation2 + $0x30] sm:$0xff] %vm252_vm0, %v2197_v0  ;;  %260 = vst.msk [vmem:[#allocation2 + $0x38] sm:$0xff] %vm252_vm0, %v2197_v0 }
  0x17   : > { %261 = vst.msk [vmem:[#allocation2 + $0x40] sm:$0xff] %vm252_vm0, %v2197_v0  ;;  %262 = vst.msk [vmem:[#allocation2 + $0x48] sm:$0xff] %vm252_vm0, %v2197_v0 }
  0x18   : > { %263 = vst.msk [vmem:[#allocation2 + $0x50] sm:$0xff] %vm252_vm0, %v2197_v0  ;;  %264 = vst.msk [vmem:[#allocation2 + $0x58] sm:$0xff] %vm252_vm0, %v2197_v0 }
  0x19   : > { %265 = vst.msk [vmem:[#allocation2 + $0x60] sm:$0xff] %vm252_vm0, %v2197_v0  ;;  %266 = vst.msk [vmem:[#allocation2 + $0x68] sm:$0xff] %vm252_vm0, %v2197_v0 }
  0x1a   : > { %267 = vst.msk [vmem:[#allocation2 + $0x70] sm:$0xff] %vm252_vm0, %v2197_v0  ;;  %268 = vst.msk [vmem:[#allocation2 + $0x78] sm:$0xff] %vm252_vm0, %v2197_v0 }
  0x1b   : > { %269 = vst.msk [vmem:[#allocation2 + $0x80] sm:$0xff] %vm252_vm0, %v2197_v0  ;;  %270 = vst.msk [vmem:[#allocation2 + $0x88] sm:$0xff] %vm252_vm0, %v2197_v0 }
  0x1c   : > { %271 = vst.msk [vmem:[#allocation2 + $0x90] sm:$0xff] %vm252_vm0, %v2197_v0  ;;  %272 = vst.msk [vmem:[#allocation2 + $0x98] sm:$0xff] %vm252_vm0, %v2197_v0 }
  0x1d   : > { %273 = vst.msk [vmem:[#allocation2 + $0xa0] sm:$0xff] %vm252_vm0, %v2197_v0  ;;  %274 = vst.msk [vmem:[#allocation2 + $0xa8] sm:$0xff] %vm252_vm0, %v2197_v0 }
  0x1e   : > { %275 = vst.msk [vmem:[#allocation2 + $0xb0] sm:$0xff] %vm252_vm0, %v2197_v0  ;;  %276 = vst.msk [vmem:[#allocation2 + $0xb8] sm:$0xff] %vm252_vm0, %v2197_v0 }
  0x1f   : > { %277 = vst.msk [vmem:[#allocation2 + $0xc0] sm:$0xff] %vm252_vm0, %v2197_v0  ;;  %278 = vst.msk [vmem:[#allocation2 + $0xc8] sm:$0xff] %vm252_vm0, %v2197_v0 }
  0x20   : > { %279 = vst.msk [vmem:[#allocation2 + $0xd0] sm:$0xff] %vm252_vm0, %v2197_v0  ;;  %280 = vst.msk [vmem:[#allocation2 + $0xd8] sm:$0xff] %vm252_vm0, %v2197_v0 }
  0x21   : > { %281 = vst.msk [vmem:[#allocation2 + $0xe0] sm:$0xff] %vm252_vm0, %v2197_v0  ;;  %282 = vst.msk [vmem:[#allocation2 + $0xe8] sm:$0xff] %vm252_vm0, %v2197_v0 }
  0x22   : > { %283 = vst.msk [vmem:[#allocation2 + $0xf0] sm:$0xff] %vm252_vm0, %v2197_v0  ;;  %284 = vst.msk [vmem:[#allocation2 + $0xf8] sm:$0xff] %vm252_vm0, %v2197_v0 }
  0x23   : > { %285 = vst.msk [vmem:[#allocation2 + $0x100] sm:$0xff] %vm252_vm0, %v2197_v0  ;;  %286 = vst.msk [vmem:[#allocation2 + $0x108] sm:$0xff] %vm252_vm0, %v2197_v0 }
  0x24   : > { %287 = vst.msk [vmem:[#allocation2 + $0x110] sm:$0xff] %vm252_vm0, %v2197_v0  ;;  %288 = vst.msk [vmem:[#allocation2 + $0x118] sm:$0xff] %vm252_vm0, %v2197_v0 }
  0x25   : > { %289 = vst.msk [vmem:[#allocation2 + $0x120] sm:$0xff] %vm252_vm0, %v2197_v0  ;;  %290 = vst.msk [vmem:[#allocation2 + $0x128] sm:$0xff] %vm252_vm0, %v2197_v0 }
  0x26   : > { %291 = vst.msk [vmem:[#allocation2 + $0x130] sm:$0xff] %vm252_vm0, %v2197_v0  ;;  %292 = vst.msk [vmem:[#allocation2 + $0x138] sm:$0xff] %vm252_vm0, %v2197_v0 }
  0x27   : > { %293 = vst.msk [vmem:[#allocation2 + $0x140] sm:$0xff] %vm252_vm0, %v2197_v0  ;;  %294 = vst.msk [vmem:[#allocation2 + $0x148] sm:$0xff] %vm252_vm0, %v2197_v0 }
  0x28   : > { %295 = vst.msk [vmem:[#allocation2 + $0x150] sm:$0xff] %vm252_vm0, %v2197_v0  ;;  %296 = vst.msk [vmem:[#allocation2 + $0x158] sm:$0xff] %vm252_vm0, %v2197_v0 }
  0x29   : > { %297 = vst.msk [vmem:[#allocation2 + $0x160] sm:$0xff] %vm252_vm0, %v2197_v0  ;;  %298 = vst.msk [vmem:[#allocation2 + $0x168] sm:$0xff] %vm252_vm0, %v2197_v0 }
  0x2a   : > { %299 = vst.msk [vmem:[#allocation2 + $0x170] sm:$0xff] %vm252_vm0, %v2197_v0  ;;  %300 = vst.msk [vmem:[#allocation2 + $0x178] sm:$0xff] %vm252_vm0, %v2197_v0 }
  0x2b   : > { %301 = vst.msk [vmem:[#allocation2 + $0x180] sm:$0xff] %vm252_vm0, %v2197_v0  ;;  %302 = vst.msk [vmem:[#allocation2 + $0x188] sm:$0xff] %vm252_vm0, %v2197_v0 }
  0x2c   : > { %303 = vst.msk [vmem:[#allocation2 + $0x190] sm:$0xff] %vm252_vm0, %v2197_v0  ;;  %304 = vst.msk [vmem:[#allocation2 + $0x198] sm:$0xff] %vm252_vm0, %v2197_v0 }
  0x2d   : > { %305 = vst.msk [vmem:[#allocation2 + $0x1a0] sm:$0xff] %vm252_vm0, %v2197_v0  ;;  %306 = vst.msk [vmem:[#allocation2 + $0x1a8] sm:$0xff] %vm252_vm0, %v2197_v0 }
  0x2e   : > { %307 = vst.msk [vmem:[#allocation2 + $0x1b0] sm:$0xff] %vm252_vm0, %v2197_v0  ;;  %308 = vst.msk [vmem:[#allocation2 + $0x1b8] sm:$0xff] %vm252_vm0, %v2197_v0 }
  0x2f   : > { %309 = vst.msk [vmem:[#allocation2 + $0x1c0] sm:$0xff] %vm252_vm0, %v2197_v0  ;;  %310 = vst.msk [vmem:[#allocation2 + $0x1c8] sm:$0xff] %vm252_vm0, %v2197_v0 }
  0x30   : > { %311 = vst.msk [vmem:[#allocation2 + $0x1d0] sm:$0xff] %vm252_vm0, %v2197_v0  ;;  %312 = vst.msk [vmem:[#allocation2 + $0x1d8] sm:$0xff] %vm252_vm0, %v2197_v0 }
  0x31   : > { %313 = vst.msk [vmem:[#allocation2 + $0x1e0] sm:$0xff] %vm252_vm0, %v2197_v0  ;;  %314 = vst.msk [vmem:[#allocation2 + $0x1e8] sm:$0xff] %vm252_vm0, %v2197_v0 }
  0x32   : > { %315 = vst.msk [vmem:[#allocation2 + $0x1f0] sm:$0xff] %vm252_vm0, %v2197_v0  ;;  %316 = vst.msk [vmem:[#allocation2 + $0x1f8] sm:$0xff] %vm252_vm0, %v2197_v0 }
  0x33 PF: > { %v2140_v1 = vld [vmem:[%s2253_s27] sm:$0xff]   ;;  %vm613_vm1 = vcmask 130048   ;;  %v2143_v4 = vld [vmem:[%s2248_s24 + $0x8] sm:$0xff]   ;;  %v2145_v6 = vld [vmem:[%s2248_s24 + $0x10] sm:$0xff]   ;;  %vm1063_vm2 = vcmask 261120   ;;  %p1877_p6 = scmp.ne.s32.totalorder %s2187_s15, 8 }
  0x34   : > { %v2141_v2 = vld [vmem:[%s2248_s24] sm:$0xff]   ;;  %2047 = vmatprep.subr.bf16.mxu0 %v2140_v1  ;;  %2113 = vmatprep.subr.bf16.mxu1 %v2140_v1  ;;  %v2144_v5 = vld [vmem:[%s2248_s24 + $0x88] sm:$0xff]   ;;  %v2146_v7 = vld [vmem:[%s2248_s24 + $0x90] sm:$0xff]  }
  0x35   : > { %v2142_v3 = vld [vmem:[%s2248_s24 + $0x80] sm:$0xff]   ;;  %2048 = vmatpush3.bf16.msra.mxu0 %v2140_v1  ;;  %2114 = vmatpush3.bf16.msra.mxu1 %v2140_v1  ;;  %v2147_v8 = vld [vmem:[%s2248_s24 + $0x18] sm:$0xff]   ;;  %v2151_v12 = vld [vmem:[%s2248_s24 + $0x28] sm:$0xff]  }
  0x36   : > { %2049 = vmatprep.mubr.msk.bf16.mxu0 %vm613_vm1, %v2141_v2  ;;  %2081 = vmatprep.mubr.msk.bf16.mxu1 %vm613_vm1, %v2142_v3  ;;  %v2148_v9 = vld [vmem:[%s2248_s24 + $0x98] sm:$0xff]   ;;  %v2149_v10 = vld [vmem:[%s2248_s24 + $0x20] sm:$0xff]   ;;  %v2152_v13 = vld [vmem:[%s2248_s24 + $0xa8] sm:$0xff]  }
  0x37   : > { %v2150_v11 = vld [vmem:[%s2248_s24 + $0xa0] sm:$0xff]   ;;  %v2153_v14 = vld [vmem:[%s2248_s24 + $0x30] sm:$0xff]   ;;  %v2155_v16 = vld [vmem:[%s2248_s24 + $0x38] sm:$0xff]  }
  0x38   : > { %2050 = vmatmul.mubr.msk.bf16.vlgmr.msra.gmra.mxu0 %vm613_vm1, %v2143_v4  ;;  %2082 = vmatmul.mubr.msk.bf16.vlgmr.msra.gmra.mxu1 %vm613_vm1, %v2144_v5  ;;  %v2154_v15 = vld [vmem:[%s2248_s24 + $0xb0] sm:$0xff]   ;;  %v2156_v17 = vld [vmem:[%s2248_s24 + $0xb8] sm:$0xff]   ;;  %v2157_v18 = vld [vmem:[%s2248_s24 + $0x40] sm:$0xff]  }
  0x39   : > { %2053 = vmatprep.mubr.msk.bf16.mxu0 %vm613_vm1, %v2145_v6  ;;  %2085 = vmatprep.mubr.msk.bf16.mxu1 %vm613_vm1, %v2146_v7  ;;  %v2158_v19 = vld [vmem:[%s2248_s24 + $0xc0] sm:$0xff]   ;;  %v2159_v20 = vld [vmem:[%s2248_s24 + $0x48] sm:$0xff]   ;;  %v2161_v22 = vld [vmem:[%s2248_s24 + $0x50] sm:$0xff]  }
  0x3a   : > { %v2160_v21 = vld [vmem:[%s2248_s24 + $0xc8] sm:$0xff]   ;;  %v2162_v23 = vld [vmem:[%s2248_s24 + $0xd0] sm:$0xff]   ;;  %v2163_v24 = vld [vmem:[%s2248_s24 + $0x58] sm:$0xff]  }
  0x3b   : > { %v2164_v25 = vld [vmem:[%s2248_s24 + $0xd8] sm:$0xff]   ;;  %v2165_v26 = vld [vmem:[%s2248_s24 + $0x60] sm:$0xff]   ;;  %v2167_v28 = vld [vmem:[%s2248_s24 + $0x68] sm:$0xff]  }
  0x3c   : > { %v2166_v27 = vld [vmem:[%s2248_s24 + $0xe0] sm:$0xff]   ;;  %v2168_v29 = vld [vmem:[%s2248_s24 + $0xe8] sm:$0xff]   ;;  %v2169_v30 = vld [vmem:[%s2248_s24 + $0x70] sm:$0xff]  }
  0x3d   : > { %v2170_v31 = vld [vmem:[%s2248_s24 + $0xf0] sm:$0xff]   ;;  %v2171_v32 = vld [vmem:[%s2248_s24 + $0x78] sm:$0xff]   ;;  %v317_v38 = vld [vmem:[#allocation2] sm:$0xff] }
  0x3e   : > { %v2172_v33 = vld [vmem:[%s2248_s24 + $0xf8] sm:$0xff]   ;;  %v319_v34 = vld [vmem:[#allocation2 + $0x10] sm:$0xff]  ;;  %v349_v39 = vld [vmem:[#allocation2 + $0x100] sm:$0xff] }
  0x3f   : > { %v351_v35 = vld [vmem:[#allocation2 + $0x110] sm:$0xff]  ;;  %v320_v44 = vld [vmem:[#allocation2 + $0x18] sm:$0xff]  ;;  %v318_v50 = vld [vmem:[#allocation2 + $0x8] sm:$0xff] }
  0x40   : > { %2054 = vmatmul.mubr.msk.bf16.gmra.mxu0 %vm613_vm1, %v2147_v8  ;;  %2086 = vmatmul.mubr.msk.bf16.gmra.mxu1 %vm613_vm1, %v2148_v9  ;;  %v352_v45 = vld [vmem:[#allocation2 + $0x118] sm:$0xff]  ;;  %v350_v51 = vld [vmem:[#allocation2 + $0x108] sm:$0xff]  ;;  %v323_v56 = vld [vmem:[#allocation2 + $0x30] sm:$0xff] }
  0x41   : > { %2057 = vmatprep.mubr.msk.bf16.mxu0 %vm613_vm1, %v2149_v10  ;;  %2089 = vmatprep.mubr.msk.bf16.mxu1 %vm613_vm1, %v2150_v11  ;;  %v355_v57 = vld [vmem:[#allocation2 + $0x130] sm:$0xff]  ;;  %v321_v62 = vld [vmem:[#allocation2 + $0x20] sm:$0xff]  ;;  %v324_v4 = vld [vmem:[#allocation2 + $0x38] sm:$0xff] }
  0x42   : > { %v353_v63 = vld [vmem:[#allocation2 + $0x120] sm:$0xff]  ;;  %v356_v5 = vld [vmem:[#allocation2 + $0x138] sm:$0xff]  ;;  %v322_v10 = vld [vmem:[#allocation2 + $0x28] sm:$0xff] }
  0x43   : > { %v354_v11 = vld [vmem:[#allocation2 + $0x128] sm:$0xff] }
  0x48   : > { %2058 = vmatmul.mubr.msk.bf16.gmra.mxu0 %vm613_vm1, %v2151_v12  ;;  %2090 = vmatmul.mubr.msk.bf16.gmra.mxu1 %vm613_vm1, %v2152_v13 }
  0x49   : > { %2061 = vmatprep.mubr.msk.bf16.mxu0 %vm613_vm1, %v2153_v14  ;;  %2093 = vmatprep.mubr.msk.bf16.mxu1 %vm613_vm1, %v2154_v15 }
  0x50   : > { %2062 = vmatmul.mubr.msk.bf16.gmra.mxu0 %vm613_vm1, %v2155_v16  ;;  %2094 = vmatmul.mubr.msk.bf16.gmra.mxu1 %vm613_vm1, %v2156_v17  ;;  %v327_v16 = vld [vmem:[#allocation2 + $0x50] sm:$0xff] }
  0x51   : > { %2065 = vmatprep.mubr.msk.bf16.mxu0 %vm613_vm1, %v2157_v18  ;;  %2097 = vmatprep.mubr.msk.bf16.mxu1 %vm613_vm1, %v2158_v19  ;;  %v359_v17 = vld [vmem:[#allocation2 + $0x150] sm:$0xff] }
  0x58   : > { %2066 = vmatmul.mubr.msk.bf16.gmra.mxu0 %vm613_vm1, %v2159_v20  ;;  %2098 = vmatmul.mubr.msk.bf16.gmra.mxu1 %vm613_vm1, %v2160_v21 }
  0x59   : > { %2069 = vmatprep.mubr.msk.bf16.mxu0 %vm613_vm1, %v2161_v22  ;;  %2101 = vmatprep.mubr.msk.bf16.mxu1 %vm613_vm1, %v2162_v23  ;;  %v325_v22 = vld [vmem:[#allocation2 + $0x40] sm:$0xff] }
  0x5a   : > { %v357_v23 = vld [vmem:[#allocation2 + $0x140] sm:$0xff] }
  0x60   : > { %2070 = vmatmul.mubr.msk.bf16.gmra.mxu0 %vm613_vm1, %v2163_v24  ;;  %2102 = vmatmul.mubr.msk.bf16.gmra.mxu1 %vm613_vm1, %v2164_v25 }
  0x61   : > { %2073 = vmatprep.mubr.msk.bf16.mxu0 %vm613_vm1, %v2165_v26  ;;  %2105 = vmatprep.mubr.msk.bf16.mxu1 %vm613_vm1, %v2166_v27 }
  0x68   : > { %2074 = vmatmul.mubr.msk.bf16.gmra.mxu0 %vm613_vm1, %v2167_v28  ;;  %2106 = vmatmul.mubr.msk.bf16.gmra.mxu1 %vm613_vm1, %v2168_v29  ;;  %v328_v28 = vld [vmem:[#allocation2 + $0x58] sm:$0xff] }
  0x69   : > { %2077 = vmatprep.mubr.msk.bf16.mxu0 %vm613_vm1, %v2169_v30  ;;  %2109 = vmatprep.mubr.msk.bf16.mxu1 %vm613_vm1, %v2170_v31  ;;  %v360_v29 = vld [vmem:[#allocation2 + $0x158] sm:$0xff] }
  0x70   : > { %2078 = vmatmul.mubr.msk.bf16.gmra.mxu0 %vm613_vm1, %v2171_v32  ;;  %2110 = vmatmul.mubr.msk.bf16.gmra.mxu1 %vm613_vm1, %v2172_v33 }
  0xf8   : > { %v2051_v36 = vpop.f32.mrf.mxu0  ;;  %v2083_v37 = vpop.f32.mrf.mxu1 }
  0xf9   : > { %v1001_v40 = vadd.f32 %v2051_v36, %v319_v34  ;;  %v1033_v41 = vadd.f32 %v2083_v37, %v351_v35  ;;  %v326_v34 = vld [vmem:[#allocation2 + $0x48] sm:$0xff] }
  0xfa   : > { %v744_v42 = vpop.f32.mrf.mxu0  ;;  %v872_v43 = vpop.f32.mrf.mxu1  ;;  %v358_v35 = vld [vmem:[#allocation2 + $0x148] sm:$0xff] }
  0xfb   : > { %1066 = vst.msk [vmem:[#allocation2 + $0x10] sm:$0xff] %vm1063_vm2, %v1001_v40  ;;  %1098 = vst.msk [vmem:[#allocation2 + $0x110] sm:$0xff] %vm1063_vm2, %v1033_v41  ;;  %v999_v46 = vadd.f32 %v744_v42, %v317_v38  ;;  %v1031_v47 = vadd.f32 %v872_v43, %v349_v39  ;;  %v331_v40 = vld [vmem:[#allocation2 + $0x70] sm:$0xff] }
  0xfc   : > { %v2052_v48 = vpop.f32.mrf.mxu0  ;;  %v2084_v49 = vpop.f32.mrf.mxu1  ;;  %v363_v41 = vld [vmem:[#allocation2 + $0x170] sm:$0xff] }
  0xfd   : > { %1064 = vst.msk [vmem:[#allocation2] sm:$0xff] %vm1063_vm2, %v999_v46  ;;  %1096 = vst.msk [vmem:[#allocation2 + $0x100] sm:$0xff] %vm1063_vm2, %v1031_v47  ;;  %v1002_v52 = vadd.f32 %v2052_v48, %v320_v44  ;;  %v1034_v53 = vadd.f32 %v2084_v49, %v352_v45  ;;  %v329_v46 = vld [vmem:[#allocation2 + $0x60] sm:$0xff] }
  0xfe   : > { %v747_v54 = vpop.f32.mrf.mxu0  ;;  %v875_v55 = vpop.f32.mrf.mxu1  ;;  %v361_v47 = vld [vmem:[#allocation2 + $0x160] sm:$0xff] }
  0xff   : > { %1067 = vst.msk [vmem:[#allocation2 + $0x18] sm:$0xff] %vm1063_vm2, %v1002_v52  ;;  %1099 = vst.msk [vmem:[#allocation2 + $0x118] sm:$0xff] %vm1063_vm2, %v1034_v53  ;;  %v1000_v58 = vadd.f32 %v747_v54, %v318_v50  ;;  %v1032_v59 = vadd.f32 %v875_v55, %v350_v51  ;;  %v332_v52 = vld [vmem:[#allocation2 + $0x78] sm:$0xff] }
 0x100   : > { %v2055_v60 = vpop.f32.mrf.mxu0  ;;  %v2087_v61 = vpop.f32.mrf.mxu1  ;;  %v364_v53 = vld [vmem:[#allocation2 + $0x178] sm:$0xff] }
 0x101   : > { %1065 = vst.msk [vmem:[#allocation2 + $0x8] sm:$0xff] %vm1063_vm2, %v1000_v58  ;;  %1097 = vst.msk [vmem:[#allocation2 + $0x108] sm:$0xff] %vm1063_vm2, %v1032_v59  ;;  %v1005_v0 = vadd.f32 %v2055_v60, %v323_v56  ;;  %v1037_v1 = vadd.f32 %v2087_v61, %v355_v57  ;;  %v330_v58 = vld [vmem:[#allocation2 + $0x68] sm:$0xff] }
 0x102   : > { %v760_v2 = vpop.f32.mrf.mxu0  ;;  %v888_v3 = vpop.f32.mrf.mxu1  ;;  %v362_v59 = vld [vmem:[#allocation2 + $0x168] sm:$0xff] }
 0x103   : > { %1070 = vst.msk [vmem:[#allocation2 + $0x30] sm:$0xff] %vm1063_vm2, %v1005_v0  ;;  %1102 = vst.msk [vmem:[#allocation2 + $0x130] sm:$0xff] %vm1063_vm2, %v1037_v1  ;;  %v1003_v6 = vadd.f32 %v760_v2, %v321_v62  ;;  %v1035_v7 = vadd.f32 %v888_v3, %v353_v63  ;;  %v335_v0 = vld [vmem:[#allocation2 + $0x90] sm:$0xff] }
 0x104   : > { %v2056_v8 = vpop.f32.mrf.mxu0  ;;  %v2088_v9 = vpop.f32.mrf.mxu1  ;;  %v367_v1 = vld [vmem:[#allocation2 + $0x190] sm:$0xff] }
 0x105   : > { %1068 = vst.msk [vmem:[#allocation2 + $0x20] sm:$0xff] %vm1063_vm2, %v1003_v6  ;;  %1100 = vst.msk [vmem:[#allocation2 + $0x120] sm:$0xff] %vm1063_vm2, %v1035_v7  ;;  %v1006_v12 = vadd.f32 %v2056_v8, %v324_v4  ;;  %v1038_v13 = vadd.f32 %v2088_v9, %v356_v5  ;;  %v333_v6 = vld [vmem:[#allocation2 + $0x80] sm:$0xff] }
 0x106   : > { %v763_v14 = vpop.f32.mrf.mxu0  ;;  %v891_v15 = vpop.f32.mrf.mxu1  ;;  %v365_v7 = vld [vmem:[#allocation2 + $0x180] sm:$0xff] }
 0x107   : > { %1071 = vst.msk [vmem:[#allocation2 + $0x38] sm:$0xff] %vm1063_vm2, %v1006_v12  ;;  %1103 = vst.msk [vmem:[#allocation2 + $0x138] sm:$0xff] %vm1063_vm2, %v1038_v13  ;;  %v1004_v18 = vadd.f32 %v763_v14, %v322_v10  ;;  %v1036_v19 = vadd.f32 %v891_v15, %v354_v11  ;;  %v336_v12 = vld [vmem:[#allocation2 + $0x98] sm:$0xff] }
 0x108   : > { %v2059_v20 = vpop.f32.mrf.mxu0  ;;  %v2091_v21 = vpop.f32.mrf.mxu1  ;;  %v368_v13 = vld [vmem:[#allocation2 + $0x198] sm:$0xff] }
 0x109   : > { %1069 = vst.msk [vmem:[#allocation2 + $0x28] sm:$0xff] %vm1063_vm2, %v1004_v18  ;;  %1101 = vst.msk [vmem:[#allocation2 + $0x128] sm:$0xff] %vm1063_vm2, %v1036_v19  ;;  %v1009_v24 = vadd.f32 %v2059_v20, %v327_v16  ;;  %v1041_v25 = vadd.f32 %v2091_v21, %v359_v17  ;;  %v334_v18 = vld [vmem:[#allocation2 + $0x88] sm:$0xff] }
 0x10a   : > { %v776_v26 = vpop.f32.mrf.mxu0  ;;  %v904_v27 = vpop.f32.mrf.mxu1  ;;  %v366_v19 = vld [vmem:[#allocation2 + $0x188] sm:$0xff] }
 0x10b   : > { %1074 = vst.msk [vmem:[#allocation2 + $0x50] sm:$0xff] %vm1063_vm2, %v1009_v24  ;;  %1106 = vst.msk [vmem:[#allocation2 + $0x150] sm:$0xff] %vm1063_vm2, %v1041_v25  ;;  %v1007_v30 = vadd.f32 %v776_v26, %v325_v22  ;;  %v1039_v31 = vadd.f32 %v904_v27, %v357_v23  ;;  %v339_v24 = vld [vmem:[#allocation2 + $0xb0] sm:$0xff] }
 0x10c   : > { %v2060_v32 = vpop.f32.mrf.mxu0  ;;  %v2092_v33 = vpop.f32.mrf.mxu1  ;;  %v371_v25 = vld [vmem:[#allocation2 + $0x1b0] sm:$0xff] }
 0x10d   : > { %1072 = vst.msk [vmem:[#allocation2 + $0x40] sm:$0xff] %vm1063_vm2, %v1007_v30  ;;  %1104 = vst.msk [vmem:[#allocation2 + $0x140] sm:$0xff] %vm1063_vm2, %v1039_v31  ;;  %v1010_v36 = vadd.f32 %v2060_v32, %v328_v28  ;;  %v1042_v37 = vadd.f32 %v2092_v33, %v360_v29  ;;  %v337_v30 = vld [vmem:[#allocation2 + $0xa0] sm:$0xff] }
 0x10e   : > { %v779_v38 = vpop.f32.mrf.mxu0  ;;  %v907_v39 = vpop.f32.mrf.mxu1  ;;  %v369_v31 = vld [vmem:[#allocation2 + $0x1a0] sm:$0xff] }
 0x10f   : > { %1075 = vst.msk [vmem:[#allocation2 + $0x58] sm:$0xff] %vm1063_vm2, %v1010_v36  ;;  %1107 = vst.msk [vmem:[#allocation2 + $0x158] sm:$0xff] %vm1063_vm2, %v1042_v37  ;;  %v1008_v42 = vadd.f32 %v779_v38, %v326_v34  ;;  %v1040_v43 = vadd.f32 %v907_v39, %v358_v35  ;;  %v340_v36 = vld [vmem:[#allocation2 + $0xb8] sm:$0xff] }
 0x110   : > { %v2063_v44 = vpop.f32.mrf.mxu0  ;;  %v2095_v45 = vpop.f32.mrf.mxu1  ;;  %v372_v37 = vld [vmem:[#allocation2 + $0x1b8] sm:$0xff] }
 0x111   : > { %1073 = vst.msk [vmem:[#allocation2 + $0x48] sm:$0xff] %vm1063_vm2, %v1008_v42  ;;  %1105 = vst.msk [vmem:[#allocation2 + $0x148] sm:$0xff] %vm1063_vm2, %v1040_v43  ;;  %v1013_v48 = vadd.f32 %v2063_v44, %v331_v40  ;;  %v1045_v49 = vadd.f32 %v2095_v45, %v363_v41  ;;  %v338_v42 = vld [vmem:[#allocation2 + $0xa8] sm:$0xff] }
 0x112   : > { %v792_v50 = vpop.f32.mrf.mxu0  ;;  %v920_v51 = vpop.f32.mrf.mxu1  ;;  %v370_v43 = vld [vmem:[#allocation2 + $0x1a8] sm:$0xff] }
 0x113   : > { %1078 = vst.msk [vmem:[#allocation2 + $0x70] sm:$0xff] %vm1063_vm2, %v1013_v48  ;;  %1110 = vst.msk [vmem:[#allocation2 + $0x170] sm:$0xff] %vm1063_vm2, %v1045_v49  ;;  %v1011_v54 = vadd.f32 %v792_v50, %v329_v46  ;;  %v1043_v55 = vadd.f32 %v920_v51, %v361_v47  ;;  %v343_v48 = vld [vmem:[#allocation2 + $0xd0] sm:$0xff] }
 0x114   : > { %v2064_v56 = vpop.f32.mrf.mxu0  ;;  %v2096_v57 = vpop.f32.mrf.mxu1  ;;  %v375_v49 = vld [vmem:[#allocation2 + $0x1d0] sm:$0xff] }
 0x115   : > { %1076 = vst.msk [vmem:[#allocation2 + $0x60] sm:$0xff] %vm1063_vm2, %v1011_v54  ;;  %1108 = vst.msk [vmem:[#allocation2 + $0x160] sm:$0xff] %vm1063_vm2, %v1043_v55  ;;  %v1014_v60 = vadd.f32 %v2064_v56, %v332_v52  ;;  %v1046_v61 = vadd.f32 %v2096_v57, %v364_v53  ;;  %v341_v54 = vld [vmem:[#allocation2 + $0xc0] sm:$0xff] }
 0x116   : > { %v795_v62 = vpop.f32.mrf.mxu0  ;;  %v923_v63 = vpop.f32.mrf.mxu1  ;;  %v373_v55 = vld [vmem:[#allocation2 + $0x1c0] sm:$0xff] }
 0x117   : > { %1079 = vst.msk [vmem:[#allocation2 + $0x78] sm:$0xff] %vm1063_vm2, %v1014_v60  ;;  %1111 = vst.msk [vmem:[#allocation2 + $0x178] sm:$0xff] %vm1063_vm2, %v1046_v61  ;;  %v1012_v2 = vadd.f32 %v795_v62, %v330_v58  ;;  %v1044_v3 = vadd.f32 %v923_v63, %v362_v59  ;;  %v344_v60 = vld [vmem:[#allocation2 + $0xd8] sm:$0xff] }
 0x118   : > { %v2067_v4 = vpop.f32.mrf.mxu0  ;;  %v2099_v5 = vpop.f32.mrf.mxu1  ;;  %v376_v61 = vld [vmem:[#allocation2 + $0x1d8] sm:$0xff] }
 0x119   : > { %1077 = vst.msk [vmem:[#allocation2 + $0x68] sm:$0xff] %vm1063_vm2, %v1012_v2  ;;  %1109 = vst.msk [vmem:[#allocation2 + $0x168] sm:$0xff] %vm1063_vm2, %v1044_v3  ;;  %v1017_v8 = vadd.f32 %v2067_v4, %v335_v0  ;;  %v1049_v9 = vadd.f32 %v2099_v5, %v367_v1  ;;  %v342_v2 = vld [vmem:[#allocation2 + $0xc8] sm:$0xff] }
 0x11a   : > { %v808_v10 = vpop.f32.mrf.mxu0  ;;  %v936_v11 = vpop.f32.mrf.mxu1  ;;  %v374_v3 = vld [vmem:[#allocation2 + $0x1c8] sm:$0xff] }
 0x11b   : > { %1082 = vst.msk [vmem:[#allocation2 + $0x90] sm:$0xff] %vm1063_vm2, %v1017_v8  ;;  %1114 = vst.msk [vmem:[#allocation2 + $0x190] sm:$0xff] %vm1063_vm2, %v1049_v9  ;;  %v1015_v14 = vadd.f32 %v808_v10, %v333_v6  ;;  %v1047_v15 = vadd.f32 %v936_v11, %v365_v7  ;;  %v347_v8 = vld [vmem:[#allocation2 + $0xf0] sm:$0xff] }
 0x11c   : > { %v2068_v16 = vpop.f32.mrf.mxu0  ;;  %v2100_v17 = vpop.f32.mrf.mxu1  ;;  %v379_v9 = vld [vmem:[#allocation2 + $0x1f0] sm:$0xff] }
 0x11d   : > { %1080 = vst.msk [vmem:[#allocation2 + $0x80] sm:$0xff] %vm1063_vm2, %v1015_v14  ;;  %1112 = vst.msk [vmem:[#allocation2 + $0x180] sm:$0xff] %vm1063_vm2, %v1047_v15  ;;  %v1018_v20 = vadd.f32 %v2068_v16, %v336_v12  ;;  %v1050_v21 = vadd.f32 %v2100_v17, %v368_v13  ;;  %v345_v14 = vld [vmem:[#allocation2 + $0xe0] sm:$0xff] }
 0x11e   : > { %v811_v22 = vpop.f32.mrf.mxu0  ;;  %v939_v23 = vpop.f32.mrf.mxu1  ;;  %v377_v15 = vld [vmem:[#allocation2 + $0x1e0] sm:$0xff] }
 0x11f   : > { %1083 = vst.msk [vmem:[#allocation2 + $0x98] sm:$0xff] %vm1063_vm2, %v1018_v20  ;;  %1115 = vst.msk [vmem:[#allocation2 + $0x198] sm:$0xff] %vm1063_vm2, %v1050_v21  ;;  %v1016_v26 = vadd.f32 %v811_v22, %v334_v18  ;;  %v1048_v27 = vadd.f32 %v939_v23, %v366_v19  ;;  %v348_v20 = vld [vmem:[#allocation2 + $0xf8] sm:$0xff] }
 0x120   : > { %v2071_v28 = vpop.f32.mrf.mxu0  ;;  %v2103_v29 = vpop.f32.mrf.mxu1  ;;  %v380_v21 = vld [vmem:[#allocation2 + $0x1f8] sm:$0xff] }
 0x121   : > { %1081 = vst.msk [vmem:[#allocation2 + $0x88] sm:$0xff] %vm1063_vm2, %v1016_v26  ;;  %1113 = vst.msk [vmem:[#allocation2 + $0x188] sm:$0xff] %vm1063_vm2, %v1048_v27  ;;  %v1021_v32 = vadd.f32 %v2071_v28, %v339_v24  ;;  %v1053_v33 = vadd.f32 %v2103_v29, %v371_v25  ;;  %v346_v26 = vld [vmem:[#allocation2 + $0xe8] sm:$0xff] }
 0x122   : > { %v824_v34 = vpop.f32.mrf.mxu0  ;;  %v952_v35 = vpop.f32.mrf.mxu1  ;;  %v378_v27 = vld [vmem:[#allocation2 + $0x1e8] sm:$0xff] }
 0x123   : > { %1086 = vst.msk [vmem:[#allocation2 + $0xb0] sm:$0xff] %vm1063_vm2, %v1021_v32  ;;  %1118 = vst.msk [vmem:[#allocation2 + $0x1b0] sm:$0xff] %vm1063_vm2, %v1053_v33  ;;  %v1019_v38 = vadd.f32 %v824_v34, %v337_v30  ;;  %v1051_v39 = vadd.f32 %v952_v35, %v369_v31 }
 0x124   : > { %v2072_v40 = vpop.f32.mrf.mxu0  ;;  %v2104_v41 = vpop.f32.mrf.mxu1 }
 0x125   : > { %1084 = vst.msk [vmem:[#allocation2 + $0xa0] sm:$0xff] %vm1063_vm2, %v1019_v38  ;;  %1116 = vst.msk [vmem:[#allocation2 + $0x1a0] sm:$0xff] %vm1063_vm2, %v1051_v39  ;;  %v1022_v44 = vadd.f32 %v2072_v40, %v340_v36  ;;  %v1054_v45 = vadd.f32 %v2104_v41, %v372_v37 }
 0x126   : > { %v827_v46 = vpop.f32.mrf.mxu0  ;;  %v955_v47 = vpop.f32.mrf.mxu1 }
 0x127   : > { %1087 = vst.msk [vmem:[#allocation2 + $0xb8] sm:$0xff] %vm1063_vm2, %v1022_v44  ;;  %1119 = vst.msk [vmem:[#allocation2 + $0x1b8] sm:$0xff] %vm1063_vm2, %v1054_v45  ;;  %v1020_v50 = vadd.f32 %v827_v46, %v338_v42  ;;  %v1052_v51 = vadd.f32 %v955_v47, %v370_v43 }
 0x128   : > { %v2075_v52 = vpop.f32.mrf.mxu0  ;;  %v2107_v53 = vpop.f32.mrf.mxu1 }
 0x129   : > { %1085 = vst.msk [vmem:[#allocation2 + $0xa8] sm:$0xff] %vm1063_vm2, %v1020_v50  ;;  %1117 = vst.msk [vmem:[#allocation2 + $0x1a8] sm:$0xff] %vm1063_vm2, %v1052_v51  ;;  %v1025_v56 = vadd.f32 %v2075_v52, %v343_v48  ;;  %v1057_v57 = vadd.f32 %v2107_v53, %v375_v49 }
 0x12a   : > { %v840_v58 = vpop.f32.mrf.mxu0  ;;  %v968_v59 = vpop.f32.mrf.mxu1 }
 0x12b   : > { %1090 = vst.msk [vmem:[#allocation2 + $0xd0] sm:$0xff] %vm1063_vm2, %v1025_v56  ;;  %1122 = vst.msk [vmem:[#allocation2 + $0x1d0] sm:$0xff] %vm1063_vm2, %v1057_v57  ;;  %v1023_v62 = vadd.f32 %v840_v58, %v341_v54  ;;  %v1055_v63 = vadd.f32 %v968_v59, %v373_v55 }
 0x12c   : > { %v2076_v0 = vpop.f32.mrf.mxu0  ;;  %v2108_v1 = vpop.f32.mrf.mxu1 }
 0x12d   : > { %1088 = vst.msk [vmem:[#allocation2 + $0xc0] sm:$0xff] %vm1063_vm2, %v1023_v62  ;;  %1120 = vst.msk [vmem:[#allocation2 + $0x1c0] sm:$0xff] %vm1063_vm2, %v1055_v63  ;;  %v1026_v4 = vadd.f32 %v2076_v0, %v344_v60  ;;  %v1058_v5 = vadd.f32 %v2108_v1, %v376_v61 }
 0x12e   : > { %v843_v6 = vpop.f32.mrf.mxu0  ;;  %v971_v7 = vpop.f32.mrf.mxu1 }
 0x12f   : > { %1091 = vst.msk [vmem:[#allocation2 + $0xd8] sm:$0xff] %vm1063_vm2, %v1026_v4  ;;  %1123 = vst.msk [vmem:[#allocation2 + $0x1d8] sm:$0xff] %vm1063_vm2, %v1058_v5  ;;  %v1024_v10 = vadd.f32 %v843_v6, %v342_v2  ;;  %v1056_v11 = vadd.f32 %v971_v7, %v374_v3 }
 0x130   : > { %v2079_v12 = vpop.f32.mrf.mxu0  ;;  %v2111_v13 = vpop.f32.mrf.mxu1 }
 0x131   : > { %1089 = vst.msk [vmem:[#allocation2 + $0xc8] sm:$0xff] %vm1063_vm2, %v1024_v10  ;;  %1121 = vst.msk [vmem:[#allocation2 + $0x1c8] sm:$0xff] %vm1063_vm2, %v1056_v11  ;;  %v1029_v16 = vadd.f32 %v2079_v12, %v347_v8  ;;  %v1061_v17 = vadd.f32 %v2111_v13, %v379_v9 }
 0x132   : > { %v856_v18 = vpop.f32.mrf.mxu0  ;;  %v984_v19 = vpop.f32.mrf.mxu1 }
 0x133   : > { %1094 = vst.msk [vmem:[#allocation2 + $0xf0] sm:$0xff] %vm1063_vm2, %v1029_v16  ;;  %1126 = vst.msk [vmem:[#allocation2 + $0x1f0] sm:$0xff] %vm1063_vm2, %v1061_v17  ;;  %v1027_v22 = vadd.f32 %v856_v18, %v345_v14  ;;  %v1059_v23 = vadd.f32 %v984_v19, %v377_v15 }
 0x134   : > { %v2080_v24 = vpop.f32.mrf.mxu0  ;;  %v2112_v25 = vpop.f32.mrf.mxu1 }
 0x135   : > { %1092 = vst.msk [vmem:[#allocation2 + $0xe0] sm:$0xff] %vm1063_vm2, %v1027_v22  ;;  %1124 = vst.msk [vmem:[#allocation2 + $0x1e0] sm:$0xff] %vm1063_vm2, %v1059_v23  ;;  %v1030_v28 = vadd.f32 %v2080_v24, %v348_v20  ;;  %v1062_v29 = vadd.f32 %v2112_v25, %v380_v21  ;;  %1131 = sbr.rel (%p1877_p6) target bundleno = 389 (0x185), region = 44 }
 0x136   : > { %v859_v30 = vpop.f32.mrf.mxu0  ;;  %v987_v31 = vpop.f32.mrf.mxu1 }
 0x137   : > { %1095 = vst.msk [vmem:[#allocation2 + $0xf8] sm:$0xff] %vm1063_vm2, %v1030_v28  ;;  %1127 = vst.msk [vmem:[#allocation2 + $0x1f8] sm:$0xff] %vm1063_vm2, %v1062_v29  ;;  %v1028_v32 = vadd.f32 %v859_v30, %v346_v26  ;;  %v1060_v33 = vadd.f32 %v987_v31, %v378_v27 }
 0x139   : > { %1093 = vst.msk [vmem:[#allocation2 + $0xe8] sm:$0xff] %vm1063_vm2, %v1028_v32  ;;  %1125 = vst.msk [vmem:[#allocation2 + $0x1e8] sm:$0xff] %vm1063_vm2, %v1060_v33 }
 0x13a   : > { %v1132_v34 = vld [vmem:[#allocation2] sm:$0xff]  ;;  %v1133_v38 = vld [vmem:[#allocation2 + $0x8] sm:$0xff]  ;;  %v1134_v39 = vld [vmem:[#allocation2 + $0x10] sm:$0xff]  ;;  %vm1658_vm3 = vcmask 257024  }
 0x13b   : > { %v2517_v35 = vld [vmem:[%s2919_s2] ss:$0 sm:$0xff]  ;;  %v1135_v40 = vld [vmem:[#allocation2 + $0x18] sm:$0xff]  ;;  %v1137_v45 = vld [vmem:[#allocation2 + $0x28] sm:$0xff] }
 0x13c   : > { %v2522_v36 = vld [vmem:[%s2920_s3] ss:$0 sm:$0xff]  ;;  %v1203_v37 = vmul.f32 %v2517_v35, %v1132_v34  ;;  %v1204_v41 = vmul.f32 %v2517_v35, %v1133_v38  ;;  %v1205_v42 = vmul.f32 %v2517_v35, %v1134_v39  ;;  %v1206_v43 = vmul.f32 %v2517_v35, %v1135_v40  ;;  %v1138_v46 = vld [vmem:[#allocation2 + $0x30] sm:$0xff]  ;;  %v1139_v51 = vld [vmem:[#allocation2 + $0x38] sm:$0xff] }
 0x13d   : > { %v1136_v44 = vld [vmem:[#allocation2 + $0x20] sm:$0xff]  ;;  %v1208_v49 = vmul.f32 %v2517_v35, %v1137_v45  ;;  %v1209_v50 = vmul.f32 %v2517_v35, %v1138_v46  ;;  %v1210_v55 = vmul.f32 %v2517_v35, %v1139_v51  ;;  %v1141_v5 = vld [vmem:[#allocation2 + $0x48] sm:$0xff]  ;;  %v1142_v6 = vld [vmem:[#allocation2 + $0x50] sm:$0xff] }
 0x13e   : > { %v1274_v47 = vadd.f32 %v2522_v36, %v1203_v37  ;;  %v1207_v48 = vmul.f32 %v2517_v35, %v1136_v44  ;;  %v1275_v52 = vadd.f32 %v2522_v36, %v1204_v41  ;;  %v1276_v53 = vadd.f32 %v2522_v36, %v1205_v42  ;;  %v1140_v0 = vld [vmem:[#allocation2 + $0x40] sm:$0xff]  ;;  %v1143_v7 = vld [vmem:[#allocation2 + $0x58] sm:$0xff]  ;;  %v1145_v13 = vld [vmem:[#allocation2 + $0x68] sm:$0xff] }
 0x13f   : > { %v1277_v54 = vadd.f32 %v2522_v36, %v1206_v43  ;;  %v1279_v58 = vadd.f32 %v2522_v36, %v1208_v49  ;;  %v1280_v59 = vadd.f32 %v2522_v36, %v1209_v50  ;;  %v1281_v63 = vadd.f32 %v2522_v36, %v1210_v55  ;;  %v1144_v12 = vld [vmem:[#allocation2 + $0x60] sm:$0xff]  ;;  %v1146_v14 = vld [vmem:[#allocation2 + $0x70] sm:$0xff]  ;;  %v1147_v19 = vld [vmem:[#allocation2 + $0x78] sm:$0xff] }
 0x140   : > { %v1338_v56 = vmax.f32 %v1274_v47, 0.0  ;;  %v1278_v57 = vadd.f32 %v2522_v36, %v1207_v48  ;;  %v1339_v60 = vmax.f32 %v1275_v52, 0.0  ;;  %v1340_v61 = vmax.f32 %v1276_v53, 0.0  ;;  %v1148_v42 = vld [vmem:[#allocation2 + $0x80] sm:$0xff]  ;;  %v1149_v47 = vld [vmem:[#allocation2 + $0x88] sm:$0xff]  ;;  %v1150_v48 = vld [vmem:[#allocation2 + $0x90] sm:$0xff] }
 0x141   : > { %v1341_v62 = vmax.f32 %v1277_v54, 0.0  ;;  %v1343_v3 = vmax.f32 %v1279_v58, 0.0  ;;  %v1344_v4 = vmax.f32 %v1280_v59, 0.0  ;;  %v1345_v11 = vmax.f32 %v1281_v63, 0.0  ;;  %v1151_v49 = vld [vmem:[#allocation2 + $0x98] sm:$0xff]  ;;  %v1152_v54 = vld [vmem:[#allocation2 + $0xa0] sm:$0xff] }
 0x142   : > { %v1950_v1 = vpack.c.bf16 %v1338_v56, %v1338_v56  ;;  %v1342_v2 = vmax.f32 %v1278_v57, 0.0  ;;  %v1951_v8 = vpack.c.bf16 %v1339_v60, %v1339_v60  ;;  %v1952_v9 = vpack.c.bf16 %v1340_v61, %v1340_v61  ;;  %v1153_v55 = vld [vmem:[#allocation2 + $0xa8] sm:$0xff]  ;;  %v1154_v56 = vld [vmem:[#allocation2 + $0xb0] sm:$0xff]  ;;  %v1155_v61 = vld [vmem:[#allocation2 + $0xb8] sm:$0xff] }
 0x143   : > { %v1953_v10 = vpack.c.bf16 %v1341_v62, %v1341_v62  ;;  %v1955_v16 = vpack.c.bf16 %v1343_v3, %v1343_v3  ;;  %v1956_v17 = vpack.c.bf16 %v1344_v4, %v1344_v4  ;;  %v1211_v18 = vmul.f32 %v2517_v35, %v1140_v0 }
 0x144   : > { %1659 = vst.msk [vmem:[%s2921_s4] sm:$0xf] %vm1658_vm3, %v1950_v1  ;;  %v1954_v15 = vpack.c.bf16 %v1342_v2, %v1342_v2  ;;  %1660 = vst.msk [vmem:[%s2921_s4 + $0x4] sm:$0xf] %vm1658_vm3, %v1951_v8  ;;  %v1957_v20 = vpack.c.bf16 %v1345_v11, %v1345_v11  ;;  %v1212_v21 = vmul.f32 %v2517_v35, %v1141_v5 }
 0x145   : > { %1661 = vst.msk [vmem:[%s2921_s4 + $0x8] sm:$0xf] %vm1658_vm3, %v1952_v9  ;;  %1662 = vst.msk [vmem:[%s2921_s4 + $0xc] sm:$0xf] %vm1658_vm3, %v1953_v10  ;;  %v1213_v22 = vmul.f32 %v2517_v35, %v1142_v6  ;;  %v1214_v23 = vmul.f32 %v2517_v35, %v1143_v7  ;;  %v1282_v24 = vadd.f32 %v2522_v36, %v1211_v18  ;;  %v1156_v18 = vld [vmem:[#allocation2 + $0xc0] sm:$0xff] }
 0x146   : > { %1663 = vst.msk [vmem:[%s2921_s4 + $0x10] sm:$0xf] %vm1658_vm3, %v1954_v15  ;;  %1664 = vst.msk [vmem:[%s2921_s4 + $0x14] sm:$0xf] %vm1658_vm3, %v1955_v16  ;;  %v1215_v25 = vmul.f32 %v2517_v35, %v1144_v12  ;;  %v1216_v26 = vmul.f32 %v2517_v35, %v1145_v13  ;;  %v1217_v27 = vmul.f32 %v2517_v35, %v1146_v14 }
 0x147   : > { %1665 = vst.msk [vmem:[%s2921_s4 + $0x18] sm:$0xf] %vm1658_vm3, %v1956_v17  ;;  %1666 = vst.msk [vmem:[%s2921_s4 + $0x1c] sm:$0xf] %vm1658_vm3, %v1957_v20  ;;  %v1283_v28 = vadd.f32 %v2522_v36, %v1212_v21  ;;  %v1284_v29 = vadd.f32 %v2522_v36, %v1213_v22  ;;  %v1285_v30 = vadd.f32 %v2522_v36, %v1214_v23  ;;  %v1346_v32 = vmax.f32 %v1282_v24, 0.0  ;;  %v1157_v23 = vld [vmem:[#allocation2 + $0xc8] sm:$0xff] }
 0x148   : > { %v1218_v31 = vmul.f32 %v2517_v35, %v1147_v19  ;;  %v1286_v33 = vadd.f32 %v2522_v36, %v1215_v25  ;;  %v1287_v34 = vadd.f32 %v2522_v36, %v1216_v26  ;;  %v1288_v37 = vadd.f32 %v2522_v36, %v1217_v27  ;;  %v1158_v24 = vld [vmem:[#allocation2 + $0xd0] sm:$0xff]  ;;  %v1159_v25 = vld [vmem:[#allocation2 + $0xd8] sm:$0xff] }
 0x149   : > { %v1347_v38 = vmax.f32 %v1283_v28, 0.0  ;;  %v1348_v39 = vmax.f32 %v1284_v29, 0.0  ;;  %v1349_v40 = vmax.f32 %v1285_v30, 0.0  ;;  %v1958_v43 = vpack.c.bf16 %v1346_v32, %v1346_v32  ;;  %v1160_v30 = vld [vmem:[#allocation2 + $0xe0] sm:$0xff]  ;;  %v1162_v32 = vld [vmem:[#allocation2 + $0xf0] sm:$0xff] }
 0x14a   : > { %v1289_v41 = vadd.f32 %v2522_v36, %v1218_v31  ;;  %v1350_v44 = vmax.f32 %v1286_v33, 0.0  ;;  %v1351_v45 = vmax.f32 %v1287_v34, 0.0  ;;  %v1352_v46 = vmax.f32 %v1288_v37, 0.0  ;;  %v1161_v31 = vld [vmem:[#allocation2 + $0xe8] sm:$0xff] }
 0x14b   : > { %v1959_v50 = vpack.c.bf16 %v1347_v38, %v1347_v38  ;;  %v1960_v51 = vpack.c.bf16 %v1348_v39, %v1348_v39  ;;  %v1961_v52 = vpack.c.bf16 %v1349_v40, %v1349_v40  ;;  %1667 = vst.msk [vmem:[%s2921_s4 + $0x20] sm:$0xf] %vm1658_vm3, %v1958_v43  ;;  %v1219_v60 = vmul.f32 %v2517_v35, %v1148_v42  ;;  %v1163_v39 = vld [vmem:[#allocation2 + $0xf8] sm:$0xff] }
 0x14c   : > { %v1353_v53 = vmax.f32 %v1289_v41, 0.0  ;;  %v1962_v57 = vpack.c.bf16 %v1350_v44, %v1350_v44  ;;  %v1963_v58 = vpack.c.bf16 %v1351_v45, %v1351_v45  ;;  %v1964_v59 = vpack.c.bf16 %v1352_v46, %v1352_v46 }
 0x14d   : > { %1668 = vst.msk [vmem:[%s2921_s4 + $0x24] sm:$0xf] %vm1658_vm3, %v1959_v50  ;;  %1669 = vst.msk [vmem:[%s2921_s4 + $0x28] sm:$0xf] %vm1658_vm3, %v1960_v51  ;;  %v1220_v63 = vmul.f32 %v2517_v35, %v1149_v47  ;;  %v1221_v0 = vmul.f32 %v2517_v35, %v1150_v48  ;;  %v1222_v1 = vmul.f32 %v2517_v35, %v1151_v49 }
 0x14e   : > { %1670 = vst.msk [vmem:[%s2921_s4 + $0x2c] sm:$0xf] %vm1658_vm3, %v1961_v52  ;;  %v1965_v62 = vpack.c.bf16 %v1353_v53, %v1353_v53  ;;  %1671 = vst.msk [vmem:[%s2921_s4 + $0x30] sm:$0xf] %vm1658_vm3, %v1962_v57  ;;  %v1290_v2 = vadd.f32 %v2522_v36, %v1219_v60  ;;  %v1223_v3 = vmul.f32 %v2517_v35, %v1152_v54  ;;  %v1164_v60 = vld [vmem:[#allocation2 + $0x100] sm:$0xff] }
 0x14f   : > { %1672 = vst.msk [vmem:[%s2921_s4 + $0x34] sm:$0xf] %vm1658_vm3, %v1963_v58  ;;  %1673 = vst.msk [vmem:[%s2921_s4 + $0x38] sm:$0xf] %vm1658_vm3, %v1964_v59  ;;  %v1224_v4 = vmul.f32 %v2517_v35, %v1153_v55  ;;  %v1225_v5 = vmul.f32 %v2517_v35, %v1154_v56  ;;  %v1291_v6 = vadd.f32 %v2522_v36, %v1220_v63 }
 0x150   : > { %1674 = vst.msk [vmem:[%s2921_s4 + $0x3c] sm:$0xf] %vm1658_vm3, %v1965_v62  ;;  %v1292_v7 = vadd.f32 %v2522_v36, %v1221_v0  ;;  %v1293_v8 = vadd.f32 %v2522_v36, %v1222_v1  ;;  %v1226_v9 = vmul.f32 %v2517_v35, %v1155_v61  ;;  %v1354_v10 = vmax.f32 %v1290_v2, 0.0  ;;  %v1165_v1 = vld [vmem:[#allocation2 + $0x108] sm:$0xff]  ;;  %v1166_v2 = vld [vmem:[#allocation2 + $0x110] sm:$0xff] }
 0x151   : > { %v1294_v11 = vadd.f32 %v2522_v36, %v1223_v3  ;;  %v1295_v12 = vadd.f32 %v2522_v36, %v1224_v4  ;;  %v1296_v13 = vadd.f32 %v2522_v36, %v1225_v5  ;;  %v1355_v14 = vmax.f32 %v1291_v6, 0.0  ;;  %v1167_v3 = vld [vmem:[#allocation2 + $0x118] sm:$0xff] }
 0x152   : > { %v1356_v15 = vmax.f32 %v1292_v7, 0.0  ;;  %v1357_v16 = vmax.f32 %v1293_v8, 0.0  ;;  %v1297_v17 = vadd.f32 %v2522_v36, %v1226_v9  ;;  %v1966_v19 = vpack.c.bf16 %v1354_v10, %v1354_v10  ;;  %v1168_v8 = vld [vmem:[#allocation2 + $0x120] sm:$0xff]  ;;  %v1169_v9 = vld [vmem:[#allocation2 + $0x128] sm:$0xff]  ;;  %v1170_v10 = vld [vmem:[#allocation2 + $0x130] sm:$0xff] }
 0x153   : > { %v1358_v20 = vmax.f32 %v1294_v11, 0.0  ;;  %v1359_v21 = vmax.f32 %v1295_v12, 0.0  ;;  %v1360_v22 = vmax.f32 %v1296_v13, 0.0  ;;  %v1967_v26 = vpack.c.bf16 %v1355_v14, %v1355_v14 }
 0x154   : > { %v1968_v27 = vpack.c.bf16 %v1356_v15, %v1356_v15  ;;  %v1969_v28 = vpack.c.bf16 %v1357_v16, %v1357_v16  ;;  %v1361_v29 = vmax.f32 %v1297_v17, 0.0  ;;  %1675 = vst.msk [vmem:[%s2921_s4 + $0x40] sm:$0xf] %vm1658_vm3, %v1966_v19  ;;  %v1227_v38 = vmul.f32 %v2517_v35, %v1156_v18  ;;  %v1171_v15 = vld [vmem:[#allocation2 + $0x138] sm:$0xff] }
 0x155   : > { %v1970_v33 = vpack.c.bf16 %v1358_v20, %v1358_v20  ;;  %v1971_v34 = vpack.c.bf16 %v1359_v21, %v1359_v21  ;;  %v1972_v37 = vpack.c.bf16 %v1360_v22, %v1360_v22  ;;  %1676 = vst.msk [vmem:[%s2921_s4 + $0x44] sm:$0xf] %vm1658_vm3, %v1967_v26  ;;  %v1228_v41 = vmul.f32 %v2517_v35, %v1157_v23 }
 0x156   : > { %1677 = vst.msk [vmem:[%s2921_s4 + $0x48] sm:$0xf] %vm1658_vm3, %v1968_v27  ;;  %1678 = vst.msk [vmem:[%s2921_s4 + $0x4c] sm:$0xf] %vm1658_vm3, %v1969_v28  ;;  %v1973_v40 = vpack.c.bf16 %v1361_v29, %v1361_v29  ;;  %v1229_v42 = vmul.f32 %v2517_v35, %v1158_v24  ;;  %v1230_v43 = vmul.f32 %v2517_v35, %v1159_v25 }
 0x157   : > { %1679 = vst.msk [vmem:[%s2921_s4 + $0x50] sm:$0xf] %vm1658_vm3, %v1970_v33  ;;  %1680 = vst.msk [vmem:[%s2921_s4 + $0x54] sm:$0xf] %vm1658_vm3, %v1971_v34  ;;  %v1298_v44 = vadd.f32 %v2522_v36, %v1227_v38  ;;  %v1231_v45 = vmul.f32 %v2517_v35, %v1160_v30  ;;  %v1232_v46 = vmul.f32 %v2517_v35, %v1161_v31  ;;  %v1172_v38 = vld [vmem:[#allocation2 + $0x140] sm:$0xff] }
 0x158   : > { %1681 = vst.msk [vmem:[%s2921_s4 + $0x58] sm:$0xf] %vm1658_vm3, %v1972_v37  ;;  %v1233_v47 = vmul.f32 %v2517_v35, %v1162_v32  ;;  %1682 = vst.msk [vmem:[%s2921_s4 + $0x5c] sm:$0xf] %vm1658_vm3, %v1973_v40  ;;  %v1299_v48 = vadd.f32 %v2522_v36, %v1228_v41  ;;  %v1300_v49 = vadd.f32 %v2522_v36, %v1229_v42 }
 0x159   : > { %v1301_v50 = vadd.f32 %v2522_v36, %v1230_v43  ;;  %v1234_v51 = vmul.f32 %v2517_v35, %v1163_v39  ;;  %v1362_v52 = vmax.f32 %v1298_v44, 0.0  ;;  %v1302_v53 = vadd.f32 %v2522_v36, %v1231_v45  ;;  %v1173_v43 = vld [vmem:[#allocation2 + $0x148] sm:$0xff]  ;;  %v1174_v44 = vld [vmem:[#allocation2 + $0x150] sm:$0xff]  ;;  %v1175_v45 = vld [vmem:[#allocation2 + $0x158] sm:$0xff] }
 0x15a   : > { %v1303_v54 = vadd.f32 %v2522_v36, %v1232_v46  ;;  %v1304_v55 = vadd.f32 %v2522_v36, %v1233_v47  ;;  %v1363_v56 = vmax.f32 %v1299_v48, 0.0  ;;  %v1364_v57 = vmax.f32 %v1300_v49, 0.0 }
 0x15b   : > { %v1365_v58 = vmax.f32 %v1301_v50, 0.0  ;;  %v1305_v59 = vadd.f32 %v2522_v36, %v1234_v51  ;;  %v1974_v61 = vpack.c.bf16 %v1362_v52, %v1362_v52  ;;  %v1366_v62 = vmax.f32 %v1302_v53, 0.0  ;;  %v1176_v50 = vld [vmem:[#allocation2 + $0x160] sm:$0xff]  ;;  %v1177_v51 = vld [vmem:[#allocation2 + $0x168] sm:$0xff]  ;;  %v1178_v52 = vld [vmem:[#allocation2 + $0x170] sm:$0xff] }
 0x15c   : > { %v1367_v63 = vmax.f32 %v1303_v54, 0.0  ;;  %v1368_v0 = vmax.f32 %v1304_v55, 0.0  ;;  %v1975_v4 = vpack.c.bf16 %v1363_v56, %v1363_v56  ;;  %v1976_v5 = vpack.c.bf16 %v1364_v57, %v1364_v57  ;;  %v1179_v57 = vld [vmem:[#allocation2 + $0x178] sm:$0xff] }
 0x15d   : > { %v1977_v6 = vpack.c.bf16 %v1365_v58, %v1365_v58  ;;  %v1369_v7 = vmax.f32 %v1305_v59, 0.0  ;;  %1683 = vst.msk [vmem:[%s2921_s4 + $0x60] sm:$0xf] %vm1658_vm3, %v1974_v61  ;;  %v1978_v11 = vpack.c.bf16 %v1366_v62, %v1366_v62  ;;  %v1235_v14 = vmul.f32 %v2517_v35, %v1164_v60 }
 0x15e   : > { %v1979_v12 = vpack.c.bf16 %v1367_v63, %v1367_v63  ;;  %v1980_v13 = vpack.c.bf16 %v1368_v0, %v1368_v0  ;;  %1684 = vst.msk [vmem:[%s2921_s4 + $0x64] sm:$0xf] %vm1658_vm3, %v1975_v4  ;;  %1685 = vst.msk [vmem:[%s2921_s4 + $0x68] sm:$0xf] %vm1658_vm3, %v1976_v5  ;;  %v1236_v17 = vmul.f32 %v2517_v35, %v1165_v1 }
 0x15f   : > { %1686 = vst.msk [vmem:[%s2921_s4 + $0x6c] sm:$0xf] %vm1658_vm3, %v1977_v6  ;;  %v1981_v16 = vpack.c.bf16 %v1369_v7, %v1369_v7  ;;  %v1237_v18 = vmul.f32 %v2517_v35, %v1166_v2  ;;  %v1238_v19 = vmul.f32 %v2517_v35, %v1167_v3  ;;  %1687 = vst.msk [vmem:[%s2921_s4 + $0x70] sm:$0xf] %vm1658_vm3, %v1978_v11 }
 0x160   : > { %1688 = vst.msk [vmem:[%s2921_s4 + $0x74] sm:$0xf] %vm1658_vm3, %v1979_v12  ;;  %1689 = vst.msk [vmem:[%s2921_s4 + $0x78] sm:$0xf] %vm1658_vm3, %v1980_v13  ;;  %v1306_v20 = vadd.f32 %v2522_v36, %v1235_v14  ;;  %v1239_v21 = vmul.f32 %v2517_v35, %v1168_v8  ;;  %v1240_v22 = vmul.f32 %v2517_v35, %v1169_v9  ;;  %v1180_v14 = vld [vmem:[#allocation2 + $0x180] sm:$0xff] }
 0x161   : > { %v1241_v23 = vmul.f32 %v2517_v35, %v1170_v10  ;;  %1690 = vst.msk [vmem:[%s2921_s4 + $0x7c] sm:$0xf] %vm1658_vm3, %v1981_v16  ;;  %v1307_v24 = vadd.f32 %v2522_v36, %v1236_v17  ;;  %v1308_v25 = vadd.f32 %v2522_v36, %v1237_v18  ;;  %v1309_v26 = vadd.f32 %v2522_v36, %v1238_v19  ;;  %v1181_v19 = vld [vmem:[#allocation2 + $0x188] sm:$0xff] }
 0x162   : > { %v1242_v27 = vmul.f32 %v2517_v35, %v1171_v15  ;;  %v1370_v28 = vmax.f32 %v1306_v20, 0.0  ;;  %v1310_v29 = vadd.f32 %v2522_v36, %v1239_v21  ;;  %v1311_v30 = vadd.f32 %v2522_v36, %v1240_v22  ;;  %v1182_v20 = vld [vmem:[#allocation2 + $0x190] sm:$0xff]  ;;  %v1183_v21 = vld [vmem:[#allocation2 + $0x198] sm:$0xff] }
 0x163   : > { %v1312_v31 = vadd.f32 %v2522_v36, %v1241_v23  ;;  %v1371_v32 = vmax.f32 %v1307_v24, 0.0  ;;  %v1372_v33 = vmax.f32 %v1308_v25, 0.0  ;;  %v1373_v34 = vmax.f32 %v1309_v26, 0.0  ;;  %v1184_v26 = vld [vmem:[#allocation2 + $0x1a0] sm:$0xff] }
 0x164   : > { %v1313_v37 = vadd.f32 %v2522_v36, %v1242_v27  ;;  %v1982_v39 = vpack.c.bf16 %v1370_v28, %v1370_v28  ;;  %v1374_v40 = vmax.f32 %v1310_v29, 0.0  ;;  %v1375_v41 = vmax.f32 %v1311_v30, 0.0  ;;  %v1185_v27 = vld [vmem:[#allocation2 + $0x1a8] sm:$0xff]  ;;  %v1186_v28 = vld [vmem:[#allocation2 + $0x1b0] sm:$0xff] }
 0x165   : > { %v1376_v42 = vmax.f32 %v1312_v31, 0.0  ;;  %v1983_v46 = vpack.c.bf16 %v1371_v32, %v1371_v32  ;;  %v1984_v47 = vpack.c.bf16 %v1372_v33, %v1372_v33  ;;  %v1985_v48 = vpack.c.bf16 %v1373_v34, %v1373_v34  ;;  %v1187_v33 = vld [vmem:[#allocation2 + $0x1b8] sm:$0xff] }
 0x166   : > { %v1377_v49 = vmax.f32 %v1313_v37, 0.0  ;;  %1691 = vst.msk [vmem:[%s2921_s4 + $0x80] sm:$0xf] %vm1658_vm3, %v1982_v39  ;;  %v1986_v53 = vpack.c.bf16 %v1374_v40, %v1374_v40  ;;  %v1987_v54 = vpack.c.bf16 %v1375_v41, %v1375_v41  ;;  %v1243_v56 = vmul.f32 %v2517_v35, %v1172_v38 }
 0x167   : > { %v1988_v55 = vpack.c.bf16 %v1376_v42, %v1376_v42  ;;  %1692 = vst.msk [vmem:[%s2921_s4 + $0x84] sm:$0xf] %vm1658_vm3, %v1983_v46  ;;  %1693 = vst.msk [vmem:[%s2921_s4 + $0x88] sm:$0xf] %vm1658_vm3, %v1984_v47  ;;  %v1244_v59 = vmul.f32 %v2517_v35, %v1173_v43  ;;  %v1245_v60 = vmul.f32 %v2517_v35, %v1174_v44 }
 0x168   : > { %1694 = vst.msk [vmem:[%s2921_s4 + $0x8c] sm:$0xf] %vm1658_vm3, %v1985_v48  ;;  %v1989_v58 = vpack.c.bf16 %v1377_v49, %v1377_v49  ;;  %v1246_v61 = vmul.f32 %v2517_v35, %v1175_v45  ;;  %1695 = vst.msk [vmem:[%s2921_s4 + $0x90] sm:$0xf] %vm1658_vm3, %v1986_v53  ;;  %v1314_v62 = vadd.f32 %v2522_v36, %v1243_v56  ;;  %v1188_v56 = vld [vmem:[#allocation2 + $0x1c0] sm:$0xff] }
 0x169   : > { %1696 = vst.msk [vmem:[%s2921_s4 + $0x94] sm:$0xf] %vm1658_vm3, %v1987_v54  ;;  %1697 = vst.msk [vmem:[%s2921_s4 + $0x98] sm:$0xf] %vm1658_vm3, %v1988_v55  ;;  %v1247_v63 = vmul.f32 %v2517_v35, %v1176_v50  ;;  %v1248_v0 = vmul.f32 %v2517_v35, %v1177_v51  ;;  %v1249_v1 = vmul.f32 %v2517_v35, %v1178_v52 }
 0x16a   : > { %1698 = vst.msk [vmem:[%s2921_s4 + $0x9c] sm:$0xf] %vm1658_vm3, %v1989_v58  ;;  %v1315_v2 = vadd.f32 %v2522_v36, %v1244_v59  ;;  %v1316_v3 = vadd.f32 %v2522_v36, %v1245_v60  ;;  %v1317_v4 = vadd.f32 %v2522_v36, %v1246_v61  ;;  %v1250_v5 = vmul.f32 %v2517_v35, %v1179_v57  ;;  %v1189_v61 = vld [vmem:[#allocation2 + $0x1c8] sm:$0xff] }
 0x16b   : > { %v1378_v6 = vmax.f32 %v1314_v62, 0.0  ;;  %v1318_v7 = vadd.f32 %v2522_v36, %v1247_v63  ;;  %v1319_v8 = vadd.f32 %v2522_v36, %v1248_v0  ;;  %v1320_v9 = vadd.f32 %v2522_v36, %v1249_v1  ;;  %v1190_v62 = vld [vmem:[#allocation2 + $0x1d0] sm:$0xff]  ;;  %v1191_v63 = vld [vmem:[#allocation2 + $0x1d8] sm:$0xff] }
 0x16c   : > { %v1379_v10 = vmax.f32 %v1315_v2, 0.0  ;;  %v1380_v11 = vmax.f32 %v1316_v3, 0.0  ;;  %v1381_v12 = vmax.f32 %v1317_v4, 0.0  ;;  %v1321_v13 = vadd.f32 %v2522_v36, %v1250_v5  ;;  %v1192_v4 = vld [vmem:[#allocation2 + $0x1e0] sm:$0xff]  ;;  %v1193_v5 = vld [vmem:[#allocation2 + $0x1e8] sm:$0xff] }
 0x16d   : > { %v1990_v15 = vpack.c.bf16 %v1378_v6, %v1378_v6  ;;  %v1382_v16 = vmax.f32 %v1318_v7, 0.0  ;;  %v1383_v17 = vmax.f32 %v1319_v8, 0.0  ;;  %v1384_v18 = vmax.f32 %v1320_v9, 0.0  ;;  %v1194_v6 = vld [vmem:[#allocation2 + $0x1f0] sm:$0xff] }
 0x16e   : > { %v1991_v22 = vpack.c.bf16 %v1379_v10, %v1379_v10  ;;  %v1992_v23 = vpack.c.bf16 %v1380_v11, %v1380_v11  ;;  %v1993_v24 = vpack.c.bf16 %v1381_v12, %v1381_v12  ;;  %v1385_v25 = vmax.f32 %v1321_v13, 0.0  ;;  %v1195_v11 = vld [vmem:[#allocation2 + $0x1f8] sm:$0xff] }
 0x16f   : > { %1699 = vst.msk [vmem:[%s2921_s4 + $0xa0] sm:$0xf] %vm1658_vm3, %v1990_v15  ;;  %v1994_v29 = vpack.c.bf16 %v1382_v16, %v1382_v16  ;;  %v1995_v30 = vpack.c.bf16 %v1383_v17, %v1383_v17  ;;  %v1996_v31 = vpack.c.bf16 %v1384_v18, %v1384_v18  ;;  %v1251_v32 = vmul.f32 %v2517_v35, %v1180_v14 }
 0x170   : > { %1700 = vst.msk [vmem:[%s2921_s4 + $0xa4] sm:$0xf] %vm1658_vm3, %v1991_v22  ;;  %1701 = vst.msk [vmem:[%s2921_s4 + $0xa8] sm:$0xf] %vm1658_vm3, %v1992_v23  ;;  %v1997_v34 = vpack.c.bf16 %v1385_v25, %v1385_v25  ;;  %v1252_v37 = vmul.f32 %v2517_v35, %v1181_v19  ;;  %v1253_v38 = vmul.f32 %v2517_v35, %v1182_v20 }
 0x171   : > { %1702 = vst.msk [vmem:[%s2921_s4 + $0xac] sm:$0xf] %vm1658_vm3, %v1993_v24  ;;  %v1254_v39 = vmul.f32 %v2517_v35, %v1183_v21  ;;  %1703 = vst.msk [vmem:[%s2921_s4 + $0xb0] sm:$0xf] %vm1658_vm3, %v1994_v29  ;;  %v1322_v40 = vadd.f32 %v2522_v36, %v1251_v32  ;;  %v1255_v41 = vmul.f32 %v2517_v35, %v1184_v26 }
 0x172   : > { %1704 = vst.msk [vmem:[%s2921_s4 + $0xb4] sm:$0xf] %vm1658_vm3, %v1995_v30  ;;  %1705 = vst.msk [vmem:[%s2921_s4 + $0xb8] sm:$0xf] %vm1658_vm3, %v1996_v31  ;;  %v1256_v42 = vmul.f32 %v2517_v35, %v1185_v27  ;;  %v1257_v43 = vmul.f32 %v2517_v35, %v1186_v28  ;;  %v1323_v44 = vadd.f32 %v2522_v36, %v1252_v37 }
 0x173   : > { %1706 = vst.msk [vmem:[%s2921_s4 + $0xbc] sm:$0xf] %vm1658_vm3, %v1997_v34  ;;  %v1324_v45 = vadd.f32 %v2522_v36, %v1253_v38  ;;  %v1325_v46 = vadd.f32 %v2522_v36, %v1254_v39  ;;  %v1258_v47 = vmul.f32 %v2517_v35, %v1187_v33  ;;  %v1386_v48 = vmax.f32 %v1322_v40, 0.0 }
 0x174   : > { %v1326_v49 = vadd.f32 %v2522_v36, %v1255_v41  ;;  %v1327_v50 = vadd.f32 %v2522_v36, %v1256_v42  ;;  %v1328_v51 = vadd.f32 %v2522_v36, %v1257_v43  ;;  %v1387_v52 = vmax.f32 %v1323_v44, 0.0 }
 0x175   : > { %v1388_v53 = vmax.f32 %v1324_v45, 0.0  ;;  %v1389_v54 = vmax.f32 %v1325_v46, 0.0  ;;  %v1329_v55 = vadd.f32 %v2522_v36, %v1258_v47  ;;  %v1998_v57 = vpack.c.bf16 %v1386_v48, %v1386_v48 }
 0x176   : > { %v1390_v58 = vmax.f32 %v1326_v49, 0.0  ;;  %v1391_v59 = vmax.f32 %v1327_v50, 0.0  ;;  %v1392_v60 = vmax.f32 %v1328_v51, 0.0  ;;  %v1999_v0 = vpack.c.bf16 %v1387_v52, %v1387_v52 }
 0x177   : > { %v2000_v1 = vpack.c.bf16 %v1388_v53, %v1388_v53  ;;  %v2001_v2 = vpack.c.bf16 %v1389_v54, %v1389_v54  ;;  %v1393_v3 = vmax.f32 %v1329_v55, 0.0  ;;  %1707 = vst.msk [vmem:[%s2921_s4 + $0xc0] sm:$0xf] %vm1658_vm3, %v1998_v57  ;;  %v1259_v10 = vmul.f32 %v2517_v35, %v1188_v56 }
 0x178   : > { %v2002_v7 = vpack.c.bf16 %v1390_v58, %v1390_v58  ;;  %v2003_v8 = vpack.c.bf16 %v1391_v59, %v1391_v59  ;;  %v2004_v9 = vpack.c.bf16 %v1392_v60, %v1392_v60  ;;  %1708 = vst.msk [vmem:[%s2921_s4 + $0xc4] sm:$0xf] %vm1658_vm3, %v1999_v0  ;;  %v1260_v13 = vmul.f32 %v2517_v35, %v1189_v61 }
 0x179   : > { %1709 = vst.msk [vmem:[%s2921_s4 + $0xc8] sm:$0xf] %vm1658_vm3, %v2000_v1  ;;  %1710 = vst.msk [vmem:[%s2921_s4 + $0xcc] sm:$0xf] %vm1658_vm3, %v2001_v2  ;;  %v2005_v12 = vpack.c.bf16 %v1393_v3, %v1393_v3  ;;  %v1261_v14 = vmul.f32 %v2517_v35, %v1190_v62  ;;  %v1262_v15 = vmul.f32 %v2517_v35, %v1191_v63 }
 0x17a   : > { %1711 = vst.msk [vmem:[%s2921_s4 + $0xd0] sm:$0xf] %vm1658_vm3, %v2002_v7  ;;  %1712 = vst.msk [vmem:[%s2921_s4 + $0xd4] sm:$0xf] %vm1658_vm3, %v2003_v8  ;;  %v1330_v16 = vadd.f32 %v2522_v36, %v1259_v10  ;;  %v1263_v17 = vmul.f32 %v2517_v35, %v1192_v4  ;;  %v1264_v18 = vmul.f32 %v2517_v35, %v1193_v5 }
 0x17b   : > { %1713 = vst.msk [vmem:[%s2921_s4 + $0xd8] sm:$0xf] %vm1658_vm3, %v2004_v9  ;;  %v1265_v19 = vmul.f32 %v2517_v35, %v1194_v6  ;;  %1714 = vst.msk [vmem:[%s2921_s4 + $0xdc] sm:$0xf] %vm1658_vm3, %v2005_v12  ;;  %v1331_v20 = vadd.f32 %v2522_v36, %v1260_v13  ;;  %v1332_v21 = vadd.f32 %v2522_v36, %v1261_v14 }
 0x17c   : > { %v1333_v22 = vadd.f32 %v2522_v36, %v1262_v15  ;;  %v1266_v23 = vmul.f32 %v2517_v35, %v1195_v11  ;;  %v1394_v24 = vmax.f32 %v1330_v16, 0.0  ;;  %v1334_v25 = vadd.f32 %v2522_v36, %v1263_v17 }
 0x17d   : > { %v1335_v26 = vadd.f32 %v2522_v36, %v1264_v18  ;;  %v1336_v27 = vadd.f32 %v2522_v36, %v1265_v19  ;;  %v1395_v28 = vmax.f32 %v1331_v20, 0.0  ;;  %v1396_v29 = vmax.f32 %v1332_v21, 0.0 }
 0x17e   : > { %v1397_v30 = vmax.f32 %v1333_v22, 0.0  ;;  %v1337_v31 = vadd.f32 %v2522_v36, %v1266_v23  ;;  %v2006_v32 = vpack.c.bf16 %v1394_v24, %v1394_v24  ;;  %v1398_v33 = vmax.f32 %v1334_v25, 0.0 }
 0x17f   : > { %v1399_v34 = vmax.f32 %v1335_v26, 0.0  ;;  %v1400_v37 = vmax.f32 %v1336_v27, 0.0  ;;  %v2007_v38 = vpack.c.bf16 %v1395_v28, %v1395_v28  ;;  %v2008_v39 = vpack.c.bf16 %v1396_v29, %v1396_v29 }
 0x180   : > { %v2009_v40 = vpack.c.bf16 %v1397_v30, %v1397_v30  ;;  %v1401_v35 = vmax.f32 %v1337_v31, 0.0  ;;  %1715 = vst.msk [vmem:[%s2921_s4 + $0xe0] sm:$0xf] %vm1658_vm3, %v2006_v32  ;;  %v2010_v41 = vpack.c.bf16 %v1398_v33, %v1398_v33 }
 0x181   : > { %v2011_v42 = vpack.c.bf16 %v1399_v34, %v1399_v34  ;;  %v2012_v43 = vpack.c.bf16 %v1400_v37, %v1400_v37  ;;  %1716 = vst.msk [vmem:[%s2921_s4 + $0xe4] sm:$0xf] %vm1658_vm3, %v2007_v38  ;;  %1717 = vst.msk [vmem:[%s2921_s4 + $0xe8] sm:$0xf] %vm1658_vm3, %v2008_v39 }
 0x182   : > { %1718 = vst.msk [vmem:[%s2921_s4 + $0xec] sm:$0xf] %vm1658_vm3, %v2009_v40  ;;  %v2013_v36 = vpack.c.bf16 %v1401_v35, %v1401_v35  ;;  %1719 = vst.msk [vmem:[%s2921_s4 + $0xf0] sm:$0xf] %vm1658_vm3, %v2010_v41 }
 0x183   : > { %1720 = vst.msk [vmem:[%s2921_s4 + $0xf4] sm:$0xf] %vm1658_vm3, %v2011_v42  ;;  %1721 = vst.msk [vmem:[%s2921_s4 + $0xf8] sm:$0xf] %vm1658_vm3, %v2012_v43 }
 0x184   : > { %1722 = vst.msk [vmem:[%s2921_s4 + $0xfc] sm:$0xf] %vm1658_vm3, %v2013_v36 }
 0x185 PF: > { %s14_s17 = sadd.s32 1, %s2195_s17   ;;  %s2922_s15 = smov %s2191_s16 }
 0x186   : > { %p11_p7 = scmp.ge.s32.totalorder %s14_s17, 11   ;;  %s2923_s16 = smov %s2925_s18 }
 0x188   :  { %13 = sbr.rel (!%p11_p7) target bundleno = 2 (0x2), region = 77 }

// kernel: _lambda_.15
= control target key start
LH: loop header
LB: loop body
LE: loop exit
PB: predicated region body
PF: predicated region fallthrough
CT: control target
= control target key end

     0   :  { %s2222_s15 = smov 0   ;;  %s2224_s16 = smov 0   ;;  %s2916_s0 = inlined_call_operand.vmem [shape: bf16[9,512,16], index: 0, kind: input, shape index: {}]   ;;  %s2917_s1 = inlined_call_operand.vmem [shape: bf16[9,16,16], index: 1, kind: input, shape index: {}]   ;;  %s2918_s2 = inlined_call_operand.vmem [shape: f32[1,16], index: 2, kind: input, shape index: {}]   ;;  %s2919_s3 = inlined_call_operand.vmem [shape: f32[1,16], index: 3, kind: input, shape index: {}]   ;;  %s2920_s4 = inlined_call_operand.vmem [shape: bf16[512,16], index: 4, kind: output, shape index: {}]  }
   0x1   :  { %s2226_s17 = smov 0  }
   0x2 LB: > { %s23_s18 = sadd.s32 1, %s2190_s16  ;;  %p1805_p0 = scmp.ge.s32.totalorder %s2194_s17, 1  ;;  %s2194_s17 = sphi %s2226_s17, %s14_s17   ;;  %s2190_s16 = sphi %s2224_s16, %s2922_s16   ;;  %s2186_s15 = sphi %s2222_s15, %s2921_s15  }
   0x3   : > { %p24_p1 = scmp.ge.s32.totalorder %s23_s18, 9  ;;  %p191_p2 = scmp.lt.s32.totalorder %s2194_s17, 10 }
   0x5   : > { %s2924_s18 = smov (%p24_p1, %s23_s18), 0  ;;  %p192_p3 = pnand %p1805_p0, %p191_p2 }
   0x6   : > { %p227_p4 = scmp.lt.s32.totalorder (!%p192_p3), %s2186_s15, 8  ;;  %p1810_p5 = scmp.ne.s32.totalorder (!%p192_p3), %s2186_s15, 0 }
   0x7   : > { %195 = sbr.rel (%p192_p3) target bundleno = 389 (0x185), region = 36 }
   0xc   : > { %s228_s19 = scalar_select %p227_p4, %s2186_s15, 8 }
   0xd   : > { %251 = sbr.rel (%p1810_p5) target bundleno = 51 (0x33), region = 40 }
   0xe   : > { %s1947_s20 = sshll.u32 %s228_s19, 8  ;;  %s1948_s21 = sshll.u32 %s228_s19, 3 }
   0xf   : > { %s2247_s24 = scalar_lea.vmem %s2916_s0, %s1947_s20  ;;  %s2252_s27 = scalar_lea.vmem %s2917_s1, %s1948_s21 }
  0x12   : > { %vm252_vm0 = vcmask 130048   ;;  %v2196_v0 = vmov 0.0  }
  0x13   : > { %253 = vst.msk [vmem:[#allocation2] sm:$0xff] %vm252_vm0, %v2196_v0  ;;  %254 = vst.msk [vmem:[#allocation2 + $0x8] sm:$0xff] %vm252_vm0, %v2196_v0 }
  0x14   : > { %255 = vst.msk [vmem:[#allocation2 + $0x10] sm:$0xff] %vm252_vm0, %v2196_v0  ;;  %256 = vst.msk [vmem:[#allocation2 + $0x18] sm:$0xff] %vm252_vm0, %v2196_v0 }
  0x15   : > { %257 = vst.msk [vmem:[#allocation2 + $0x20] sm:$0xff] %vm252_vm0, %v2196_v0  ;;  %258 = vst.msk [vmem:[#allocation2 + $0x28] sm:$0xff] %vm252_vm0, %v2196_v0 }
  0x16   : > { %259 = vst.msk [vmem:[#allocation2 + $0x30] sm:$0xff] %vm252_vm0, %v2196_v0  ;;  %260 = vst.msk [vmem:[#allocation2 + $0x38] sm:$0xff] %vm252_vm0, %v2196_v0 }
  0x17   : > { %261 = vst.msk [vmem:[#allocation2 + $0x40] sm:$0xff] %vm252_vm0, %v2196_v0  ;;  %262 = vst.msk [vmem:[#allocation2 + $0x48] sm:$0xff] %vm252_vm0, %v2196_v0 }
  0x18   : > { %263 = vst.msk [vmem:[#allocation2 + $0x50] sm:$0xff] %vm252_vm0, %v2196_v0  ;;  %264 = vst.msk [vmem:[#allocation2 + $0x58] sm:$0xff] %vm252_vm0, %v2196_v0 }
  0x19   : > { %265 = vst.msk [vmem:[#allocation2 + $0x60] sm:$0xff] %vm252_vm0, %v2196_v0  ;;  %266 = vst.msk [vmem:[#allocation2 + $0x68] sm:$0xff] %vm252_vm0, %v2196_v0 }
  0x1a   : > { %267 = vst.msk [vmem:[#allocation2 + $0x70] sm:$0xff] %vm252_vm0, %v2196_v0  ;;  %268 = vst.msk [vmem:[#allocation2 + $0x78] sm:$0xff] %vm252_vm0, %v2196_v0 }
  0x1b   : > { %269 = vst.msk [vmem:[#allocation2 + $0x80] sm:$0xff] %vm252_vm0, %v2196_v0  ;;  %270 = vst.msk [vmem:[#allocation2 + $0x88] sm:$0xff] %vm252_vm0, %v2196_v0 }
  0x1c   : > { %271 = vst.msk [vmem:[#allocation2 + $0x90] sm:$0xff] %vm252_vm0, %v2196_v0  ;;  %272 = vst.msk [vmem:[#allocation2 + $0x98] sm:$0xff] %vm252_vm0, %v2196_v0 }
  0x1d   : > { %273 = vst.msk [vmem:[#allocation2 + $0xa0] sm:$0xff] %vm252_vm0, %v2196_v0  ;;  %274 = vst.msk [vmem:[#allocation2 + $0xa8] sm:$0xff] %vm252_vm0, %v2196_v0 }
  0x1e   : > { %275 = vst.msk [vmem:[#allocation2 + $0xb0] sm:$0xff] %vm252_vm0, %v2196_v0  ;;  %276 = vst.msk [vmem:[#allocation2 + $0xb8] sm:$0xff] %vm252_vm0, %v2196_v0 }
  0x1f   : > { %277 = vst.msk [vmem:[#allocation2 + $0xc0] sm:$0xff] %vm252_vm0, %v2196_v0  ;;  %278 = vst.msk [vmem:[#allocation2 + $0xc8] sm:$0xff] %vm252_vm0, %v2196_v0 }
  0x20   : > { %279 = vst.msk [vmem:[#allocation2 + $0xd0] sm:$0xff] %vm252_vm0, %v2196_v0  ;;  %280 = vst.msk [vmem:[#allocation2 + $0xd8] sm:$0xff] %vm252_vm0, %v2196_v0 }
  0x21   : > { %281 = vst.msk [vmem:[#allocation2 + $0xe0] sm:$0xff] %vm252_vm0, %v2196_v0  ;;  %282 = vst.msk [vmem:[#allocation2 + $0xe8] sm:$0xff] %vm252_vm0, %v2196_v0 }
  0x22   : > { %283 = vst.msk [vmem:[#allocation2 + $0xf0] sm:$0xff] %vm252_vm0, %v2196_v0  ;;  %284 = vst.msk [vmem:[#allocation2 + $0xf8] sm:$0xff] %vm252_vm0, %v2196_v0 }
  0x23   : > { %285 = vst.msk [vmem:[#allocation2 + $0x100] sm:$0xff] %vm252_vm0, %v2196_v0  ;;  %286 = vst.msk [vmem:[#allocation2 + $0x108] sm:$0xff] %vm252_vm0, %v2196_v0 }
  0x24   : > { %287 = vst.msk [vmem:[#allocation2 + $0x110] sm:$0xff] %vm252_vm0, %v2196_v0  ;;  %288 = vst.msk [vmem:[#allocation2 + $0x118] sm:$0xff] %vm252_vm0, %v2196_v0 }
  0x25   : > { %289 = vst.msk [vmem:[#allocation2 + $0x120] sm:$0xff] %vm252_vm0, %v2196_v0  ;;  %290 = vst.msk [vmem:[#allocation2 + $0x128] sm:$0xff] %vm252_vm0, %v2196_v0 }
  0x26   : > { %291 = vst.msk [vmem:[#allocation2 + $0x130] sm:$0xff] %vm252_vm0, %v2196_v0  ;;  %292 = vst.msk [vmem:[#allocation2 + $0x138] sm:$0xff] %vm252_vm0, %v2196_v0 }
  0x27   : > { %293 = vst.msk [vmem:[#allocation2 + $0x140] sm:$0xff] %vm252_vm0, %v2196_v0  ;;  %294 = vst.msk [vmem:[#allocation2 + $0x148] sm:$0xff] %vm252_vm0, %v2196_v0 }
  0x28   : > { %295 = vst.msk [vmem:[#allocation2 + $0x150] sm:$0xff] %vm252_vm0, %v2196_v0  ;;  %296 = vst.msk [vmem:[#allocation2 + $0x158] sm:$0xff] %vm252_vm0, %v2196_v0 }
  0x29   : > { %297 = vst.msk [vmem:[#allocation2 + $0x160] sm:$0xff] %vm252_vm0, %v2196_v0  ;;  %298 = vst.msk [vmem:[#allocation2 + $0x168] sm:$0xff] %vm252_vm0, %v2196_v0 }
  0x2a   : > { %299 = vst.msk [vmem:[#allocation2 + $0x170] sm:$0xff] %vm252_vm0, %v2196_v0  ;;  %300 = vst.msk [vmem:[#allocation2 + $0x178] sm:$0xff] %vm252_vm0, %v2196_v0 }
  0x2b   : > { %301 = vst.msk [vmem:[#allocation2 + $0x180] sm:$0xff] %vm252_vm0, %v2196_v0  ;;  %302 = vst.msk [vmem:[#allocation2 + $0x188] sm:$0xff] %vm252_vm0, %v2196_v0 }
  0x2c   : > { %303 = vst.msk [vmem:[#allocation2 + $0x190] sm:$0xff] %vm252_vm0, %v2196_v0  ;;  %304 = vst.msk [vmem:[#allocation2 + $0x198] sm:$0xff] %vm252_vm0, %v2196_v0 }
  0x2d   : > { %305 = vst.msk [vmem:[#allocation2 + $0x1a0] sm:$0xff] %vm252_vm0, %v2196_v0  ;;  %306 = vst.msk [vmem:[#allocation2 + $0x1a8] sm:$0xff] %vm252_vm0, %v2196_v0 }
  0x2e   : > { %307 = vst.msk [vmem:[#allocation2 + $0x1b0] sm:$0xff] %vm252_vm0, %v2196_v0  ;;  %308 = vst.msk [vmem:[#allocation2 + $0x1b8] sm:$0xff] %vm252_vm0, %v2196_v0 }
  0x2f   : > { %309 = vst.msk [vmem:[#allocation2 + $0x1c0] sm:$0xff] %vm252_vm0, %v2196_v0  ;;  %310 = vst.msk [vmem:[#allocation2 + $0x1c8] sm:$0xff] %vm252_vm0, %v2196_v0 }
  0x30   : > { %311 = vst.msk [vmem:[#allocation2 + $0x1d0] sm:$0xff] %vm252_vm0, %v2196_v0  ;;  %312 = vst.msk [vmem:[#allocation2 + $0x1d8] sm:$0xff] %vm252_vm0, %v2196_v0 }
  0x31   : > { %313 = vst.msk [vmem:[#allocation2 + $0x1e0] sm:$0xff] %vm252_vm0, %v2196_v0  ;;  %314 = vst.msk [vmem:[#allocation2 + $0x1e8] sm:$0xff] %vm252_vm0, %v2196_v0 }
  0x32   : > { %315 = vst.msk [vmem:[#allocation2 + $0x1f0] sm:$0xff] %vm252_vm0, %v2196_v0  ;;  %316 = vst.msk [vmem:[#allocation2 + $0x1f8] sm:$0xff] %vm252_vm0, %v2196_v0 }
  0x33 PF: > { %v2139_v1 = vld [vmem:[%s2252_s27] sm:$0xff]   ;;  %vm613_vm1 = vcmask 130048   ;;  %v2142_v4 = vld [vmem:[%s2247_s24 + $0x8] sm:$0xff]   ;;  %v2144_v6 = vld [vmem:[%s2247_s24 + $0x10] sm:$0xff]   ;;  %p1876_p6 = scmp.ne.s32.totalorder %s2186_s15, 8 }
  0x34   : > { %v2140_v2 = vld [vmem:[%s2247_s24] sm:$0xff]   ;;  %2046 = vmatprep.subr.bf16.mxu0 %v2139_v1  ;;  %2112 = vmatprep.subr.bf16.mxu1 %v2139_v1  ;;  %v2143_v5 = vld [vmem:[%s2247_s24 + $0x88] sm:$0xff]   ;;  %v2145_v7 = vld [vmem:[%s2247_s24 + $0x90] sm:$0xff]  }
  0x35   : > { %v2141_v3 = vld [vmem:[%s2247_s24 + $0x80] sm:$0xff]   ;;  %2047 = vmatpush3.bf16.msra.mxu0 %v2139_v1  ;;  %2113 = vmatpush3.bf16.msra.mxu1 %v2139_v1  ;;  %v2146_v8 = vld [vmem:[%s2247_s24 + $0x18] sm:$0xff]   ;;  %v2150_v12 = vld [vmem:[%s2247_s24 + $0x28] sm:$0xff]  }
  0x36   : > { %2048 = vmatprep.mubr.msk.bf16.mxu0 %vm613_vm1, %v2140_v2  ;;  %2080 = vmatprep.mubr.msk.bf16.mxu1 %vm613_vm1, %v2141_v3  ;;  %v2147_v9 = vld [vmem:[%s2247_s24 + $0x98] sm:$0xff]   ;;  %v2148_v10 = vld [vmem:[%s2247_s24 + $0x20] sm:$0xff]   ;;  %v2151_v13 = vld [vmem:[%s2247_s24 + $0xa8] sm:$0xff]  }
  0x37   : > { %v2149_v11 = vld [vmem:[%s2247_s24 + $0xa0] sm:$0xff]   ;;  %v2152_v14 = vld [vmem:[%s2247_s24 + $0x30] sm:$0xff]   ;;  %v2154_v16 = vld [vmem:[%s2247_s24 + $0x38] sm:$0xff]  }
  0x38   : > { %2049 = vmatmul.mubr.msk.bf16.vlgmr.msra.gmra.mxu0 %vm613_vm1, %v2142_v4  ;;  %2081 = vmatmul.mubr.msk.bf16.vlgmr.msra.gmra.mxu1 %vm613_vm1, %v2143_v5  ;;  %v2153_v15 = vld [vmem:[%s2247_s24 + $0xb0] sm:$0xff]   ;;  %v2155_v17 = vld [vmem:[%s2247_s24 + $0xb8] sm:$0xff]   ;;  %v2156_v18 = vld [vmem:[%s2247_s24 + $0x40] sm:$0xff]  }
  0x39   : > { %2052 = vmatprep.mubr.msk.bf16.mxu0 %vm613_vm1, %v2144_v6  ;;  %2084 = vmatprep.mubr.msk.bf16.mxu1 %vm613_vm1, %v2145_v7  ;;  %v2157_v19 = vld [vmem:[%s2247_s24 + $0xc0] sm:$0xff]   ;;  %v2158_v20 = vld [vmem:[%s2247_s24 + $0x48] sm:$0xff]   ;;  %v2160_v22 = vld [vmem:[%s2247_s24 + $0x50] sm:$0xff]  }
  0x3a   : > { %v2159_v21 = vld [vmem:[%s2247_s24 + $0xc8] sm:$0xff]   ;;  %v2161_v23 = vld [vmem:[%s2247_s24 + $0xd0] sm:$0xff]   ;;  %v2162_v24 = vld [vmem:[%s2247_s24 + $0x58] sm:$0xff]  }
  0x3b   : > { %v2163_v25 = vld [vmem:[%s2247_s24 + $0xd8] sm:$0xff]   ;;  %v2164_v26 = vld [vmem:[%s2247_s24 + $0x60] sm:$0xff]   ;;  %v2166_v28 = vld [vmem:[%s2247_s24 + $0x68] sm:$0xff]  }
  0x3c   : > { %v2165_v27 = vld [vmem:[%s2247_s24 + $0xe0] sm:$0xff]   ;;  %v2167_v29 = vld [vmem:[%s2247_s24 + $0xe8] sm:$0xff]   ;;  %v2168_v30 = vld [vmem:[%s2247_s24 + $0x70] sm:$0xff]  }
  0x3d   : > { %v2169_v31 = vld [vmem:[%s2247_s24 + $0xf0] sm:$0xff]   ;;  %v2170_v32 = vld [vmem:[%s2247_s24 + $0x78] sm:$0xff]   ;;  %v317_v38 = vld [vmem:[#allocation2] sm:$0xff] }
  0x3e   : > { %v2171_v33 = vld [vmem:[%s2247_s24 + $0xf8] sm:$0xff]   ;;  %v319_v34 = vld [vmem:[#allocation2 + $0x10] sm:$0xff]  ;;  %v349_v39 = vld [vmem:[#allocation2 + $0x100] sm:$0xff] }
  0x3f   : > { %v351_v35 = vld [vmem:[#allocation2 + $0x110] sm:$0xff]  ;;  %v320_v44 = vld [vmem:[#allocation2 + $0x18] sm:$0xff]  ;;  %v318_v50 = vld [vmem:[#allocation2 + $0x8] sm:$0xff] }
  0x40   : > { %2053 = vmatmul.mubr.msk.bf16.gmra.mxu0 %vm613_vm1, %v2146_v8  ;;  %2085 = vmatmul.mubr.msk.bf16.gmra.mxu1 %vm613_vm1, %v2147_v9  ;;  %v352_v45 = vld [vmem:[#allocation2 + $0x118] sm:$0xff]  ;;  %v350_v51 = vld [vmem:[#allocation2 + $0x108] sm:$0xff]  ;;  %v323_v56 = vld [vmem:[#allocation2 + $0x30] sm:$0xff] }
  0x41   : > { %2056 = vmatprep.mubr.msk.bf16.mxu0 %vm613_vm1, %v2148_v10  ;;  %2088 = vmatprep.mubr.msk.bf16.mxu1 %vm613_vm1, %v2149_v11  ;;  %v355_v57 = vld [vmem:[#allocation2 + $0x130] sm:$0xff]  ;;  %v321_v62 = vld [vmem:[#allocation2 + $0x20] sm:$0xff]  ;;  %v324_v4 = vld [vmem:[#allocation2 + $0x38] sm:$0xff] }
  0x42   : > { %v353_v63 = vld [vmem:[#allocation2 + $0x120] sm:$0xff]  ;;  %v356_v5 = vld [vmem:[#allocation2 + $0x138] sm:$0xff]  ;;  %v322_v10 = vld [vmem:[#allocation2 + $0x28] sm:$0xff] }
  0x43   : > { %v354_v11 = vld [vmem:[#allocation2 + $0x128] sm:$0xff] }
  0x48   : > { %2057 = vmatmul.mubr.msk.bf16.gmra.mxu0 %vm613_vm1, %v2150_v12  ;;  %2089 = vmatmul.mubr.msk.bf16.gmra.mxu1 %vm613_vm1, %v2151_v13 }
  0x49   : > { %2060 = vmatprep.mubr.msk.bf16.mxu0 %vm613_vm1, %v2152_v14  ;;  %2092 = vmatprep.mubr.msk.bf16.mxu1 %vm613_vm1, %v2153_v15 }
  0x50   : > { %2061 = vmatmul.mubr.msk.bf16.gmra.mxu0 %vm613_vm1, %v2154_v16  ;;  %2093 = vmatmul.mubr.msk.bf16.gmra.mxu1 %vm613_vm1, %v2155_v17  ;;  %v327_v16 = vld [vmem:[#allocation2 + $0x50] sm:$0xff] }
  0x51   : > { %2064 = vmatprep.mubr.msk.bf16.mxu0 %vm613_vm1, %v2156_v18  ;;  %2096 = vmatprep.mubr.msk.bf16.mxu1 %vm613_vm1, %v2157_v19  ;;  %v359_v17 = vld [vmem:[#allocation2 + $0x150] sm:$0xff] }
  0x58   : > { %2065 = vmatmul.mubr.msk.bf16.gmra.mxu0 %vm613_vm1, %v2158_v20  ;;  %2097 = vmatmul.mubr.msk.bf16.gmra.mxu1 %vm613_vm1, %v2159_v21 }
  0x59   : > { %2068 = vmatprep.mubr.msk.bf16.mxu0 %vm613_vm1, %v2160_v22  ;;  %2100 = vmatprep.mubr.msk.bf16.mxu1 %vm613_vm1, %v2161_v23  ;;  %v325_v22 = vld [vmem:[#allocation2 + $0x40] sm:$0xff] }
  0x5a   : > { %v357_v23 = vld [vmem:[#allocation2 + $0x140] sm:$0xff] }
  0x60   : > { %2069 = vmatmul.mubr.msk.bf16.gmra.mxu0 %vm613_vm1, %v2162_v24  ;;  %2101 = vmatmul.mubr.msk.bf16.gmra.mxu1 %vm613_vm1, %v2163_v25 }
  0x61   : > { %2072 = vmatprep.mubr.msk.bf16.mxu0 %vm613_vm1, %v2164_v26  ;;  %2104 = vmatprep.mubr.msk.bf16.mxu1 %vm613_vm1, %v2165_v27 }
  0x68   : > { %2073 = vmatmul.mubr.msk.bf16.gmra.mxu0 %vm613_vm1, %v2166_v28  ;;  %2105 = vmatmul.mubr.msk.bf16.gmra.mxu1 %vm613_vm1, %v2167_v29  ;;  %v328_v28 = vld [vmem:[#allocation2 + $0x58] sm:$0xff] }
  0x69   : > { %2076 = vmatprep.mubr.msk.bf16.mxu0 %vm613_vm1, %v2168_v30  ;;  %2108 = vmatprep.mubr.msk.bf16.mxu1 %vm613_vm1, %v2169_v31  ;;  %v360_v29 = vld [vmem:[#allocation2 + $0x158] sm:$0xff] }
  0x70   : > { %2077 = vmatmul.mubr.msk.bf16.gmra.mxu0 %vm613_vm1, %v2170_v32  ;;  %2109 = vmatmul.mubr.msk.bf16.gmra.mxu1 %vm613_vm1, %v2171_v33 }
  0xf8   : > { %v2050_v36 = vpop.f32.mrf.mxu0  ;;  %v2082_v37 = vpop.f32.mrf.mxu1 }
  0xf9   : > { %v1001_v40 = vadd.f32 %v2050_v36, %v319_v34  ;;  %v1033_v41 = vadd.f32 %v2082_v37, %v351_v35  ;;  %v326_v34 = vld [vmem:[#allocation2 + $0x48] sm:$0xff] }
  0xfa   : > { %v744_v42 = vpop.f32.mrf.mxu0  ;;  %v872_v43 = vpop.f32.mrf.mxu1  ;;  %v358_v35 = vld [vmem:[#allocation2 + $0x148] sm:$0xff] }
  0xfb   : > { %1065 = vst.msk [vmem:[#allocation2 + $0x10] sm:$0xff] %vm613_vm1, %v1001_v40  ;;  %1097 = vst.msk [vmem:[#allocation2 + $0x110] sm:$0xff] %vm613_vm1, %v1033_v41  ;;  %v999_v46 = vadd.f32 %v744_v42, %v317_v38  ;;  %v1031_v47 = vadd.f32 %v872_v43, %v349_v39  ;;  %v331_v40 = vld [vmem:[#allocation2 + $0x70] sm:$0xff] }
  0xfc   : > { %v2051_v48 = vpop.f32.mrf.mxu0  ;;  %v2083_v49 = vpop.f32.mrf.mxu1  ;;  %v363_v41 = vld [vmem:[#allocation2 + $0x170] sm:$0xff] }
  0xfd   : > { %1063 = vst.msk [vmem:[#allocation2] sm:$0xff] %vm613_vm1, %v999_v46  ;;  %1095 = vst.msk [vmem:[#allocation2 + $0x100] sm:$0xff] %vm613_vm1, %v1031_v47  ;;  %v1002_v52 = vadd.f32 %v2051_v48, %v320_v44  ;;  %v1034_v53 = vadd.f32 %v2083_v49, %v352_v45  ;;  %v329_v46 = vld [vmem:[#allocation2 + $0x60] sm:$0xff] }
  0xfe   : > { %v747_v54 = vpop.f32.mrf.mxu0  ;;  %v875_v55 = vpop.f32.mrf.mxu1  ;;  %v361_v47 = vld [vmem:[#allocation2 + $0x160] sm:$0xff] }
  0xff   : > { %1066 = vst.msk [vmem:[#allocation2 + $0x18] sm:$0xff] %vm613_vm1, %v1002_v52  ;;  %1098 = vst.msk [vmem:[#allocation2 + $0x118] sm:$0xff] %vm613_vm1, %v1034_v53  ;;  %v1000_v58 = vadd.f32 %v747_v54, %v318_v50  ;;  %v1032_v59 = vadd.f32 %v875_v55, %v350_v51  ;;  %v332_v52 = vld [vmem:[#allocation2 + $0x78] sm:$0xff] }
 0x100   : > { %v2054_v60 = vpop.f32.mrf.mxu0  ;;  %v2086_v61 = vpop.f32.mrf.mxu1  ;;  %v364_v53 = vld [vmem:[#allocation2 + $0x178] sm:$0xff] }
 0x101   : > { %1064 = vst.msk [vmem:[#allocation2 + $0x8] sm:$0xff] %vm613_vm1, %v1000_v58  ;;  %1096 = vst.msk [vmem:[#allocation2 + $0x108] sm:$0xff] %vm613_vm1, %v1032_v59  ;;  %v1005_v0 = vadd.f32 %v2054_v60, %v323_v56  ;;  %v1037_v1 = vadd.f32 %v2086_v61, %v355_v57  ;;  %v330_v58 = vld [vmem:[#allocation2 + $0x68] sm:$0xff] }
 0x102   : > { %v760_v2 = vpop.f32.mrf.mxu0  ;;  %v888_v3 = vpop.f32.mrf.mxu1  ;;  %v362_v59 = vld [vmem:[#allocation2 + $0x168] sm:$0xff] }
 0x103   : > { %1069 = vst.msk [vmem:[#allocation2 + $0x30] sm:$0xff] %vm613_vm1, %v1005_v0  ;;  %1101 = vst.msk [vmem:[#allocation2 + $0x130] sm:$0xff] %vm613_vm1, %v1037_v1  ;;  %v1003_v6 = vadd.f32 %v760_v2, %v321_v62  ;;  %v1035_v7 = vadd.f32 %v888_v3, %v353_v63  ;;  %v335_v0 = vld [vmem:[#allocation2 + $0x90] sm:$0xff] }
 0x104   : > { %v2055_v8 = vpop.f32.mrf.mxu0  ;;  %v2087_v9 = vpop.f32.mrf.mxu1  ;;  %v367_v1 = vld [vmem:[#allocation2 + $0x190] sm:$0xff] }
 0x105   : > { %1067 = vst.msk [vmem:[#allocation2 + $0x20] sm:$0xff] %vm613_vm1, %v1003_v6  ;;  %1099 = vst.msk [vmem:[#allocation2 + $0x120] sm:$0xff] %vm613_vm1, %v1035_v7  ;;  %v1006_v12 = vadd.f32 %v2055_v8, %v324_v4  ;;  %v1038_v13 = vadd.f32 %v2087_v9, %v356_v5  ;;  %v333_v6 = vld [vmem:[#allocation2 + $0x80] sm:$0xff] }
 0x106   : > { %v763_v14 = vpop.f32.mrf.mxu0  ;;  %v891_v15 = vpop.f32.mrf.mxu1  ;;  %v365_v7 = vld [vmem:[#allocation2 + $0x180] sm:$0xff] }
 0x107   : > { %1070 = vst.msk [vmem:[#allocation2 + $0x38] sm:$0xff] %vm613_vm1, %v1006_v12  ;;  %1102 = vst.msk [vmem:[#allocation2 + $0x138] sm:$0xff] %vm613_vm1, %v1038_v13  ;;  %v1004_v18 = vadd.f32 %v763_v14, %v322_v10  ;;  %v1036_v19 = vadd.f32 %v891_v15, %v354_v11  ;;  %v336_v12 = vld [vmem:[#allocation2 + $0x98] sm:$0xff] }
 0x108   : > { %v2058_v20 = vpop.f32.mrf.mxu0  ;;  %v2090_v21 = vpop.f32.mrf.mxu1  ;;  %v368_v13 = vld [vmem:[#allocation2 + $0x198] sm:$0xff] }
 0x109   : > { %1068 = vst.msk [vmem:[#allocation2 + $0x28] sm:$0xff] %vm613_vm1, %v1004_v18  ;;  %1100 = vst.msk [vmem:[#allocation2 + $0x128] sm:$0xff] %vm613_vm1, %v1036_v19  ;;  %v1009_v24 = vadd.f32 %v2058_v20, %v327_v16  ;;  %v1041_v25 = vadd.f32 %v2090_v21, %v359_v17  ;;  %v334_v18 = vld [vmem:[#allocation2 + $0x88] sm:$0xff] }
 0x10a   : > { %v776_v26 = vpop.f32.mrf.mxu0  ;;  %v904_v27 = vpop.f32.mrf.mxu1  ;;  %v366_v19 = vld [vmem:[#allocation2 + $0x188] sm:$0xff] }
 0x10b   : > { %1073 = vst.msk [vmem:[#allocation2 + $0x50] sm:$0xff] %vm613_vm1, %v1009_v24  ;;  %1105 = vst.msk [vmem:[#allocation2 + $0x150] sm:$0xff] %vm613_vm1, %v1041_v25  ;;  %v1007_v30 = vadd.f32 %v776_v26, %v325_v22  ;;  %v1039_v31 = vadd.f32 %v904_v27, %v357_v23  ;;  %v339_v24 = vld [vmem:[#allocation2 + $0xb0] sm:$0xff] }
 0x10c   : > { %v2059_v32 = vpop.f32.mrf.mxu0  ;;  %v2091_v33 = vpop.f32.mrf.mxu1  ;;  %v371_v25 = vld [vmem:[#allocation2 + $0x1b0] sm:$0xff] }
 0x10d   : > { %1071 = vst.msk [vmem:[#allocation2 + $0x40] sm:$0xff] %vm613_vm1, %v1007_v30  ;;  %1103 = vst.msk [vmem:[#allocation2 + $0x140] sm:$0xff] %vm613_vm1, %v1039_v31  ;;  %v1010_v36 = vadd.f32 %v2059_v32, %v328_v28  ;;  %v1042_v37 = vadd.f32 %v2091_v33, %v360_v29  ;;  %v337_v30 = vld [vmem:[#allocation2 + $0xa0] sm:$0xff] }
 0x10e   : > { %v779_v38 = vpop.f32.mrf.mxu0  ;;  %v907_v39 = vpop.f32.mrf.mxu1  ;;  %v369_v31 = vld [vmem:[#allocation2 + $0x1a0] sm:$0xff] }
 0x10f   : > { %1074 = vst.msk [vmem:[#allocation2 + $0x58] sm:$0xff] %vm613_vm1, %v1010_v36  ;;  %1106 = vst.msk [vmem:[#allocation2 + $0x158] sm:$0xff] %vm613_vm1, %v1042_v37  ;;  %v1008_v42 = vadd.f32 %v779_v38, %v326_v34  ;;  %v1040_v43 = vadd.f32 %v907_v39, %v358_v35  ;;  %v340_v36 = vld [vmem:[#allocation2 + $0xb8] sm:$0xff] }
 0x110   : > { %v2062_v44 = vpop.f32.mrf.mxu0  ;;  %v2094_v45 = vpop.f32.mrf.mxu1  ;;  %v372_v37 = vld [vmem:[#allocation2 + $0x1b8] sm:$0xff] }
 0x111   : > { %1072 = vst.msk [vmem:[#allocation2 + $0x48] sm:$0xff] %vm613_vm1, %v1008_v42  ;;  %1104 = vst.msk [vmem:[#allocation2 + $0x148] sm:$0xff] %vm613_vm1, %v1040_v43  ;;  %v1013_v48 = vadd.f32 %v2062_v44, %v331_v40  ;;  %v1045_v49 = vadd.f32 %v2094_v45, %v363_v41  ;;  %v338_v42 = vld [vmem:[#allocation2 + $0xa8] sm:$0xff] }
 0x112   : > { %v792_v50 = vpop.f32.mrf.mxu0  ;;  %v920_v51 = vpop.f32.mrf.mxu1  ;;  %v370_v43 = vld [vmem:[#allocation2 + $0x1a8] sm:$0xff] }
 0x113   : > { %1077 = vst.msk [vmem:[#allocation2 + $0x70] sm:$0xff] %vm613_vm1, %v1013_v48  ;;  %1109 = vst.msk [vmem:[#allocation2 + $0x170] sm:$0xff] %vm613_vm1, %v1045_v49  ;;  %v1011_v54 = vadd.f32 %v792_v50, %v329_v46  ;;  %v1043_v55 = vadd.f32 %v920_v51, %v361_v47  ;;  %v343_v48 = vld [vmem:[#allocation2 + $0xd0] sm:$0xff] }
 0x114   : > { %v2063_v56 = vpop.f32.mrf.mxu0  ;;  %v2095_v57 = vpop.f32.mrf.mxu1  ;;  %v375_v49 = vld [vmem:[#allocation2 + $0x1d0] sm:$0xff] }
 0x115   : > { %1075 = vst.msk [vmem:[#allocation2 + $0x60] sm:$0xff] %vm613_vm1, %v1011_v54  ;;  %1107 = vst.msk [vmem:[#allocation2 + $0x160] sm:$0xff] %vm613_vm1, %v1043_v55  ;;  %v1014_v60 = vadd.f32 %v2063_v56, %v332_v52  ;;  %v1046_v61 = vadd.f32 %v2095_v57, %v364_v53  ;;  %v341_v54 = vld [vmem:[#allocation2 + $0xc0] sm:$0xff] }
 0x116   : > { %v795_v62 = vpop.f32.mrf.mxu0  ;;  %v923_v63 = vpop.f32.mrf.mxu1  ;;  %v373_v55 = vld [vmem:[#allocation2 + $0x1c0] sm:$0xff] }
 0x117   : > { %1078 = vst.msk [vmem:[#allocation2 + $0x78] sm:$0xff] %vm613_vm1, %v1014_v60  ;;  %1110 = vst.msk [vmem:[#allocation2 + $0x178] sm:$0xff] %vm613_vm1, %v1046_v61  ;;  %v1012_v2 = vadd.f32 %v795_v62, %v330_v58  ;;  %v1044_v3 = vadd.f32 %v923_v63, %v362_v59  ;;  %v344_v60 = vld [vmem:[#allocation2 + $0xd8] sm:$0xff] }
 0x118   : > { %v2066_v4 = vpop.f32.mrf.mxu0  ;;  %v2098_v5 = vpop.f32.mrf.mxu1  ;;  %v376_v61 = vld [vmem:[#allocation2 + $0x1d8] sm:$0xff] }
 0x119   : > { %1076 = vst.msk [vmem:[#allocation2 + $0x68] sm:$0xff] %vm613_vm1, %v1012_v2  ;;  %1108 = vst.msk [vmem:[#allocation2 + $0x168] sm:$0xff] %vm613_vm1, %v1044_v3  ;;  %v1017_v8 = vadd.f32 %v2066_v4, %v335_v0  ;;  %v1049_v9 = vadd.f32 %v2098_v5, %v367_v1  ;;  %v342_v2 = vld [vmem:[#allocation2 + $0xc8] sm:$0xff] }
 0x11a   : > { %v808_v10 = vpop.f32.mrf.mxu0  ;;  %v936_v11 = vpop.f32.mrf.mxu1  ;;  %v374_v3 = vld [vmem:[#allocation2 + $0x1c8] sm:$0xff] }
 0x11b   : > { %1081 = vst.msk [vmem:[#allocation2 + $0x90] sm:$0xff] %vm613_vm1, %v1017_v8  ;;  %1113 = vst.msk [vmem:[#allocation2 + $0x190] sm:$0xff] %vm613_vm1, %v1049_v9  ;;  %v1015_v14 = vadd.f32 %v808_v10, %v333_v6  ;;  %v1047_v15 = vadd.f32 %v936_v11, %v365_v7  ;;  %v347_v8 = vld [vmem:[#allocation2 + $0xf0] sm:$0xff] }
 0x11c   : > { %v2067_v16 = vpop.f32.mrf.mxu0  ;;  %v2099_v17 = vpop.f32.mrf.mxu1  ;;  %v379_v9 = vld [vmem:[#allocation2 + $0x1f0] sm:$0xff] }
 0x11d   : > { %1079 = vst.msk [vmem:[#allocation2 + $0x80] sm:$0xff] %vm613_vm1, %v1015_v14  ;;  %1111 = vst.msk [vmem:[#allocation2 + $0x180] sm:$0xff] %vm613_vm1, %v1047_v15  ;;  %v1018_v20 = vadd.f32 %v2067_v16, %v336_v12  ;;  %v1050_v21 = vadd.f32 %v2099_v17, %v368_v13  ;;  %v345_v14 = vld [vmem:[#allocation2 + $0xe0] sm:$0xff] }
 0x11e   : > { %v811_v22 = vpop.f32.mrf.mxu0  ;;  %v939_v23 = vpop.f32.mrf.mxu1  ;;  %v377_v15 = vld [vmem:[#allocation2 + $0x1e0] sm:$0xff] }
 0x11f   : > { %1082 = vst.msk [vmem:[#allocation2 + $0x98] sm:$0xff] %vm613_vm1, %v1018_v20  ;;  %1114 = vst.msk [vmem:[#allocation2 + $0x198] sm:$0xff] %vm613_vm1, %v1050_v21  ;;  %v1016_v26 = vadd.f32 %v811_v22, %v334_v18  ;;  %v1048_v27 = vadd.f32 %v939_v23, %v366_v19  ;;  %v348_v20 = vld [vmem:[#allocation2 + $0xf8] sm:$0xff] }
 0x120   : > { %v2070_v28 = vpop.f32.mrf.mxu0  ;;  %v2102_v29 = vpop.f32.mrf.mxu1  ;;  %v380_v21 = vld [vmem:[#allocation2 + $0x1f8] sm:$0xff] }
 0x121   : > { %1080 = vst.msk [vmem:[#allocation2 + $0x88] sm:$0xff] %vm613_vm1, %v1016_v26  ;;  %1112 = vst.msk [vmem:[#allocation2 + $0x188] sm:$0xff] %vm613_vm1, %v1048_v27  ;;  %v1021_v32 = vadd.f32 %v2070_v28, %v339_v24  ;;  %v1053_v33 = vadd.f32 %v2102_v29, %v371_v25  ;;  %v346_v26 = vld [vmem:[#allocation2 + $0xe8] sm:$0xff] }
 0x122   : > { %v824_v34 = vpop.f32.mrf.mxu0  ;;  %v952_v35 = vpop.f32.mrf.mxu1  ;;  %v378_v27 = vld [vmem:[#allocation2 + $0x1e8] sm:$0xff] }
 0x123   : > { %1085 = vst.msk [vmem:[#allocation2 + $0xb0] sm:$0xff] %vm613_vm1, %v1021_v32  ;;  %1117 = vst.msk [vmem:[#allocation2 + $0x1b0] sm:$0xff] %vm613_vm1, %v1053_v33  ;;  %v1019_v38 = vadd.f32 %v824_v34, %v337_v30  ;;  %v1051_v39 = vadd.f32 %v952_v35, %v369_v31 }
 0x124   : > { %v2071_v40 = vpop.f32.mrf.mxu0  ;;  %v2103_v41 = vpop.f32.mrf.mxu1 }
 0x125   : > { %1083 = vst.msk [vmem:[#allocation2 + $0xa0] sm:$0xff] %vm613_vm1, %v1019_v38  ;;  %1115 = vst.msk [vmem:[#allocation2 + $0x1a0] sm:$0xff] %vm613_vm1, %v1051_v39  ;;  %v1022_v44 = vadd.f32 %v2071_v40, %v340_v36  ;;  %v1054_v45 = vadd.f32 %v2103_v41, %v372_v37 }
 0x126   : > { %v827_v46 = vpop.f32.mrf.mxu0  ;;  %v955_v47 = vpop.f32.mrf.mxu1 }
 0x127   : > { %1086 = vst.msk [vmem:[#allocation2 + $0xb8] sm:$0xff] %vm613_vm1, %v1022_v44  ;;  %1118 = vst.msk [vmem:[#allocation2 + $0x1b8] sm:$0xff] %vm613_vm1, %v1054_v45  ;;  %v1020_v50 = vadd.f32 %v827_v46, %v338_v42  ;;  %v1052_v51 = vadd.f32 %v955_v47, %v370_v43 }
 0x128   : > { %v2074_v52 = vpop.f32.mrf.mxu0  ;;  %v2106_v53 = vpop.f32.mrf.mxu1 }
 0x129   : > { %1084 = vst.msk [vmem:[#allocation2 + $0xa8] sm:$0xff] %vm613_vm1, %v1020_v50  ;;  %1116 = vst.msk [vmem:[#allocation2 + $0x1a8] sm:$0xff] %vm613_vm1, %v1052_v51  ;;  %v1025_v56 = vadd.f32 %v2074_v52, %v343_v48  ;;  %v1057_v57 = vadd.f32 %v2106_v53, %v375_v49 }
 0x12a   : > { %v840_v58 = vpop.f32.mrf.mxu0  ;;  %v968_v59 = vpop.f32.mrf.mxu1 }
 0x12b   : > { %1089 = vst.msk [vmem:[#allocation2 + $0xd0] sm:$0xff] %vm613_vm1, %v1025_v56  ;;  %1121 = vst.msk [vmem:[#allocation2 + $0x1d0] sm:$0xff] %vm613_vm1, %v1057_v57  ;;  %v1023_v62 = vadd.f32 %v840_v58, %v341_v54  ;;  %v1055_v63 = vadd.f32 %v968_v59, %v373_v55 }
 0x12c   : > { %v2075_v0 = vpop.f32.mrf.mxu0  ;;  %v2107_v1 = vpop.f32.mrf.mxu1 }
 0x12d   : > { %1087 = vst.msk [vmem:[#allocation2 + $0xc0] sm:$0xff] %vm613_vm1, %v1023_v62  ;;  %1119 = vst.msk [vmem:[#allocation2 + $0x1c0] sm:$0xff] %vm613_vm1, %v1055_v63  ;;  %v1026_v4 = vadd.f32 %v2075_v0, %v344_v60  ;;  %v1058_v5 = vadd.f32 %v2107_v1, %v376_v61 }
 0x12e   : > { %v843_v6 = vpop.f32.mrf.mxu0  ;;  %v971_v7 = vpop.f32.mrf.mxu1 }
 0x12f   : > { %1090 = vst.msk [vmem:[#allocation2 + $0xd8] sm:$0xff] %vm613_vm1, %v1026_v4  ;;  %1122 = vst.msk [vmem:[#allocation2 + $0x1d8] sm:$0xff] %vm613_vm1, %v1058_v5  ;;  %v1024_v10 = vadd.f32 %v843_v6, %v342_v2  ;;  %v1056_v11 = vadd.f32 %v971_v7, %v374_v3 }
 0x130   : > { %v2078_v12 = vpop.f32.mrf.mxu0  ;;  %v2110_v13 = vpop.f32.mrf.mxu1 }
 0x131   : > { %1088 = vst.msk [vmem:[#allocation2 + $0xc8] sm:$0xff] %vm613_vm1, %v1024_v10  ;;  %1120 = vst.msk [vmem:[#allocation2 + $0x1c8] sm:$0xff] %vm613_vm1, %v1056_v11  ;;  %v1029_v16 = vadd.f32 %v2078_v12, %v347_v8  ;;  %v1061_v17 = vadd.f32 %v2110_v13, %v379_v9 }
 0x132   : > { %v856_v18 = vpop.f32.mrf.mxu0  ;;  %v984_v19 = vpop.f32.mrf.mxu1 }
 0x133   : > { %1093 = vst.msk [vmem:[#allocation2 + $0xf0] sm:$0xff] %vm613_vm1, %v1029_v16  ;;  %1125 = vst.msk [vmem:[#allocation2 + $0x1f0] sm:$0xff] %vm613_vm1, %v1061_v17  ;;  %v1027_v22 = vadd.f32 %v856_v18, %v345_v14  ;;  %v1059_v23 = vadd.f32 %v984_v19, %v377_v15 }
 0x134   : > { %v2079_v24 = vpop.f32.mrf.mxu0  ;;  %v2111_v25 = vpop.f32.mrf.mxu1 }
 0x135   : > { %1091 = vst.msk [vmem:[#allocation2 + $0xe0] sm:$0xff] %vm613_vm1, %v1027_v22  ;;  %1123 = vst.msk [vmem:[#allocation2 + $0x1e0] sm:$0xff] %vm613_vm1, %v1059_v23  ;;  %v1030_v28 = vadd.f32 %v2079_v24, %v348_v20  ;;  %v1062_v29 = vadd.f32 %v2111_v25, %v380_v21  ;;  %1130 = sbr.rel (%p1876_p6) target bundleno = 389 (0x185), region = 44 }
 0x136   : > { %v859_v30 = vpop.f32.mrf.mxu0  ;;  %v987_v31 = vpop.f32.mrf.mxu1 }
 0x137   : > { %1094 = vst.msk [vmem:[#allocation2 + $0xf8] sm:$0xff] %vm613_vm1, %v1030_v28  ;;  %1126 = vst.msk [vmem:[#allocation2 + $0x1f8] sm:$0xff] %vm613_vm1, %v1062_v29  ;;  %v1028_v32 = vadd.f32 %v859_v30, %v346_v26  ;;  %v1060_v33 = vadd.f32 %v987_v31, %v378_v27 }
 0x139   : > { %1092 = vst.msk [vmem:[#allocation2 + $0xe8] sm:$0xff] %vm613_vm1, %v1028_v32  ;;  %1124 = vst.msk [vmem:[#allocation2 + $0x1e8] sm:$0xff] %vm613_vm1, %v1060_v33 }
 0x13a   : > { %v1131_v34 = vld [vmem:[#allocation2] sm:$0xff]  ;;  %v1132_v38 = vld [vmem:[#allocation2 + $0x8] sm:$0xff]  ;;  %v1133_v39 = vld [vmem:[#allocation2 + $0x10] sm:$0xff]  ;;  %vm1657_vm2 = vcmask 125952  }
 0x13b   : > { %v2516_v35 = vld [vmem:[%s2918_s2] ss:$0 sm:$0xff]  ;;  %v1134_v40 = vld [vmem:[#allocation2 + $0x18] sm:$0xff]  ;;  %v1136_v45 = vld [vmem:[#allocation2 + $0x28] sm:$0xff] }
 0x13c   : > { %v2521_v36 = vld [vmem:[%s2919_s3] ss:$0 sm:$0xff]  ;;  %v1202_v37 = vmul.f32 %v2516_v35, %v1131_v34  ;;  %v1203_v41 = vmul.f32 %v2516_v35, %v1132_v38  ;;  %v1204_v42 = vmul.f32 %v2516_v35, %v1133_v39  ;;  %v1205_v43 = vmul.f32 %v2516_v35, %v1134_v40  ;;  %v1137_v46 = vld [vmem:[#allocation2 + $0x30] sm:$0xff]  ;;  %v1138_v51 = vld [vmem:[#allocation2 + $0x38] sm:$0xff] }
 0x13d   : > { %v1135_v44 = vld [vmem:[#allocation2 + $0x20] sm:$0xff]  ;;  %v1207_v49 = vmul.f32 %v2516_v35, %v1136_v45  ;;  %v1208_v50 = vmul.f32 %v2516_v35, %v1137_v46  ;;  %v1209_v55 = vmul.f32 %v2516_v35, %v1138_v51  ;;  %v1140_v5 = vld [vmem:[#allocation2 + $0x48] sm:$0xff]  ;;  %v1141_v6 = vld [vmem:[#allocation2 + $0x50] sm:$0xff] }
 0x13e   : > { %v1273_v47 = vadd.f32 %v2521_v36, %v1202_v37  ;;  %v1206_v48 = vmul.f32 %v2516_v35, %v1135_v44  ;;  %v1274_v52 = vadd.f32 %v2521_v36, %v1203_v41  ;;  %v1275_v53 = vadd.f32 %v2521_v36, %v1204_v42  ;;  %v1139_v0 = vld [vmem:[#allocation2 + $0x40] sm:$0xff]  ;;  %v1142_v7 = vld [vmem:[#allocation2 + $0x58] sm:$0xff]  ;;  %v1144_v13 = vld [vmem:[#allocation2 + $0x68] sm:$0xff] }
 0x13f   : > { %v1276_v54 = vadd.f32 %v2521_v36, %v1205_v43  ;;  %v1278_v58 = vadd.f32 %v2521_v36, %v1207_v49  ;;  %v1279_v59 = vadd.f32 %v2521_v36, %v1208_v50  ;;  %v1280_v63 = vadd.f32 %v2521_v36, %v1209_v55  ;;  %v1143_v12 = vld [vmem:[#allocation2 + $0x60] sm:$0xff]  ;;  %v1145_v14 = vld [vmem:[#allocation2 + $0x70] sm:$0xff]  ;;  %v1146_v19 = vld [vmem:[#allocation2 + $0x78] sm:$0xff] }
 0x140   : > { %v1337_v56 = vmax.f32 %v1273_v47, 0.0  ;;  %v1277_v57 = vadd.f32 %v2521_v36, %v1206_v48  ;;  %v1338_v60 = vmax.f32 %v1274_v52, 0.0  ;;  %v1339_v61 = vmax.f32 %v1275_v53, 0.0  ;;  %v1147_v42 = vld [vmem:[#allocation2 + $0x80] sm:$0xff]  ;;  %v1148_v47 = vld [vmem:[#allocation2 + $0x88] sm:$0xff]  ;;  %v1149_v48 = vld [vmem:[#allocation2 + $0x90] sm:$0xff] }
 0x141   : > { %v1340_v62 = vmax.f32 %v1276_v54, 0.0  ;;  %v1342_v3 = vmax.f32 %v1278_v58, 0.0  ;;  %v1343_v4 = vmax.f32 %v1279_v59, 0.0  ;;  %v1344_v11 = vmax.f32 %v1280_v63, 0.0  ;;  %v1150_v49 = vld [vmem:[#allocation2 + $0x98] sm:$0xff]  ;;  %v1151_v54 = vld [vmem:[#allocation2 + $0xa0] sm:$0xff] }
 0x142   : > { %v1949_v1 = vpack.c.bf16 %v1337_v56, %v1337_v56  ;;  %v1341_v2 = vmax.f32 %v1277_v57, 0.0  ;;  %v1950_v8 = vpack.c.bf16 %v1338_v60, %v1338_v60  ;;  %v1951_v9 = vpack.c.bf16 %v1339_v61, %v1339_v61  ;;  %v1152_v55 = vld [vmem:[#allocation2 + $0xa8] sm:$0xff]  ;;  %v1153_v56 = vld [vmem:[#allocation2 + $0xb0] sm:$0xff]  ;;  %v1154_v61 = vld [vmem:[#allocation2 + $0xb8] sm:$0xff] }
 0x143   : > { %v1952_v10 = vpack.c.bf16 %v1340_v62, %v1340_v62  ;;  %v1954_v16 = vpack.c.bf16 %v1342_v3, %v1342_v3  ;;  %v1955_v17 = vpack.c.bf16 %v1343_v4, %v1343_v4  ;;  %v1210_v18 = vmul.f32 %v2516_v35, %v1139_v0 }
 0x144   : > { %1658 = vst.msk [vmem:[%s2920_s4] sm:$0xf] %vm1657_vm2, %v1949_v1  ;;  %v1953_v15 = vpack.c.bf16 %v1341_v2, %v1341_v2  ;;  %1659 = vst.msk [vmem:[%s2920_s4 + $0x4] sm:$0xf] %vm1657_vm2, %v1950_v8  ;;  %v1956_v20 = vpack.c.bf16 %v1344_v11, %v1344_v11  ;;  %v1211_v21 = vmul.f32 %v2516_v35, %v1140_v5 }
 0x145   : > { %1660 = vst.msk [vmem:[%s2920_s4 + $0x8] sm:$0xf] %vm1657_vm2, %v1951_v9  ;;  %1661 = vst.msk [vmem:[%s2920_s4 + $0xc] sm:$0xf] %vm1657_vm2, %v1952_v10  ;;  %v1212_v22 = vmul.f32 %v2516_v35, %v1141_v6  ;;  %v1213_v23 = vmul.f32 %v2516_v35, %v1142_v7  ;;  %v1281_v24 = vadd.f32 %v2521_v36, %v1210_v18  ;;  %v1155_v18 = vld [vmem:[#allocation2 + $0xc0] sm:$0xff] }
 0x146   : > { %1662 = vst.msk [vmem:[%s2920_s4 + $0x10] sm:$0xf] %vm1657_vm2, %v1953_v15  ;;  %1663 = vst.msk [vmem:[%s2920_s4 + $0x14] sm:$0xf] %vm1657_vm2, %v1954_v16  ;;  %v1214_v25 = vmul.f32 %v2516_v35, %v1143_v12  ;;  %v1215_v26 = vmul.f32 %v2516_v35, %v1144_v13  ;;  %v1216_v27 = vmul.f32 %v2516_v35, %v1145_v14 }
 0x147   : > { %1664 = vst.msk [vmem:[%s2920_s4 + $0x18] sm:$0xf] %vm1657_vm2, %v1955_v17  ;;  %1665 = vst.msk [vmem:[%s2920_s4 + $0x1c] sm:$0xf] %vm1657_vm2, %v1956_v20  ;;  %v1282_v28 = vadd.f32 %v2521_v36, %v1211_v21  ;;  %v1283_v29 = vadd.f32 %v2521_v36, %v1212_v22  ;;  %v1284_v30 = vadd.f32 %v2521_v36, %v1213_v23  ;;  %v1345_v32 = vmax.f32 %v1281_v24, 0.0  ;;  %v1156_v23 = vld [vmem:[#allocation2 + $0xc8] sm:$0xff] }
 0x148   : > { %v1217_v31 = vmul.f32 %v2516_v35, %v1146_v19  ;;  %v1285_v33 = vadd.f32 %v2521_v36, %v1214_v25  ;;  %v1286_v34 = vadd.f32 %v2521_v36, %v1215_v26  ;;  %v1287_v37 = vadd.f32 %v2521_v36, %v1216_v27  ;;  %v1157_v24 = vld [vmem:[#allocation2 + $0xd0] sm:$0xff]  ;;  %v1158_v25 = vld [vmem:[#allocation2 + $0xd8] sm:$0xff] }
 0x149   : > { %v1346_v38 = vmax.f32 %v1282_v28, 0.0  ;;  %v1347_v39 = vmax.f32 %v1283_v29, 0.0  ;;  %v1348_v40 = vmax.f32 %v1284_v30, 0.0  ;;  %v1957_v43 = vpack.c.bf16 %v1345_v32, %v1345_v32  ;;  %v1159_v30 = vld [vmem:[#allocation2 + $0xe0] sm:$0xff]  ;;  %v1161_v32 = vld [vmem:[#allocation2 + $0xf0] sm:$0xff] }
 0x14a   : > { %v1288_v41 = vadd.f32 %v2521_v36, %v1217_v31  ;;  %v1349_v44 = vmax.f32 %v1285_v33, 0.0  ;;  %v1350_v45 = vmax.f32 %v1286_v34, 0.0  ;;  %v1351_v46 = vmax.f32 %v1287_v37, 0.0  ;;  %v1160_v31 = vld [vmem:[#allocation2 + $0xe8] sm:$0xff] }
 0x14b   : > { %v1958_v50 = vpack.c.bf16 %v1346_v38, %v1346_v38  ;;  %v1959_v51 = vpack.c.bf16 %v1347_v39, %v1347_v39  ;;  %v1960_v52 = vpack.c.bf16 %v1348_v40, %v1348_v40  ;;  %1666 = vst.msk [vmem:[%s2920_s4 + $0x20] sm:$0xf] %vm1657_vm2, %v1957_v43  ;;  %v1218_v60 = vmul.f32 %v2516_v35, %v1147_v42  ;;  %v1162_v39 = vld [vmem:[#allocation2 + $0xf8] sm:$0xff] }
 0x14c   : > { %v1352_v53 = vmax.f32 %v1288_v41, 0.0  ;;  %v1961_v57 = vpack.c.bf16 %v1349_v44, %v1349_v44  ;;  %v1962_v58 = vpack.c.bf16 %v1350_v45, %v1350_v45  ;;  %v1963_v59 = vpack.c.bf16 %v1351_v46, %v1351_v46 }
 0x14d   : > { %1667 = vst.msk [vmem:[%s2920_s4 + $0x24] sm:$0xf] %vm1657_vm2, %v1958_v50  ;;  %1668 = vst.msk [vmem:[%s2920_s4 + $0x28] sm:$0xf] %vm1657_vm2, %v1959_v51  ;;  %v1219_v63 = vmul.f32 %v2516_v35, %v1148_v47  ;;  %v1220_v0 = vmul.f32 %v2516_v35, %v1149_v48  ;;  %v1221_v1 = vmul.f32 %v2516_v35, %v1150_v49 }
 0x14e   : > { %1669 = vst.msk [vmem:[%s2920_s4 + $0x2c] sm:$0xf] %vm1657_vm2, %v1960_v52  ;;  %v1964_v62 = vpack.c.bf16 %v1352_v53, %v1352_v53  ;;  %1670 = vst.msk [vmem:[%s2920_s4 + $0x30] sm:$0xf] %vm1657_vm2, %v1961_v57  ;;  %v1289_v2 = vadd.f32 %v2521_v36, %v1218_v60  ;;  %v1222_v3 = vmul.f32 %v2516_v35, %v1151_v54  ;;  %v1163_v60 = vld [vmem:[#allocation2 + $0x100] sm:$0xff] }
 0x14f   : > { %1671 = vst.msk [vmem:[%s2920_s4 + $0x34] sm:$0xf] %vm1657_vm2, %v1962_v58  ;;  %1672 = vst.msk [vmem:[%s2920_s4 + $0x38] sm:$0xf] %vm1657_vm2, %v1963_v59  ;;  %v1223_v4 = vmul.f32 %v2516_v35, %v1152_v55  ;;  %v1224_v5 = vmul.f32 %v2516_v35, %v1153_v56  ;;  %v1290_v6 = vadd.f32 %v2521_v36, %v1219_v63 }
 0x150   : > { %1673 = vst.msk [vmem:[%s2920_s4 + $0x3c] sm:$0xf] %vm1657_vm2, %v1964_v62  ;;  %v1291_v7 = vadd.f32 %v2521_v36, %v1220_v0  ;;  %v1292_v8 = vadd.f32 %v2521_v36, %v1221_v1  ;;  %v1225_v9 = vmul.f32 %v2516_v35, %v1154_v61  ;;  %v1353_v10 = vmax.f32 %v1289_v2, 0.0  ;;  %v1164_v1 = vld [vmem:[#allocation2 + $0x108] sm:$0xff]  ;;  %v1165_v2 = vld [vmem:[#allocation2 + $0x110] sm:$0xff] }
 0x151   : > { %v1293_v11 = vadd.f32 %v2521_v36, %v1222_v3  ;;  %v1294_v12 = vadd.f32 %v2521_v36, %v1223_v4  ;;  %v1295_v13 = vadd.f32 %v2521_v36, %v1224_v5  ;;  %v1354_v14 = vmax.f32 %v1290_v6, 0.0  ;;  %v1166_v3 = vld [vmem:[#allocation2 + $0x118] sm:$0xff] }
 0x152   : > { %v1355_v15 = vmax.f32 %v1291_v7, 0.0  ;;  %v1356_v16 = vmax.f32 %v1292_v8, 0.0  ;;  %v1296_v17 = vadd.f32 %v2521_v36, %v1225_v9  ;;  %v1965_v19 = vpack.c.bf16 %v1353_v10, %v1353_v10  ;;  %v1167_v8 = vld [vmem:[#allocation2 + $0x120] sm:$0xff]  ;;  %v1168_v9 = vld [vmem:[#allocation2 + $0x128] sm:$0xff]  ;;  %v1169_v10 = vld [vmem:[#allocation2 + $0x130] sm:$0xff] }
 0x153   : > { %v1357_v20 = vmax.f32 %v1293_v11, 0.0  ;;  %v1358_v21 = vmax.f32 %v1294_v12, 0.0  ;;  %v1359_v22 = vmax.f32 %v1295_v13, 0.0  ;;  %v1966_v26 = vpack.c.bf16 %v1354_v14, %v1354_v14 }
 0x154   : > { %v1967_v27 = vpack.c.bf16 %v1355_v15, %v1355_v15  ;;  %v1968_v28 = vpack.c.bf16 %v1356_v16, %v1356_v16  ;;  %v1360_v29 = vmax.f32 %v1296_v17, 0.0  ;;  %1674 = vst.msk [vmem:[%s2920_s4 + $0x40] sm:$0xf] %vm1657_vm2, %v1965_v19  ;;  %v1226_v38 = vmul.f32 %v2516_v35, %v1155_v18  ;;  %v1170_v15 = vld [vmem:[#allocation2 + $0x138] sm:$0xff] }
 0x155   : > { %v1969_v33 = vpack.c.bf16 %v1357_v20, %v1357_v20  ;;  %v1970_v34 = vpack.c.bf16 %v1358_v21, %v1358_v21  ;;  %v1971_v37 = vpack.c.bf16 %v1359_v22, %v1359_v22  ;;  %1675 = vst.msk [vmem:[%s2920_s4 + $0x44] sm:$0xf] %vm1657_vm2, %v1966_v26  ;;  %v1227_v41 = vmul.f32 %v2516_v35, %v1156_v23 }
 0x156   : > { %1676 = vst.msk [vmem:[%s2920_s4 + $0x48] sm:$0xf] %vm1657_vm2, %v1967_v27  ;;  %1677 = vst.msk [vmem:[%s2920_s4 + $0x4c] sm:$0xf] %vm1657_vm2, %v1968_v28  ;;  %v1972_v40 = vpack.c.bf16 %v1360_v29, %v1360_v29  ;;  %v1228_v42 = vmul.f32 %v2516_v35, %v1157_v24  ;;  %v1229_v43 = vmul.f32 %v2516_v35, %v1158_v25 }
 0x157   : > { %1678 = vst.msk [vmem:[%s2920_s4 + $0x50] sm:$0xf] %vm1657_vm2, %v1969_v33  ;;  %1679 = vst.msk [vmem:[%s2920_s4 + $0x54] sm:$0xf] %vm1657_vm2, %v1970_v34  ;;  %v1297_v44 = vadd.f32 %v2521_v36, %v1226_v38  ;;  %v1230_v45 = vmul.f32 %v2516_v35, %v1159_v30  ;;  %v1231_v46 = vmul.f32 %v2516_v35, %v1160_v31  ;;  %v1171_v38 = vld [vmem:[#allocation2 + $0x140] sm:$0xff] }
 0x158   : > { %1680 = vst.msk [vmem:[%s2920_s4 + $0x58] sm:$0xf] %vm1657_vm2, %v1971_v37  ;;  %v1232_v47 = vmul.f32 %v2516_v35, %v1161_v32  ;;  %1681 = vst.msk [vmem:[%s2920_s4 + $0x5c] sm:$0xf] %vm1657_vm2, %v1972_v40  ;;  %v1298_v48 = vadd.f32 %v2521_v36, %v1227_v41  ;;  %v1299_v49 = vadd.f32 %v2521_v36, %v1228_v42 }
 0x159   : > { %v1300_v50 = vadd.f32 %v2521_v36, %v1229_v43  ;;  %v1233_v51 = vmul.f32 %v2516_v35, %v1162_v39  ;;  %v1361_v52 = vmax.f32 %v1297_v44, 0.0  ;;  %v1301_v53 = vadd.f32 %v2521_v36, %v1230_v45  ;;  %v1172_v43 = vld [vmem:[#allocation2 + $0x148] sm:$0xff]  ;;  %v1173_v44 = vld [vmem:[#allocation2 + $0x150] sm:$0xff]  ;;  %v1174_v45 = vld [vmem:[#allocation2 + $0x158] sm:$0xff] }
 0x15a   : > { %v1302_v54 = vadd.f32 %v2521_v36, %v1231_v46  ;;  %v1303_v55 = vadd.f32 %v2521_v36, %v1232_v47  ;;  %v1362_v56 = vmax.f32 %v1298_v48, 0.0  ;;  %v1363_v57 = vmax.f32 %v1299_v49, 0.0 }
 0x15b   : > { %v1364_v58 = vmax.f32 %v1300_v50, 0.0  ;;  %v1304_v59 = vadd.f32 %v2521_v36, %v1233_v51  ;;  %v1973_v61 = vpack.c.bf16 %v1361_v52, %v1361_v52  ;;  %v1365_v62 = vmax.f32 %v1301_v53, 0.0  ;;  %v1175_v50 = vld [vmem:[#allocation2 + $0x160] sm:$0xff]  ;;  %v1176_v51 = vld [vmem:[#allocation2 + $0x168] sm:$0xff]  ;;  %v1177_v52 = vld [vmem:[#allocation2 + $0x170] sm:$0xff] }
 0x15c   : > { %v1366_v63 = vmax.f32 %v1302_v54, 0.0  ;;  %v1367_v0 = vmax.f32 %v1303_v55, 0.0  ;;  %v1974_v4 = vpack.c.bf16 %v1362_v56, %v1362_v56  ;;  %v1975_v5 = vpack.c.bf16 %v1363_v57, %v1363_v57  ;;  %v1178_v57 = vld [vmem:[#allocation2 + $0x178] sm:$0xff] }
 0x15d   : > { %v1976_v6 = vpack.c.bf16 %v1364_v58, %v1364_v58  ;;  %v1368_v7 = vmax.f32 %v1304_v59, 0.0  ;;  %1682 = vst.msk [vmem:[%s2920_s4 + $0x60] sm:$0xf] %vm1657_vm2, %v1973_v61  ;;  %v1977_v11 = vpack.c.bf16 %v1365_v62, %v1365_v62  ;;  %v1234_v14 = vmul.f32 %v2516_v35, %v1163_v60 }
 0x15e   : > { %v1978_v12 = vpack.c.bf16 %v1366_v63, %v1366_v63  ;;  %v1979_v13 = vpack.c.bf16 %v1367_v0, %v1367_v0  ;;  %1683 = vst.msk [vmem:[%s2920_s4 + $0x64] sm:$0xf] %vm1657_vm2, %v1974_v4  ;;  %1684 = vst.msk [vmem:[%s2920_s4 + $0x68] sm:$0xf] %vm1657_vm2, %v1975_v5  ;;  %v1235_v17 = vmul.f32 %v2516_v35, %v1164_v1 }
 0x15f   : > { %1685 = vst.msk [vmem:[%s2920_s4 + $0x6c] sm:$0xf] %vm1657_vm2, %v1976_v6  ;;  %v1980_v16 = vpack.c.bf16 %v1368_v7, %v1368_v7  ;;  %v1236_v18 = vmul.f32 %v2516_v35, %v1165_v2  ;;  %v1237_v19 = vmul.f32 %v2516_v35, %v1166_v3  ;;  %1686 = vst.msk [vmem:[%s2920_s4 + $0x70] sm:$0xf] %vm1657_vm2, %v1977_v11 }
 0x160   : > { %1687 = vst.msk [vmem:[%s2920_s4 + $0x74] sm:$0xf] %vm1657_vm2, %v1978_v12  ;;  %1688 = vst.msk [vmem:[%s2920_s4 + $0x78] sm:$0xf] %vm1657_vm2, %v1979_v13  ;;  %v1305_v20 = vadd.f32 %v2521_v36, %v1234_v14  ;;  %v1238_v21 = vmul.f32 %v2516_v35, %v1167_v8  ;;  %v1239_v22 = vmul.f32 %v2516_v35, %v1168_v9  ;;  %v1179_v14 = vld [vmem:[#allocation2 + $0x180] sm:$0xff] }
 0x161   : > { %v1240_v23 = vmul.f32 %v2516_v35, %v1169_v10  ;;  %1689 = vst.msk [vmem:[%s2920_s4 + $0x7c] sm:$0xf] %vm1657_vm2, %v1980_v16  ;;  %v1306_v24 = vadd.f32 %v2521_v36, %v1235_v17  ;;  %v1307_v25 = vadd.f32 %v2521_v36, %v1236_v18  ;;  %v1308_v26 = vadd.f32 %v2521_v36, %v1237_v19  ;;  %v1180_v19 = vld [vmem:[#allocation2 + $0x188] sm:$0xff] }
 0x162   : > { %v1241_v27 = vmul.f32 %v2516_v35, %v1170_v15  ;;  %v1369_v28 = vmax.f32 %v1305_v20, 0.0  ;;  %v1309_v29 = vadd.f32 %v2521_v36, %v1238_v21  ;;  %v1310_v30 = vadd.f32 %v2521_v36, %v1239_v22  ;;  %v1181_v20 = vld [vmem:[#allocation2 + $0x190] sm:$0xff]  ;;  %v1182_v21 = vld [vmem:[#allocation2 + $0x198] sm:$0xff] }
 0x163   : > { %v1311_v31 = vadd.f32 %v2521_v36, %v1240_v23  ;;  %v1370_v32 = vmax.f32 %v1306_v24, 0.0  ;;  %v1371_v33 = vmax.f32 %v1307_v25, 0.0  ;;  %v1372_v34 = vmax.f32 %v1308_v26, 0.0  ;;  %v1183_v26 = vld [vmem:[#allocation2 + $0x1a0] sm:$0xff] }
 0x164   : > { %v1312_v37 = vadd.f32 %v2521_v36, %v1241_v27  ;;  %v1981_v39 = vpack.c.bf16 %v1369_v28, %v1369_v28  ;;  %v1373_v40 = vmax.f32 %v1309_v29, 0.0  ;;  %v1374_v41 = vmax.f32 %v1310_v30, 0.0  ;;  %v1184_v27 = vld [vmem:[#allocation2 + $0x1a8] sm:$0xff]  ;;  %v1185_v28 = vld [vmem:[#allocation2 + $0x1b0] sm:$0xff] }
 0x165   : > { %v1375_v42 = vmax.f32 %v1311_v31, 0.0  ;;  %v1982_v46 = vpack.c.bf16 %v1370_v32, %v1370_v32  ;;  %v1983_v47 = vpack.c.bf16 %v1371_v33, %v1371_v33  ;;  %v1984_v48 = vpack.c.bf16 %v1372_v34, %v1372_v34  ;;  %v1186_v33 = vld [vmem:[#allocation2 + $0x1b8] sm:$0xff] }
 0x166   : > { %v1376_v49 = vmax.f32 %v1312_v37, 0.0  ;;  %1690 = vst.msk [vmem:[%s2920_s4 + $0x80] sm:$0xf] %vm1657_vm2, %v1981_v39  ;;  %v1985_v53 = vpack.c.bf16 %v1373_v40, %v1373_v40  ;;  %v1986_v54 = vpack.c.bf16 %v1374_v41, %v1374_v41  ;;  %v1242_v56 = vmul.f32 %v2516_v35, %v1171_v38 }
 0x167   : > { %v1987_v55 = vpack.c.bf16 %v1375_v42, %v1375_v42  ;;  %1691 = vst.msk [vmem:[%s2920_s4 + $0x84] sm:$0xf] %vm1657_vm2, %v1982_v46  ;;  %1692 = vst.msk [vmem:[%s2920_s4 + $0x88] sm:$0xf] %vm1657_vm2, %v1983_v47  ;;  %v1243_v59 = vmul.f32 %v2516_v35, %v1172_v43  ;;  %v1244_v60 = vmul.f32 %v2516_v35, %v1173_v44 }
 0x168   : > { %1693 = vst.msk [vmem:[%s2920_s4 + $0x8c] sm:$0xf] %vm1657_vm2, %v1984_v48  ;;  %v1988_v58 = vpack.c.bf16 %v1376_v49, %v1376_v49  ;;  %v1245_v61 = vmul.f32 %v2516_v35, %v1174_v45  ;;  %1694 = vst.msk [vmem:[%s2920_s4 + $0x90] sm:$0xf] %vm1657_vm2, %v1985_v53  ;;  %v1313_v62 = vadd.f32 %v2521_v36, %v1242_v56  ;;  %v1187_v56 = vld [vmem:[#allocation2 + $0x1c0] sm:$0xff] }
 0x169   : > { %1695 = vst.msk [vmem:[%s2920_s4 + $0x94] sm:$0xf] %vm1657_vm2, %v1986_v54  ;;  %1696 = vst.msk [vmem:[%s2920_s4 + $0x98] sm:$0xf] %vm1657_vm2, %v1987_v55  ;;  %v1246_v63 = vmul.f32 %v2516_v35, %v1175_v50  ;;  %v1247_v0 = vmul.f32 %v2516_v35, %v1176_v51  ;;  %v1248_v1 = vmul.f32 %v2516_v35, %v1177_v52 }
 0x16a   : > { %1697 = vst.msk [vmem:[%s2920_s4 + $0x9c] sm:$0xf] %vm1657_vm2, %v1988_v58  ;;  %v1314_v2 = vadd.f32 %v2521_v36, %v1243_v59  ;;  %v1315_v3 = vadd.f32 %v2521_v36, %v1244_v60  ;;  %v1316_v4 = vadd.f32 %v2521_v36, %v1245_v61  ;;  %v1249_v5 = vmul.f32 %v2516_v35, %v1178_v57  ;;  %v1188_v61 = vld [vmem:[#allocation2 + $0x1c8] sm:$0xff] }
 0x16b   : > { %v1377_v6 = vmax.f32 %v1313_v62, 0.0  ;;  %v1317_v7 = vadd.f32 %v2521_v36, %v1246_v63  ;;  %v1318_v8 = vadd.f32 %v2521_v36, %v1247_v0  ;;  %v1319_v9 = vadd.f32 %v2521_v36, %v1248_v1  ;;  %v1189_v62 = vld [vmem:[#allocation2 + $0x1d0] sm:$0xff]  ;;  %v1190_v63 = vld [vmem:[#allocation2 + $0x1d8] sm:$0xff] }
 0x16c   : > { %v1378_v10 = vmax.f32 %v1314_v2, 0.0  ;;  %v1379_v11 = vmax.f32 %v1315_v3, 0.0  ;;  %v1380_v12 = vmax.f32 %v1316_v4, 0.0  ;;  %v1320_v13 = vadd.f32 %v2521_v36, %v1249_v5  ;;  %v1191_v4 = vld [vmem:[#allocation2 + $0x1e0] sm:$0xff]  ;;  %v1192_v5 = vld [vmem:[#allocation2 + $0x1e8] sm:$0xff] }
 0x16d   : > { %v1989_v15 = vpack.c.bf16 %v1377_v6, %v1377_v6  ;;  %v1381_v16 = vmax.f32 %v1317_v7, 0.0  ;;  %v1382_v17 = vmax.f32 %v1318_v8, 0.0  ;;  %v1383_v18 = vmax.f32 %v1319_v9, 0.0  ;;  %v1193_v6 = vld [vmem:[#allocation2 + $0x1f0] sm:$0xff] }
 0x16e   : > { %v1990_v22 = vpack.c.bf16 %v1378_v10, %v1378_v10  ;;  %v1991_v23 = vpack.c.bf16 %v1379_v11, %v1379_v11  ;;  %v1992_v24 = vpack.c.bf16 %v1380_v12, %v1380_v12  ;;  %v1384_v25 = vmax.f32 %v1320_v13, 0.0  ;;  %v1194_v11 = vld [vmem:[#allocation2 + $0x1f8] sm:$0xff] }
 0x16f   : > { %1698 = vst.msk [vmem:[%s2920_s4 + $0xa0] sm:$0xf] %vm1657_vm2, %v1989_v15  ;;  %v1993_v29 = vpack.c.bf16 %v1381_v16, %v1381_v16  ;;  %v1994_v30 = vpack.c.bf16 %v1382_v17, %v1382_v17  ;;  %v1995_v31 = vpack.c.bf16 %v1383_v18, %v1383_v18  ;;  %v1250_v32 = vmul.f32 %v2516_v35, %v1179_v14 }
 0x170   : > { %1699 = vst.msk [vmem:[%s2920_s4 + $0xa4] sm:$0xf] %vm1657_vm2, %v1990_v22  ;;  %1700 = vst.msk [vmem:[%s2920_s4 + $0xa8] sm:$0xf] %vm1657_vm2, %v1991_v23  ;;  %v1996_v34 = vpack.c.bf16 %v1384_v25, %v1384_v25  ;;  %v1251_v37 = vmul.f32 %v2516_v35, %v1180_v19  ;;  %v1252_v38 = vmul.f32 %v2516_v35, %v1181_v20 }
 0x171   : > { %1701 = vst.msk [vmem:[%s2920_s4 + $0xac] sm:$0xf] %vm1657_vm2, %v1992_v24  ;;  %v1253_v39 = vmul.f32 %v2516_v35, %v1182_v21  ;;  %1702 = vst.msk [vmem:[%s2920_s4 + $0xb0] sm:$0xf] %vm1657_vm2, %v1993_v29  ;;  %v1321_v40 = vadd.f32 %v2521_v36, %v1250_v32  ;;  %v1254_v41 = vmul.f32 %v2516_v35, %v1183_v26 }
 0x172   : > { %1703 = vst.msk [vmem:[%s2920_s4 + $0xb4] sm:$0xf] %vm1657_vm2, %v1994_v30  ;;  %1704 = vst.msk [vmem:[%s2920_s4 + $0xb8] sm:$0xf] %vm1657_vm2, %v1995_v31  ;;  %v1255_v42 = vmul.f32 %v2516_v35, %v1184_v27  ;;  %v1256_v43 = vmul.f32 %v2516_v35, %v1185_v28  ;;  %v1322_v44 = vadd.f32 %v2521_v36, %v1251_v37 }
 0x173   : > { %1705 = vst.msk [vmem:[%s2920_s4 + $0xbc] sm:$0xf] %vm1657_vm2, %v1996_v34  ;;  %v1323_v45 = vadd.f32 %v2521_v36, %v1252_v38  ;;  %v1324_v46 = vadd.f32 %v2521_v36, %v1253_v39  ;;  %v1257_v47 = vmul.f32 %v2516_v35, %v1186_v33  ;;  %v1385_v48 = vmax.f32 %v1321_v40, 0.0 }
 0x174   : > { %v1325_v49 = vadd.f32 %v2521_v36, %v1254_v41  ;;  %v1326_v50 = vadd.f32 %v2521_v36, %v1255_v42  ;;  %v1327_v51 = vadd.f32 %v2521_v36, %v1256_v43  ;;  %v1386_v52 = vmax.f32 %v1322_v44, 0.0 }
 0x175   : > { %v1387_v53 = vmax.f32 %v1323_v45, 0.0  ;;  %v1388_v54 = vmax.f32 %v1324_v46, 0.0  ;;  %v1328_v55 = vadd.f32 %v2521_v36, %v1257_v47  ;;  %v1997_v57 = vpack.c.bf16 %v1385_v48, %v1385_v48 }
 0x176   : > { %v1389_v58 = vmax.f32 %v1325_v49, 0.0  ;;  %v1390_v59 = vmax.f32 %v1326_v50, 0.0  ;;  %v1391_v60 = vmax.f32 %v1327_v51, 0.0  ;;  %v1998_v0 = vpack.c.bf16 %v1386_v52, %v1386_v52 }
 0x177   : > { %v1999_v1 = vpack.c.bf16 %v1387_v53, %v1387_v53  ;;  %v2000_v2 = vpack.c.bf16 %v1388_v54, %v1388_v54  ;;  %v1392_v3 = vmax.f32 %v1328_v55, 0.0  ;;  %1706 = vst.msk [vmem:[%s2920_s4 + $0xc0] sm:$0xf] %vm1657_vm2, %v1997_v57  ;;  %v1258_v10 = vmul.f32 %v2516_v35, %v1187_v56 }
 0x178   : > { %v2001_v7 = vpack.c.bf16 %v1389_v58, %v1389_v58  ;;  %v2002_v8 = vpack.c.bf16 %v1390_v59, %v1390_v59  ;;  %v2003_v9 = vpack.c.bf16 %v1391_v60, %v1391_v60  ;;  %1707 = vst.msk [vmem:[%s2920_s4 + $0xc4] sm:$0xf] %vm1657_vm2, %v1998_v0  ;;  %v1259_v13 = vmul.f32 %v2516_v35, %v1188_v61 }
 0x179   : > { %1708 = vst.msk [vmem:[%s2920_s4 + $0xc8] sm:$0xf] %vm1657_vm2, %v1999_v1  ;;  %1709 = vst.msk [vmem:[%s2920_s4 + $0xcc] sm:$0xf] %vm1657_vm2, %v2000_v2  ;;  %v2004_v12 = vpack.c.bf16 %v1392_v3, %v1392_v3  ;;  %v1260_v14 = vmul.f32 %v2516_v35, %v1189_v62  ;;  %v1261_v15 = vmul.f32 %v2516_v35, %v1190_v63 }
 0x17a   : > { %1710 = vst.msk [vmem:[%s2920_s4 + $0xd0] sm:$0xf] %vm1657_vm2, %v2001_v7  ;;  %1711 = vst.msk [vmem:[%s2920_s4 + $0xd4] sm:$0xf] %vm1657_vm2, %v2002_v8  ;;  %v1329_v16 = vadd.f32 %v2521_v36, %v1258_v10  ;;  %v1262_v17 = vmul.f32 %v2516_v35, %v1191_v4  ;;  %v1263_v18 = vmul.f32 %v2516_v35, %v1192_v5 }
 0x17b   : > { %1712 = vst.msk [vmem:[%s2920_s4 + $0xd8] sm:$0xf] %vm1657_vm2, %v2003_v9  ;;  %v1264_v19 = vmul.f32 %v2516_v35, %v1193_v6  ;;  %1713 = vst.msk [vmem:[%s2920_s4 + $0xdc] sm:$0xf] %vm1657_vm2, %v2004_v12  ;;  %v1330_v20 = vadd.f32 %v2521_v36, %v1259_v13  ;;  %v1331_v21 = vadd.f32 %v2521_v36, %v1260_v14 }
 0x17c   : > { %v1332_v22 = vadd.f32 %v2521_v36, %v1261_v15  ;;  %v1265_v23 = vmul.f32 %v2516_v35, %v1194_v11  ;;  %v1393_v24 = vmax.f32 %v1329_v16, 0.0  ;;  %v1333_v25 = vadd.f32 %v2521_v36, %v1262_v17 }
 0x17d   : > { %v1334_v26 = vadd.f32 %v2521_v36, %v1263_v18  ;;  %v1335_v27 = vadd.f32 %v2521_v36, %v1264_v19  ;;  %v1394_v28 = vmax.f32 %v1330_v20, 0.0  ;;  %v1395_v29 = vmax.f32 %v1331_v21, 0.0 }
 0x17e   : > { %v1396_v30 = vmax.f32 %v1332_v22, 0.0  ;;  %v1336_v31 = vadd.f32 %v2521_v36, %v1265_v23  ;;  %v2005_v32 = vpack.c.bf16 %v1393_v24, %v1393_v24  ;;  %v1397_v33 = vmax.f32 %v1333_v25, 0.0 }
 0x17f   : > { %v1398_v34 = vmax.f32 %v1334_v26, 0.0  ;;  %v1399_v37 = vmax.f32 %v1335_v27, 0.0  ;;  %v2006_v38 = vpack.c.bf16 %v1394_v28, %v1394_v28  ;;  %v2007_v39 = vpack.c.bf16 %v1395_v29, %v1395_v29 }
 0x180   : > { %v2008_v40 = vpack.c.bf16 %v1396_v30, %v1396_v30  ;;  %v1400_v35 = vmax.f32 %v1336_v31, 0.0  ;;  %1714 = vst.msk [vmem:[%s2920_s4 + $0xe0] sm:$0xf] %vm1657_vm2, %v2005_v32  ;;  %v2009_v41 = vpack.c.bf16 %v1397_v33, %v1397_v33 }
 0x181   : > { %v2010_v42 = vpack.c.bf16 %v1398_v34, %v1398_v34  ;;  %v2011_v43 = vpack.c.bf16 %v1399_v37, %v1399_v37  ;;  %1715 = vst.msk [vmem:[%s2920_s4 + $0xe4] sm:$0xf] %vm1657_vm2, %v2006_v38  ;;  %1716 = vst.msk [vmem:[%s2920_s4 + $0xe8] sm:$0xf] %vm1657_vm2, %v2007_v39 }
 0x182   : > { %1717 = vst.msk [vmem:[%s2920_s4 + $0xec] sm:$0xf] %vm1657_vm2, %v2008_v40  ;;  %v2012_v36 = vpack.c.bf16 %v1400_v35, %v1400_v35  ;;  %1718 = vst.msk [vmem:[%s2920_s4 + $0xf0] sm:$0xf] %vm1657_vm2, %v2009_v41 }
 0x183   : > { %1719 = vst.msk [vmem:[%s2920_s4 + $0xf4] sm:$0xf] %vm1657_vm2, %v2010_v42  ;;  %1720 = vst.msk [vmem:[%s2920_s4 + $0xf8] sm:$0xf] %vm1657_vm2, %v2011_v43 }
 0x184   : > { %1721 = vst.msk [vmem:[%s2920_s4 + $0xfc] sm:$0xf] %vm1657_vm2, %v2012_v36 }
 0x185 PF: > { %s14_s17 = sadd.s32 1, %s2194_s17   ;;  %s2921_s15 = smov %s2190_s16 }
 0x186   : > { %p11_p7 = scmp.ge.s32.totalorder %s14_s17, 11   ;;  %s2922_s16 = smov %s2924_s18 }
 0x188   :  { %13 = sbr.rel (!%p11_p7) target bundleno = 2 (0x2), region = 77 }

// kernel: _lambda_.16
= control target key start
LH: loop header
LB: loop body
LE: loop exit
PB: predicated region body
PF: predicated region fallthrough
CT: control target
= control target key end

     0   :  { %s1971_s18 = smov 0   ;;  %s1973_s19 = smov 0   ;;  %s2857_s0 = inlined_call_operand.vmem [shape: bf16[9,512,16], index: 0, kind: input, shape index: {}]   ;;  %s2858_s1 = inlined_call_operand.vmem [shape: bf16[9,16,16], index: 1, kind: input, shape index: {}]   ;;  %s2859_s2 = inlined_call_operand.vmem [shape: f32[1,16], index: 2, kind: input, shape index: {}]   ;;  %s2860_s3 = inlined_call_operand.vmem [shape: f32[1,16], index: 3, kind: input, shape index: {}]   ;;  %s2861_s4 = inlined_call_operand.vmem [shape: f32[512,16], index: 4, kind: input, shape index: {}]   ;;  %s2862_s5 = inlined_call_operand.vmem [shape: f32[512,16], index: 5, kind: output, shape index: {}]  }
   0x1   :  { %s1975_s20 = smov 0  }
   0x2 LB: > { %s24_s21 = sadd.s32 1, %s1934_s19  ;;  %p1677_p0 = scmp.ge.s32.totalorder %s1938_s20, 1  ;;  %s1938_s20 = sphi %s1975_s20, %s15_s20   ;;  %s1934_s19 = sphi %s1973_s19, %s2864_s19   ;;  %s1930_s18 = sphi %s1971_s18, %s2863_s18  }
   0x3   : > { %p25_p1 = scmp.ge.s32.totalorder %s24_s21, 9  ;;  %p227_p2 = scmp.lt.s32.totalorder %s1938_s20, 10 }
   0x5   : > { %s2866_s21 = smov (%p25_p1, %s24_s21), 0  ;;  %p228_p3 = pnand %p1677_p0, %p227_p2 }
   0x6   : > { %p270_p4 = scmp.lt.s32.totalorder (!%p228_p3), %s1930_s18, 8  ;;  %p1682_p5 = scmp.ne.s32.totalorder (!%p228_p3), %s1930_s18, 0 }
   0x7   : > { %231 = sbr.rel (%p228_p3) target bundleno = 372 (0x174), region = 40 }
   0xc   : > { %s271_s22 = scalar_select %p270_p4, %s1930_s18, 8 }
   0xd   : > { %300 = sbr.rel (%p1682_p5) target bundleno = 51 (0x33), region = 44 }
   0xe   : > { %s1755_s23 = sshll.u32 %s271_s22, 8  ;;  %s1756_s24 = sshll.u32 %s271_s22, 3 }
   0xf   : > { %s1996_s27 = scalar_lea.vmem %s2857_s0, %s1755_s23  ;;  %s2001_s30 = scalar_lea.vmem %s2858_s1, %s1756_s24 }
  0x12   : > { %vm301_vm0 = vcmask 130048   ;;  %v1940_v0 = vmov 0.0  }
  0x13   : > { %302 = vst.msk [vmem:[#allocation2] sm:$0xff] %vm301_vm0, %v1940_v0  ;;  %303 = vst.msk [vmem:[#allocation2 + $0x8] sm:$0xff] %vm301_vm0, %v1940_v0 }
  0x14   : > { %304 = vst.msk [vmem:[#allocation2 + $0x10] sm:$0xff] %vm301_vm0, %v1940_v0  ;;  %305 = vst.msk [vmem:[#allocation2 + $0x18] sm:$0xff] %vm301_vm0, %v1940_v0 }
  0x15   : > { %306 = vst.msk [vmem:[#allocation2 + $0x20] sm:$0xff] %vm301_vm0, %v1940_v0  ;;  %307 = vst.msk [vmem:[#allocation2 + $0x28] sm:$0xff] %vm301_vm0, %v1940_v0 }
  0x16   : > { %308 = vst.msk [vmem:[#allocation2 + $0x30] sm:$0xff] %vm301_vm0, %v1940_v0  ;;  %309 = vst.msk [vmem:[#allocation2 + $0x38] sm:$0xff] %vm301_vm0, %v1940_v0 }
  0x17   : > { %310 = vst.msk [vmem:[#allocation2 + $0x40] sm:$0xff] %vm301_vm0, %v1940_v0  ;;  %311 = vst.msk [vmem:[#allocation2 + $0x48] sm:$0xff] %vm301_vm0, %v1940_v0 }
  0x18   : > { %312 = vst.msk [vmem:[#allocation2 + $0x50] sm:$0xff] %vm301_vm0, %v1940_v0  ;;  %313 = vst.msk [vmem:[#allocation2 + $0x58] sm:$0xff] %vm301_vm0, %v1940_v0 }
  0x19   : > { %314 = vst.msk [vmem:[#allocation2 + $0x60] sm:$0xff] %vm301_vm0, %v1940_v0  ;;  %315 = vst.msk [vmem:[#allocation2 + $0x68] sm:$0xff] %vm301_vm0, %v1940_v0 }
  0x1a   : > { %316 = vst.msk [vmem:[#allocation2 + $0x70] sm:$0xff] %vm301_vm0, %v1940_v0  ;;  %317 = vst.msk [vmem:[#allocation2 + $0x78] sm:$0xff] %vm301_vm0, %v1940_v0 }
  0x1b   : > { %318 = vst.msk [vmem:[#allocation2 + $0x80] sm:$0xff] %vm301_vm0, %v1940_v0  ;;  %319 = vst.msk [vmem:[#allocation2 + $0x88] sm:$0xff] %vm301_vm0, %v1940_v0 }
  0x1c   : > { %320 = vst.msk [vmem:[#allocation2 + $0x90] sm:$0xff] %vm301_vm0, %v1940_v0  ;;  %321 = vst.msk [vmem:[#allocation2 + $0x98] sm:$0xff] %vm301_vm0, %v1940_v0 }
  0x1d   : > { %322 = vst.msk [vmem:[#allocation2 + $0xa0] sm:$0xff] %vm301_vm0, %v1940_v0  ;;  %323 = vst.msk [vmem:[#allocation2 + $0xa8] sm:$0xff] %vm301_vm0, %v1940_v0 }
  0x1e   : > { %324 = vst.msk [vmem:[#allocation2 + $0xb0] sm:$0xff] %vm301_vm0, %v1940_v0  ;;  %325 = vst.msk [vmem:[#allocation2 + $0xb8] sm:$0xff] %vm301_vm0, %v1940_v0 }
  0x1f   : > { %326 = vst.msk [vmem:[#allocation2 + $0xc0] sm:$0xff] %vm301_vm0, %v1940_v0  ;;  %327 = vst.msk [vmem:[#allocation2 + $0xc8] sm:$0xff] %vm301_vm0, %v1940_v0 }
  0x20   : > { %328 = vst.msk [vmem:[#allocation2 + $0xd0] sm:$0xff] %vm301_vm0, %v1940_v0  ;;  %329 = vst.msk [vmem:[#allocation2 + $0xd8] sm:$0xff] %vm301_vm0, %v1940_v0 }
  0x21   : > { %330 = vst.msk [vmem:[#allocation2 + $0xe0] sm:$0xff] %vm301_vm0, %v1940_v0  ;;  %331 = vst.msk [vmem:[#allocation2 + $0xe8] sm:$0xff] %vm301_vm0, %v1940_v0 }
  0x22   : > { %332 = vst.msk [vmem:[#allocation2 + $0xf0] sm:$0xff] %vm301_vm0, %v1940_v0  ;;  %333 = vst.msk [vmem:[#allocation2 + $0xf8] sm:$0xff] %vm301_vm0, %v1940_v0 }
  0x23   : > { %334 = vst.msk [vmem:[#allocation2 + $0x100] sm:$0xff] %vm301_vm0, %v1940_v0  ;;  %335 = vst.msk [vmem:[#allocation2 + $0x108] sm:$0xff] %vm301_vm0, %v1940_v0 }
  0x24   : > { %336 = vst.msk [vmem:[#allocation2 + $0x110] sm:$0xff] %vm301_vm0, %v1940_v0  ;;  %337 = vst.msk [vmem:[#allocation2 + $0x118] sm:$0xff] %vm301_vm0, %v1940_v0 }
  0x25   : > { %338 = vst.msk [vmem:[#allocation2 + $0x120] sm:$0xff] %vm301_vm0, %v1940_v0  ;;  %339 = vst.msk [vmem:[#allocation2 + $0x128] sm:$0xff] %vm301_vm0, %v1940_v0 }
  0x26   : > { %340 = vst.msk [vmem:[#allocation2 + $0x130] sm:$0xff] %vm301_vm0, %v1940_v0  ;;  %341 = vst.msk [vmem:[#allocation2 + $0x138] sm:$0xff] %vm301_vm0, %v1940_v0 }
  0x27   : > { %342 = vst.msk [vmem:[#allocation2 + $0x140] sm:$0xff] %vm301_vm0, %v1940_v0  ;;  %343 = vst.msk [vmem:[#allocation2 + $0x148] sm:$0xff] %vm301_vm0, %v1940_v0 }
  0x28   : > { %344 = vst.msk [vmem:[#allocation2 + $0x150] sm:$0xff] %vm301_vm0, %v1940_v0  ;;  %345 = vst.msk [vmem:[#allocation2 + $0x158] sm:$0xff] %vm301_vm0, %v1940_v0 }
  0x29   : > { %346 = vst.msk [vmem:[#allocation2 + $0x160] sm:$0xff] %vm301_vm0, %v1940_v0  ;;  %347 = vst.msk [vmem:[#allocation2 + $0x168] sm:$0xff] %vm301_vm0, %v1940_v0 }
  0x2a   : > { %348 = vst.msk [vmem:[#allocation2 + $0x170] sm:$0xff] %vm301_vm0, %v1940_v0  ;;  %349 = vst.msk [vmem:[#allocation2 + $0x178] sm:$0xff] %vm301_vm0, %v1940_v0 }
  0x2b   : > { %350 = vst.msk [vmem:[#allocation2 + $0x180] sm:$0xff] %vm301_vm0, %v1940_v0  ;;  %351 = vst.msk [vmem:[#allocation2 + $0x188] sm:$0xff] %vm301_vm0, %v1940_v0 }
  0x2c   : > { %352 = vst.msk [vmem:[#allocation2 + $0x190] sm:$0xff] %vm301_vm0, %v1940_v0  ;;  %353 = vst.msk [vmem:[#allocation2 + $0x198] sm:$0xff] %vm301_vm0, %v1940_v0 }
  0x2d   : > { %354 = vst.msk [vmem:[#allocation2 + $0x1a0] sm:$0xff] %vm301_vm0, %v1940_v0  ;;  %355 = vst.msk [vmem:[#allocation2 + $0x1a8] sm:$0xff] %vm301_vm0, %v1940_v0 }
  0x2e   : > { %356 = vst.msk [vmem:[#allocation2 + $0x1b0] sm:$0xff] %vm301_vm0, %v1940_v0  ;;  %357 = vst.msk [vmem:[#allocation2 + $0x1b8] sm:$0xff] %vm301_vm0, %v1940_v0 }
  0x2f   : > { %358 = vst.msk [vmem:[#allocation2 + $0x1c0] sm:$0xff] %vm301_vm0, %v1940_v0  ;;  %359 = vst.msk [vmem:[#allocation2 + $0x1c8] sm:$0xff] %vm301_vm0, %v1940_v0 }
  0x30   : > { %360 = vst.msk [vmem:[#allocation2 + $0x1d0] sm:$0xff] %vm301_vm0, %v1940_v0  ;;  %361 = vst.msk [vmem:[#allocation2 + $0x1d8] sm:$0xff] %vm301_vm0, %v1940_v0 }
  0x31   : > { %362 = vst.msk [vmem:[#allocation2 + $0x1e0] sm:$0xff] %vm301_vm0, %v1940_v0  ;;  %363 = vst.msk [vmem:[#allocation2 + $0x1e8] sm:$0xff] %vm301_vm0, %v1940_v0 }
  0x32   : > { %364 = vst.msk [vmem:[#allocation2 + $0x1f0] sm:$0xff] %vm301_vm0, %v1940_v0  ;;  %365 = vst.msk [vmem:[#allocation2 + $0x1f8] sm:$0xff] %vm301_vm0, %v1940_v0 }
  0x33 PF: > { %v1883_v1 = vld [vmem:[%s2001_s30] sm:$0xff]   ;;  %vm662_vm1 = vcmask 130048   ;;  %v1886_v4 = vld [vmem:[%s1996_s27 + $0x8] sm:$0xff]   ;;  %v1888_v6 = vld [vmem:[%s1996_s27 + $0x10] sm:$0xff]   ;;  %p1748_p6 = scmp.ne.s32.totalorder %s1930_s18, 8 }
  0x34   : > { %v1884_v2 = vld [vmem:[%s1996_s27] sm:$0xff]   ;;  %1790 = vmatprep.subr.bf16.mxu0 %v1883_v1  ;;  %1856 = vmatprep.subr.bf16.mxu1 %v1883_v1  ;;  %v1887_v5 = vld [vmem:[%s1996_s27 + $0x88] sm:$0xff]   ;;  %v1889_v7 = vld [vmem:[%s1996_s27 + $0x90] sm:$0xff]  }
  0x35   : > { %v1885_v3 = vld [vmem:[%s1996_s27 + $0x80] sm:$0xff]   ;;  %1791 = vmatpush3.bf16.msra.mxu0 %v1883_v1  ;;  %1857 = vmatpush3.bf16.msra.mxu1 %v1883_v1  ;;  %v1890_v8 = vld [vmem:[%s1996_s27 + $0x18] sm:$0xff]   ;;  %v1894_v12 = vld [vmem:[%s1996_s27 + $0x28] sm:$0xff]  }
  0x36   : > { %1792 = vmatprep.mubr.msk.bf16.mxu0 %vm662_vm1, %v1884_v2  ;;  %1824 = vmatprep.mubr.msk.bf16.mxu1 %vm662_vm1, %v1885_v3  ;;  %v1891_v9 = vld [vmem:[%s1996_s27 + $0x98] sm:$0xff]   ;;  %v1892_v10 = vld [vmem:[%s1996_s27 + $0x20] sm:$0xff]   ;;  %v1895_v13 = vld [vmem:[%s1996_s27 + $0xa8] sm:$0xff]  }
  0x37   : > { %v1893_v11 = vld [vmem:[%s1996_s27 + $0xa0] sm:$0xff]   ;;  %v1896_v14 = vld [vmem:[%s1996_s27 + $0x30] sm:$0xff]   ;;  %v1898_v16 = vld [vmem:[%s1996_s27 + $0x38] sm:$0xff]  }
  0x38   : > { %1793 = vmatmul.mubr.msk.bf16.vlgmr.msra.gmra.mxu0 %vm662_vm1, %v1886_v4  ;;  %1825 = vmatmul.mubr.msk.bf16.vlgmr.msra.gmra.mxu1 %vm662_vm1, %v1887_v5  ;;  %v1897_v15 = vld [vmem:[%s1996_s27 + $0xb0] sm:$0xff]   ;;  %v1899_v17 = vld [vmem:[%s1996_s27 + $0xb8] sm:$0xff]   ;;  %v1900_v18 = vld [vmem:[%s1996_s27 + $0x40] sm:$0xff]  }
  0x39   : > { %1796 = vmatprep.mubr.msk.bf16.mxu0 %vm662_vm1, %v1888_v6  ;;  %1828 = vmatprep.mubr.msk.bf16.mxu1 %vm662_vm1, %v1889_v7  ;;  %v1901_v19 = vld [vmem:[%s1996_s27 + $0xc0] sm:$0xff]   ;;  %v1902_v20 = vld [vmem:[%s1996_s27 + $0x48] sm:$0xff]   ;;  %v1904_v22 = vld [vmem:[%s1996_s27 + $0x50] sm:$0xff]  }
  0x3a   : > { %v1903_v21 = vld [vmem:[%s1996_s27 + $0xc8] sm:$0xff]   ;;  %v1905_v23 = vld [vmem:[%s1996_s27 + $0xd0] sm:$0xff]   ;;  %v1906_v24 = vld [vmem:[%s1996_s27 + $0x58] sm:$0xff]  }
  0x3b   : > { %v1907_v25 = vld [vmem:[%s1996_s27 + $0xd8] sm:$0xff]   ;;  %v1908_v26 = vld [vmem:[%s1996_s27 + $0x60] sm:$0xff]   ;;  %v1910_v28 = vld [vmem:[%s1996_s27 + $0x68] sm:$0xff]  }
  0x3c   : > { %v1909_v27 = vld [vmem:[%s1996_s27 + $0xe0] sm:$0xff]   ;;  %v1911_v29 = vld [vmem:[%s1996_s27 + $0xe8] sm:$0xff]   ;;  %v1912_v30 = vld [vmem:[%s1996_s27 + $0x70] sm:$0xff]  }
  0x3d   : > { %v1913_v31 = vld [vmem:[%s1996_s27 + $0xf0] sm:$0xff]   ;;  %v1914_v32 = vld [vmem:[%s1996_s27 + $0x78] sm:$0xff]   ;;  %v366_v38 = vld [vmem:[#allocation2] sm:$0xff] }
  0x3e   : > { %v1915_v33 = vld [vmem:[%s1996_s27 + $0xf8] sm:$0xff]   ;;  %v368_v34 = vld [vmem:[#allocation2 + $0x10] sm:$0xff]  ;;  %v398_v39 = vld [vmem:[#allocation2 + $0x100] sm:$0xff] }
  0x3f   : > { %v400_v35 = vld [vmem:[#allocation2 + $0x110] sm:$0xff]  ;;  %v369_v44 = vld [vmem:[#allocation2 + $0x18] sm:$0xff]  ;;  %v367_v50 = vld [vmem:[#allocation2 + $0x8] sm:$0xff] }
  0x40   : > { %1797 = vmatmul.mubr.msk.bf16.gmra.mxu0 %vm662_vm1, %v1890_v8  ;;  %1829 = vmatmul.mubr.msk.bf16.gmra.mxu1 %vm662_vm1, %v1891_v9  ;;  %v401_v45 = vld [vmem:[#allocation2 + $0x118] sm:$0xff]  ;;  %v399_v51 = vld [vmem:[#allocation2 + $0x108] sm:$0xff]  ;;  %v372_v56 = vld [vmem:[#allocation2 + $0x30] sm:$0xff] }
  0x41   : > { %1800 = vmatprep.mubr.msk.bf16.mxu0 %vm662_vm1, %v1892_v10  ;;  %1832 = vmatprep.mubr.msk.bf16.mxu1 %vm662_vm1, %v1893_v11  ;;  %v404_v57 = vld [vmem:[#allocation2 + $0x130] sm:$0xff]  ;;  %v370_v62 = vld [vmem:[#allocation2 + $0x20] sm:$0xff]  ;;  %v373_v4 = vld [vmem:[#allocation2 + $0x38] sm:$0xff] }
  0x42   : > { %v402_v63 = vld [vmem:[#allocation2 + $0x120] sm:$0xff]  ;;  %v405_v5 = vld [vmem:[#allocation2 + $0x138] sm:$0xff]  ;;  %v371_v10 = vld [vmem:[#allocation2 + $0x28] sm:$0xff] }
  0x43   : > { %v403_v11 = vld [vmem:[#allocation2 + $0x128] sm:$0xff] }
  0x48   : > { %1801 = vmatmul.mubr.msk.bf16.gmra.mxu0 %vm662_vm1, %v1894_v12  ;;  %1833 = vmatmul.mubr.msk.bf16.gmra.mxu1 %vm662_vm1, %v1895_v13 }
  0x49   : > { %1804 = vmatprep.mubr.msk.bf16.mxu0 %vm662_vm1, %v1896_v14  ;;  %1836 = vmatprep.mubr.msk.bf16.mxu1 %vm662_vm1, %v1897_v15 }
  0x50   : > { %1805 = vmatmul.mubr.msk.bf16.gmra.mxu0 %vm662_vm1, %v1898_v16  ;;  %1837 = vmatmul.mubr.msk.bf16.gmra.mxu1 %vm662_vm1, %v1899_v17  ;;  %v376_v16 = vld [vmem:[#allocation2 + $0x50] sm:$0xff] }
  0x51   : > { %1808 = vmatprep.mubr.msk.bf16.mxu0 %vm662_vm1, %v1900_v18  ;;  %1840 = vmatprep.mubr.msk.bf16.mxu1 %vm662_vm1, %v1901_v19  ;;  %v408_v17 = vld [vmem:[#allocation2 + $0x150] sm:$0xff] }
  0x58   : > { %1809 = vmatmul.mubr.msk.bf16.gmra.mxu0 %vm662_vm1, %v1902_v20  ;;  %1841 = vmatmul.mubr.msk.bf16.gmra.mxu1 %vm662_vm1, %v1903_v21 }
  0x59   : > { %1812 = vmatprep.mubr.msk.bf16.mxu0 %vm662_vm1, %v1904_v22  ;;  %1844 = vmatprep.mubr.msk.bf16.mxu1 %vm662_vm1, %v1905_v23  ;;  %v374_v22 = vld [vmem:[#allocation2 + $0x40] sm:$0xff] }
  0x5a   : > { %v406_v23 = vld [vmem:[#allocation2 + $0x140] sm:$0xff] }
  0x60   : > { %1813 = vmatmul.mubr.msk.bf16.gmra.mxu0 %vm662_vm1, %v1906_v24  ;;  %1845 = vmatmul.mubr.msk.bf16.gmra.mxu1 %vm662_vm1, %v1907_v25 }
  0x61   : > { %1816 = vmatprep.mubr.msk.bf16.mxu0 %vm662_vm1, %v1908_v26  ;;  %1848 = vmatprep.mubr.msk.bf16.mxu1 %vm662_vm1, %v1909_v27 }
  0x68   : > { %1817 = vmatmul.mubr.msk.bf16.gmra.mxu0 %vm662_vm1, %v1910_v28  ;;  %1849 = vmatmul.mubr.msk.bf16.gmra.mxu1 %vm662_vm1, %v1911_v29  ;;  %v377_v28 = vld [vmem:[#allocation2 + $0x58] sm:$0xff] }
  0x69   : > { %1820 = vmatprep.mubr.msk.bf16.mxu0 %vm662_vm1, %v1912_v30  ;;  %1852 = vmatprep.mubr.msk.bf16.mxu1 %vm662_vm1, %v1913_v31  ;;  %v409_v29 = vld [vmem:[#allocation2 + $0x158] sm:$0xff] }
  0x70   : > { %1821 = vmatmul.mubr.msk.bf16.gmra.mxu0 %vm662_vm1, %v1914_v32  ;;  %1853 = vmatmul.mubr.msk.bf16.gmra.mxu1 %vm662_vm1, %v1915_v33 }
  0xf8   : > { %v1794_v36 = vpop.f32.mrf.mxu0  ;;  %v1826_v37 = vpop.f32.mrf.mxu1 }
  0xf9   : > { %v1050_v40 = vadd.f32 %v1794_v36, %v368_v34  ;;  %v1082_v41 = vadd.f32 %v1826_v37, %v400_v35  ;;  %v375_v34 = vld [vmem:[#allocation2 + $0x48] sm:$0xff] }
  0xfa   : > { %v793_v42 = vpop.f32.mrf.mxu0  ;;  %v921_v43 = vpop.f32.mrf.mxu1  ;;  %v407_v35 = vld [vmem:[#allocation2 + $0x148] sm:$0xff] }
  0xfb   : > { %1114 = vst.msk [vmem:[#allocation2 + $0x10] sm:$0xff] %vm662_vm1, %v1050_v40  ;;  %1146 = vst.msk [vmem:[#allocation2 + $0x110] sm:$0xff] %vm662_vm1, %v1082_v41  ;;  %v1048_v46 = vadd.f32 %v793_v42, %v366_v38  ;;  %v1080_v47 = vadd.f32 %v921_v43, %v398_v39  ;;  %v380_v40 = vld [vmem:[#allocation2 + $0x70] sm:$0xff] }
  0xfc   : > { %v1795_v48 = vpop.f32.mrf.mxu0  ;;  %v1827_v49 = vpop.f32.mrf.mxu1  ;;  %v412_v41 = vld [vmem:[#allocation2 + $0x170] sm:$0xff] }
  0xfd   : > { %1112 = vst.msk [vmem:[#allocation2] sm:$0xff] %vm662_vm1, %v1048_v46  ;;  %1144 = vst.msk [vmem:[#allocation2 + $0x100] sm:$0xff] %vm662_vm1, %v1080_v47  ;;  %v1051_v52 = vadd.f32 %v1795_v48, %v369_v44  ;;  %v1083_v53 = vadd.f32 %v1827_v49, %v401_v45  ;;  %v378_v46 = vld [vmem:[#allocation2 + $0x60] sm:$0xff] }
  0xfe   : > { %v796_v54 = vpop.f32.mrf.mxu0  ;;  %v924_v55 = vpop.f32.mrf.mxu1  ;;  %v410_v47 = vld [vmem:[#allocation2 + $0x160] sm:$0xff] }
  0xff   : > { %1115 = vst.msk [vmem:[#allocation2 + $0x18] sm:$0xff] %vm662_vm1, %v1051_v52  ;;  %1147 = vst.msk [vmem:[#allocation2 + $0x118] sm:$0xff] %vm662_vm1, %v1083_v53  ;;  %v1049_v58 = vadd.f32 %v796_v54, %v367_v50  ;;  %v1081_v59 = vadd.f32 %v924_v55, %v399_v51  ;;  %v381_v52 = vld [vmem:[#allocation2 + $0x78] sm:$0xff] }
 0x100   : > { %v1798_v60 = vpop.f32.mrf.mxu0  ;;  %v1830_v61 = vpop.f32.mrf.mxu1  ;;  %v413_v53 = vld [vmem:[#allocation2 + $0x178] sm:$0xff] }
 0x101   : > { %1113 = vst.msk [vmem:[#allocation2 + $0x8] sm:$0xff] %vm662_vm1, %v1049_v58  ;;  %1145 = vst.msk [vmem:[#allocation2 + $0x108] sm:$0xff] %vm662_vm1, %v1081_v59  ;;  %v1054_v0 = vadd.f32 %v1798_v60, %v372_v56  ;;  %v1086_v1 = vadd.f32 %v1830_v61, %v404_v57  ;;  %v379_v58 = vld [vmem:[#allocation2 + $0x68] sm:$0xff] }
 0x102   : > { %v809_v2 = vpop.f32.mrf.mxu0  ;;  %v937_v3 = vpop.f32.mrf.mxu1  ;;  %v411_v59 = vld [vmem:[#allocation2 + $0x168] sm:$0xff] }
 0x103   : > { %1118 = vst.msk [vmem:[#allocation2 + $0x30] sm:$0xff] %vm662_vm1, %v1054_v0  ;;  %1150 = vst.msk [vmem:[#allocation2 + $0x130] sm:$0xff] %vm662_vm1, %v1086_v1  ;;  %v1052_v6 = vadd.f32 %v809_v2, %v370_v62  ;;  %v1084_v7 = vadd.f32 %v937_v3, %v402_v63  ;;  %v384_v0 = vld [vmem:[#allocation2 + $0x90] sm:$0xff] }
 0x104   : > { %v1799_v8 = vpop.f32.mrf.mxu0  ;;  %v1831_v9 = vpop.f32.mrf.mxu1  ;;  %v416_v1 = vld [vmem:[#allocation2 + $0x190] sm:$0xff] }
 0x105   : > { %1116 = vst.msk [vmem:[#allocation2 + $0x20] sm:$0xff] %vm662_vm1, %v1052_v6  ;;  %1148 = vst.msk [vmem:[#allocation2 + $0x120] sm:$0xff] %vm662_vm1, %v1084_v7  ;;  %v1055_v12 = vadd.f32 %v1799_v8, %v373_v4  ;;  %v1087_v13 = vadd.f32 %v1831_v9, %v405_v5  ;;  %v382_v6 = vld [vmem:[#allocation2 + $0x80] sm:$0xff] }
 0x106   : > { %v812_v14 = vpop.f32.mrf.mxu0  ;;  %v940_v15 = vpop.f32.mrf.mxu1  ;;  %v414_v7 = vld [vmem:[#allocation2 + $0x180] sm:$0xff] }
 0x107   : > { %1119 = vst.msk [vmem:[#allocation2 + $0x38] sm:$0xff] %vm662_vm1, %v1055_v12  ;;  %1151 = vst.msk [vmem:[#allocation2 + $0x138] sm:$0xff] %vm662_vm1, %v1087_v13  ;;  %v1053_v18 = vadd.f32 %v812_v14, %v371_v10  ;;  %v1085_v19 = vadd.f32 %v940_v15, %v403_v11  ;;  %v385_v12 = vld [vmem:[#allocation2 + $0x98] sm:$0xff] }
 0x108   : > { %v1802_v20 = vpop.f32.mrf.mxu0  ;;  %v1834_v21 = vpop.f32.mrf.mxu1  ;;  %v417_v13 = vld [vmem:[#allocation2 + $0x198] sm:$0xff] }
 0x109   : > { %1117 = vst.msk [vmem:[#allocation2 + $0x28] sm:$0xff] %vm662_vm1, %v1053_v18  ;;  %1149 = vst.msk [vmem:[#allocation2 + $0x128] sm:$0xff] %vm662_vm1, %v1085_v19  ;;  %v1058_v24 = vadd.f32 %v1802_v20, %v376_v16  ;;  %v1090_v25 = vadd.f32 %v1834_v21, %v408_v17  ;;  %v383_v18 = vld [vmem:[#allocation2 + $0x88] sm:$0xff] }
 0x10a   : > { %v825_v26 = vpop.f32.mrf.mxu0  ;;  %v953_v27 = vpop.f32.mrf.mxu1  ;;  %v415_v19 = vld [vmem:[#allocation2 + $0x188] sm:$0xff] }
 0x10b   : > { %1122 = vst.msk [vmem:[#allocation2 + $0x50] sm:$0xff] %vm662_vm1, %v1058_v24  ;;  %1154 = vst.msk [vmem:[#allocation2 + $0x150] sm:$0xff] %vm662_vm1, %v1090_v25  ;;  %v1056_v30 = vadd.f32 %v825_v26, %v374_v22  ;;  %v1088_v31 = vadd.f32 %v953_v27, %v406_v23  ;;  %v388_v24 = vld [vmem:[#allocation2 + $0xb0] sm:$0xff] }
 0x10c   : > { %v1803_v32 = vpop.f32.mrf.mxu0  ;;  %v1835_v33 = vpop.f32.mrf.mxu1  ;;  %v420_v25 = vld [vmem:[#allocation2 + $0x1b0] sm:$0xff] }
 0x10d   : > { %1120 = vst.msk [vmem:[#allocation2 + $0x40] sm:$0xff] %vm662_vm1, %v1056_v30  ;;  %1152 = vst.msk [vmem:[#allocation2 + $0x140] sm:$0xff] %vm662_vm1, %v1088_v31  ;;  %v1059_v36 = vadd.f32 %v1803_v32, %v377_v28  ;;  %v1091_v37 = vadd.f32 %v1835_v33, %v409_v29  ;;  %v386_v30 = vld [vmem:[#allocation2 + $0xa0] sm:$0xff] }
 0x10e   : > { %v828_v38 = vpop.f32.mrf.mxu0  ;;  %v956_v39 = vpop.f32.mrf.mxu1  ;;  %v418_v31 = vld [vmem:[#allocation2 + $0x1a0] sm:$0xff] }
 0x10f   : > { %1123 = vst.msk [vmem:[#allocation2 + $0x58] sm:$0xff] %vm662_vm1, %v1059_v36  ;;  %1155 = vst.msk [vmem:[#allocation2 + $0x158] sm:$0xff] %vm662_vm1, %v1091_v37  ;;  %v1057_v42 = vadd.f32 %v828_v38, %v375_v34  ;;  %v1089_v43 = vadd.f32 %v956_v39, %v407_v35  ;;  %v389_v36 = vld [vmem:[#allocation2 + $0xb8] sm:$0xff] }
 0x110   : > { %v1806_v44 = vpop.f32.mrf.mxu0  ;;  %v1838_v45 = vpop.f32.mrf.mxu1  ;;  %v421_v37 = vld [vmem:[#allocation2 + $0x1b8] sm:$0xff] }
 0x111   : > { %1121 = vst.msk [vmem:[#allocation2 + $0x48] sm:$0xff] %vm662_vm1, %v1057_v42  ;;  %1153 = vst.msk [vmem:[#allocation2 + $0x148] sm:$0xff] %vm662_vm1, %v1089_v43  ;;  %v1062_v48 = vadd.f32 %v1806_v44, %v380_v40  ;;  %v1094_v49 = vadd.f32 %v1838_v45, %v412_v41  ;;  %v387_v42 = vld [vmem:[#allocation2 + $0xa8] sm:$0xff] }
 0x112   : > { %v841_v50 = vpop.f32.mrf.mxu0  ;;  %v969_v51 = vpop.f32.mrf.mxu1  ;;  %v419_v43 = vld [vmem:[#allocation2 + $0x1a8] sm:$0xff] }
 0x113   : > { %1126 = vst.msk [vmem:[#allocation2 + $0x70] sm:$0xff] %vm662_vm1, %v1062_v48  ;;  %1158 = vst.msk [vmem:[#allocation2 + $0x170] sm:$0xff] %vm662_vm1, %v1094_v49  ;;  %v1060_v54 = vadd.f32 %v841_v50, %v378_v46  ;;  %v1092_v55 = vadd.f32 %v969_v51, %v410_v47  ;;  %v392_v48 = vld [vmem:[#allocation2 + $0xd0] sm:$0xff] }
 0x114   : > { %v1807_v56 = vpop.f32.mrf.mxu0  ;;  %v1839_v57 = vpop.f32.mrf.mxu1  ;;  %v424_v49 = vld [vmem:[#allocation2 + $0x1d0] sm:$0xff] }
 0x115   : > { %1124 = vst.msk [vmem:[#allocation2 + $0x60] sm:$0xff] %vm662_vm1, %v1060_v54  ;;  %1156 = vst.msk [vmem:[#allocation2 + $0x160] sm:$0xff] %vm662_vm1, %v1092_v55  ;;  %v1063_v60 = vadd.f32 %v1807_v56, %v381_v52  ;;  %v1095_v61 = vadd.f32 %v1839_v57, %v413_v53  ;;  %v390_v54 = vld [vmem:[#allocation2 + $0xc0] sm:$0xff] }
 0x116   : > { %v844_v62 = vpop.f32.mrf.mxu0  ;;  %v972_v63 = vpop.f32.mrf.mxu1  ;;  %v422_v55 = vld [vmem:[#allocation2 + $0x1c0] sm:$0xff] }
 0x117   : > { %1127 = vst.msk [vmem:[#allocation2 + $0x78] sm:$0xff] %vm662_vm1, %v1063_v60  ;;  %1159 = vst.msk [vmem:[#allocation2 + $0x178] sm:$0xff] %vm662_vm1, %v1095_v61  ;;  %v1061_v2 = vadd.f32 %v844_v62, %v379_v58  ;;  %v1093_v3 = vadd.f32 %v972_v63, %v411_v59  ;;  %v393_v60 = vld [vmem:[#allocation2 + $0xd8] sm:$0xff] }
 0x118   : > { %v1810_v4 = vpop.f32.mrf.mxu0  ;;  %v1842_v5 = vpop.f32.mrf.mxu1  ;;  %v425_v61 = vld [vmem:[#allocation2 + $0x1d8] sm:$0xff] }
 0x119   : > { %1125 = vst.msk [vmem:[#allocation2 + $0x68] sm:$0xff] %vm662_vm1, %v1061_v2  ;;  %1157 = vst.msk [vmem:[#allocation2 + $0x168] sm:$0xff] %vm662_vm1, %v1093_v3  ;;  %v1066_v8 = vadd.f32 %v1810_v4, %v384_v0  ;;  %v1098_v9 = vadd.f32 %v1842_v5, %v416_v1  ;;  %v391_v2 = vld [vmem:[#allocation2 + $0xc8] sm:$0xff] }
 0x11a   : > { %v857_v10 = vpop.f32.mrf.mxu0  ;;  %v985_v11 = vpop.f32.mrf.mxu1  ;;  %v423_v3 = vld [vmem:[#allocation2 + $0x1c8] sm:$0xff] }
 0x11b   : > { %1130 = vst.msk [vmem:[#allocation2 + $0x90] sm:$0xff] %vm662_vm1, %v1066_v8  ;;  %1162 = vst.msk [vmem:[#allocation2 + $0x190] sm:$0xff] %vm662_vm1, %v1098_v9  ;;  %v1064_v14 = vadd.f32 %v857_v10, %v382_v6  ;;  %v1096_v15 = vadd.f32 %v985_v11, %v414_v7  ;;  %v396_v8 = vld [vmem:[#allocation2 + $0xf0] sm:$0xff] }
 0x11c   : > { %v1811_v16 = vpop.f32.mrf.mxu0  ;;  %v1843_v17 = vpop.f32.mrf.mxu1  ;;  %v428_v9 = vld [vmem:[#allocation2 + $0x1f0] sm:$0xff] }
 0x11d   : > { %1128 = vst.msk [vmem:[#allocation2 + $0x80] sm:$0xff] %vm662_vm1, %v1064_v14  ;;  %1160 = vst.msk [vmem:[#allocation2 + $0x180] sm:$0xff] %vm662_vm1, %v1096_v15  ;;  %v1067_v20 = vadd.f32 %v1811_v16, %v385_v12  ;;  %v1099_v21 = vadd.f32 %v1843_v17, %v417_v13  ;;  %v394_v14 = vld [vmem:[#allocation2 + $0xe0] sm:$0xff] }
 0x11e   : > { %v860_v22 = vpop.f32.mrf.mxu0  ;;  %v988_v23 = vpop.f32.mrf.mxu1  ;;  %v426_v15 = vld [vmem:[#allocation2 + $0x1e0] sm:$0xff] }
 0x11f   : > { %1131 = vst.msk [vmem:[#allocation2 + $0x98] sm:$0xff] %vm662_vm1, %v1067_v20  ;;  %1163 = vst.msk [vmem:[#allocation2 + $0x198] sm:$0xff] %vm662_vm1, %v1099_v21  ;;  %v1065_v26 = vadd.f32 %v860_v22, %v383_v18  ;;  %v1097_v27 = vadd.f32 %v988_v23, %v415_v19  ;;  %v397_v20 = vld [vmem:[#allocation2 + $0xf8] sm:$0xff] }
 0x120   : > { %v1814_v28 = vpop.f32.mrf.mxu0  ;;  %v1846_v29 = vpop.f32.mrf.mxu1  ;;  %v429_v21 = vld [vmem:[#allocation2 + $0x1f8] sm:$0xff] }
 0x121   : > { %1129 = vst.msk [vmem:[#allocation2 + $0x88] sm:$0xff] %vm662_vm1, %v1065_v26  ;;  %1161 = vst.msk [vmem:[#allocation2 + $0x188] sm:$0xff] %vm662_vm1, %v1097_v27  ;;  %v1070_v32 = vadd.f32 %v1814_v28, %v388_v24  ;;  %v1102_v33 = vadd.f32 %v1846_v29, %v420_v25  ;;  %v395_v26 = vld [vmem:[#allocation2 + $0xe8] sm:$0xff] }
 0x122   : > { %v873_v34 = vpop.f32.mrf.mxu0  ;;  %v1001_v35 = vpop.f32.mrf.mxu1  ;;  %v427_v27 = vld [vmem:[#allocation2 + $0x1e8] sm:$0xff] }
 0x123   : > { %1134 = vst.msk [vmem:[#allocation2 + $0xb0] sm:$0xff] %vm662_vm1, %v1070_v32  ;;  %1166 = vst.msk [vmem:[#allocation2 + $0x1b0] sm:$0xff] %vm662_vm1, %v1102_v33  ;;  %v1068_v38 = vadd.f32 %v873_v34, %v386_v30  ;;  %v1100_v39 = vadd.f32 %v1001_v35, %v418_v31 }
 0x124   : > { %v1815_v40 = vpop.f32.mrf.mxu0  ;;  %v1847_v41 = vpop.f32.mrf.mxu1 }
 0x125   : > { %1132 = vst.msk [vmem:[#allocation2 + $0xa0] sm:$0xff] %vm662_vm1, %v1068_v38  ;;  %1164 = vst.msk [vmem:[#allocation2 + $0x1a0] sm:$0xff] %vm662_vm1, %v1100_v39  ;;  %v1071_v44 = vadd.f32 %v1815_v40, %v389_v36  ;;  %v1103_v45 = vadd.f32 %v1847_v41, %v421_v37 }
 0x126   : > { %v876_v46 = vpop.f32.mrf.mxu0  ;;  %v1004_v47 = vpop.f32.mrf.mxu1 }
 0x127   : > { %1135 = vst.msk [vmem:[#allocation2 + $0xb8] sm:$0xff] %vm662_vm1, %v1071_v44  ;;  %1167 = vst.msk [vmem:[#allocation2 + $0x1b8] sm:$0xff] %vm662_vm1, %v1103_v45  ;;  %v1069_v50 = vadd.f32 %v876_v46, %v387_v42  ;;  %v1101_v51 = vadd.f32 %v1004_v47, %v419_v43 }
 0x128   : > { %v1818_v52 = vpop.f32.mrf.mxu0  ;;  %v1850_v53 = vpop.f32.mrf.mxu1 }
 0x129   : > { %1133 = vst.msk [vmem:[#allocation2 + $0xa8] sm:$0xff] %vm662_vm1, %v1069_v50  ;;  %1165 = vst.msk [vmem:[#allocation2 + $0x1a8] sm:$0xff] %vm662_vm1, %v1101_v51  ;;  %v1074_v56 = vadd.f32 %v1818_v52, %v392_v48  ;;  %v1106_v57 = vadd.f32 %v1850_v53, %v424_v49 }
 0x12a   : > { %v889_v58 = vpop.f32.mrf.mxu0  ;;  %v1017_v59 = vpop.f32.mrf.mxu1 }
 0x12b   : > { %1138 = vst.msk [vmem:[#allocation2 + $0xd0] sm:$0xff] %vm662_vm1, %v1074_v56  ;;  %1170 = vst.msk [vmem:[#allocation2 + $0x1d0] sm:$0xff] %vm662_vm1, %v1106_v57  ;;  %v1072_v62 = vadd.f32 %v889_v58, %v390_v54  ;;  %v1104_v63 = vadd.f32 %v1017_v59, %v422_v55 }
 0x12c   : > { %v1819_v0 = vpop.f32.mrf.mxu0  ;;  %v1851_v1 = vpop.f32.mrf.mxu1 }
 0x12d   : > { %1136 = vst.msk [vmem:[#allocation2 + $0xc0] sm:$0xff] %vm662_vm1, %v1072_v62  ;;  %1168 = vst.msk [vmem:[#allocation2 + $0x1c0] sm:$0xff] %vm662_vm1, %v1104_v63  ;;  %v1075_v4 = vadd.f32 %v1819_v0, %v393_v60  ;;  %v1107_v5 = vadd.f32 %v1851_v1, %v425_v61 }
 0x12e   : > { %v892_v6 = vpop.f32.mrf.mxu0  ;;  %v1020_v7 = vpop.f32.mrf.mxu1 }
 0x12f   : > { %1139 = vst.msk [vmem:[#allocation2 + $0xd8] sm:$0xff] %vm662_vm1, %v1075_v4  ;;  %1171 = vst.msk [vmem:[#allocation2 + $0x1d8] sm:$0xff] %vm662_vm1, %v1107_v5  ;;  %v1073_v10 = vadd.f32 %v892_v6, %v391_v2  ;;  %v1105_v11 = vadd.f32 %v1020_v7, %v423_v3 }
 0x130   : > { %v1822_v12 = vpop.f32.mrf.mxu0  ;;  %v1854_v13 = vpop.f32.mrf.mxu1 }
 0x131   : > { %1137 = vst.msk [vmem:[#allocation2 + $0xc8] sm:$0xff] %vm662_vm1, %v1073_v10  ;;  %1169 = vst.msk [vmem:[#allocation2 + $0x1c8] sm:$0xff] %vm662_vm1, %v1105_v11  ;;  %v1078_v16 = vadd.f32 %v1822_v12, %v396_v8  ;;  %v1110_v17 = vadd.f32 %v1854_v13, %v428_v9 }
 0x132   : > { %v905_v18 = vpop.f32.mrf.mxu0  ;;  %v1033_v19 = vpop.f32.mrf.mxu1 }
 0x133   : > { %1142 = vst.msk [vmem:[#allocation2 + $0xf0] sm:$0xff] %vm662_vm1, %v1078_v16  ;;  %1174 = vst.msk [vmem:[#allocation2 + $0x1f0] sm:$0xff] %vm662_vm1, %v1110_v17  ;;  %v1076_v22 = vadd.f32 %v905_v18, %v394_v14  ;;  %v1108_v23 = vadd.f32 %v1033_v19, %v426_v15 }
 0x134   : > { %v1823_v24 = vpop.f32.mrf.mxu0  ;;  %v1855_v25 = vpop.f32.mrf.mxu1 }
 0x135   : > { %1140 = vst.msk [vmem:[#allocation2 + $0xe0] sm:$0xff] %vm662_vm1, %v1076_v22  ;;  %1172 = vst.msk [vmem:[#allocation2 + $0x1e0] sm:$0xff] %vm662_vm1, %v1108_v23  ;;  %v1079_v28 = vadd.f32 %v1823_v24, %v397_v20  ;;  %v1111_v29 = vadd.f32 %v1855_v25, %v429_v21  ;;  %1179 = sbr.rel (%p1748_p6) target bundleno = 372 (0x174), region = 48 }
 0x136   : > { %v908_v30 = vpop.f32.mrf.mxu0  ;;  %v1036_v31 = vpop.f32.mrf.mxu1 }
 0x137   : > { %1143 = vst.msk [vmem:[#allocation2 + $0xf8] sm:$0xff] %vm662_vm1, %v1079_v28  ;;  %1175 = vst.msk [vmem:[#allocation2 + $0x1f8] sm:$0xff] %vm662_vm1, %v1111_v29  ;;  %v1077_v32 = vadd.f32 %v908_v30, %v395_v26  ;;  %v1109_v33 = vadd.f32 %v1036_v31, %v427_v27 }
 0x139   : > { %1141 = vst.msk [vmem:[#allocation2 + $0xe8] sm:$0xff] %vm662_vm1, %v1077_v32  ;;  %1173 = vst.msk [vmem:[#allocation2 + $0x1e8] sm:$0xff] %vm662_vm1, %v1109_v33 }
 0x13a   : > { %v1180_v34 = vld [vmem:[#allocation2] sm:$0xff]  ;;  %v1181_v38 = vld [vmem:[#allocation2 + $0x8] sm:$0xff]  ;;  %v1182_v41 = vld [vmem:[#allocation2 + $0x10] sm:$0xff] }
 0x13b   : > { %v2265_v35 = vld [vmem:[%s2859_s2] ss:$0 sm:$0xff]  ;;  %v1183_v42 = vld [vmem:[#allocation2 + $0x18] sm:$0xff]  ;;  %v1387_v44 = vld [vmem:[%s2861_s4 + $0x8] sm:$0xff] }
 0x13c   : > { %v2270_v36 = vld [vmem:[%s2860_s3] ss:$0 sm:$0xff]  ;;  %v1251_v37 = vmul.f32 %v2265_v35, %v1180_v34  ;;  %v1252_v40 = vmul.f32 %v2265_v35, %v1181_v38  ;;  %v1253_v45 = vmul.f32 %v2265_v35, %v1182_v41  ;;  %v1388_v46 = vld [vmem:[%s2861_s4 + $0x10] sm:$0xff]  ;;  %v1254_v47 = vmul.f32 %v2265_v35, %v1183_v42  ;;  %v1389_v50 = vld [vmem:[%s2861_s4 + $0x18] sm:$0xff] }
 0x13d   : > { %v1386_v39 = vld [vmem:[%s2861_s4] sm:$0xff]  ;;  %v1185_v52 = vld [vmem:[#allocation2 + $0x28] sm:$0xff]  ;;  %v1186_v53 = vld [vmem:[#allocation2 + $0x30] sm:$0xff] }
 0x13e   : > { %v1322_v43 = vadd.f32 %v2270_v36, %v1251_v37  ;;  %v1184_v48 = vld [vmem:[#allocation2 + $0x20] sm:$0xff]  ;;  %v1323_v49 = vadd.f32 %v2270_v36, %v1252_v40  ;;  %v1324_v55 = vadd.f32 %v2270_v36, %v1253_v45  ;;  %v1325_v56 = vadd.f32 %v2270_v36, %v1254_v47  ;;  %v1187_v59 = vld [vmem:[#allocation2 + $0x38] sm:$0xff]  ;;  %v1391_v62 = vld [vmem:[%s2861_s4 + $0x28] sm:$0xff] }
 0x13f   : > { %v1255_v51 = vmul.f32 %v2265_v35, %v1184_v48  ;;  %v1390_v57 = vld [vmem:[%s2861_s4 + $0x20] sm:$0xff]  ;;  %v1256_v58 = vmul.f32 %v2265_v35, %v1185_v52  ;;  %v1257_v63 = vmul.f32 %v2265_v35, %v1186_v53  ;;  %v1258_v0 = vmul.f32 %v2265_v35, %v1187_v59  ;;  %v1189_v2 = vld [vmem:[#allocation2 + $0x48] sm:$0xff]  ;;  %v1392_v6 = vld [vmem:[%s2861_s4 + $0x30] sm:$0xff] }
 0x140   : > { %v1450_v54 = vadd.f32 %v1386_v39, %v1322_v43  ;;  %v1451_v60 = vadd.f32 %v1387_v44, %v1323_v49  ;;  %v1188_v1 = vld [vmem:[#allocation2 + $0x40] sm:$0xff]  ;;  %v1452_v3 = vadd.f32 %v1388_v46, %v1324_v55  ;;  %v1453_v4 = vadd.f32 %v1389_v50, %v1325_v56  ;;  %v1393_v7 = vld [vmem:[%s2861_s4 + $0x38] sm:$0xff]  ;;  %v1190_v9 = vld [vmem:[#allocation2 + $0x50] sm:$0xff] }
 0x141   : > { %v1326_v61 = vadd.f32 %v2270_v36, %v1255_v51  ;;  %v1327_v5 = vadd.f32 %v2270_v36, %v1256_v58  ;;  %v1259_v8 = vmul.f32 %v2265_v35, %v1188_v1  ;;  %v1328_v11 = vadd.f32 %v2270_v36, %v1257_v63  ;;  %v1394_v13 = vld [vmem:[%s2861_s4 + $0x40] sm:$0xff]  ;;  %v1191_v15 = vld [vmem:[#allocation2 + $0x58] sm:$0xff]  ;;  %v1395_v19 = vld [vmem:[%s2861_s4 + $0x48] sm:$0xff] }
 0x142   : > { %1514 = vst.msk [vmem:[%s2862_s5] sm:$0xff] %vm662_vm1, %v1450_v54  ;;  %1515 = vst.msk [vmem:[%s2862_s5 + $0x8] sm:$0xff] %vm662_vm1, %v1451_v60  ;;  %v1329_v12 = vadd.f32 %v2270_v36, %v1258_v0  ;;  %v1260_v14 = vmul.f32 %v2265_v35, %v1189_v2  ;;  %v1192_v16 = vld [vmem:[#allocation2 + $0x60] sm:$0xff]  ;;  %v1261_v20 = vmul.f32 %v2265_v35, %v1190_v9  ;;  %v1396_v21 = vld [vmem:[%s2861_s4 + $0x50] sm:$0xff] }
 0x143   : > { %v1454_v10 = vadd.f32 %v1390_v57, %v1326_v61  ;;  %1516 = vst.msk [vmem:[%s2862_s5 + $0x10] sm:$0xff] %vm662_vm1, %v1452_v3  ;;  %1517 = vst.msk [vmem:[%s2862_s5 + $0x18] sm:$0xff] %vm662_vm1, %v1453_v4  ;;  %v1455_v17 = vadd.f32 %v1391_v62, %v1327_v5  ;;  %v1330_v18 = vadd.f32 %v2270_v36, %v1259_v8  ;;  %v1193_v23 = vld [vmem:[#allocation2 + $0x68] sm:$0xff]  ;;  %v1397_v27 = vld [vmem:[%s2861_s4 + $0x58] sm:$0xff] }
 0x144   : > { %v1262_v22 = vmul.f32 %v2265_v35, %v1191_v15  ;;  %v1456_v24 = vadd.f32 %v1392_v6, %v1328_v11  ;;  %v1457_v25 = vadd.f32 %v1393_v7, %v1329_v12  ;;  %v1331_v26 = vadd.f32 %v2270_v36, %v1260_v14  ;;  %v1194_v29 = vld [vmem:[#allocation2 + $0x70] sm:$0xff]  ;;  %v1195_v30 = vld [vmem:[#allocation2 + $0x78] sm:$0xff]  ;;  %v1398_v34 = vld [vmem:[%s2861_s4 + $0x60] sm:$0xff] }
 0x145   : > { %1518 = vst.msk [vmem:[%s2862_s5 + $0x20] sm:$0xff] %vm662_vm1, %v1454_v10  ;;  %v1263_v28 = vmul.f32 %v2265_v35, %v1192_v16  ;;  %1519 = vst.msk [vmem:[%s2862_s5 + $0x28] sm:$0xff] %vm662_vm1, %v1455_v17  ;;  %v1458_v31 = vadd.f32 %v1394_v13, %v1330_v18  ;;  %v1332_v32 = vadd.f32 %v2270_v36, %v1261_v20  ;;  %v1196_v38 = vld [vmem:[#allocation2 + $0x80] sm:$0xff]  ;;  %v1399_v41 = vld [vmem:[%s2861_s4 + $0x68] sm:$0xff] }
 0x146   : > { %v1333_v33 = vadd.f32 %v2270_v36, %v1262_v22  ;;  %v1264_v37 = vmul.f32 %v2265_v35, %v1193_v23  ;;  %1520 = vst.msk [vmem:[%s2862_s5 + $0x30] sm:$0xff] %vm662_vm1, %v1456_v24  ;;  %1521 = vst.msk [vmem:[%s2862_s5 + $0x38] sm:$0xff] %vm662_vm1, %v1457_v25  ;;  %v1459_v39 = vadd.f32 %v1395_v19, %v1331_v26  ;;  %v1197_v44 = vld [vmem:[#allocation2 + $0x88] sm:$0xff]  ;;  %v1198_v45 = vld [vmem:[#allocation2 + $0x90] sm:$0xff] }
 0x147   : > { %v1334_v40 = vadd.f32 %v2270_v36, %v1263_v28  ;;  %v1265_v42 = vmul.f32 %v2265_v35, %v1194_v29  ;;  %v1266_v43 = vmul.f32 %v2265_v35, %v1195_v30  ;;  %1522 = vst.msk [vmem:[%s2862_s5 + $0x40] sm:$0xff] %vm662_vm1, %v1458_v31  ;;  %v1460_v46 = vadd.f32 %v1396_v21, %v1332_v32  ;;  %v1400_v49 = vld [vmem:[%s2861_s4 + $0x70] sm:$0xff]  ;;  %v1401_v50 = vld [vmem:[%s2861_s4 + $0x78] sm:$0xff]  ;;  %v1402_v56 = vld [vmem:[%s2861_s4 + $0x80] sm:$0xff] }
 0x148   : > { %v1461_v47 = vadd.f32 %v1397_v27, %v1333_v33  ;;  %v1335_v48 = vadd.f32 %v2270_v36, %v1264_v37  ;;  %v1267_v51 = vmul.f32 %v2265_v35, %v1196_v38  ;;  %v1199_v52 = vld [vmem:[#allocation2 + $0x98] sm:$0xff]  ;;  %1523 = vst.msk [vmem:[%s2862_s5 + $0x48] sm:$0xff] %vm662_vm1, %v1459_v39  ;;  %v1268_v57 = vmul.f32 %v2265_v35, %v1197_v44  ;;  %v1200_v58 = vld [vmem:[#allocation2 + $0xa0] sm:$0xff]  ;;  %v1201_v59 = vld [vmem:[#allocation2 + $0xa8] sm:$0xff] }
 0x149   : > { %v1462_v53 = vadd.f32 %v1398_v34, %v1334_v40  ;;  %v1336_v54 = vadd.f32 %v2270_v36, %v1265_v42  ;;  %v1337_v55 = vadd.f32 %v2270_v36, %v1266_v43  ;;  %1524 = vst.msk [vmem:[%s2862_s5 + $0x50] sm:$0xff] %vm662_vm1, %v1460_v46  ;;  %v1403_v62 = vld [vmem:[%s2861_s4 + $0x88] sm:$0xff]  ;;  %v1269_v63 = vmul.f32 %v2265_v35, %v1198_v45  ;;  %v1404_v0 = vld [vmem:[%s2861_s4 + $0x90] sm:$0xff]  ;;  %v1405_v6 = vld [vmem:[%s2861_s4 + $0x98] sm:$0xff] }
 0x14a   : > { %1525 = vst.msk [vmem:[%s2862_s5 + $0x58] sm:$0xff] %vm662_vm1, %v1461_v47  ;;  %v1463_v60 = vadd.f32 %v1399_v41, %v1335_v48  ;;  %v1338_v61 = vadd.f32 %v2270_v36, %v1267_v51  ;;  %v1270_v1 = vmul.f32 %v2265_v35, %v1199_v52  ;;  %v1202_v2 = vld [vmem:[#allocation2 + $0xb0] sm:$0xff]  ;;  %v1339_v5 = vadd.f32 %v2270_v36, %v1268_v57  ;;  %v1203_v8 = vld [vmem:[#allocation2 + $0xb8] sm:$0xff]  ;;  %v1204_v9 = vld [vmem:[#allocation2 + $0xc0] sm:$0xff] }
 0x14b   : > { %1526 = vst.msk [vmem:[%s2862_s5 + $0x60] sm:$0xff] %vm662_vm1, %v1462_v53  ;;  %v1464_v3 = vadd.f32 %v1400_v49, %v1336_v54  ;;  %v1465_v4 = vadd.f32 %v1401_v50, %v1337_v55  ;;  %v1271_v7 = vmul.f32 %v2265_v35, %v1200_v58  ;;  %v1340_v11 = vadd.f32 %v2270_v36, %v1269_v63  ;;  %v1406_v13 = vld [vmem:[%s2861_s4 + $0xa0] sm:$0xff]  ;;  %v1205_v15 = vld [vmem:[#allocation2 + $0xc8] sm:$0xff]  ;;  %v1206_v21 = vld [vmem:[#allocation2 + $0xd0] sm:$0xff] }
 0x14c   : > { %1527 = vst.msk [vmem:[%s2862_s5 + $0x68] sm:$0xff] %vm662_vm1, %v1463_v60  ;;  %v1466_v10 = vadd.f32 %v1402_v56, %v1338_v61  ;;  %v1341_v12 = vadd.f32 %v2270_v36, %v1270_v1  ;;  %v1272_v14 = vmul.f32 %v2265_v35, %v1201_v59  ;;  %v1467_v16 = vadd.f32 %v1403_v62, %v1339_v5  ;;  %v1407_v18 = vld [vmem:[%s2861_s4 + $0xa8] sm:$0xff]  ;;  %v1207_v22 = vld [vmem:[#allocation2 + $0xd8] sm:$0xff]  ;;  %v1408_v26 = vld [vmem:[%s2861_s4 + $0xb0] sm:$0xff] }
 0x14d   : > { %1528 = vst.msk [vmem:[%s2862_s5 + $0x70] sm:$0xff] %vm662_vm1, %v1464_v3  ;;  %1529 = vst.msk [vmem:[%s2862_s5 + $0x78] sm:$0xff] %vm662_vm1, %v1465_v4  ;;  %v1342_v17 = vadd.f32 %v2270_v36, %v1271_v7  ;;  %v1273_v19 = vmul.f32 %v2265_v35, %v1202_v2  ;;  %v1274_v20 = vmul.f32 %v2265_v35, %v1203_v8  ;;  %v1409_v27 = vld [vmem:[%s2861_s4 + $0xb8] sm:$0xff]  ;;  %v1208_v29 = vld [vmem:[#allocation2 + $0xe0] sm:$0xff] }
 0x14e   : > { %1530 = vst.msk [vmem:[%s2862_s5 + $0x80] sm:$0xff] %vm662_vm1, %v1466_v10  ;;  %v1468_v23 = vadd.f32 %v1404_v0, %v1340_v11  ;;  %v1469_v24 = vadd.f32 %v1405_v6, %v1341_v12  ;;  %v1343_v25 = vadd.f32 %v2270_v36, %v1272_v14  ;;  %v1275_v28 = vmul.f32 %v2265_v35, %v1204_v9  ;;  %v1410_v33 = vld [vmem:[%s2861_s4 + $0xc0] sm:$0xff]  ;;  %v1209_v37 = vld [vmem:[#allocation2 + $0xe8] sm:$0xff]  ;;  %v1210_v43 = vld [vmem:[#allocation2 + $0xf0] sm:$0xff] }
 0x14f   : > { %1531 = vst.msk [vmem:[%s2862_s5 + $0x88] sm:$0xff] %vm662_vm1, %v1467_v16  ;;  %v1470_v30 = vadd.f32 %v1406_v13, %v1342_v17  ;;  %v1344_v31 = vadd.f32 %v2270_v36, %v1273_v19  ;;  %v1345_v32 = vadd.f32 %v2270_v36, %v1274_v20  ;;  %v1276_v34 = vmul.f32 %v2265_v35, %v1205_v15  ;;  %v1411_v40 = vld [vmem:[%s2861_s4 + $0xc8] sm:$0xff]  ;;  %v1211_v44 = vld [vmem:[#allocation2 + $0xf8] sm:$0xff]  ;;  %v1412_v48 = vld [vmem:[%s2861_s4 + $0xd0] sm:$0xff] }
 0x150   : > { %1532 = vst.msk [vmem:[%s2862_s5 + $0x90] sm:$0xff] %vm662_vm1, %v1468_v23  ;;  %1533 = vst.msk [vmem:[%s2862_s5 + $0x98] sm:$0xff] %vm662_vm1, %v1469_v24  ;;  %v1471_v38 = vadd.f32 %v1407_v18, %v1343_v25  ;;  %v1346_v39 = vadd.f32 %v2270_v36, %v1275_v28  ;;  %v1277_v41 = vmul.f32 %v2265_v35, %v1206_v21  ;;  %v1413_v49 = vld [vmem:[%s2861_s4 + $0xd8] sm:$0xff]  ;;  %v1212_v51 = vld [vmem:[#allocation2 + $0x100] sm:$0xff] }
 0x151   : > { %v1278_v42 = vmul.f32 %v2265_v35, %v1207_v22  ;;  %1534 = vst.msk [vmem:[%s2862_s5 + $0xa0] sm:$0xff] %vm662_vm1, %v1470_v30  ;;  %v1472_v45 = vadd.f32 %v1408_v26, %v1344_v31  ;;  %v1473_v46 = vadd.f32 %v1409_v27, %v1345_v32  ;;  %v1347_v47 = vadd.f32 %v2270_v36, %v1276_v34  ;;  %v1414_v55 = vld [vmem:[%s2861_s4 + $0xe0] sm:$0xff]  ;;  %v1213_v57 = vld [vmem:[#allocation2 + $0x108] sm:$0xff]  ;;  %v1214_v63 = vld [vmem:[#allocation2 + $0x110] sm:$0xff] }
 0x152   : > { %v1279_v50 = vmul.f32 %v2265_v35, %v1208_v29  ;;  %1535 = vst.msk [vmem:[%s2862_s5 + $0xa8] sm:$0xff] %vm662_vm1, %v1471_v38  ;;  %v1474_v52 = vadd.f32 %v1410_v33, %v1346_v39  ;;  %v1348_v53 = vadd.f32 %v2270_v36, %v1277_v41  ;;  %v1280_v56 = vmul.f32 %v2265_v35, %v1209_v37  ;;  %v1415_v60 = vld [vmem:[%s2861_s4 + $0xe8] sm:$0xff]  ;;  %v1215_v0 = vld [vmem:[#allocation2 + $0x118] sm:$0xff]  ;;  %v1416_v4 = vld [vmem:[%s2861_s4 + $0xf0] sm:$0xff] }
 0x153   : > { %v1349_v54 = vadd.f32 %v2270_v36, %v1278_v42  ;;  %1536 = vst.msk [vmem:[%s2862_s5 + $0xb0] sm:$0xff] %vm662_vm1, %v1472_v45  ;;  %1537 = vst.msk [vmem:[%s2862_s5 + $0xb8] sm:$0xff] %vm662_vm1, %v1473_v46  ;;  %v1475_v58 = vadd.f32 %v1411_v40, %v1347_v47  ;;  %v1281_v61 = vmul.f32 %v2265_v35, %v1210_v43  ;;  %v1417_v5 = vld [vmem:[%s2861_s4 + $0xf8] sm:$0xff]  ;;  %v1216_v7 = vld [vmem:[#allocation2 + $0x120] sm:$0xff] }
 0x154   : > { %v1350_v59 = vadd.f32 %v2270_v36, %v1279_v50  ;;  %v1282_v62 = vmul.f32 %v2265_v35, %v1211_v44  ;;  %1538 = vst.msk [vmem:[%s2862_s5 + $0xc0] sm:$0xff] %vm662_vm1, %v1474_v52  ;;  %v1476_v1 = vadd.f32 %v1412_v48, %v1348_v53  ;;  %v1351_v3 = vadd.f32 %v2270_v36, %v1280_v56  ;;  %v1418_v11 = vld [vmem:[%s2861_s4 + $0x100] sm:$0xff]  ;;  %v1217_v13 = vld [vmem:[#allocation2 + $0x128] sm:$0xff]  ;;  %v1218_v19 = vld [vmem:[#allocation2 + $0x130] sm:$0xff] }
 0x155   : > { %v1477_v2 = vadd.f32 %v1413_v49, %v1349_v54  ;;  %v1283_v6 = vmul.f32 %v2265_v35, %v1212_v51  ;;  %1539 = vst.msk [vmem:[%s2862_s5 + $0xc8] sm:$0xff] %vm662_vm1, %v1475_v58  ;;  %v1352_v9 = vadd.f32 %v2270_v36, %v1281_v61  ;;  %v1284_v12 = vmul.f32 %v2265_v35, %v1213_v57  ;;  %v1419_v16 = vld [vmem:[%s2861_s4 + $0x108] sm:$0xff]  ;;  %v1219_v20 = vld [vmem:[#allocation2 + $0x138] sm:$0xff]  ;;  %v1420_v24 = vld [vmem:[%s2861_s4 + $0x110] sm:$0xff] }
 0x156   : > { %v1478_v8 = vadd.f32 %v1414_v55, %v1350_v59  ;;  %v1353_v10 = vadd.f32 %v2270_v36, %v1282_v62  ;;  %1540 = vst.msk [vmem:[%s2862_s5 + $0xd0] sm:$0xff] %vm662_vm1, %v1476_v1  ;;  %v1479_v14 = vadd.f32 %v1415_v60, %v1351_v3  ;;  %v1285_v17 = vmul.f32 %v2265_v35, %v1214_v63  ;;  %v1421_v25 = vld [vmem:[%s2861_s4 + $0x118] sm:$0xff]  ;;  %v1220_v27 = vld [vmem:[#allocation2 + $0x140] sm:$0xff]  ;;  %v1221_v33 = vld [vmem:[#allocation2 + $0x148] sm:$0xff] }
 0x157   : > { %1541 = vst.msk [vmem:[%s2862_s5 + $0xd8] sm:$0xff] %vm662_vm1, %v1477_v2  ;;  %v1354_v15 = vadd.f32 %v2270_v36, %v1283_v6  ;;  %v1286_v18 = vmul.f32 %v2265_v35, %v1215_v0  ;;  %v1480_v21 = vadd.f32 %v1416_v4, %v1352_v9  ;;  %v1355_v23 = vadd.f32 %v2270_v36, %v1284_v12  ;;  %v1422_v31 = vld [vmem:[%s2861_s4 + $0x120] sm:$0xff]  ;;  %v1423_v38 = vld [vmem:[%s2861_s4 + $0x128] sm:$0xff]  ;;  %v1222_v41 = vld [vmem:[#allocation2 + $0x150] sm:$0xff] }
 0x158   : > { %1542 = vst.msk [vmem:[%s2862_s5 + $0xe0] sm:$0xff] %vm662_vm1, %v1478_v8  ;;  %v1481_v22 = vadd.f32 %v1417_v5, %v1353_v10  ;;  %v1287_v26 = vmul.f32 %v2265_v35, %v1216_v7  ;;  %1543 = vst.msk [vmem:[%s2862_s5 + $0xe8] sm:$0xff] %vm662_vm1, %v1479_v14  ;;  %v1356_v29 = vadd.f32 %v2270_v36, %v1285_v17  ;;  %v1223_v42 = vld [vmem:[#allocation2 + $0x158] sm:$0xff]  ;;  %v1424_v46 = vld [vmem:[%s2861_s4 + $0x130] sm:$0xff] }
 0x159   : > { %v1482_v28 = vadd.f32 %v1418_v11, %v1354_v15  ;;  %v1357_v30 = vadd.f32 %v2270_v36, %v1286_v18  ;;  %v1288_v32 = vmul.f32 %v2265_v35, %v1217_v13  ;;  %1544 = vst.msk [vmem:[%s2862_s5 + $0xf0] sm:$0xff] %vm662_vm1, %v1480_v21  ;;  %v1483_v34 = vadd.f32 %v1419_v16, %v1355_v23  ;;  %v1425_v47 = vld [vmem:[%s2861_s4 + $0x138] sm:$0xff]  ;;  %v1224_v49 = vld [vmem:[#allocation2 + $0x160] sm:$0xff]  ;;  %v1225_v55 = vld [vmem:[#allocation2 + $0x168] sm:$0xff] }
 0x15a   : > { %1545 = vst.msk [vmem:[%s2862_s5 + $0xf8] sm:$0xff] %vm662_vm1, %v1481_v22  ;;  %v1358_v37 = vadd.f32 %v2270_v36, %v1287_v26  ;;  %v1289_v39 = vmul.f32 %v2265_v35, %v1218_v19  ;;  %v1290_v40 = vmul.f32 %v2265_v35, %v1219_v20  ;;  %v1484_v43 = vadd.f32 %v1420_v24, %v1356_v29  ;;  %v1426_v53 = vld [vmem:[%s2861_s4 + $0x140] sm:$0xff]  ;;  %v1427_v58 = vld [vmem:[%s2861_s4 + $0x148] sm:$0xff]  ;;  %v1226_v61 = vld [vmem:[#allocation2 + $0x170] sm:$0xff] }
 0x15b   : > { %1546 = vst.msk [vmem:[%s2862_s5 + $0x100] sm:$0xff] %vm662_vm1, %v1482_v28  ;;  %v1485_v44 = vadd.f32 %v1421_v25, %v1357_v30  ;;  %v1359_v45 = vadd.f32 %v2270_v36, %v1288_v32  ;;  %v1291_v48 = vmul.f32 %v2265_v35, %v1220_v27  ;;  %1547 = vst.msk [vmem:[%s2862_s5 + $0x108] sm:$0xff] %vm662_vm1, %v1483_v34  ;;  %v1227_v62 = vld [vmem:[#allocation2 + $0x178] sm:$0xff]  ;;  %v1428_v2 = vld [vmem:[%s2861_s4 + $0x150] sm:$0xff] }
 0x15c   : > { %v1486_v50 = vadd.f32 %v1422_v31, %v1358_v37  ;;  %v1360_v51 = vadd.f32 %v2270_v36, %v1289_v39  ;;  %v1361_v52 = vadd.f32 %v2270_v36, %v1290_v40  ;;  %v1292_v54 = vmul.f32 %v2265_v35, %v1221_v33  ;;  %1548 = vst.msk [vmem:[%s2862_s5 + $0x110] sm:$0xff] %vm662_vm1, %v1484_v43  ;;  %v1429_v3 = vld [vmem:[%s2861_s4 + $0x158] sm:$0xff]  ;;  %v1228_v5 = vld [vmem:[#allocation2 + $0x180] sm:$0xff]  ;;  %v1229_v11 = vld [vmem:[#allocation2 + $0x188] sm:$0xff] }
 0x15d   : > { %1549 = vst.msk [vmem:[%s2862_s5 + $0x118] sm:$0xff] %vm662_vm1, %v1485_v44  ;;  %v1487_v56 = vadd.f32 %v1423_v38, %v1359_v45  ;;  %v1362_v57 = vadd.f32 %v2270_v36, %v1291_v48  ;;  %v1293_v59 = vmul.f32 %v2265_v35, %v1222_v41  ;;  %v1294_v60 = vmul.f32 %v2265_v35, %v1223_v42  ;;  %v1430_v9 = vld [vmem:[%s2861_s4 + $0x160] sm:$0xff]  ;;  %v1431_v14 = vld [vmem:[%s2861_s4 + $0x168] sm:$0xff]  ;;  %v1230_v17 = vld [vmem:[#allocation2 + $0x190] sm:$0xff] }
 0x15e   : > { %1550 = vst.msk [vmem:[%s2862_s5 + $0x120] sm:$0xff] %vm662_vm1, %v1486_v50  ;;  %v1488_v63 = vadd.f32 %v1424_v46, %v1360_v51  ;;  %v1489_v0 = vadd.f32 %v1425_v47, %v1361_v52  ;;  %v1363_v1 = vadd.f32 %v2270_v36, %v1292_v54  ;;  %v1295_v4 = vmul.f32 %v2265_v35, %v1224_v49  ;;  %v1231_v18 = vld [vmem:[#allocation2 + $0x198] sm:$0xff]  ;;  %v1432_v22 = vld [vmem:[%s2861_s4 + $0x170] sm:$0xff]  ;;  %v1232_v25 = vld [vmem:[#allocation2 + $0x1a0] sm:$0xff] }
 0x15f   : > { %1551 = vst.msk [vmem:[%s2862_s5 + $0x128] sm:$0xff] %vm662_vm1, %v1487_v56  ;;  %v1490_v6 = vadd.f32 %v1426_v53, %v1362_v57  ;;  %v1364_v7 = vadd.f32 %v2270_v36, %v1293_v59  ;;  %v1365_v8 = vadd.f32 %v2270_v36, %v1294_v60  ;;  %v1296_v10 = vmul.f32 %v2265_v35, %v1225_v55  ;;  %v1433_v23 = vld [vmem:[%s2861_s4 + $0x178] sm:$0xff]  ;;  %v1434_v29 = vld [vmem:[%s2861_s4 + $0x180] sm:$0xff]  ;;  %v1233_v31 = vld [vmem:[#allocation2 + $0x1a8] sm:$0xff] }
 0x160   : > { %1552 = vst.msk [vmem:[%s2862_s5 + $0x130] sm:$0xff] %vm662_vm1, %v1488_v63  ;;  %1553 = vst.msk [vmem:[%s2862_s5 + $0x138] sm:$0xff] %vm662_vm1, %v1489_v0  ;;  %v1491_v12 = vadd.f32 %v1427_v58, %v1363_v1  ;;  %v1366_v13 = vadd.f32 %v2270_v36, %v1295_v4  ;;  %v1297_v15 = vmul.f32 %v2265_v35, %v1226_v61  ;;  %v1435_v34 = vld [vmem:[%s2861_s4 + $0x188] sm:$0xff]  ;;  %v1234_v39 = vld [vmem:[#allocation2 + $0x1b0] sm:$0xff] }
 0x161   : > { %v1298_v16 = vmul.f32 %v2265_v35, %v1227_v62  ;;  %1554 = vst.msk [vmem:[%s2862_s5 + $0x140] sm:$0xff] %vm662_vm1, %v1490_v6  ;;  %v1492_v19 = vadd.f32 %v1428_v2, %v1364_v7  ;;  %v1493_v20 = vadd.f32 %v1429_v3, %v1365_v8  ;;  %v1367_v21 = vadd.f32 %v2270_v36, %v1296_v10  ;;  %v1235_v40 = vld [vmem:[#allocation2 + $0x1b8] sm:$0xff]  ;;  %v1436_v44 = vld [vmem:[%s2861_s4 + $0x190] sm:$0xff]  ;;  %v1236_v47 = vld [vmem:[#allocation2 + $0x1c0] sm:$0xff] }
 0x162   : > { %v1299_v24 = vmul.f32 %v2265_v35, %v1228_v5  ;;  %1555 = vst.msk [vmem:[%s2862_s5 + $0x148] sm:$0xff] %vm662_vm1, %v1491_v12  ;;  %v1494_v26 = vadd.f32 %v1430_v9, %v1366_v13  ;;  %v1368_v27 = vadd.f32 %v2270_v36, %v1297_v15  ;;  %v1300_v30 = vmul.f32 %v2265_v35, %v1229_v11  ;;  %v1437_v45 = vld [vmem:[%s2861_s4 + $0x198] sm:$0xff]  ;;  %v1438_v51 = vld [vmem:[%s2861_s4 + $0x1a0] sm:$0xff]  ;;  %v1237_v53 = vld [vmem:[#allocation2 + $0x1c8] sm:$0xff] }
 0x163   : > { %v1369_v28 = vadd.f32 %v2270_v36, %v1298_v16  ;;  %1556 = vst.msk [vmem:[%s2862_s5 + $0x150] sm:$0xff] %vm662_vm1, %v1492_v19  ;;  %1557 = vst.msk [vmem:[%s2862_s5 + $0x158] sm:$0xff] %vm662_vm1, %v1493_v20  ;;  %v1495_v32 = vadd.f32 %v1431_v14, %v1367_v21  ;;  %v1301_v37 = vmul.f32 %v2265_v35, %v1230_v17  ;;  %v1439_v56 = vld [vmem:[%s2861_s4 + $0x1a8] sm:$0xff]  ;;  %v1238_v59 = vld [vmem:[#allocation2 + $0x1d0] sm:$0xff] }
 0x164   : > { %v1370_v33 = vadd.f32 %v2270_v36, %v1299_v24  ;;  %v1302_v38 = vmul.f32 %v2265_v35, %v1231_v18  ;;  %1558 = vst.msk [vmem:[%s2862_s5 + $0x160] sm:$0xff] %vm662_vm1, %v1494_v26  ;;  %v1496_v41 = vadd.f32 %v1432_v22, %v1368_v27  ;;  %v1371_v43 = vadd.f32 %v2270_v36, %v1300_v30  ;;  %v1239_v60 = vld [vmem:[#allocation2 + $0x1d8] sm:$0xff]  ;;  %v1440_v0 = vld [vmem:[%s2861_s4 + $0x1b0] sm:$0xff]  ;;  %v1240_v3 = vld [vmem:[#allocation2 + $0x1e0] sm:$0xff] }
 0x165   : > { %v1497_v42 = vadd.f32 %v1433_v23, %v1369_v28  ;;  %v1303_v46 = vmul.f32 %v2265_v35, %v1232_v25  ;;  %1559 = vst.msk [vmem:[%s2862_s5 + $0x168] sm:$0xff] %vm662_vm1, %v1495_v32  ;;  %v1372_v49 = vadd.f32 %v2270_v36, %v1301_v37  ;;  %v1304_v52 = vmul.f32 %v2265_v35, %v1233_v31  ;;  %v1441_v1 = vld [vmem:[%s2861_s4 + $0x1b8] sm:$0xff]  ;;  %v1442_v7 = vld [vmem:[%s2861_s4 + $0x1c0] sm:$0xff]  ;;  %v1241_v9 = vld [vmem:[#allocation2 + $0x1e8] sm:$0xff] }
 0x166   : > { %v1498_v48 = vadd.f32 %v1434_v29, %v1370_v33  ;;  %v1373_v50 = vadd.f32 %v2270_v36, %v1302_v38  ;;  %1560 = vst.msk [vmem:[%s2862_s5 + $0x170] sm:$0xff] %vm662_vm1, %v1496_v41  ;;  %v1499_v54 = vadd.f32 %v1435_v34, %v1371_v43  ;;  %v1305_v57 = vmul.f32 %v2265_v35, %v1234_v39  ;;  %v1443_v12 = vld [vmem:[%s2861_s4 + $0x1c8] sm:$0xff]  ;;  %v1242_v15 = vld [vmem:[#allocation2 + $0x1f0] sm:$0xff]  ;;  %v1243_v16 = vld [vmem:[#allocation2 + $0x1f8] sm:$0xff] }
 0x167   : > { %1561 = vst.msk [vmem:[%s2862_s5 + $0x178] sm:$0xff] %vm662_vm1, %v1497_v42  ;;  %v1374_v55 = vadd.f32 %v2270_v36, %v1303_v46  ;;  %v1306_v58 = vmul.f32 %v2265_v35, %v1235_v40  ;;  %v1500_v61 = vadd.f32 %v1436_v44, %v1372_v49  ;;  %v1375_v63 = vadd.f32 %v2270_v36, %v1304_v52  ;;  %v1444_v20 = vld [vmem:[%s2861_s4 + $0x1d0] sm:$0xff]  ;;  %v1445_v21 = vld [vmem:[%s2861_s4 + $0x1d8] sm:$0xff]  ;;  %v1446_v26 = vld [vmem:[%s2861_s4 + $0x1e0] sm:$0xff] }
 0x168   : > { %1562 = vst.msk [vmem:[%s2862_s5 + $0x180] sm:$0xff] %vm662_vm1, %v1498_v48  ;;  %v1501_v62 = vadd.f32 %v1437_v45, %v1373_v50  ;;  %v1307_v2 = vmul.f32 %v2265_v35, %v1236_v47  ;;  %1563 = vst.msk [vmem:[%s2862_s5 + $0x188] sm:$0xff] %vm662_vm1, %v1499_v54  ;;  %v1376_v5 = vadd.f32 %v2270_v36, %v1305_v57  ;;  %v1447_v30 = vld [vmem:[%s2861_s4 + $0x1e8] sm:$0xff]  ;;  %v1448_v38 = vld [vmem:[%s2861_s4 + $0x1f0] sm:$0xff] }
 0x169   : > { %v1502_v4 = vadd.f32 %v1438_v51, %v1374_v55  ;;  %v1377_v6 = vadd.f32 %v2270_v36, %v1306_v58  ;;  %v1308_v8 = vmul.f32 %v2265_v35, %v1237_v53  ;;  %1564 = vst.msk [vmem:[%s2862_s5 + $0x190] sm:$0xff] %vm662_vm1, %v1500_v61  ;;  %v1503_v10 = vadd.f32 %v1439_v56, %v1375_v63  ;;  %v1449_v39 = vld [vmem:[%s2861_s4 + $0x1f8] sm:$0xff] }
 0x16a   : > { %1565 = vst.msk [vmem:[%s2862_s5 + $0x198] sm:$0xff] %vm662_vm1, %v1501_v62  ;;  %v1378_v11 = vadd.f32 %v2270_v36, %v1307_v2  ;;  %v1309_v13 = vmul.f32 %v2265_v35, %v1238_v59  ;;  %v1310_v14 = vmul.f32 %v2265_v35, %v1239_v60  ;;  %v1504_v17 = vadd.f32 %v1440_v0, %v1376_v5 }
 0x16b   : > { %1566 = vst.msk [vmem:[%s2862_s5 + $0x1a0] sm:$0xff] %vm662_vm1, %v1502_v4  ;;  %v1505_v18 = vadd.f32 %v1441_v1, %v1377_v6  ;;  %v1379_v19 = vadd.f32 %v2270_v36, %v1308_v8  ;;  %v1311_v22 = vmul.f32 %v2265_v35, %v1240_v3  ;;  %1567 = vst.msk [vmem:[%s2862_s5 + $0x1a8] sm:$0xff] %vm662_vm1, %v1503_v10 }
 0x16c   : > { %v1506_v23 = vadd.f32 %v1442_v7, %v1378_v11  ;;  %v1380_v24 = vadd.f32 %v2270_v36, %v1309_v13  ;;  %v1381_v25 = vadd.f32 %v2270_v36, %v1310_v14  ;;  %v1312_v27 = vmul.f32 %v2265_v35, %v1241_v9  ;;  %1568 = vst.msk [vmem:[%s2862_s5 + $0x1b0] sm:$0xff] %vm662_vm1, %v1504_v17 }
 0x16d   : > { %1569 = vst.msk [vmem:[%s2862_s5 + $0x1b8] sm:$0xff] %vm662_vm1, %v1505_v18  ;;  %v1507_v28 = vadd.f32 %v1443_v12, %v1379_v19  ;;  %v1382_v29 = vadd.f32 %v2270_v36, %v1311_v22  ;;  %v1313_v31 = vmul.f32 %v2265_v35, %v1242_v15  ;;  %v1314_v32 = vmul.f32 %v2265_v35, %v1243_v16 }
 0x16e   : > { %1570 = vst.msk [vmem:[%s2862_s5 + $0x1c0] sm:$0xff] %vm662_vm1, %v1506_v23  ;;  %v1508_v33 = vadd.f32 %v1444_v20, %v1380_v24  ;;  %v1509_v34 = vadd.f32 %v1445_v21, %v1381_v25  ;;  %v1383_v37 = vadd.f32 %v2270_v36, %v1312_v27 }
 0x16f   : > { %1571 = vst.msk [vmem:[%s2862_s5 + $0x1c8] sm:$0xff] %vm662_vm1, %v1507_v28  ;;  %v1510_v35 = vadd.f32 %v1446_v26, %v1382_v29  ;;  %v1384_v40 = vadd.f32 %v2270_v36, %v1313_v31  ;;  %v1385_v41 = vadd.f32 %v2270_v36, %v1314_v32 }
 0x170   : > { %1572 = vst.msk [vmem:[%s2862_s5 + $0x1d0] sm:$0xff] %vm662_vm1, %v1508_v33  ;;  %1573 = vst.msk [vmem:[%s2862_s5 + $0x1d8] sm:$0xff] %vm662_vm1, %v1509_v34  ;;  %v1511_v42 = vadd.f32 %v1447_v30, %v1383_v37 }
 0x171   : > { %1574 = vst.msk [vmem:[%s2862_s5 + $0x1e0] sm:$0xff] %vm662_vm1, %v1510_v35  ;;  %v1512_v43 = vadd.f32 %v1448_v38, %v1384_v40  ;;  %v1513_v44 = vadd.f32 %v1449_v39, %v1385_v41 }
 0x172   : > { %1575 = vst.msk [vmem:[%s2862_s5 + $0x1e8] sm:$0xff] %vm662_vm1, %v1511_v42 }
 0x173   : > { %1576 = vst.msk [vmem:[%s2862_s5 + $0x1f0] sm:$0xff] %vm662_vm1, %v1512_v43  ;;  %1577 = vst.msk [vmem:[%s2862_s5 + $0x1f8] sm:$0xff] %vm662_vm1, %v1513_v44 }
 0x174 PF: > { %s15_s20 = sadd.s32 1, %s1938_s20   ;;  %s2863_s18 = smov %s1934_s19 }
 0x175   : > { %p12_p7 = scmp.ge.s32.totalorder %s15_s20, 11   ;;  %s2864_s19 = smov %s2866_s21 }
 0x177   :  { %14 = sbr.rel (!%p12_p7) target bundleno = 2 (0x2), region = 84 }

// kernel: _lambda_.21
= control target key start
LH: loop header
LB: loop body
LE: loop exit
PB: predicated region body
PF: predicated region fallthrough
CT: control target
= control target key end

     0   :  { %vm156_vm0 = vcmask 257024   ;;  %s385_s0 = inlined_call_operand.vmem [shape: f32[128,32], index: 0, kind: input, shape index: {}]   ;;  %s386_s1 = inlined_call_operand.vmem [shape: f32[1,32], index: 1, kind: input, shape index: {}]   ;;  %s387_s2 = inlined_call_operand.vmem [shape: f32[1,32], index: 2, kind: input, shape index: {}]   ;;  %s388_s3 = inlined_call_operand.vmem [shape: bf16[128,32], index: 3, kind: output, shape index: {}]  }
   0x1   :  { %v14_v0 = vld [vmem:[%s385_s0] sm:$0xff]  ;;  %v15_v4 = vld [vmem:[%s385_s0 + $0x8] sm:$0xff]  ;;  %v16_v5 = vld [vmem:[%s385_s0 + $0x10] sm:$0xff] }
   0x2   :  { %v237_v1 = vld [vmem:[%s386_s1] ss:$0 sm:$0xff]  ;;  %v17_v6 = vld [vmem:[%s385_s0 + $0x18] sm:$0xff]  ;;  %v19_v11 = vld [vmem:[%s385_s0 + $0x28] sm:$0xff] }
   0x3   :  { %v242_v2 = vld [vmem:[%s387_s2] ss:$0 sm:$0xff]  ;;  %v37_v3 = vmul.f32 %v237_v1, %v14_v0  ;;  %v38_v7 = vmul.f32 %v237_v1, %v15_v4  ;;  %v39_v8 = vmul.f32 %v237_v1, %v16_v5  ;;  %v40_v9 = vmul.f32 %v237_v1, %v17_v6  ;;  %v20_v12 = vld [vmem:[%s385_s0 + $0x30] sm:$0xff]  ;;  %v21_v17 = vld [vmem:[%s385_s0 + $0x38] sm:$0xff] }
   0x4   :  { %v18_v10 = vld [vmem:[%s385_s0 + $0x20] sm:$0xff]  ;;  %v42_v15 = vmul.f32 %v237_v1, %v19_v11  ;;  %v43_v16 = vmul.f32 %v237_v1, %v20_v12  ;;  %v44_v21 = vmul.f32 %v237_v1, %v21_v17  ;;  %v23_v35 = vld [vmem:[%s385_s0 + $0x48] sm:$0xff]  ;;  %v24_v36 = vld [vmem:[%s385_s0 + $0x50] sm:$0xff] }
   0x5   :  { %v60_v13 = vadd.f32 %v242_v2, %v37_v3  ;;  %v41_v14 = vmul.f32 %v237_v1, %v18_v10  ;;  %v61_v18 = vadd.f32 %v242_v2, %v38_v7  ;;  %v62_v19 = vadd.f32 %v242_v2, %v39_v8  ;;  %v22_v30 = vld [vmem:[%s385_s0 + $0x40] sm:$0xff]  ;;  %v25_v37 = vld [vmem:[%s385_s0 + $0x58] sm:$0xff]  ;;  %v27_v43 = vld [vmem:[%s385_s0 + $0x68] sm:$0xff] }
   0x6   :  { %v63_v20 = vadd.f32 %v242_v2, %v40_v9  ;;  %v65_v24 = vadd.f32 %v242_v2, %v42_v15  ;;  %v66_v25 = vadd.f32 %v242_v2, %v43_v16  ;;  %v67_v29 = vadd.f32 %v242_v2, %v44_v21  ;;  %v26_v42 = vld [vmem:[%s385_s0 + $0x60] sm:$0xff]  ;;  %v28_v44 = vld [vmem:[%s385_s0 + $0x70] sm:$0xff]  ;;  %v29_v49 = vld [vmem:[%s385_s0 + $0x78] sm:$0xff] }
   0x7   :  { %v76_v22 = vmax.f32 %v60_v13, 0.0  ;;  %v64_v23 = vadd.f32 %v242_v2, %v41_v14  ;;  %v77_v26 = vmax.f32 %v61_v18, 0.0  ;;  %v78_v27 = vmax.f32 %v62_v19, 0.0 }
   0x8   :  { %v79_v28 = vmax.f32 %v63_v20, 0.0  ;;  %v81_v33 = vmax.f32 %v65_v24, 0.0  ;;  %v82_v34 = vmax.f32 %v66_v25, 0.0  ;;  %v83_v41 = vmax.f32 %v67_v29, 0.0 }
   0x9   :  { %v195_v31 = vpack.c.bf16 %v76_v22, %v76_v22  ;;  %v80_v32 = vmax.f32 %v64_v23, 0.0  ;;  %v196_v38 = vpack.c.bf16 %v77_v26, %v77_v26  ;;  %v197_v39 = vpack.c.bf16 %v78_v27, %v78_v27 }
   0xa   :  { %v198_v40 = vpack.c.bf16 %v79_v28, %v79_v28  ;;  %v200_v46 = vpack.c.bf16 %v81_v33, %v81_v33  ;;  %v201_v47 = vpack.c.bf16 %v82_v34, %v82_v34  ;;  %v45_v48 = vmul.f32 %v237_v1, %v22_v30 }
   0xb   :  { %157 = vst.msk [vmem:[%s388_s3] sm:$0xf] %vm156_vm0, %v195_v31  ;;  %v199_v45 = vpack.c.bf16 %v80_v32, %v80_v32  ;;  %158 = vst.msk [vmem:[%s388_s3 + $0x4] sm:$0xf] %vm156_vm0, %v196_v38  ;;  %v202_v50 = vpack.c.bf16 %v83_v41, %v83_v41  ;;  %v46_v51 = vmul.f32 %v237_v1, %v23_v35 }
   0xc   :  { %159 = vst.msk [vmem:[%s388_s3 + $0x8] sm:$0xf] %vm156_vm0, %v197_v39  ;;  %160 = vst.msk [vmem:[%s388_s3 + $0xc] sm:$0xf] %vm156_vm0, %v198_v40  ;;  %v47_v52 = vmul.f32 %v237_v1, %v24_v36  ;;  %v48_v53 = vmul.f32 %v237_v1, %v25_v37  ;;  %v68_v54 = vadd.f32 %v242_v2, %v45_v48 }
   0xd   :  { %161 = vst.msk [vmem:[%s388_s3 + $0x10] sm:$0xf] %vm156_vm0, %v199_v45  ;;  %162 = vst.msk [vmem:[%s388_s3 + $0x14] sm:$0xf] %vm156_vm0, %v200_v46  ;;  %v49_v55 = vmul.f32 %v237_v1, %v26_v42  ;;  %v50_v56 = vmul.f32 %v237_v1, %v27_v43  ;;  %v51_v57 = vmul.f32 %v237_v1, %v28_v44 }
   0xe   :  { %163 = vst.msk [vmem:[%s388_s3 + $0x18] sm:$0xf] %vm156_vm0, %v201_v47  ;;  %164 = vst.msk [vmem:[%s388_s3 + $0x1c] sm:$0xf] %vm156_vm0, %v202_v50  ;;  %v69_v58 = vadd.f32 %v242_v2, %v46_v51  ;;  %v70_v59 = vadd.f32 %v242_v2, %v47_v52  ;;  %v71_v60 = vadd.f32 %v242_v2, %v48_v53  ;;  %v84_v62 = vmax.f32 %v68_v54, 0.0 }
   0xf   :  { %v52_v61 = vmul.f32 %v237_v1, %v29_v49  ;;  %v72_v63 = vadd.f32 %v242_v2, %v49_v55  ;;  %v73_v0 = vadd.f32 %v242_v2, %v50_v56  ;;  %v74_v3 = vadd.f32 %v242_v2, %v51_v57 }
  0x10   :  { %v85_v4 = vmax.f32 %v69_v58, 0.0  ;;  %v86_v5 = vmax.f32 %v70_v59, 0.0  ;;  %v87_v6 = vmax.f32 %v71_v60, 0.0  ;;  %v203_v8 = vpack.c.bf16 %v84_v62, %v84_v62 }
  0x11   :  { %v75_v7 = vadd.f32 %v242_v2, %v52_v61  ;;  %v88_v9 = vmax.f32 %v72_v63, 0.0  ;;  %v89_v10 = vmax.f32 %v73_v0, 0.0  ;;  %v90_v11 = vmax.f32 %v74_v3, 0.0 }
  0x12   :  { %v204_v12 = vpack.c.bf16 %v85_v4, %v85_v4  ;;  %v205_v13 = vpack.c.bf16 %v86_v5, %v86_v5  ;;  %v206_v14 = vpack.c.bf16 %v87_v6, %v87_v6  ;;  %165 = vst.msk [vmem:[%s388_s3 + $0x20] sm:$0xf] %vm156_vm0, %v203_v8 }
  0x13   :  { %v91_v1 = vmax.f32 %v75_v7, 0.0  ;;  %v207_v15 = vpack.c.bf16 %v88_v9, %v88_v9  ;;  %v208_v16 = vpack.c.bf16 %v89_v10, %v89_v10  ;;  %v209_v17 = vpack.c.bf16 %v90_v11, %v90_v11 }
  0x14   :  { %166 = vst.msk [vmem:[%s388_s3 + $0x24] sm:$0xf] %vm156_vm0, %v204_v12  ;;  %167 = vst.msk [vmem:[%s388_s3 + $0x28] sm:$0xf] %vm156_vm0, %v205_v13 }
  0x15   :  { %168 = vst.msk [vmem:[%s388_s3 + $0x2c] sm:$0xf] %vm156_vm0, %v206_v14  ;;  %v210_v2 = vpack.c.bf16 %v91_v1, %v91_v1  ;;  %169 = vst.msk [vmem:[%s388_s3 + $0x30] sm:$0xf] %vm156_vm0, %v207_v15 }
  0x16   :  { %170 = vst.msk [vmem:[%s388_s3 + $0x34] sm:$0xf] %vm156_vm0, %v208_v16  ;;  %171 = vst.msk [vmem:[%s388_s3 + $0x38] sm:$0xf] %vm156_vm0, %v209_v17 }
  0x17   :  { %172 = vst.msk [vmem:[%s388_s3 + $0x3c] sm:$0xf] %vm156_vm0, %v210_v2 }

// kernel: _lambda_.20
= control target key start
LH: loop header
LB: loop body
LE: loop exit
PB: predicated region body
PF: predicated region fallthrough
CT: control target
= control target key end

     0   :  { %s930_s18 = smov 0   ;;  %s932_s19 = smov 0   ;;  %s1173_s0 = inlined_call_operand.vmem [shape: bf16[9,128,32], index: 0, kind: input, shape index: {}]   ;;  %s1174_s1 = inlined_call_operand.vmem [shape: bf16[9,32,32], index: 1, kind: input, shape index: {}]   ;;  %s1175_s2 = inlined_call_operand.vmem [shape: f32[1,32], index: 2, kind: input, shape index: {}]   ;;  %s1176_s3 = inlined_call_operand.vmem [shape: f32[1,32], index: 3, kind: input, shape index: {}]   ;;  %s1177_s4 = inlined_call_operand.vmem [shape: f32[128,32], index: 4, kind: input, shape index: {}]   ;;  %s1178_s5 = inlined_call_operand.vmem [shape: f32[128,32], index: 5, kind: output, shape index: {}]  }
   0x1   :  { %s934_s20 = smov 0  }
   0x2 LB: > { %s24_s21 = sadd.s32 1, %s893_s19  ;;  %p773_p0 = scmp.ge.s32.totalorder %s897_s20, 1  ;;  %s897_s20 = sphi %s934_s20, %s15_s20   ;;  %s893_s19 = sphi %s932_s19, %s1180_s19   ;;  %s889_s18 = sphi %s930_s18, %s1179_s18  }
   0x3   : > { %p25_p1 = scmp.ge.s32.totalorder %s24_s21, 9  ;;  %p227_p2 = scmp.lt.s32.totalorder %s897_s20, 10 }
   0x5   : > { %s1182_s21 = smov (%p25_p1, %s24_s21), 0  ;;  %p228_p3 = pnand %p773_p0, %p227_p2 }
   0x6   : > { %p270_p4 = scmp.lt.s32.totalorder (!%p228_p3), %s889_s18, 8  ;;  %p778_p5 = scmp.ne.s32.totalorder (!%p228_p3), %s889_s18, 0 }
   0x7   : > { %231 = sbr.rel (%p228_p3) target bundleno = 266 (0x10a), region = 40 }
   0xc   : > { %s271_s22 = scalar_select %p270_p4, %s889_s18, 8 }
   0xd   : > { %300 = sbr.rel (%p778_p5) target bundleno = 27 (0x1b), region = 44 }
   0xe   : > { %s804_s23 = sshll.u32 %s271_s22, 6  ;;  %s805_s24 = sshll.u32 %s271_s22, 4 }
   0xf   : > { %s955_s27 = scalar_lea.vmem %s1173_s0, %s804_s23  ;;  %s283_s30 = scalar_lea.vmem %s1174_s1, %s805_s24 }
  0x12   : > { %vm301_vm0 = vcmask 261120   ;;  %v899_v0 = vmov 0.0  }
  0x13   : > { %302 = vst.msk [vmem:[#allocation2] sm:$0xff] %vm301_vm0, %v899_v0  ;;  %303 = vst.msk [vmem:[#allocation2 + $0x8] sm:$0xff] %vm301_vm0, %v899_v0 }
  0x14   : > { %304 = vst.msk [vmem:[#allocation2 + $0x10] sm:$0xff] %vm301_vm0, %v899_v0  ;;  %305 = vst.msk [vmem:[#allocation2 + $0x18] sm:$0xff] %vm301_vm0, %v899_v0 }
  0x15   : > { %306 = vst.msk [vmem:[#allocation2 + $0x20] sm:$0xff] %vm301_vm0, %v899_v0  ;;  %307 = vst.msk [vmem:[#allocation2 + $0x28] sm:$0xff] %vm301_vm0, %v899_v0 }
  0x16   : > { %308 = vst.msk [vmem:[#allocation2 + $0x30] sm:$0xff] %vm301_vm0, %v899_v0  ;;  %309 = vst.msk [vmem:[#allocation2 + $0x38] sm:$0xff] %vm301_vm0, %v899_v0 }
  0x17   : > { %310 = vst.msk [vmem:[#allocation2 + $0x40] sm:$0xff] %vm301_vm0, %v899_v0  ;;  %311 = vst.msk [vmem:[#allocation2 + $0x48] sm:$0xff] %vm301_vm0, %v899_v0 }
  0x18   : > { %312 = vst.msk [vmem:[#allocation2 + $0x50] sm:$0xff] %vm301_vm0, %v899_v0  ;;  %313 = vst.msk [vmem:[#allocation2 + $0x58] sm:$0xff] %vm301_vm0, %v899_v0 }
  0x19   : > { %314 = vst.msk [vmem:[#allocation2 + $0x60] sm:$0xff] %vm301_vm0, %v899_v0  ;;  %315 = vst.msk [vmem:[#allocation2 + $0x68] sm:$0xff] %vm301_vm0, %v899_v0 }
  0x1a   : > { %316 = vst.msk [vmem:[#allocation2 + $0x70] sm:$0xff] %vm301_vm0, %v899_v0  ;;  %317 = vst.msk [vmem:[#allocation2 + $0x78] sm:$0xff] %vm301_vm0, %v899_v0 }
  0x1b PF: > { %v865_v1 = vld [vmem:[%s283_s30 + $0x8] sm:$0xff]   ;;  %v866_v2 = vld [vmem:[%s283_s30] sm:$0xff]   ;;  %vm406_vm1 = vcmask 261120   ;;  %v871_v7 = vld [vmem:[%s955_s27 + $0x10] sm:$0xff]   ;;  %p797_p6 = scmp.ne.s32.totalorder %s889_s18, 8 }
  0x1c   : > { %816 = vmatprep.subr.bf16.mxu0 %v865_v1  ;;  %836 = vmatprep.subr.bf16.mxu1 %v865_v1  ;;  %v867_v3 = vld [vmem:[%s955_s27] sm:$0xff]   ;;  %v869_v5 = vld [vmem:[%s955_s27 + $0x8] sm:$0xff]   ;;  %v872_v8 = vld [vmem:[%s955_s27 + $0x30] sm:$0xff]  }
  0x1d   : > { %817 = vmatpush3.bf16.msra.mxu0 %v865_v1  ;;  %838 = vmatpush3.bf16.msra.mxu1 %v865_v1  ;;  %v868_v4 = vld [vmem:[%s955_s27 + $0x20] sm:$0xff]   ;;  %v870_v6 = vld [vmem:[%s955_s27 + $0x28] sm:$0xff]   ;;  %v873_v9 = vld [vmem:[%s955_s27 + $0x18] sm:$0xff]  }
  0x1e   : > { %818 = vmatprep.subr.bf16.mxu0 %v866_v2  ;;  %837 = vmatprep.subr.bf16.mxu1 %v866_v2  ;;  %v874_v10 = vld [vmem:[%s955_s27 + $0x38] sm:$0xff]   ;;  %v320_v11 = vld [vmem:[#allocation2 + $0x10] sm:$0xff]  ;;  %v318_v15 = vld [vmem:[#allocation2] sm:$0xff] }
  0x1f   : > { %820 = vmatprep.mubr.msk.bf16.mxu0 %vm406_vm1, %v867_v3  ;;  %828 = vmatprep.mubr.msk.bf16.mxu1 %vm406_vm1, %v868_v4  ;;  %v328_v12 = vld [vmem:[#allocation2 + $0x50] sm:$0xff]  ;;  %v326_v16 = vld [vmem:[#allocation2 + $0x40] sm:$0xff]  ;;  %v321_v21 = vld [vmem:[#allocation2 + $0x18] sm:$0xff] }
  0x20   : > { %v329_v22 = vld [vmem:[#allocation2 + $0x58] sm:$0xff]  ;;  %v319_v27 = vld [vmem:[#allocation2 + $0x8] sm:$0xff]  ;;  %v324_v33 = vld [vmem:[#allocation2 + $0x30] sm:$0xff] }
  0x21   : > { %819 = vmatpush3.bf16.msra.mxu0 %v866_v2  ;;  %839 = vmatpush3.bf16.msra.mxu1 %v866_v2  ;;  %v327_v28 = vld [vmem:[#allocation2 + $0x48] sm:$0xff]  ;;  %v332_v34 = vld [vmem:[#allocation2 + $0x70] sm:$0xff]  ;;  %v322_v39 = vld [vmem:[#allocation2 + $0x20] sm:$0xff] }
  0x22   : > { %v330_v40 = vld [vmem:[#allocation2 + $0x60] sm:$0xff]  ;;  %v325_v45 = vld [vmem:[#allocation2 + $0x38] sm:$0xff]  ;;  %v323_v51 = vld [vmem:[#allocation2 + $0x28] sm:$0xff] }
  0x23   : > { %v333_v46 = vld [vmem:[#allocation2 + $0x78] sm:$0xff]  ;;  %v331_v52 = vld [vmem:[#allocation2 + $0x68] sm:$0xff] }
  0x24   : > { %821 = vmatmul.mubr.msk.bf16.vlgmr.msra.gmra.mxu0 %vm406_vm1, %v869_v5  ;;  %829 = vmatmul.mubr.msk.bf16.vlgmr.msra.gmra.mxu1 %vm406_vm1, %v870_v6 }
  0x25   : > { %824 = vmatprep.mubr.msk.bf16.mxu0 %vm406_vm1, %v871_v7  ;;  %832 = vmatprep.mubr.msk.bf16.mxu1 %vm406_vm1, %v872_v8 }
  0x2c   : > { %825 = vmatmul.mubr.msk.bf16.gmra.mxu0 %vm406_vm1, %v873_v9  ;;  %833 = vmatmul.mubr.msk.bf16.gmra.mxu1 %vm406_vm1, %v874_v10 }
  0xe4   : > { %v822_v13 = vpop.f32.mrf.mxu0  ;;  %v830_v14 = vpop.f32.mrf.mxu1 }
  0xe5   : > { %v530_v17 = vadd.f32 %v822_v13, %v320_v11  ;;  %v538_v18 = vadd.f32 %v830_v14, %v328_v12 }
  0xe6   : > { %v465_v19 = vpop.f32.mrf.mxu0  ;;  %v497_v20 = vpop.f32.mrf.mxu1 }
  0xe7   : > { %546 = vst.msk [vmem:[#allocation2 + $0x10] sm:$0xff] %vm406_vm1, %v530_v17  ;;  %554 = vst.msk [vmem:[#allocation2 + $0x50] sm:$0xff] %vm406_vm1, %v538_v18  ;;  %v528_v23 = vadd.f32 %v465_v19, %v318_v15  ;;  %v536_v24 = vadd.f32 %v497_v20, %v326_v16 }
  0xe8   : > { %v823_v25 = vpop.f32.mrf.mxu0  ;;  %v831_v26 = vpop.f32.mrf.mxu1 }
  0xe9   : > { %544 = vst.msk [vmem:[#allocation2] sm:$0xff] %vm406_vm1, %v528_v23  ;;  %552 = vst.msk [vmem:[#allocation2 + $0x40] sm:$0xff] %vm406_vm1, %v536_v24  ;;  %v531_v29 = vadd.f32 %v823_v25, %v321_v21  ;;  %v539_v30 = vadd.f32 %v831_v26, %v329_v22 }
  0xea   : > { %v468_v31 = vpop.f32.mrf.mxu0  ;;  %v500_v32 = vpop.f32.mrf.mxu1 }
  0xeb   : > { %547 = vst.msk [vmem:[#allocation2 + $0x18] sm:$0xff] %vm406_vm1, %v531_v29  ;;  %555 = vst.msk [vmem:[#allocation2 + $0x58] sm:$0xff] %vm406_vm1, %v539_v30  ;;  %v529_v35 = vadd.f32 %v468_v31, %v319_v27  ;;  %v537_v36 = vadd.f32 %v500_v32, %v327_v28 }
  0xec   : > { %v826_v37 = vpop.f32.mrf.mxu0  ;;  %v834_v38 = vpop.f32.mrf.mxu1 }
  0xed   : > { %545 = vst.msk [vmem:[#allocation2 + $0x8] sm:$0xff] %vm406_vm1, %v529_v35  ;;  %553 = vst.msk [vmem:[#allocation2 + $0x48] sm:$0xff] %vm406_vm1, %v537_v36  ;;  %v534_v41 = vadd.f32 %v826_v37, %v324_v33  ;;  %v542_v42 = vadd.f32 %v834_v38, %v332_v34 }
  0xee   : > { %v481_v43 = vpop.f32.mrf.mxu0  ;;  %v513_v44 = vpop.f32.mrf.mxu1 }
  0xef   : > { %550 = vst.msk [vmem:[#allocation2 + $0x30] sm:$0xff] %vm406_vm1, %v534_v41  ;;  %558 = vst.msk [vmem:[#allocation2 + $0x70] sm:$0xff] %vm406_vm1, %v542_v42  ;;  %v532_v47 = vadd.f32 %v481_v43, %v322_v39  ;;  %v540_v48 = vadd.f32 %v513_v44, %v330_v40 }
  0xf0   : > { %v827_v49 = vpop.f32.mrf.mxu0  ;;  %v835_v50 = vpop.f32.mrf.mxu1 }
  0xf1   : > { %548 = vst.msk [vmem:[#allocation2 + $0x20] sm:$0xff] %vm406_vm1, %v532_v47  ;;  %556 = vst.msk [vmem:[#allocation2 + $0x60] sm:$0xff] %vm406_vm1, %v540_v48  ;;  %v535_v53 = vadd.f32 %v827_v49, %v325_v45  ;;  %v543_v54 = vadd.f32 %v835_v50, %v333_v46  ;;  %563 = sbr.rel (%p797_p6) target bundleno = 266 (0x10a), region = 48 }
  0xf2   : > { %v484_v55 = vpop.f32.mrf.mxu0  ;;  %v516_v56 = vpop.f32.mrf.mxu1 }
  0xf3   : > { %551 = vst.msk [vmem:[#allocation2 + $0x38] sm:$0xff] %vm406_vm1, %v535_v53  ;;  %559 = vst.msk [vmem:[#allocation2 + $0x78] sm:$0xff] %vm406_vm1, %v543_v54  ;;  %v533_v57 = vadd.f32 %v484_v55, %v323_v51  ;;  %v541_v58 = vadd.f32 %v516_v56, %v331_v52 }
  0xf5   : > { %549 = vst.msk [vmem:[#allocation2 + $0x28] sm:$0xff] %vm406_vm1, %v533_v57  ;;  %557 = vst.msk [vmem:[#allocation2 + $0x68] sm:$0xff] %vm406_vm1, %v541_v58 }
  0xf6   : > { %v564_v59 = vld [vmem:[#allocation2] sm:$0xff]  ;;  %v565_v63 = vld [vmem:[#allocation2 + $0x8] sm:$0xff]  ;;  %v566_v2 = vld [vmem:[#allocation2 + $0x10] sm:$0xff] }
  0xf7   : > { %v1013_v60 = vld [vmem:[%s1175_s2] ss:$0 sm:$0xff]  ;;  %v567_v3 = vld [vmem:[#allocation2 + $0x18] sm:$0xff]  ;;  %v627_v5 = vld [vmem:[%s1177_s4 + $0x8] sm:$0xff] }
  0xf8   : > { %v1018_v61 = vld [vmem:[%s1176_s3] ss:$0 sm:$0xff]  ;;  %v587_v62 = vmul.f32 %v1013_v60, %v564_v59  ;;  %v588_v1 = vmul.f32 %v1013_v60, %v565_v63  ;;  %v589_v6 = vmul.f32 %v1013_v60, %v566_v2  ;;  %v628_v7 = vld [vmem:[%s1177_s4 + $0x10] sm:$0xff]  ;;  %v590_v8 = vmul.f32 %v1013_v60, %v567_v3  ;;  %v629_v11 = vld [vmem:[%s1177_s4 + $0x18] sm:$0xff] }
  0xf9   : > { %v626_v0 = vld [vmem:[%s1177_s4] sm:$0xff]  ;;  %v570_v14 = vld [vmem:[#allocation2 + $0x30] sm:$0xff]  ;;  %v631_v23 = vld [vmem:[%s1177_s4 + $0x28] sm:$0xff] }
  0xfa   : > { %v610_v4 = vadd.f32 %v1018_v61, %v587_v62  ;;  %v568_v9 = vld [vmem:[#allocation2 + $0x20] sm:$0xff]  ;;  %v611_v10 = vadd.f32 %v1018_v61, %v588_v1  ;;  %v612_v16 = vadd.f32 %v1018_v61, %v589_v6  ;;  %v613_v17 = vadd.f32 %v1018_v61, %v590_v8  ;;  %v571_v20 = vld [vmem:[#allocation2 + $0x38] sm:$0xff]  ;;  %v573_v27 = vld [vmem:[#allocation2 + $0x48] sm:$0xff] }
  0xfb   : > { %v591_v12 = vmul.f32 %v1013_v60, %v568_v9  ;;  %v630_v18 = vld [vmem:[%s1177_s4 + $0x20] sm:$0xff]  ;;  %v593_v24 = vmul.f32 %v1013_v60, %v570_v14  ;;  %v594_v25 = vmul.f32 %v1013_v60, %v571_v20  ;;  %v632_v31 = vld [vmem:[%s1177_s4 + $0x30] sm:$0xff]  ;;  %v633_v32 = vld [vmem:[%s1177_s4 + $0x38] sm:$0xff]  ;;  %v596_v39 = vmul.f32 %v1013_v60, %v573_v27 }
  0xfc   : > { %v569_v13 = vld [vmem:[#allocation2 + $0x28] sm:$0xff]  ;;  %v642_v15 = vadd.f32 %v626_v0, %v610_v4  ;;  %v643_v21 = vadd.f32 %v627_v5, %v611_v10  ;;  %v572_v26 = vld [vmem:[#allocation2 + $0x40] sm:$0xff]  ;;  %v644_v28 = vadd.f32 %v628_v7, %v612_v16  ;;  %v645_v29 = vadd.f32 %v629_v11, %v613_v17  ;;  %v574_v34 = vld [vmem:[#allocation2 + $0x50] sm:$0xff] }
  0xfd   : > { %v592_v19 = vmul.f32 %v1013_v60, %v569_v13  ;;  %v614_v22 = vadd.f32 %v1018_v61, %v591_v12  ;;  %v595_v33 = vmul.f32 %v1013_v60, %v572_v26  ;;  %v616_v36 = vadd.f32 %v1018_v61, %v593_v24  ;;  %v634_v38 = vld [vmem:[%s1177_s4 + $0x40] sm:$0xff]  ;;  %v575_v40 = vld [vmem:[#allocation2 + $0x58] sm:$0xff]  ;;  %v635_v44 = vld [vmem:[%s1177_s4 + $0x48] sm:$0xff] }
  0xfe   : > { %658 = vst.msk [vmem:[%s1178_s5] sm:$0xff] %vm406_vm1, %v642_v15  ;;  %659 = vst.msk [vmem:[%s1178_s5 + $0x8] sm:$0xff] %vm406_vm1, %v643_v21  ;;  %v617_v37 = vadd.f32 %v1018_v61, %v594_v25  ;;  %v576_v41 = vld [vmem:[#allocation2 + $0x60] sm:$0xff]  ;;  %v597_v45 = vmul.f32 %v1013_v60, %v574_v34  ;;  %v636_v46 = vld [vmem:[%s1177_s4 + $0x50] sm:$0xff]  ;;  %v598_v47 = vmul.f32 %v1013_v60, %v575_v40 }
  0xff   : > { %v615_v30 = vadd.f32 %v1018_v61, %v592_v19  ;;  %v646_v35 = vadd.f32 %v630_v18, %v614_v22  ;;  %660 = vst.msk [vmem:[%s1178_s5 + $0x10] sm:$0xff] %vm406_vm1, %v644_v28  ;;  %661 = vst.msk [vmem:[%s1178_s5 + $0x18] sm:$0xff] %vm406_vm1, %v645_v29  ;;  %v618_v43 = vadd.f32 %v1018_v61, %v595_v33  ;;  %v577_v48 = vld [vmem:[#allocation2 + $0x68] sm:$0xff]  ;;  %v637_v52 = vld [vmem:[%s1177_s4 + $0x58] sm:$0xff] }
 0x100   : > { %v648_v49 = vadd.f32 %v632_v31, %v616_v36  ;;  %v649_v50 = vadd.f32 %v633_v32, %v617_v37  ;;  %v619_v51 = vadd.f32 %v1018_v61, %v596_v39  ;;  %v599_v53 = vmul.f32 %v1013_v60, %v576_v41  ;;  %v578_v54 = vld [vmem:[#allocation2 + $0x70] sm:$0xff]  ;;  %v579_v55 = vld [vmem:[#allocation2 + $0x78] sm:$0xff]  ;;  %v638_v59 = vld [vmem:[%s1177_s4 + $0x60] sm:$0xff] }
 0x101   : > { %v647_v42 = vadd.f32 %v631_v23, %v615_v30  ;;  %662 = vst.msk [vmem:[%s1178_s5 + $0x20] sm:$0xff] %vm406_vm1, %v646_v35  ;;  %v650_v56 = vadd.f32 %v634_v38, %v618_v43  ;;  %v620_v57 = vadd.f32 %v1018_v61, %v597_v45  ;;  %v621_v58 = vadd.f32 %v1018_v61, %v598_v47  ;;  %v639_v1 = vld [vmem:[%s1177_s4 + $0x68] sm:$0xff]  ;;  %v640_v7 = vld [vmem:[%s1177_s4 + $0x70] sm:$0xff]  ;;  %v641_v8 = vld [vmem:[%s1177_s4 + $0x78] sm:$0xff] }
 0x102   : > { %v600_v62 = vmul.f32 %v1013_v60, %v577_v48  ;;  %664 = vst.msk [vmem:[%s1178_s5 + $0x30] sm:$0xff] %vm406_vm1, %v648_v49  ;;  %665 = vst.msk [vmem:[%s1178_s5 + $0x38] sm:$0xff] %vm406_vm1, %v649_v50  ;;  %v651_v63 = vadd.f32 %v635_v44, %v619_v51  ;;  %v622_v0 = vadd.f32 %v1018_v61, %v599_v53 }
 0x103   : > { %663 = vst.msk [vmem:[%s1178_s5 + $0x28] sm:$0xff] %vm406_vm1, %v647_v42  ;;  %v601_v2 = vmul.f32 %v1013_v60, %v578_v54  ;;  %v602_v3 = vmul.f32 %v1013_v60, %v579_v55  ;;  %666 = vst.msk [vmem:[%s1178_s5 + $0x40] sm:$0xff] %vm406_vm1, %v650_v56  ;;  %v652_v4 = vadd.f32 %v636_v46, %v620_v57 }
 0x104   : > { %v653_v5 = vadd.f32 %v637_v52, %v621_v58  ;;  %v623_v6 = vadd.f32 %v1018_v61, %v600_v62  ;;  %667 = vst.msk [vmem:[%s1178_s5 + $0x48] sm:$0xff] %vm406_vm1, %v651_v63  ;;  %v654_v60 = vadd.f32 %v638_v59, %v622_v0 }
 0x105   : > { %v624_v9 = vadd.f32 %v1018_v61, %v601_v2  ;;  %v625_v10 = vadd.f32 %v1018_v61, %v602_v3  ;;  %668 = vst.msk [vmem:[%s1178_s5 + $0x50] sm:$0xff] %vm406_vm1, %v652_v4 }
 0x106   : > { %669 = vst.msk [vmem:[%s1178_s5 + $0x58] sm:$0xff] %vm406_vm1, %v653_v5  ;;  %v655_v11 = vadd.f32 %v639_v1, %v623_v6  ;;  %670 = vst.msk [vmem:[%s1178_s5 + $0x60] sm:$0xff] %vm406_vm1, %v654_v60 }
 0x107   : > { %v656_v12 = vadd.f32 %v640_v7, %v624_v9  ;;  %v657_v13 = vadd.f32 %v641_v8, %v625_v10 }
 0x108   : > { %671 = vst.msk [vmem:[%s1178_s5 + $0x68] sm:$0xff] %vm406_vm1, %v655_v11 }
 0x109   : > { %672 = vst.msk [vmem:[%s1178_s5 + $0x70] sm:$0xff] %vm406_vm1, %v656_v12  ;;  %673 = vst.msk [vmem:[%s1178_s5 + $0x78] sm:$0xff] %vm406_vm1, %v657_v13 }
 0x10a PF: > { %s15_s20 = sadd.s32 1, %s897_s20   ;;  %s1179_s18 = smov %s893_s19 }
 0x10b   : > { %p12_p7 = scmp.ge.s32.totalorder %s15_s20, 11   ;;  %s1180_s19 = smov %s1182_s21 }
 0x10d   :  { %14 = sbr.rel (!%p12_p7) target bundleno = 2 (0x2), region = 84 }

// kernel: _lambda_.19
= control target key start
LH: loop header
LB: loop body
LE: loop exit
PB: predicated region body
PF: predicated region fallthrough
CT: control target
= control target key end

     0   :  { %vm22_vm0 = vcmask 261120   ;;  %v417_v1 = vmov 0.0   ;;  %vm119_vm1 = vcmask 130048   ;;  %s616_s1 = inlined_call_operand.vmem [shape: bf16[1,16,32], index: 1, kind: input, shape index: {}]   ;;  %s617_s0 = inlined_call_operand.vmem [shape: bf16[1,128,16], index: 0, kind: input, shape index: {}]   ;;  %s618_s2 = inlined_call_operand.vmem [shape: f32[1,32], index: 2, kind: input, shape index: {}]   ;;  %s619_s3 = inlined_call_operand.vmem [shape: f32[1,32], index: 3, kind: input, shape index: {}]   ;;  %s620_s4 = inlined_call_operand.vmem [shape: f32[128,32], index: 4, kind: output, shape index: {}]  }
   0x1   :  { %v408_v0 = vld [vmem:[%s616_s1] sm:$0xff]   ;;  %25 = vst.msk [vmem:[#allocation2 + $0x10] sm:$0xff] %vm22_vm0, %v417_v1  ;;  %23 = vst.msk [vmem:[#allocation2] sm:$0xff] %vm22_vm0, %v417_v1  ;;  %v411_v4 = vld [vmem:[%s617_s0 + $0x8] sm:$0xff]  }
   0x2   :  { %24 = vst.msk [vmem:[#allocation2 + $0x8] sm:$0xff] %vm22_vm0, %v417_v1  ;;  %26 = vst.msk [vmem:[#allocation2 + $0x18] sm:$0xff] %vm22_vm0, %v417_v1  ;;  %v409_v2 = vld [vmem:[%s617_s0] sm:$0xff]   ;;  %387 = vmatprep.subr.bf16.mxu0 %v408_v0  ;;  %405 = vmatprep.subr.bf16.mxu1 %v408_v0  ;;  %v412_v5 = vld [vmem:[%s617_s0 + $0x28] sm:$0xff]  }
   0x3   :  { %27 = vst.msk [vmem:[#allocation2 + $0x20] sm:$0xff] %vm22_vm0, %v417_v1  ;;  %28 = vst.msk [vmem:[#allocation2 + $0x28] sm:$0xff] %vm22_vm0, %v417_v1  ;;  %v410_v3 = vld [vmem:[%s617_s0 + $0x20] sm:$0xff]   ;;  %388 = vmatpush3.bf16.msra.mxu0 %v408_v0  ;;  %406 = vmatpush3.bf16.msra.mxu1 %v408_v0  ;;  %v413_v6 = vld [vmem:[%s617_s0 + $0x10] sm:$0xff]  }
   0x4   :  { %29 = vst.msk [vmem:[#allocation2 + $0x30] sm:$0xff] %vm22_vm0, %v417_v1  ;;  %30 = vst.msk [vmem:[#allocation2 + $0x38] sm:$0xff] %vm22_vm0, %v417_v1  ;;  %389 = vmatprep.mubr.msk.bf16.mxu0 %vm119_vm1, %v409_v2  ;;  %397 = vmatprep.mubr.msk.bf16.mxu1 %vm119_vm1, %v410_v3  ;;  %v414_v7 = vld [vmem:[%s617_s0 + $0x30] sm:$0xff]   ;;  %v415_v8 = vld [vmem:[%s617_s0 + $0x18] sm:$0xff]  }
   0x5   :  { %31 = vst.msk [vmem:[#allocation2 + $0x40] sm:$0xff] %vm22_vm0, %v417_v1  ;;  %32 = vst.msk [vmem:[#allocation2 + $0x48] sm:$0xff] %vm22_vm0, %v417_v1  ;;  %v416_v9 = vld [vmem:[%s617_s0 + $0x38] sm:$0xff]   ;;  %v503_v36 = vld [vmem:[%s618_s2] ss:$0 sm:$0xff] }
   0x6   :  { %33 = vst.msk [vmem:[#allocation2 + $0x50] sm:$0xff] %vm22_vm0, %v417_v1  ;;  %34 = vst.msk [vmem:[#allocation2 + $0x58] sm:$0xff] %vm22_vm0, %v417_v1  ;;  %390 = vmatmul.mubr.msk.bf16.vlgmr.msra.gmra.mxu0 %vm119_vm1, %v411_v4  ;;  %398 = vmatmul.mubr.msk.bf16.vlgmr.msra.gmra.mxu1 %vm119_vm1, %v412_v5  ;;  %v510_v44 = vld [vmem:[%s619_s3] ss:$0 sm:$0xff] }
   0x7   :  { %35 = vst.msk [vmem:[#allocation2 + $0x60] sm:$0xff] %vm22_vm0, %v417_v1  ;;  %36 = vst.msk [vmem:[#allocation2 + $0x68] sm:$0xff] %vm22_vm0, %v417_v1  ;;  %393 = vmatprep.mubr.msk.bf16.mxu0 %vm119_vm1, %v413_v6  ;;  %401 = vmatprep.mubr.msk.bf16.mxu1 %vm119_vm1, %v414_v7 }
   0x8   :  { %37 = vst.msk [vmem:[#allocation2 + $0x70] sm:$0xff] %vm22_vm0, %v417_v1  ;;  %38 = vst.msk [vmem:[#allocation2 + $0x78] sm:$0xff] %vm22_vm0, %v417_v1  ;;  %v41_v10 = vld [vmem:[#allocation2 + $0x10] sm:$0xff]  ;;  %v39_v14 = vld [vmem:[#allocation2] sm:$0xff] }
   0x9   :  { %v42_v20 = vld [vmem:[#allocation2 + $0x18] sm:$0xff]  ;;  %v40_v26 = vld [vmem:[#allocation2 + $0x8] sm:$0xff] }
   0xa   :  { %v43_v39 = vld [vmem:[#allocation2 + $0x20] sm:$0xff]  ;;  %v44_v62 = vld [vmem:[#allocation2 + $0x28] sm:$0xff] }
   0xb   :  { %v45_v32 = vld [vmem:[#allocation2 + $0x30] sm:$0xff]  ;;  %v46_v52 = vld [vmem:[#allocation2 + $0x38] sm:$0xff] }
   0xc   :  { %v47_v15 = vld [vmem:[#allocation2 + $0x40] sm:$0xff]  ;;  %v48_v27 = vld [vmem:[#allocation2 + $0x48] sm:$0xff] }
   0xd   :  { %v49_v11 = vld [vmem:[#allocation2 + $0x50] sm:$0xff]  ;;  %v50_v21 = vld [vmem:[#allocation2 + $0x58] sm:$0xff] }
   0xe   :  { %394 = vmatmul.mubr.msk.bf16.gmra.mxu0 %vm119_vm1, %v415_v8  ;;  %402 = vmatmul.mubr.msk.bf16.gmra.mxu1 %vm119_vm1, %v416_v9  ;;  %v51_v40 = vld [vmem:[#allocation2 + $0x60] sm:$0xff]  ;;  %v52_v63 = vld [vmem:[#allocation2 + $0x68] sm:$0xff] }
   0xf   :  { %v53_v33 = vld [vmem:[#allocation2 + $0x70] sm:$0xff]  ;;  %v54_v53 = vld [vmem:[#allocation2 + $0x78] sm:$0xff] }
  0xc6   :  { %v391_v12 = vpop.f32.mrf.mxu0  ;;  %v399_v13 = vpop.f32.mrf.mxu1 }
  0xc7   :  { %v243_v16 = vadd.f32 %v391_v12, %v41_v10  ;;  %v251_v17 = vadd.f32 %v399_v13, %v49_v11 }
  0xc8   :  { %v178_v18 = vpop.f32.mrf.mxu0  ;;  %v210_v19 = vpop.f32.mrf.mxu1 }
  0xc9   :  { %260 = vst.msk [vmem:[#allocation2 + $0x10] sm:$0xff] %vm22_vm0, %v243_v16  ;;  %268 = vst.msk [vmem:[#allocation2 + $0x50] sm:$0xff] %vm22_vm0, %v251_v17  ;;  %v241_v22 = vadd.f32 %v178_v18, %v39_v14  ;;  %v249_v23 = vadd.f32 %v210_v19, %v47_v15 }
  0xca   :  { %v392_v24 = vpop.f32.mrf.mxu0  ;;  %v400_v25 = vpop.f32.mrf.mxu1 }
  0xcb   :  { %258 = vst.msk [vmem:[#allocation2] sm:$0xff] %vm22_vm0, %v241_v22  ;;  %266 = vst.msk [vmem:[#allocation2 + $0x40] sm:$0xff] %vm22_vm0, %v249_v23  ;;  %v244_v28 = vadd.f32 %v392_v24, %v42_v20  ;;  %v252_v29 = vadd.f32 %v400_v25, %v50_v21 }
  0xcc   :  { %v181_v30 = vpop.f32.mrf.mxu0  ;;  %v213_v31 = vpop.f32.mrf.mxu1 }
  0xcd   :  { %261 = vst.msk [vmem:[#allocation2 + $0x18] sm:$0xff] %vm22_vm0, %v244_v28  ;;  %269 = vst.msk [vmem:[#allocation2 + $0x58] sm:$0xff] %vm22_vm0, %v252_v29  ;;  %v242_v34 = vadd.f32 %v181_v30, %v40_v26  ;;  %v250_v35 = vadd.f32 %v213_v31, %v48_v27 }
  0xce   :  { %v395_v37 = vpop.f32.mrf.mxu0  ;;  %v403_v38 = vpop.f32.mrf.mxu1 }
  0xcf   :  { %259 = vst.msk [vmem:[#allocation2 + $0x8] sm:$0xff] %vm22_vm0, %v242_v34  ;;  %267 = vst.msk [vmem:[#allocation2 + $0x48] sm:$0xff] %vm22_vm0, %v250_v35  ;;  %v247_v41 = vadd.f32 %v395_v37, %v45_v32  ;;  %v255_v42 = vadd.f32 %v403_v38, %v53_v33 }
  0xd0   :  { %v279_v43 = vld [vmem:[#allocation2 + $0x10] sm:$0xff]  ;;  %v194_v46 = vpop.f32.mrf.mxu0  ;;  %v226_v47 = vpop.f32.mrf.mxu1 }
  0xd1   :  { %v287_v45 = vld [vmem:[#allocation2 + $0x50] sm:$0xff]  ;;  %v302_v48 = vmul.f32 %v503_v36, %v279_v43  ;;  %264 = vst.msk [vmem:[#allocation2 + $0x30] sm:$0xff] %vm22_vm0, %v247_v41  ;;  %272 = vst.msk [vmem:[#allocation2 + $0x70] sm:$0xff] %vm22_vm0, %v255_v42  ;;  %v245_v50 = vadd.f32 %v194_v46, %v43_v39  ;;  %v253_v51 = vadd.f32 %v226_v47, %v51_v40 }
  0xd2   :  { %v310_v49 = vmul.f32 %v503_v36, %v287_v45  ;;  %v277_v54 = vld [vmem:[#allocation2] sm:$0xff]  ;;  %v396_v56 = vpop.f32.mrf.mxu0  ;;  %v404_v57 = vpop.f32.mrf.mxu1 }
  0xd3   :  { %v285_v55 = vld [vmem:[#allocation2 + $0x40] sm:$0xff]  ;;  %v325_v58 = vadd.f32 %v510_v44, %v302_v48  ;;  %v300_v60 = vmul.f32 %v503_v36, %v277_v54  ;;  %262 = vst.msk [vmem:[#allocation2 + $0x20] sm:$0xff] %vm22_vm0, %v245_v50  ;;  %270 = vst.msk [vmem:[#allocation2 + $0x60] sm:$0xff] %vm22_vm0, %v253_v51  ;;  %v248_v2 = vadd.f32 %v396_v56, %v46_v52 }
  0xd4   :  { %v333_v59 = vadd.f32 %v510_v44, %v310_v49  ;;  %v308_v61 = vmul.f32 %v503_v36, %v285_v55  ;;  %v280_v0 = vld [vmem:[#allocation2 + $0x18] sm:$0xff]  ;;  %v256_v3 = vadd.f32 %v404_v57, %v54_v53  ;;  %v197_v4 = vpop.f32.mrf.mxu0  ;;  %v229_v5 = vpop.f32.mrf.mxu1 }
  0xd5   :  { %v288_v1 = vld [vmem:[#allocation2 + $0x58] sm:$0xff]  ;;  %341 = vst.msk [vmem:[%s620_s4 + $0x10] sm:$0xff] %vm22_vm0, %v325_v58  ;;  %v323_v6 = vadd.f32 %v510_v44, %v300_v60  ;;  %v303_v8 = vmul.f32 %v503_v36, %v280_v0  ;;  %265 = vst.msk [vmem:[#allocation2 + $0x38] sm:$0xff] %vm22_vm0, %v248_v2  ;;  %v246_v12 = vadd.f32 %v197_v4, %v44_v62 }
  0xd6   :  { %349 = vst.msk [vmem:[%s620_s4 + $0x50] sm:$0xff] %vm22_vm0, %v333_v59  ;;  %v331_v7 = vadd.f32 %v510_v44, %v308_v61  ;;  %v311_v9 = vmul.f32 %v503_v36, %v288_v1  ;;  %v278_v10 = vld [vmem:[#allocation2 + $0x8] sm:$0xff]  ;;  %273 = vst.msk [vmem:[#allocation2 + $0x78] sm:$0xff] %vm22_vm0, %v256_v3  ;;  %v254_v13 = vadd.f32 %v229_v5, %v52_v63 }
  0xd7   :  { %v286_v11 = vld [vmem:[#allocation2 + $0x48] sm:$0xff]  ;;  %339 = vst.msk [vmem:[%s620_s4] sm:$0xff] %vm22_vm0, %v323_v6  ;;  %v326_v14 = vadd.f32 %v510_v44, %v303_v8  ;;  %v301_v16 = vmul.f32 %v503_v36, %v278_v10  ;;  %263 = vst.msk [vmem:[#allocation2 + $0x28] sm:$0xff] %vm22_vm0, %v246_v12 }
  0xd8   :  { %347 = vst.msk [vmem:[%s620_s4 + $0x40] sm:$0xff] %vm22_vm0, %v331_v7  ;;  %v334_v15 = vadd.f32 %v510_v44, %v311_v9  ;;  %v309_v17 = vmul.f32 %v503_v36, %v286_v11  ;;  %v283_v18 = vld [vmem:[#allocation2 + $0x30] sm:$0xff]  ;;  %271 = vst.msk [vmem:[#allocation2 + $0x68] sm:$0xff] %vm22_vm0, %v254_v13 }
  0xd9   :  { %v291_v19 = vld [vmem:[#allocation2 + $0x70] sm:$0xff]  ;;  %342 = vst.msk [vmem:[%s620_s4 + $0x18] sm:$0xff] %vm22_vm0, %v326_v14  ;;  %v324_v20 = vadd.f32 %v510_v44, %v301_v16  ;;  %v306_v22 = vmul.f32 %v503_v36, %v283_v18 }
  0xda   :  { %350 = vst.msk [vmem:[%s620_s4 + $0x58] sm:$0xff] %vm22_vm0, %v334_v15  ;;  %v332_v21 = vadd.f32 %v510_v44, %v309_v17  ;;  %v314_v23 = vmul.f32 %v503_v36, %v291_v19  ;;  %v281_v24 = vld [vmem:[#allocation2 + $0x20] sm:$0xff] }
  0xdb   :  { %v289_v25 = vld [vmem:[#allocation2 + $0x60] sm:$0xff]  ;;  %340 = vst.msk [vmem:[%s620_s4 + $0x8] sm:$0xff] %vm22_vm0, %v324_v20  ;;  %v329_v26 = vadd.f32 %v510_v44, %v306_v22  ;;  %v304_v28 = vmul.f32 %v503_v36, %v281_v24 }
  0xdc   :  { %348 = vst.msk [vmem:[%s620_s4 + $0x48] sm:$0xff] %vm22_vm0, %v332_v21  ;;  %v337_v27 = vadd.f32 %v510_v44, %v314_v23  ;;  %v312_v29 = vmul.f32 %v503_v36, %v289_v25  ;;  %v284_v32 = vld [vmem:[#allocation2 + $0x38] sm:$0xff] }
  0xdd   :  { %345 = vst.msk [vmem:[%s620_s4 + $0x30] sm:$0xff] %vm22_vm0, %v329_v26  ;;  %v327_v30 = vadd.f32 %v510_v44, %v304_v28  ;;  %v292_v33 = vld [vmem:[#allocation2 + $0x78] sm:$0xff]  ;;  %v307_v34 = vmul.f32 %v503_v36, %v284_v32 }
  0xde   :  { %353 = vst.msk [vmem:[%s620_s4 + $0x70] sm:$0xff] %vm22_vm0, %v337_v27  ;;  %v335_v31 = vadd.f32 %v510_v44, %v312_v29  ;;  %v315_v35 = vmul.f32 %v503_v36, %v292_v33  ;;  %v282_v37 = vld [vmem:[#allocation2 + $0x28] sm:$0xff] }
  0xdf   :  { %343 = vst.msk [vmem:[%s620_s4 + $0x20] sm:$0xff] %vm22_vm0, %v327_v30  ;;  %v290_v38 = vld [vmem:[#allocation2 + $0x68] sm:$0xff]  ;;  %v330_v39 = vadd.f32 %v510_v44, %v307_v34  ;;  %v305_v41 = vmul.f32 %v503_v36, %v282_v37 }
  0xe0   :  { %351 = vst.msk [vmem:[%s620_s4 + $0x60] sm:$0xff] %vm22_vm0, %v335_v31  ;;  %v338_v40 = vadd.f32 %v510_v44, %v315_v35  ;;  %v313_v42 = vmul.f32 %v503_v36, %v290_v38 }
  0xe1   :  { %346 = vst.msk [vmem:[%s620_s4 + $0x38] sm:$0xff] %vm22_vm0, %v330_v39  ;;  %v328_v43 = vadd.f32 %v510_v44, %v305_v41 }
  0xe2   :  { %354 = vst.msk [vmem:[%s620_s4 + $0x78] sm:$0xff] %vm22_vm0, %v338_v40  ;;  %v336_v45 = vadd.f32 %v510_v44, %v313_v42 }
  0xe3   :  { %344 = vst.msk [vmem:[%s620_s4 + $0x28] sm:$0xff] %vm22_vm0, %v328_v43 }
  0xe4   :  { %352 = vst.msk [vmem:[%s620_s4 + $0x68] sm:$0xff] %vm22_vm0, %v336_v45 }

// kernel: _lambda_.22
= control target key start
LH: loop header
LB: loop body
LE: loop exit
PB: predicated region body
PF: predicated region fallthrough
CT: control target
= control target key end

     0   :  { %s942_s15 = smov 0   ;;  %s944_s16 = smov 0   ;;  %s1137_s0 = inlined_call_operand.vmem [shape: bf16[9,128,32], index: 0, kind: input, shape index: {}]   ;;  %s1138_s1 = inlined_call_operand.vmem [shape: bf16[9,32,64], index: 1, kind: input, shape index: {}]   ;;  %s1139_s2 = inlined_call_operand.vmem [shape: f32[1,64], index: 2, kind: input, shape index: {}]   ;;  %s1140_s3 = inlined_call_operand.vmem [shape: f32[1,64], index: 3, kind: input, shape index: {}]   ;;  %s1141_s4 = inlined_call_operand.vmem [shape: bf16[128,64], index: 4, kind: output, shape index: {}]  }
   0x1   :  { %s946_s17 = smov 0  }
   0x2 LB: > { %s23_s18 = sadd.s32 1, %s910_s16  ;;  %p758_p0 = scmp.ge.s32.totalorder %s914_s17, 1  ;;  %s914_s17 = sphi %s946_s17, %s14_s17   ;;  %s910_s16 = sphi %s944_s16, %s1143_s16   ;;  %s906_s15 = sphi %s942_s15, %s1142_s15  }
   0x3   : > { %p24_p1 = scmp.ge.s32.totalorder %s23_s18, 9  ;;  %p191_p2 = scmp.lt.s32.totalorder %s914_s17, 10 }
   0x5   : > { %s1145_s18 = smov (%p24_p1, %s23_s18), 0  ;;  %p192_p3 = pnand %p758_p0, %p191_p2 }
   0x6   : > { %p227_p4 = scmp.lt.s32.totalorder (!%p192_p3), %s906_s15, 8  ;;  %p763_p5 = scmp.ne.s32.totalorder (!%p192_p3), %s906_s15, 0 }
   0x7   : > { %195 = sbr.rel (%p192_p3) target bundleno = 268 (0x10c), region = 36 }
   0xc   : > { %s228_s19 = scalar_select %p227_p4, %s906_s15, 8 }
   0xd   : > { %251 = sbr.rel (%p763_p5) target bundleno = 27 (0x1b), region = 40 }
   0xe   : > { %s805_s20 = sshll.u32 %s228_s19, 6  ;;  %s806_s21 = sshll.u32 %s228_s19, 4 }
   0xf   : > { %s967_s24 = scalar_lea.vmem %s1137_s0, %s805_s20  ;;  %s240_s27 = scalar_lea.vmem %s1138_s1, %s806_s21 }
  0x12   : > { %vm252_vm0 = vcmask 523264   ;;  %v916_v0 = vmov 0.0  }
  0x13   : > { %253 = vst.msk [vmem:[#allocation2] sm:$0xff] %vm252_vm0, %v916_v0  ;;  %254 = vst.msk [vmem:[#allocation2 + $0x8] sm:$0xff] %vm252_vm0, %v916_v0 }
  0x14   : > { %255 = vst.msk [vmem:[#allocation2 + $0x10] sm:$0xff] %vm252_vm0, %v916_v0  ;;  %256 = vst.msk [vmem:[#allocation2 + $0x18] sm:$0xff] %vm252_vm0, %v916_v0 }
  0x15   : > { %257 = vst.msk [vmem:[#allocation2 + $0x20] sm:$0xff] %vm252_vm0, %v916_v0  ;;  %258 = vst.msk [vmem:[#allocation2 + $0x28] sm:$0xff] %vm252_vm0, %v916_v0 }
  0x16   : > { %259 = vst.msk [vmem:[#allocation2 + $0x30] sm:$0xff] %vm252_vm0, %v916_v0  ;;  %260 = vst.msk [vmem:[#allocation2 + $0x38] sm:$0xff] %vm252_vm0, %v916_v0 }
  0x17   : > { %261 = vst.msk [vmem:[#allocation2 + $0x40] sm:$0xff] %vm252_vm0, %v916_v0  ;;  %262 = vst.msk [vmem:[#allocation2 + $0x48] sm:$0xff] %vm252_vm0, %v916_v0 }
  0x18   : > { %263 = vst.msk [vmem:[#allocation2 + $0x50] sm:$0xff] %vm252_vm0, %v916_v0  ;;  %264 = vst.msk [vmem:[#allocation2 + $0x58] sm:$0xff] %vm252_vm0, %v916_v0 }
  0x19   : > { %265 = vst.msk [vmem:[#allocation2 + $0x60] sm:$0xff] %vm252_vm0, %v916_v0  ;;  %266 = vst.msk [vmem:[#allocation2 + $0x68] sm:$0xff] %vm252_vm0, %v916_v0 }
  0x1a   : > { %267 = vst.msk [vmem:[#allocation2 + $0x70] sm:$0xff] %vm252_vm0, %v916_v0  ;;  %268 = vst.msk [vmem:[#allocation2 + $0x78] sm:$0xff] %vm252_vm0, %v916_v0 }
  0x1b PF: > { %v882_v1 = vld [vmem:[%s240_s27 + $0x8] sm:$0xff]   ;;  %v883_v2 = vld [vmem:[%s240_s27] sm:$0xff]   ;;  %vm357_vm1 = vcmask 261120   ;;  %v888_v7 = vld [vmem:[%s967_s24 + $0x10] sm:$0xff]   ;;  %vm495_vm2 = vcmask 523264   ;;  %p782_p6 = scmp.ne.s32.totalorder %s906_s15, 8 }
  0x1c   : > { %833 = vmatprep.subr.bf16.mxu0 %v882_v1  ;;  %853 = vmatprep.subr.bf16.mxu1 %v882_v1  ;;  %v884_v3 = vld [vmem:[%s967_s24] sm:$0xff]   ;;  %v886_v5 = vld [vmem:[%s967_s24 + $0x8] sm:$0xff]   ;;  %v889_v8 = vld [vmem:[%s967_s24 + $0x30] sm:$0xff]  }
  0x1d   : > { %834 = vmatpush3.bf16.msra.mxu0 %v882_v1  ;;  %855 = vmatpush3.bf16.msra.mxu1 %v882_v1  ;;  %v885_v4 = vld [vmem:[%s967_s24 + $0x20] sm:$0xff]   ;;  %v887_v6 = vld [vmem:[%s967_s24 + $0x28] sm:$0xff]   ;;  %v890_v9 = vld [vmem:[%s967_s24 + $0x18] sm:$0xff]  }
  0x1e   : > { %835 = vmatprep.subr.bf16.mxu0 %v883_v2  ;;  %854 = vmatprep.subr.bf16.mxu1 %v883_v2  ;;  %v891_v10 = vld [vmem:[%s967_s24 + $0x38] sm:$0xff]   ;;  %v271_v11 = vld [vmem:[#allocation2 + $0x10] sm:$0xff]  ;;  %v269_v15 = vld [vmem:[#allocation2] sm:$0xff] }
  0x1f   : > { %837 = vmatprep.mubr.msk.bf16.mxu0 %vm357_vm1, %v884_v3  ;;  %845 = vmatprep.mubr.msk.bf16.mxu1 %vm357_vm1, %v885_v4  ;;  %v279_v12 = vld [vmem:[#allocation2 + $0x50] sm:$0xff]  ;;  %v277_v16 = vld [vmem:[#allocation2 + $0x40] sm:$0xff]  ;;  %v272_v21 = vld [vmem:[#allocation2 + $0x18] sm:$0xff] }
  0x20   : > { %v280_v22 = vld [vmem:[#allocation2 + $0x58] sm:$0xff]  ;;  %v270_v27 = vld [vmem:[#allocation2 + $0x8] sm:$0xff]  ;;  %v275_v33 = vld [vmem:[#allocation2 + $0x30] sm:$0xff] }
  0x21   : > { %836 = vmatpush3.bf16.msra.mxu0 %v883_v2  ;;  %856 = vmatpush3.bf16.msra.mxu1 %v883_v2  ;;  %v278_v28 = vld [vmem:[#allocation2 + $0x48] sm:$0xff]  ;;  %v283_v34 = vld [vmem:[#allocation2 + $0x70] sm:$0xff]  ;;  %v273_v39 = vld [vmem:[#allocation2 + $0x20] sm:$0xff] }
  0x22   : > { %v281_v40 = vld [vmem:[#allocation2 + $0x60] sm:$0xff]  ;;  %v276_v45 = vld [vmem:[#allocation2 + $0x38] sm:$0xff]  ;;  %v274_v51 = vld [vmem:[#allocation2 + $0x28] sm:$0xff] }
  0x23   : > { %v284_v46 = vld [vmem:[#allocation2 + $0x78] sm:$0xff]  ;;  %v282_v52 = vld [vmem:[#allocation2 + $0x68] sm:$0xff] }
  0x24   : > { %838 = vmatmul.mubr.msk.bf16.vlgmr.msra.gmra.mxu0 %vm357_vm1, %v886_v5  ;;  %846 = vmatmul.mubr.msk.bf16.vlgmr.msra.gmra.mxu1 %vm357_vm1, %v887_v6 }
  0x25   : > { %841 = vmatprep.mubr.msk.bf16.mxu0 %vm357_vm1, %v888_v7  ;;  %849 = vmatprep.mubr.msk.bf16.mxu1 %vm357_vm1, %v889_v8 }
  0x2c   : > { %842 = vmatmul.mubr.msk.bf16.gmra.mxu0 %vm357_vm1, %v890_v9  ;;  %850 = vmatmul.mubr.msk.bf16.gmra.mxu1 %vm357_vm1, %v891_v10 }
  0xe4   : > { %v839_v13 = vpop.f32.mrf.mxu0  ;;  %v847_v14 = vpop.f32.mrf.mxu1 }
  0xe5   : > { %v481_v17 = vadd.f32 %v839_v13, %v271_v11  ;;  %v489_v18 = vadd.f32 %v847_v14, %v279_v12 }
  0xe6   : > { %v416_v19 = vpop.f32.mrf.mxu0  ;;  %v448_v20 = vpop.f32.mrf.mxu1 }
  0xe7   : > { %498 = vst.msk [vmem:[#allocation2 + $0x10] sm:$0xff] %vm495_vm2, %v481_v17  ;;  %506 = vst.msk [vmem:[#allocation2 + $0x50] sm:$0xff] %vm495_vm2, %v489_v18  ;;  %v479_v23 = vadd.f32 %v416_v19, %v269_v15  ;;  %v487_v24 = vadd.f32 %v448_v20, %v277_v16 }
  0xe8   : > { %v840_v25 = vpop.f32.mrf.mxu0  ;;  %v848_v26 = vpop.f32.mrf.mxu1 }
  0xe9   : > { %496 = vst.msk [vmem:[#allocation2] sm:$0xff] %vm495_vm2, %v479_v23  ;;  %504 = vst.msk [vmem:[#allocation2 + $0x40] sm:$0xff] %vm495_vm2, %v487_v24  ;;  %v482_v29 = vadd.f32 %v840_v25, %v272_v21  ;;  %v490_v30 = vadd.f32 %v848_v26, %v280_v22 }
  0xea   : > { %v419_v31 = vpop.f32.mrf.mxu0  ;;  %v451_v32 = vpop.f32.mrf.mxu1 }
  0xeb   : > { %499 = vst.msk [vmem:[#allocation2 + $0x18] sm:$0xff] %vm495_vm2, %v482_v29  ;;  %507 = vst.msk [vmem:[#allocation2 + $0x58] sm:$0xff] %vm495_vm2, %v490_v30  ;;  %v480_v35 = vadd.f32 %v419_v31, %v270_v27  ;;  %v488_v36 = vadd.f32 %v451_v32, %v278_v28 }
  0xec   : > { %v843_v37 = vpop.f32.mrf.mxu0  ;;  %v851_v38 = vpop.f32.mrf.mxu1 }
  0xed   : > { %497 = vst.msk [vmem:[#allocation2 + $0x8] sm:$0xff] %vm495_vm2, %v480_v35  ;;  %505 = vst.msk [vmem:[#allocation2 + $0x48] sm:$0xff] %vm495_vm2, %v488_v36  ;;  %v485_v41 = vadd.f32 %v843_v37, %v275_v33  ;;  %v493_v42 = vadd.f32 %v851_v38, %v283_v34 }
  0xee   : > { %v432_v43 = vpop.f32.mrf.mxu0  ;;  %v464_v44 = vpop.f32.mrf.mxu1 }
  0xef   : > { %502 = vst.msk [vmem:[#allocation2 + $0x30] sm:$0xff] %vm495_vm2, %v485_v41  ;;  %510 = vst.msk [vmem:[#allocation2 + $0x70] sm:$0xff] %vm495_vm2, %v493_v42  ;;  %v483_v47 = vadd.f32 %v432_v43, %v273_v39  ;;  %v491_v48 = vadd.f32 %v464_v44, %v281_v40 }
  0xf0   : > { %v844_v49 = vpop.f32.mrf.mxu0  ;;  %v852_v50 = vpop.f32.mrf.mxu1 }
  0xf1   : > { %500 = vst.msk [vmem:[#allocation2 + $0x20] sm:$0xff] %vm495_vm2, %v483_v47  ;;  %508 = vst.msk [vmem:[#allocation2 + $0x60] sm:$0xff] %vm495_vm2, %v491_v48  ;;  %v486_v53 = vadd.f32 %v844_v49, %v276_v45  ;;  %v494_v54 = vadd.f32 %v852_v50, %v284_v46  ;;  %515 = sbr.rel (%p782_p6) target bundleno = 268 (0x10c), region = 44 }
  0xf2   : > { %v435_v55 = vpop.f32.mrf.mxu0  ;;  %v467_v56 = vpop.f32.mrf.mxu1 }
  0xf3   : > { %503 = vst.msk [vmem:[#allocation2 + $0x38] sm:$0xff] %vm495_vm2, %v486_v53  ;;  %511 = vst.msk [vmem:[#allocation2 + $0x78] sm:$0xff] %vm495_vm2, %v494_v54  ;;  %v484_v57 = vadd.f32 %v435_v55, %v274_v51  ;;  %v492_v58 = vadd.f32 %v467_v56, %v282_v52 }
  0xf5   : > { %501 = vst.msk [vmem:[#allocation2 + $0x28] sm:$0xff] %vm495_vm2, %v484_v57  ;;  %509 = vst.msk [vmem:[#allocation2 + $0x68] sm:$0xff] %vm495_vm2, %v492_v58 }
  0xf6   : > { %v516_v59 = vld [vmem:[#allocation2] sm:$0xff]  ;;  %v517_v63 = vld [vmem:[#allocation2 + $0x8] sm:$0xff]  ;;  %v518_v0 = vld [vmem:[#allocation2 + $0x10] sm:$0xff]  ;;  %vm658_vm3 = vcmask 519168  }
  0xf7   : > { %v1025_v60 = vld [vmem:[%s1139_s2] ss:$0 sm:$0xff]  ;;  %v519_v1 = vld [vmem:[#allocation2 + $0x18] sm:$0xff]  ;;  %v522_v7 = vld [vmem:[#allocation2 + $0x30] sm:$0xff] }
  0xf8   : > { %v1030_v61 = vld [vmem:[%s1140_s3] ss:$0 sm:$0xff]  ;;  %v539_v62 = vmul.f32 %v1025_v60, %v516_v59  ;;  %v540_v2 = vmul.f32 %v1025_v60, %v517_v63  ;;  %v541_v3 = vmul.f32 %v1025_v60, %v518_v0  ;;  %v542_v4 = vmul.f32 %v1025_v60, %v519_v1  ;;  %v525_v30 = vld [vmem:[#allocation2 + $0x48] sm:$0xff]  ;;  %v526_v31 = vld [vmem:[#allocation2 + $0x50] sm:$0xff] }
  0xf9   : > { %v520_v5 = vld [vmem:[#allocation2 + $0x20] sm:$0xff]  ;;  %v545_v11 = vmul.f32 %v1025_v60, %v522_v7  ;;  %v527_v32 = vld [vmem:[#allocation2 + $0x58] sm:$0xff]  ;;  %v530_v39 = vld [vmem:[#allocation2 + $0x70] sm:$0xff]  ;;  %v548_v46 = vmul.f32 %v1025_v60, %v525_v30  ;;  %v549_v47 = vmul.f32 %v1025_v60, %v526_v31 }
  0xfa   : > { %v562_v8 = vadd.f32 %v1030_v61, %v539_v62  ;;  %v543_v9 = vmul.f32 %v1025_v60, %v520_v5  ;;  %v523_v12 = vld [vmem:[#allocation2 + $0x38] sm:$0xff]  ;;  %v563_v13 = vadd.f32 %v1030_v61, %v540_v2  ;;  %v564_v14 = vadd.f32 %v1030_v61, %v541_v3  ;;  %v524_v25 = vld [vmem:[#allocation2 + $0x40] sm:$0xff] }
  0xfb   : > { %v565_v15 = vadd.f32 %v1030_v61, %v542_v4  ;;  %v546_v16 = vmul.f32 %v1025_v60, %v523_v12  ;;  %v568_v20 = vadd.f32 %v1030_v61, %v545_v11  ;;  %v528_v37 = vld [vmem:[#allocation2 + $0x60] sm:$0xff]  ;;  %v547_v43 = vmul.f32 %v1025_v60, %v524_v25  ;;  %v531_v44 = vld [vmem:[#allocation2 + $0x78] sm:$0xff] }
  0xfc   : > { %v521_v6 = vld [vmem:[#allocation2 + $0x28] sm:$0xff]  ;;  %v578_v17 = vmax.f32 %v562_v8, 0.0  ;;  %v566_v18 = vadd.f32 %v1030_v61, %v543_v9  ;;  %v579_v21 = vmax.f32 %v563_v13, 0.0  ;;  %v580_v22 = vmax.f32 %v564_v14, 0.0 }
  0xfd   : > { %v544_v10 = vmul.f32 %v1025_v60, %v521_v6  ;;  %v581_v23 = vmax.f32 %v565_v15, 0.0  ;;  %v569_v24 = vadd.f32 %v1030_v61, %v546_v16  ;;  %v584_v29 = vmax.f32 %v568_v20, 0.0  ;;  %v529_v38 = vld [vmem:[#allocation2 + $0x68] sm:$0xff] }
  0xfe   : > { %v807_v26 = vpack.c.bf16 %v578_v17, %v578_v17  ;;  %v582_v27 = vmax.f32 %v566_v18, 0.0  ;;  %v808_v33 = vpack.c.bf16 %v579_v21, %v579_v21  ;;  %v809_v34 = vpack.c.bf16 %v580_v22, %v580_v22 }
  0xff   : > { %v567_v19 = vadd.f32 %v1030_v61, %v544_v10  ;;  %v810_v35 = vpack.c.bf16 %v581_v23, %v581_v23  ;;  %v585_v36 = vmax.f32 %v569_v24, 0.0  ;;  %v813_v42 = vpack.c.bf16 %v584_v29, %v584_v29 }
 0x100   : > { %659 = vst.msk [vmem:[%s1141_s4] sm:$0xf] %vm658_vm3, %v807_v26  ;;  %v811_v40 = vpack.c.bf16 %v582_v27, %v582_v27  ;;  %660 = vst.msk [vmem:[%s1141_s4 + $0x4] sm:$0xf] %vm658_vm3, %v808_v33  ;;  %v550_v48 = vmul.f32 %v1025_v60, %v527_v32  ;;  %v570_v49 = vadd.f32 %v1030_v61, %v547_v43 }
 0x101   : > { %v583_v28 = vmax.f32 %v567_v19, 0.0  ;;  %661 = vst.msk [vmem:[%s1141_s4 + $0x8] sm:$0xf] %vm658_vm3, %v809_v34  ;;  %662 = vst.msk [vmem:[%s1141_s4 + $0xc] sm:$0xf] %vm658_vm3, %v810_v35  ;;  %v814_v45 = vpack.c.bf16 %v585_v36, %v585_v36  ;;  %v551_v50 = vmul.f32 %v1025_v60, %v528_v37  ;;  %v552_v51 = vmul.f32 %v1025_v60, %v529_v38 }
 0x102   : > { %663 = vst.msk [vmem:[%s1141_s4 + $0x10] sm:$0xf] %vm658_vm3, %v811_v40  ;;  %665 = vst.msk [vmem:[%s1141_s4 + $0x18] sm:$0xf] %vm658_vm3, %v813_v42  ;;  %v553_v52 = vmul.f32 %v1025_v60, %v530_v39  ;;  %v571_v53 = vadd.f32 %v1030_v61, %v548_v46  ;;  %v572_v54 = vadd.f32 %v1030_v61, %v549_v47  ;;  %v586_v57 = vmax.f32 %v570_v49, 0.0 }
 0x103   : > { %v812_v41 = vpack.c.bf16 %v583_v28, %v583_v28  ;;  %666 = vst.msk [vmem:[%s1141_s4 + $0x1c] sm:$0xf] %vm658_vm3, %v814_v45  ;;  %v573_v55 = vadd.f32 %v1030_v61, %v550_v48  ;;  %v554_v56 = vmul.f32 %v1025_v60, %v531_v44  ;;  %v574_v58 = vadd.f32 %v1030_v61, %v551_v50 }
 0x104   : > { %v575_v59 = vadd.f32 %v1030_v61, %v552_v51  ;;  %v576_v62 = vadd.f32 %v1030_v61, %v553_v52  ;;  %v587_v63 = vmax.f32 %v571_v53, 0.0  ;;  %v588_v0 = vmax.f32 %v572_v54, 0.0 }
 0x105   : > { %664 = vst.msk [vmem:[%s1141_s4 + $0x14] sm:$0xf] %vm658_vm3, %v812_v41  ;;  %v589_v1 = vmax.f32 %v573_v55, 0.0  ;;  %v577_v2 = vadd.f32 %v1030_v61, %v554_v56  ;;  %v815_v3 = vpack.c.bf16 %v586_v57, %v586_v57  ;;  %v590_v4 = vmax.f32 %v574_v58, 0.0 }
 0x106   : > { %v591_v5 = vmax.f32 %v575_v59, 0.0  ;;  %v592_v6 = vmax.f32 %v576_v62, 0.0  ;;  %v816_v7 = vpack.c.bf16 %v587_v63, %v587_v63  ;;  %v817_v8 = vpack.c.bf16 %v588_v0, %v588_v0 }
 0x107   : > { %v818_v9 = vpack.c.bf16 %v589_v1, %v589_v1  ;;  %v593_v60 = vmax.f32 %v577_v2, 0.0  ;;  %667 = vst.msk [vmem:[%s1141_s4 + $0x20] sm:$0xf] %vm658_vm3, %v815_v3  ;;  %v819_v10 = vpack.c.bf16 %v590_v4, %v590_v4 }
 0x108   : > { %v820_v11 = vpack.c.bf16 %v591_v5, %v591_v5  ;;  %v821_v12 = vpack.c.bf16 %v592_v6, %v592_v6  ;;  %668 = vst.msk [vmem:[%s1141_s4 + $0x24] sm:$0xf] %vm658_vm3, %v816_v7  ;;  %669 = vst.msk [vmem:[%s1141_s4 + $0x28] sm:$0xf] %vm658_vm3, %v817_v8 }
 0x109   : > { %670 = vst.msk [vmem:[%s1141_s4 + $0x2c] sm:$0xf] %vm658_vm3, %v818_v9  ;;  %v822_v61 = vpack.c.bf16 %v593_v60, %v593_v60  ;;  %671 = vst.msk [vmem:[%s1141_s4 + $0x30] sm:$0xf] %vm658_vm3, %v819_v10 }
 0x10a   : > { %672 = vst.msk [vmem:[%s1141_s4 + $0x34] sm:$0xf] %vm658_vm3, %v820_v11  ;;  %673 = vst.msk [vmem:[%s1141_s4 + $0x38] sm:$0xf] %vm658_vm3, %v821_v12 }
 0x10b   : > { %674 = vst.msk [vmem:[%s1141_s4 + $0x3c] sm:$0xf] %vm658_vm3, %v822_v61 }
 0x10c PF: > { %s14_s17 = sadd.s32 1, %s914_s17   ;;  %s1142_s15 = smov %s910_s16 }
 0x10d   : > { %p11_p7 = scmp.ge.s32.totalorder %s14_s17, 11   ;;  %s1143_s16 = smov %s1145_s18 }
 0x10f   :  { %13 = sbr.rel (!%p11_p7) target bundleno = 2 (0x2), region = 77 }

// kernel: _lambda_.25
= control target key start
LH: loop header
LB: loop body
LE: loop exit
PB: predicated region body
PF: predicated region fallthrough
CT: control target
= control target key end

     0   :  { %v236_v1 = vmov 0.0   ;;  %vm237_vm0 = vmmov 0   ;;  %s322_s0 = inlined_call_operand.vmem [shape: f32[2,16,64], index: 0, kind: input, shape index: {}]   ;;  %s323_s1 = inlined_call_operand.vmem [shape: f32[1,64], index: 1, kind: input, shape index: {}]   ;;  %s324_s2 = inlined_call_operand.vmem [shape: f32[1,64], index: 2, kind: input, shape index: {}]   ;;  %s325_s3 = inlined_call_operand.vmem [shape: f32[64,10], index: 3, kind: input, shape index: {}]   ;;  %s326_s4 = inlined_call_operand.vmem [shape: f32[1,10], index: 4, kind: input, shape index: {}]   ;;  %s327_s5 = inlined_call_operand.hbm [shape: f32[2,10], index: 5, kind: output, shape index: {}]  }
   0x1   :  { %v79_v0 = vld [vmem:[%s325_s3 + $0x38] sm:$0xff]  ;;  %192 = vmatprep.subr.mxu0 %v236_v1  ;;  %v78_v2 = vld [vmem:[%s325_s3 + $0x30] sm:$0xff]  ;;  %208 = vmatprep.mubr.msk.f32.mxu0 %vm237_vm0, %v236_v1  ;;  %v77_v3 = vld [vmem:[%s325_s3 + $0x28] sm:$0xff] }
   0x2   :  { %193 = vmatpush3.msra.mxu0 %v79_v0  ;;  %v21_v4 = vld [vmem:[%s322_s0] sm:$0xff]  ;;  %v22_v5 = vld [vmem:[%s322_s0 + $0x8] sm:$0xff]  ;;  %v23_v6 = vld [vmem:[%s322_s0 + $0x10] sm:$0xff] }
   0x3   :  { %194 = vmatprep.subr.mxu0 %v236_v1  ;;  %v24_v7 = vld [vmem:[%s322_s0 + $0x18] sm:$0xff]  ;;  %v179_v8 = vld [vmem:[%s323_s1] ss:$0 sm:$0xff] }
   0x4   :  { %195 = vmatpush3.msra.mxu0 %v78_v2  ;;  %v180_v9 = vld [vmem:[%s324_s2] ss:$0 sm:$0xff]  ;;  %v32_v11 = vmul.f32 %v179_v8, %v21_v4  ;;  %v33_v12 = vmul.f32 %v179_v8, %v22_v5  ;;  %v34_v13 = vmul.f32 %v179_v8, %v23_v6  ;;  %v35_v14 = vmul.f32 %v179_v8, %v24_v7 }
   0x5   :  { %196 = vmatprep.subr.mxu0 %v236_v1  ;;  %v76_v10 = vld [vmem:[%s325_s3 + $0x20] sm:$0xff] }
   0x6   :  { %10 = vsyncpa [#allocation3], 0  ;;  %197 = vmatpush3.msra.mxu0 %v77_v3  ;;  %v75_v15 = vld [vmem:[%s325_s3 + $0x18] sm:$0xff]  ;;  %v43_v16 = vadd.f32 %v180_v9, %v32_v11  ;;  %v44_v17 = vadd.f32 %v180_v9, %v33_v12  ;;  %v45_v18 = vadd.f32 %v180_v9, %v34_v13  ;;  %v46_v19 = vadd.f32 %v180_v9, %v35_v14  ;;  %v74_v20 = vld [vmem:[%s325_s3 + $0x10] sm:$0xff]  ;;  %s238_s19 = smov [#allocation2]  }
   0x7   :  { %198 = vmatprep.subr.mxu0 %v236_v1  ;;  %vm51_vm1 = vcmask 523264   ;;  %v73_v25 = vld [vmem:[%s325_s3 + $0x8] sm:$0xff]  ;;  %v72_v32 = vld [vmem:[%s325_s3] sm:$0xff]  ;;  %vm89_vm2 = vcmask 1041409   ;;  %s171_s20 = sshll.u32 %s238_s19, 4  ;;  %vm163_vm3 = vcmask 74752   ;;  %s172_s20 = int_to_ptr.vmem [resolvable:$true] %s171_s20 }
   0x8   :  { %199 = vmatpush3.msra.mxu0 %v76_v10  ;;  %v47_v21 = vmax.f32 %v43_v16, 0.0  ;;  %v48_v22 = vmax.f32 %v44_v17, 0.0  ;;  %v49_v23 = vmax.f32 %v45_v18, 0.0  ;;  %v50_v24 = vmax.f32 %v46_v19, 0.0  ;;  %v181_v48 = vld [vmem:[%s326_s4] ss:$0 sm:$0xff]  ;;  %p219_p1 = scmp.lt.s32.totalorder %s172_s20, %s172_s20 }
   0x9   :  { %200 = vmatprep.subr.mxu0 %v236_v1  ;;  %s214_s21 = scalar_lea.vmem %s172_s20, 32 }
   0xa   :  { %201 = vmatpush3.msra.mxu0 %v75_v15  ;;  %v52_v26 = vsel %vm51_vm1, %v47_v21, 0.0  ;;  %v53_v27 = vsel %vm51_vm1, %v48_v22, 0.0  ;;  %v61_v28 = vsel %vm51_vm1, %v49_v23, 0.0  ;;  %v62_v29 = vsel %vm51_vm1, %v50_v24, 0.0  ;;  %p215_p0 = scmp.ne.s32.totalorder %s172_s20, %s214_s21  ;;  %p220_p2 = scmp.lt.s32.totalorder %s214_s21, %s214_s21 }
   0xb   :  { %202 = vmatprep.subr.mxu0 %v236_v1  ;;  %v54_v30 = vadd.f32 %v53_v27, %v52_v26  ;;  %v63_v31 = vadd.f32 %v62_v29, %v61_v28 }
   0xc   :  { %203 = vmatpush3.msra.mxu0 %v74_v20  ;;  %p221_p3 = por %p220_p2, %p219_p1 }
   0xd   :  { %204 = vmatprep.subr.mxu0 %v236_v1  ;;  %v55_v33 = vrot.slane %v54_v30, 4  ;;  %v64_v34 = vrot.slane %v63_v31, 4 }
   0xe   :  { %205 = vmatpush3.msra.mxu0 %v73_v25  ;;  %p222_p4 = pnand %p221_p3, %p215_p0 }
   0xf   :  { %206 = vmatprep.subr.mxu0 %v236_v1  ;;  %v56_v35 = vadd.f32 %v55_v33, %v54_v30  ;;  %v65_v36 = vadd.f32 %v64_v34, %v63_v31 }
  0x10   :  { %207 = vmatpush3.msra.mxu0 %v72_v32 }
  0x11   :  { %v57_v37 = vrot.slane %v56_v35, 2  ;;  %v66_v38 = vrot.slane %v65_v36, 2 }
  0x13   :  { %v58_v39 = vadd.f32 %v57_v37, %v56_v35  ;;  %v67_v40 = vadd.f32 %v66_v38, %v65_v36 }
  0x15   :  { %v59_v41 = vrot.slane %v58_v39, 1  ;;  %v68_v42 = vrot.slane %v67_v40, 1 }
  0x17   :  { %v60_v43 = vadd.f32 %v59_v41, %v58_v39  ;;  %v69_v44 = vadd.f32 %v68_v42, %v67_v40 }
  0x19   :  { %v70_v45 = vmul.f32 0.0625, %v60_v43  ;;  %v71_v46 = vmul.f32 0.0625, %v69_v44 }
  0x1b   :  { %v90_v47 = vsel %vm89_vm2, %v71_v46, %v70_v45 }
  0x1c   :  { %209 = vmatmul.mubr.msk.f32.vlgmr.msra.gmra.mxu0 %vm51_vm1, %v90_v47 }
  0xdc   :  { %v159_v49 = vpop.f32.mrf.mxu0 }
  0xdd   :  { %v160_v50 = vadd.f32 %v181_v48, %v159_v49 }
  0xde   :  { %v210_v51 = vpop.f32.mrf.mxu0 }
  0xdf   :  { %164 = vst.msk [vmem:[#allocation2] sm:$0x3] %vm163_vm3, %v160_v50 }
  0xe0   :  { %225 = shalt.err (!%p222_p4)
}
  0xe1   :  { %174 = dma.vmem_to_hbm [thread:$0]  %s172_s20, 32, %s327_s5, [#allocation3]  }
  0xe2   :  { %234 = dma.done.wait [#allocation3], 32  }
  0xe3   :  { %235 = vsyncadd [#allocation3], 4294967264 }
  0xe4   :  { %178 = vsyncpa [#allocation3], 1 }

// kernel: _lambda_.24
= control target key start
LH: loop header
LB: loop body
LE: loop exit
PB: predicated region body
PF: predicated region fallthrough
CT: control target
= control target key end

     0   :  { %s688_s18 = smov 0   ;;  %s690_s19 = smov 0   ;;  %s767_s0 = inlined_call_operand.vmem [shape: bf16[9,32,64], index: 0, kind: input, shape index: {}]   ;;  %s768_s1 = inlined_call_operand.vmem [shape: bf16[9,64,64], index: 1, kind: input, shape index: {}]   ;;  %s769_s2 = inlined_call_operand.vmem [shape: f32[1,64], index: 2, kind: input, shape index: {}]   ;;  %s770_s3 = inlined_call_operand.vmem [shape: f32[1,64], index: 3, kind: input, shape index: {}]   ;;  %s771_s4 = inlined_call_operand.vmem [shape: f32[32,64], index: 4, kind: input, shape index: {}]   ;;  %s772_s5 = inlined_call_operand.vmem [shape: f32[32,64], index: 5, kind: output, shape index: {}]  }
   0x1   :  { %s692_s20 = smov 0  }
   0x2 LB: > { %s24_s21 = sadd.s32 1, %s651_s19  ;;  %p561_p0 = scmp.ge.s32.totalorder %s655_s20, 1  ;;  %s655_s20 = sphi %s692_s20, %s15_s20   ;;  %s651_s19 = sphi %s690_s19, %s774_s19   ;;  %s647_s18 = sphi %s688_s18, %s773_s18  }
   0x3   : > { %p25_p1 = scmp.ge.s32.totalorder %s24_s21, 9  ;;  %p227_p2 = scmp.lt.s32.totalorder %s655_s20, 10 }
   0x5   : > { %s776_s21 = smov (%p25_p1, %s24_s21), 0  ;;  %p228_p3 = pnand %p561_p0, %p227_p2 }
   0x6   : > { %p270_p4 = scmp.lt.s32.totalorder (!%p228_p3), %s647_s18, 8  ;;  %p566_p5 = scmp.ne.s32.totalorder (!%p228_p3), %s647_s18, 0 }
   0x7   : > { %231 = sbr.rel (%p228_p3) target bundleno = 254 (0xfe), region = 40 }
   0xc   : > { %s271_s22 = scalar_select %p270_p4, %s647_s18, 8 }
   0xd   : > { %300 = sbr.rel (%p566_p5) target bundleno = 21 (0x15), region = 44 }
   0xe   : > { %s582_s23 = sshll.u32 %s271_s22, 4  ;;  %s583_s24 = sshll.u32 %s271_s22, 5 }
   0xf   : > { %s277_s27 = scalar_lea.vmem %s767_s0, %s582_s23  ;;  %s283_s30 = scalar_lea.vmem %s768_s1, %s583_s24 }
  0x12   : > { %vm301_vm0 = vcmask 523264   ;;  %v657_v0 = vmov 0.0  }
  0x13   : > { %302 = vst.msk [vmem:[#allocation2] sm:$0xff] %vm301_vm0, %v657_v0  ;;  %303 = vst.msk [vmem:[#allocation2 + $0x8] sm:$0xff] %vm301_vm0, %v657_v0 }
  0x14   : > { %304 = vst.msk [vmem:[#allocation2 + $0x10] sm:$0xff] %vm301_vm0, %v657_v0  ;;  %305 = vst.msk [vmem:[#allocation2 + $0x18] sm:$0xff] %vm301_vm0, %v657_v0 }
  0x15 PF: > { %v627_v1 = vld [vmem:[%s283_s30 + $0x18] sm:$0xff]   ;;  %v628_v2 = vld [vmem:[%s283_s30 + $0x10] sm:$0xff]   ;;  %v629_v3 = vld [vmem:[%s283_s30 + $0x8] sm:$0xff]   ;;  %vm356_vm1 = vcmask 523264   ;;  %p575_p6 = scmp.ne.s32.totalorder %s647_s18, 8 }
  0x16   : > { %590 = vmatprep.subr.bf16.mxu0 %v627_v1  ;;  %v631_v4 = vld [vmem:[%s277_s27] sm:$0xff]   ;;  %v632_v6 = vld [vmem:[%s277_s27 + $0x8] sm:$0xff]  }
  0x17   : > { %591 = vmatpush3.bf16.msra.mxu0 %v627_v1  ;;  %598 = vmatprep.mubr.msk.bf16.mxu0 %vm356_vm1, %v631_v4  ;;  %v630_v5 = vld [vmem:[%s283_s30] sm:$0xff]  }
  0x18   : > { %592 = vmatprep.subr.bf16.mxu0 %v628_v2 }
  0x1a   : > { %v306_v9 = vld [vmem:[#allocation2] sm:$0xff]  ;;  %v307_v15 = vld [vmem:[#allocation2 + $0x8] sm:$0xff] }
  0x1b   : > { %593 = vmatpush3.bf16.msra.mxu0 %v628_v2  ;;  %v308_v7 = vld [vmem:[#allocation2 + $0x10] sm:$0xff]  ;;  %v309_v12 = vld [vmem:[#allocation2 + $0x18] sm:$0xff] }
  0x1c   : > { %594 = vmatprep.subr.bf16.mxu0 %v629_v3 }
  0x1f   : > { %595 = vmatpush3.bf16.msra.mxu0 %v629_v3 }
  0x20   : > { %596 = vmatprep.subr.bf16.mxu0 %v630_v5 }
  0x23   : > { %597 = vmatpush3.bf16.msra.mxu0 %v630_v5 }
  0x26   : > { %599 = vmatmul.mubr.msk.bf16.vlgmr.msra.gmra.mxu0 %vm356_vm1, %v632_v6 }
  0xe6   : > { %v600_v8 = vpop.f32.mrf.mxu0 }
  0xe7   : > { %v414_v10 = vadd.f32 %v600_v8, %v308_v7 }
  0xe8   : > { %v397_v11 = vpop.f32.mrf.mxu0 }
  0xe9   : > { %418 = vst.msk [vmem:[#allocation2 + $0x10] sm:$0xff] %vm356_vm1, %v414_v10  ;;  %v412_v13 = vadd.f32 %v397_v11, %v306_v9 }
  0xea   : > { %v601_v14 = vpop.f32.mrf.mxu0 }
  0xeb   : > { %416 = vst.msk [vmem:[#allocation2] sm:$0xff] %vm356_vm1, %v412_v13  ;;  %v415_v16 = vadd.f32 %v601_v14, %v309_v12  ;;  %423 = sbr.rel (%p575_p6) target bundleno = 254 (0xfe), region = 48 }
  0xec   : > { %v400_v17 = vpop.f32.mrf.mxu0 }
  0xed   : > { %419 = vst.msk [vmem:[#allocation2 + $0x18] sm:$0xff] %vm356_vm1, %v415_v16  ;;  %v413_v18 = vadd.f32 %v400_v17, %v307_v15 }
  0xef   : > { %417 = vst.msk [vmem:[#allocation2 + $0x8] sm:$0xff] %vm356_vm1, %v413_v18 }
  0xf0   : > { %v576_v20 = vld [vmem:[%s769_s2] ss:$0 sm:$0xff]  ;;  %v426_v26 = vld [vmem:[#allocation2 + $0x10] sm:$0xff]  ;;  %v451_v29 = vld [vmem:[%s771_s4 + $0x8] sm:$0xff] }
  0xf1   : > { %v577_v21 = vld [vmem:[%s770_s3] ss:$0 sm:$0xff]  ;;  %v437_v30 = vmul.f32 %v576_v20, %v426_v26  ;;  %v452_v33 = vld [vmem:[%s771_s4 + $0x10] sm:$0xff]  ;;  %v453_v34 = vld [vmem:[%s771_s4 + $0x18] sm:$0xff] }
  0xf2   : > { %v424_v19 = vld [vmem:[#allocation2] sm:$0xff] }
  0xf3   : > { %v435_v22 = vmul.f32 %v576_v20, %v424_v19  ;;  %v450_v24 = vld [vmem:[%s771_s4] sm:$0xff]  ;;  %v448_v36 = vadd.f32 %v577_v21, %v437_v30 }
  0xf4   : > { %v427_v27 = vld [vmem:[#allocation2 + $0x18] sm:$0xff] }
  0xf5   : > { %v446_v28 = vadd.f32 %v577_v21, %v435_v22  ;;  %v438_v31 = vmul.f32 %v576_v20, %v427_v27  ;;  %v456_v39 = vadd.f32 %v452_v33, %v448_v36 }
  0xf6   : > { %v425_v23 = vld [vmem:[#allocation2 + $0x8] sm:$0xff] }
  0xf7   : > { %v436_v25 = vmul.f32 %v576_v20, %v425_v23  ;;  %v454_v35 = vadd.f32 %v450_v24, %v446_v28  ;;  %v449_v37 = vadd.f32 %v577_v21, %v438_v31  ;;  %460 = vst.msk [vmem:[%s772_s5 + $0x10] sm:$0xff] %vm356_vm1, %v456_v39 }
  0xf9   : > { %v447_v32 = vadd.f32 %v577_v21, %v436_v25  ;;  %458 = vst.msk [vmem:[%s772_s5] sm:$0xff] %vm356_vm1, %v454_v35  ;;  %v457_v40 = vadd.f32 %v453_v34, %v449_v37 }
  0xfb   : > { %v455_v38 = vadd.f32 %v451_v29, %v447_v32  ;;  %461 = vst.msk [vmem:[%s772_s5 + $0x18] sm:$0xff] %vm356_vm1, %v457_v40 }
  0xfd   : > { %459 = vst.msk [vmem:[%s772_s5 + $0x8] sm:$0xff] %vm356_vm1, %v455_v38 }
  0xfe PF: > { %s15_s20 = sadd.s32 1, %s655_s20   ;;  %s773_s18 = smov %s651_s19 }
  0xff   : > { %p12_p7 = scmp.ge.s32.totalorder %s15_s20, 11   ;;  %s774_s19 = smov %s776_s21 }
 0x101   :  { %14 = sbr.rel (!%p12_p7) target bundleno = 2 (0x2), region = 84 }

// kernel: _lambda_.23
= control target key start
LH: loop header
LB: loop body
LE: loop exit
PB: predicated region body
PF: predicated region fallthrough
CT: control target
= control target key end

     0   :  { %vm22_vm0 = vcmask 523264   ;;  %v188_v1 = vmov 0.0   ;;  %vm61_vm1 = vcmask 261120   ;;  %s256_s1 = inlined_call_operand.vmem [shape: bf16[1,32,64], index: 1, kind: input, shape index: {}]   ;;  %s257_s0 = inlined_call_operand.vmem [shape: bf16[1,32,32], index: 0, kind: input, shape index: {}]   ;;  %s258_s2 = inlined_call_operand.vmem [shape: f32[1,64], index: 2, kind: input, shape index: {}]   ;;  %s259_s3 = inlined_call_operand.vmem [shape: f32[1,64], index: 3, kind: input, shape index: {}]   ;;  %s260_s4 = inlined_call_operand.vmem [shape: f32[32,64], index: 4, kind: output, shape index: {}]  }
   0x1   :  { %v184_v0 = vld [vmem:[%s256_s1 + $0x8] sm:$0xff]   ;;  %25 = vst.msk [vmem:[#allocation2 + $0x10] sm:$0xff] %vm22_vm0, %v188_v1  ;;  %23 = vst.msk [vmem:[#allocation2] sm:$0xff] %vm22_vm0, %v188_v1  ;;  %v185_v2 = vld [vmem:[%s256_s1] sm:$0xff]  }
   0x2   :  { %24 = vst.msk [vmem:[#allocation2 + $0x8] sm:$0xff] %vm22_vm0, %v188_v1  ;;  %26 = vst.msk [vmem:[#allocation2 + $0x18] sm:$0xff] %vm22_vm0, %v188_v1  ;;  %175 = vmatprep.subr.bf16.mxu0 %v184_v0  ;;  %v186_v3 = vld [vmem:[%s257_s0] sm:$0xff]   ;;  %v187_v4 = vld [vmem:[%s257_s0 + $0x8] sm:$0xff]  }
   0x3   :  { %176 = vmatpush3.bf16.msra.mxu0 %v184_v0  ;;  %179 = vmatprep.mubr.msk.bf16.mxu0 %vm61_vm1, %v186_v3  ;;  %v169_v17 = vld [vmem:[%s258_s2] ss:$0 sm:$0xff] }
   0x4   :  { %177 = vmatprep.subr.bf16.mxu0 %v185_v2  ;;  %v170_v19 = vld [vmem:[%s259_s3] ss:$0 sm:$0xff] }
   0x7   :  { %178 = vmatpush3.bf16.msra.mxu0 %v185_v2 }
   0x8   :  { %v29_v5 = vld [vmem:[#allocation2 + $0x10] sm:$0xff]  ;;  %v27_v7 = vld [vmem:[#allocation2] sm:$0xff] }
   0x9   :  { %v30_v10 = vld [vmem:[#allocation2 + $0x18] sm:$0xff]  ;;  %v28_v13 = vld [vmem:[#allocation2 + $0x8] sm:$0xff] }
   0xa   :  { %180 = vmatmul.mubr.msk.bf16.vlgmr.msra.gmra.mxu0 %vm61_vm1, %v187_v4 }
  0xca   :  { %v181_v6 = vpop.f32.mrf.mxu0 }
  0xcb   :  { %v119_v8 = vadd.f32 %v181_v6, %v29_v5 }
  0xcc   :  { %v102_v9 = vpop.f32.mrf.mxu0 }
  0xcd   :  { %124 = vst.msk [vmem:[#allocation2 + $0x10] sm:$0xff] %vm22_vm0, %v119_v8  ;;  %v117_v11 = vadd.f32 %v102_v9, %v27_v7 }
  0xce   :  { %v182_v12 = vpop.f32.mrf.mxu0 }
  0xcf   :  { %122 = vst.msk [vmem:[#allocation2] sm:$0xff] %vm22_vm0, %v117_v11  ;;  %v120_v14 = vadd.f32 %v182_v12, %v30_v10 }
  0xd0   :  { %v105_v15 = vpop.f32.mrf.mxu0 }
  0xd1   :  { %125 = vst.msk [vmem:[#allocation2 + $0x18] sm:$0xff] %vm22_vm0, %v120_v14  ;;  %v118_v16 = vadd.f32 %v105_v15, %v28_v13 }
  0xd3   :  { %123 = vst.msk [vmem:[#allocation2 + $0x8] sm:$0xff] %vm22_vm0, %v118_v16 }
  0xd4   :  { %v131_v18 = vld [vmem:[#allocation2 + $0x10] sm:$0xff] }
  0xd5   :  { %v142_v20 = vmul.f32 %v169_v17, %v131_v18 }
  0xd6   :  { %v129_v21 = vld [vmem:[#allocation2] sm:$0xff] }
  0xd7   :  { %v153_v22 = vadd.f32 %v170_v19, %v142_v20  ;;  %v140_v23 = vmul.f32 %v169_v17, %v129_v21 }
  0xd8   :  { %v132_v24 = vld [vmem:[#allocation2 + $0x18] sm:$0xff] }
  0xd9   :  { %157 = vst.msk [vmem:[%s260_s4 + $0x10] sm:$0xff] %vm22_vm0, %v153_v22  ;;  %v151_v25 = vadd.f32 %v170_v19, %v140_v23  ;;  %v143_v26 = vmul.f32 %v169_v17, %v132_v24 }
  0xda   :  { %v130_v27 = vld [vmem:[#allocation2 + $0x8] sm:$0xff] }
  0xdb   :  { %155 = vst.msk [vmem:[%s260_s4] sm:$0xff] %vm22_vm0, %v151_v25  ;;  %v154_v28 = vadd.f32 %v170_v19, %v143_v26  ;;  %v141_v29 = vmul.f32 %v169_v17, %v130_v27 }
  0xdd   :  { %158 = vst.msk [vmem:[%s260_s4 + $0x18] sm:$0xff] %vm22_vm0, %v154_v28  ;;  %v152_v30 = vadd.f32 %v170_v19, %v141_v29 }
  0xdf   :  { %156 = vst.msk [vmem:[%s260_s4 + $0x8] sm:$0xff] %vm22_vm0, %v152_v30 }

</bundles_post_ra>
